<compile_context>
chip_gen: v5e
topology: v5e:2x2
jax: 0.10.0
libtpu: 0.0.40
codegen_flags: <defaults>
</compile_context>

<pallas_src>
from functools import partial

import numpy as np

import jax
import jax.numpy as jnp
from jax import lax
from jax.experimental import pallas as pl
from jax.experimental.pallas import tpu as pltpu


def _res_layer_kernel(N, H, W, C,
                      x_ref, w_ref, ga_ref, ba_ref, gb_ref, bb_ref,
                      out_ref, pad_ref, acc_ref):
    """grid step 0 = conv_a -> BN_a -> ReLU (restaged into pad_ref for step 1)
       grid step 1 = conv_b -> BN_b -> ReLU -> + x (stored to out_ref)

    x_ref  : (N*H, W*C)      f32   input rows, lane-dense (also the residual)
    w_ref  : (3*W*C, W*C)    bf16  this step's banded per-dy conv weights
    ga/ba  : (1, C)          f32   BN affine for conv_a
    gb/bb  : (1, C)          f32   BN affine for conv_b
    out_ref: (N*H, W*C)      f32   output rows (written in step 1 only)
    pad_ref: (N*(H+2), W*C)  bf16  y-padded activation rows (shared by steps)
    acc_ref: (N*H, W*C)      f32   raw conv output staging (two-pass BN)
    """
    WC = W * C
    eps = 1e-5
    inv_m = 1.0 / float(N * H * W)
    phase = pl.program_id(0)

    # Step 0 only: stage x into the y-padded row buffer.  Only the 2N one-row
    # borders are zeroed; x-direction SAME padding is folded into w_ref.
    @pl.when(phase == 0)
    def _stage_input():
        zrow = jnp.zeros((1, WC), jnp.bfloat16)
        for n in range(N):
            base = n * (H + 2)
            pad_ref[base:base + 1, :] = zrow
            pad_ref[base + H + 1:base + H + 2, :] = zrow
            pad_ref[base + 1:base + 1 + H, :] = (
                x_ref[n * H:(n + 1) * H, :].astype(jnp.bfloat16))

    # Convolution: per image, three banded matmuls (one per vertical tap),
    # bf16 operands, f32 accumulation.  The raw conv output is staged in
    # acc_ref and per-(x, channel) sums / sum-of-squares are accumulated in f32
    # for single-pass BN statistics, so no (N*H, W*C) value stays live in vregs.
    s_xc = jnp.zeros((1, WC), jnp.float32)
    ss_xc = jnp.zeros((1, WC), jnp.float32)
    for n in range(N):
        base = n * (H + 2)
        acc = jnp.dot(pad_ref[base:base + H, :], w_ref[0:WC, :],
                      preferred_element_type=jnp.float32)
        acc = acc + jnp.dot(pad_ref[base + 1:base + 1 + H, :],
                            w_ref[WC:2 * WC, :],
                            preferred_element_type=jnp.float32)
        acc = acc + jnp.dot(pad_ref[base + 2:base + 2 + H, :],
                            w_ref[2 * WC:3 * WC, :],
                            preferred_element_type=jnp.float32)
        s_xc = s_xc + jnp.sum(acc, axis=0, keepdims=True)
        ss_xc = ss_xc + jnp.sum(acc * acc, axis=0, keepdims=True)
        acc_ref[n * H:(n + 1) * H, :] = acc

    # Fold the (x, channel) lane statistics down to per-channel (training-mode,
    # biased variance), then tile scale/shift back to W*C lanes so the apply is
    # a fully lane-dense FMA.
    s_c = jnp.zeros((1, C), jnp.float32)
    ss_c = jnp.zeros((1, C), jnp.float32)
    for xw in range(W):
        s_c = s_c + s_xc[:, xw * C:(xw + 1) * C]
        ss_c = ss_c + ss_xc[:, xw * C:(xw + 1) * C]
    mean = s_c * inv_m
    var = ss_c * inv_m - mean * mean

    def scale_shift(gamma, beta):
        scale_c = gamma * lax.rsqrt(var + eps)
        shift_c = beta - mean * scale_c
        return (jnp.concatenate([scale_c] * W, axis=1),
                jnp.concatenate([shift_c] * W, axis=1))

    # Step 0: BN_a + ReLU, restage (bf16) as conv_b's padded input.  The border
    # rows of pad_ref are untouched, so they are still zero for step 1.
    @pl.when(phase == 0)
    def _finish_block_a():
        scale, shift = scale_shift(ga_ref[...], ba_ref[...])
        for n in range(N):
            y = jnp.maximum(acc_ref[n * H:(n + 1) * H, :] * scale + shift, 0.0)
            pad_ref[n * (H + 2) + 1:n * (H + 2) + 1 + H, :] = (
                y.astype(jnp.bfloat16))

    # Step 1: BN_b + ReLU + residual add, one lane-dense store of the output.
    @pl.when(phase == 1)
    def _finish_block_b():
        scale, shift = scale_shift(gb_ref[...], bb_ref[...])
        y = jnp.maximum(acc_ref[...] * scale + shift, 0.0) + x_ref[...]
        out_ref[...] = y.astype(out_ref.dtype)


def _band_selector(W):
    """sel[dx, k, x] = 1 iff input column k feeds output column x at tap dx."""
    sel = np.zeros((3, W, W), np.float32)
    for dx in range(3):
        for x in range(W):
            k = x + dx - 1
            if 0 <= k < W:
                sel[dx, k, x] = 1.0
    return jnp.asarray(sel)


def _banded_weights(w_hwio, W):
    """HWIO (3, 3, Cin, Cout) -> (3*W*Cin, W*Cout) bf16.

    For each vertical tap dy, rows [dy*W*Cin, (dy+1)*W*Cin) hold the banded
    block-Toeplitz matrix B with B[k*Cin+ci, x*Cout+co] = w[dy, k-x+1, ci, co]
    (zero outside the 3-block band), so `padded_rows @ B` performs all
    horizontal taps and the x-direction SAME padding in one MXU pass.
    """
    _, _, Cin, Cout = w_hwio.shape
    sel = _band_selector(W)
    band = jnp.einsum("yxio,xkq->ykiqo", w_hwio.astype(jnp.float32), sel)
    return band.reshape(3 * W * Cin, W * Cout).astype(jnp.bfloat16)


def res_layer_forward(x_nhwc, params):
    """y = relu(bn_b(conv_b(relu(bn_a(conv_a(x)))))) + x  (NHWC, training-mode BN)."""
    N, H, W, C = x_nhwc.shape
    WC = W * C
    # Lane-dense layout: rows = (n, y) image rows, lanes = (x, c).  Fully
    # lane-dense when W*C is a multiple of 128 (true at these shapes).
    x2d = x_nhwc.reshape(N * H, WC)

    # Host-side weight prep (in practice done once per weight set): fold the
    # horizontal taps + x padding into per-dy banded matrices; conv_a stacked
    # above conv_b so the grid's phase index selects the right block and the
    # pipeline prefetches conv_b's weights while conv_a computes.
    wband = jnp.concatenate([_banded_weights(params["wa"], W),
                             _banded_weights(params["wb"], W)], axis=0)
    ga = params["ga"].reshape(1, C).astype(jnp.float32)
    ba = params["ba"].reshape(1, C).astype(jnp.float32)
    gb = params["gb"].reshape(1, C).astype(jnp.float32)
    bb = params["bb"].reshape(1, C).astype(jnp.float32)

    kernel = partial(_res_layer_kernel, N, H, W, C)
    out2d = pl.pallas_call(
        kernel,
        out_shape=jax.ShapeDtypeStruct((N * H, WC), x_nhwc.dtype),
        grid=(2,),                                        # phase 0: conv_a, 1: conv_b
        in_specs=[
            pl.BlockSpec((N * H, WC), lambda i: (0, 0)),      # x (stays resident)
            pl.BlockSpec((3 * WC, WC), lambda i: (i, 0)),     # this phase's weights
            pl.BlockSpec((1, C), lambda i: (0, 0)),
            pl.BlockSpec((1, C), lambda i: (0, 0)),
            pl.BlockSpec((1, C), lambda i: (0, 0)),
            pl.BlockSpec((1, C), lambda i: (0, 0)),
        ],
        out_specs=pl.BlockSpec((N * H, WC), lambda i: (0, 0)),
        scratch_shapes=[
            pltpu.VMEM((N * (H + 2), WC), jnp.bfloat16),   # y-padded activations (bf16)
            pltpu.VMEM((N * H, WC), jnp.float32),          # raw conv output staging
        ],
        compiler_params=pltpu.CompilerParams(
            dimension_semantics=("arbitrary",)),
    )(x2d, wband, ga, ba, gb, bb)

    return out2d.reshape(N, H, W, C)


def ref_forward(x_nhwc, params):
    """Pure-JAX reference (lax.conv, f32 HIGHEST) for correctness checking."""
    def block(x, w, g, b, res):
        y = lax.conv_general_dilated(
            x, w, (1, 1), "SAME",
            dimension_numbers=("NHWC", "HWIO", "NHWC"),
            precision=lax.Precision.HIGHEST)
        mean = jnp.mean(y, axis=(0, 1, 2), keepdims=True)
        var = jnp.mean((y - mean) ** 2, axis=(0, 1, 2), keepdims=True)
        y = (y - mean) * (g / jnp.sqrt(var + 1e-5)) + b
        return jnp.maximum(y, 0.0) + res

    y = block(x_nhwc, params["wa"], params["ga"], params["ba"], 0.0)
    y = block(y, params["wb"], params["gb"], params["bb"], x_nhwc)
    return y


def init_params(key, n_features):
    """Deterministic init mirroring PyTorch defaults:
    Conv2d kaiming_uniform(a=sqrt(5)) -> U(-1/sqrt(fan_in), 1/sqrt(fan_in)), no bias;
    BatchNorm2d weight=1, bias=0."""
    C = n_features
    ka, kb = jax.random.split(key)
    fan_in = C * 3 * 3
    bound = 1.0 / (fan_in ** 0.5)
    wa_oihw = jax.random.uniform(ka, (C, C, 3, 3), jnp.float32, -bound, bound)
    wb_oihw = jax.random.uniform(kb, (C, C, 3, 3), jnp.float32, -bound, bound)
    return {
        "wa": jnp.transpose(wa_oihw, (2, 3, 1, 0)),   # HWIO
        "wb": jnp.transpose(wb_oihw, (2, 3, 1, 0)),
        "ga": jnp.ones((C,), jnp.float32),
        "ba": jnp.zeros((C,), jnp.float32),
        "gb": jnp.ones((C,), jnp.float32),
        "bb": jnp.zeros((C,), jnp.float32),
    }


if __name__ == "__main__":
    key = jax.random.PRNGKey(0)
    kx, kp = jax.random.split(key)

    N, C, H, W = 2, 32, 16, 16                    # batch=2, n_features=32, 16x16
    x_nchw = jax.random.normal(kx, (N, C, H, W), jnp.float32)   # PyTorch-style NCHW
    x_nhwc = jnp.transpose(x_nchw, (0, 2, 3, 1))                # kernel layout

    params = init_params(kp, C)

    fwd = jax.jit(res_layer_forward)
    out = jax.block_until_ready(fwd(x_nhwc, params))

    ref = ref_forward(x_nhwc, params)
    assert out.shape == (N, H, W, C)
    # bf16-fed MXU (f32 accumulation) vs f32 HIGHEST reference.
    err = float(jnp.max(jnp.abs(out - ref)))
    assert jnp.allclose(out, ref, atol=2e-2, rtol=2e-2), f"max abs err = {err}"

    print("KERNEL_OK")
</pallas_src>

<mosaic_0001>
module attributes {stable_mosaic.version = 11 : i64} {
  func.func @_res_layer_kernel(%arg0: i32, %arg1: memref<32x512xf32, #tpu.memory_space<vmem>>, %arg2: memref<1536x512xbf16, #tpu.memory_space<vmem>>, %arg3: memref<1x32xf32, #tpu.memory_space<vmem>>, %arg4: memref<1x32xf32, #tpu.memory_space<vmem>>, %arg5: memref<1x32xf32, #tpu.memory_space<vmem>>, %arg6: memref<1x32xf32, #tpu.memory_space<vmem>>, %arg7: memref<32x512xf32, #tpu.memory_space<vmem>>, %arg8: memref<36x512xbf16, #tpu.memory_space<vmem>>, %arg9: memref<32x512xf32, #tpu.memory_space<vmem>>) attributes {dimension_semantics = [#tpu.dimension_semantics<arbitrary>], iteration_bounds = array<i64: 2>, scalar_prefetch = 0 : i64, scratch_operands = 2 : i64, tpu.core_type = #tpu.core_type<tc>, window_params = [{pipeline_mode = #tpu.pipeline_mode<synchronous>, transform_indices = @transform_0, window_bounds = array<i64: 32, 512>}, {transform_indices = @transform_1, window_bounds = array<i64: 1536, 512>}, {pipeline_mode = #tpu.pipeline_mode<synchronous>, transform_indices = @transform_2, window_bounds = array<i64: 1, 32>}, {pipeline_mode = #tpu.pipeline_mode<synchronous>, transform_indices = @transform_3, window_bounds = array<i64: 1, 32>}, {pipeline_mode = #tpu.pipeline_mode<synchronous>, transform_indices = @transform_4, window_bounds = array<i64: 1, 32>}, {pipeline_mode = #tpu.pipeline_mode<synchronous>, transform_indices = @transform_5, window_bounds = array<i64: 1, 32>}, {pipeline_mode = #tpu.pipeline_mode<synchronous>, transform_indices = @transform_6, window_bounds = array<i64: 32, 512>}]} {
    %c0_i32 = arith.constant 0 : i32
    %0 = arith.cmpi eq, %arg0, %c0_i32 : i32
    %1 = arith.extui %0 : i1 to i32
    %c0_i32_0 = arith.constant 0 : i32
    %2 = arith.cmpi ne, %1, %c0_i32_0 : i32
    scf.if %2 {
      %cst_38 = arith.constant 0.000000e+00 : bf16
      %121 = vector.broadcast %cst_38 : bf16 to vector<1x512xbf16>
      %c0_39 = arith.constant 0 : index
      %c0_40 = arith.constant 0 : index
      %122 = vector.load %arg8[%c0_39, %c0_40] : memref<36x512xbf16, #tpu.memory_space<vmem>>, vector<1x512xbf16>
      tpu.vector_store %arg8[%c0_39, %c0_40], %121 {strides = array<i32>} : memref<36x512xbf16, #tpu.memory_space<vmem>>, vector<1x512xbf16>,
      %c17 = arith.constant 17 : index
      %c0_41 = arith.constant 0 : index
      %123 = vector.load %arg8[%c17, %c0_41] : memref<36x512xbf16, #tpu.memory_space<vmem>>, vector<1x512xbf16>
      tpu.vector_store %arg8[%c17, %c0_41], %121 {strides = array<i32>} : memref<36x512xbf16, #tpu.memory_space<vmem>>, vector<1x512xbf16>,
      %c0_42 = arith.constant 0 : index
      %c0_43 = arith.constant 0 : index
      %124 = vector.load %arg1[%c0_42, %c0_43] : memref<32x512xf32, #tpu.memory_space<vmem>>, vector<16x512xf32>
      %125 = arith.truncf %124 : vector<16x512xf32> to vector<16x512xbf16>
      %c1_44 = arith.constant 1 : index
      %c0_45 = arith.constant 0 : index
      %126 = vector.load %arg8[%c1_44, %c0_45] : memref<36x512xbf16, #tpu.memory_space<vmem>>, vector<16x512xbf16>
      tpu.vector_store %arg8[%c1_44, %c0_45], %125 {strides = array<i32>} : memref<36x512xbf16, #tpu.memory_space<vmem>>, vector<16x512xbf16>,
      %c18_46 = arith.constant 18 : index
      %c0_47 = arith.constant 0 : index
      %127 = vector.load %arg8[%c18_46, %c0_47] : memref<36x512xbf16, #tpu.memory_space<vmem>>, vector<1x512xbf16>
      tpu.vector_store %arg8[%c18_46, %c0_47], %121 {strides = array<i32>} : memref<36x512xbf16, #tpu.memory_space<vmem>>, vector<1x512xbf16>,
      %c35 = arith.constant 35 : index
      %c0_48 = arith.constant 0 : index
      %128 = vector.load %arg8[%c35, %c0_48] : memref<36x512xbf16, #tpu.memory_space<vmem>>, vector<1x512xbf16>
      tpu.vector_store %arg8[%c35, %c0_48], %121 {strides = array<i32>} : memref<36x512xbf16, #tpu.memory_space<vmem>>, vector<1x512xbf16>,
      %c16_49 = arith.constant 16 : index
      %c0_50 = arith.constant 0 : index
      %129 = vector.load %arg1[%c16_49, %c0_50] : memref<32x512xf32, #tpu.memory_space<vmem>>, vector<16x512xf32>
      %130 = arith.truncf %129 : vector<16x512xf32> to vector<16x512xbf16>
      %c19_51 = arith.constant 19 : index
      %c0_52 = arith.constant 0 : index
      %131 = vector.load %arg8[%c19_51, %c0_52] : memref<36x512xbf16, #tpu.memory_space<vmem>>, vector<16x512xbf16>
      tpu.vector_store %arg8[%c19_51, %c0_52], %130 {strides = array<i32>} : memref<36x512xbf16, #tpu.memory_space<vmem>>, vector<16x512xbf16>,
    } else {
    }
    %cst = arith.constant 0.000000e+00 : f32
    %3 = vector.broadcast %cst : f32 to vector<1x512xf32>
    %cst_1 = arith.constant 0.000000e+00 : f32
    %4 = vector.broadcast %cst_1 : f32 to vector<1x512xf32>
    %c0 = arith.constant 0 : index
    %c0_2 = arith.constant 0 : index
    %5 = vector.load %arg8[%c0, %c0_2] : memref<36x512xbf16, #tpu.memory_space<vmem>>, vector<16x512xbf16>
    %c0_3 = arith.constant 0 : index
    %c0_4 = arith.constant 0 : index
    %6 = vector.load %arg2[%c0_3, %c0_4] : memref<1536x512xbf16, #tpu.memory_space<vmem>>, vector<512x512xbf16>
    %cst_5 = arith.constant dense<0.000000e+00> : vector<16x512xf32>
    %7 = tpu.matmul %5, %6, %cst_5 {dimension_numbers = #tpu.dot_dimension_numbers<[1], [0], [0], [1], [0, 0, 1, 1], [], []>} : vector<16x512xbf16>, vector<512x512xbf16>, vector<16x512xf32> -> vector<16x512xf32>
    %c1 = arith.constant 1 : index
    %c0_6 = arith.constant 0 : index
    %8 = vector.load %arg8[%c1, %c0_6] : memref<36x512xbf16, #tpu.memory_space<vmem>>, vector<16x512xbf16>
    %c512 = arith.constant 512 : index
    %c0_7 = arith.constant 0 : index
    %9 = vector.load %arg2[%c512, %c0_7] : memref<1536x512xbf16, #tpu.memory_space<vmem>>, vector<512x512xbf16>
    %cst_8 = arith.constant dense<0.000000e+00> : vector<16x512xf32>
    %10 = tpu.matmul %8, %9, %cst_8 {dimension_numbers = #tpu.dot_dimension_numbers<[1], [0], [0], [1], [0, 0, 1, 1], [], []>} : vector<16x512xbf16>, vector<512x512xbf16>, vector<16x512xf32> -> vector<16x512xf32>
    %11 = arith.addf %7, %10 : vector<16x512xf32>
    %c2 = arith.constant 2 : index
    %c0_9 = arith.constant 0 : index
    %12 = vector.load %arg8[%c2, %c0_9] : memref<36x512xbf16, #tpu.memory_space<vmem>>, vector<16x512xbf16>
    %c1024 = arith.constant 1024 : index
    %c0_10 = arith.constant 0 : index
    %13 = vector.load %arg2[%c1024, %c0_10] : memref<1536x512xbf16, #tpu.memory_space<vmem>>, vector<512x512xbf16>
    %cst_11 = arith.constant dense<0.000000e+00> : vector<16x512xf32>
    %14 = tpu.matmul %12, %13, %cst_11 {dimension_numbers = #tpu.dot_dimension_numbers<[1], [0], [0], [1], [0, 0, 1, 1], [], []>} : vector<16x512xbf16>, vector<512x512xbf16>, vector<16x512xf32> -> vector<16x512xf32>
    %15 = arith.addf %11, %14 : vector<16x512xf32>
    %cst_12 = arith.constant dense<0.000000e+00> : vector<512xf32>
    %16 = vector.multi_reduction <add>, %15, %cst_12 [0] : vector<16x512xf32> to vector<512xf32>
    %17 = vector.shape_cast %16 : vector<512xf32> to vector<1x512xf32>
    %18 = arith.addf %3, %17 : vector<1x512xf32>
    %19 = arith.mulf %15, %15 : vector<16x512xf32>
    %cst_13 = arith.constant dense<0.000000e+00> : vector<512xf32>
    %20 = vector.multi_reduction <add>, %19, %cst_13 [0] : vector<16x512xf32> to vector<512xf32>
    %21 = vector.shape_cast %20 : vector<512xf32> to vector<1x512xf32>
    %22 = arith.addf %4, %21 : vector<1x512xf32>
    %c0_14 = arith.constant 0 : index
    %c0_15 = arith.constant 0 : index
    %23 = vector.load %arg9[%c0_14, %c0_15] : memref<32x512xf32, #tpu.memory_space<vmem>>, vector<16x512xf32>
    tpu.vector_store %arg9[%c0_14, %c0_15], %15 {strides = array<i32>} : memref<32x512xf32, #tpu.memory_space<vmem>>, vector<16x512xf32>,
    %c18 = arith.constant 18 : index
    %c0_16 = arith.constant 0 : index
    %24 = vector.load %arg8[%c18, %c0_16] : memref<36x512xbf16, #tpu.memory_space<vmem>>, vector<16x512xbf16>
    %c0_17 = arith.constant 0 : index
    %c0_18 = arith.constant 0 : index
    %25 = vector.load %arg2[%c0_17, %c0_18] : memref<1536x512xbf16, #tpu.memory_space<vmem>>, vector<512x512xbf16>
    %cst_19 = arith.constant dense<0.000000e+00> : vector<16x512xf32>
    %26 = tpu.matmul %24, %25, %cst_19 {dimension_numbers = #tpu.dot_dimension_numbers<[1], [0], [0], [1], [0, 0, 1, 1], [], []>} : vector<16x512xbf16>, vector<512x512xbf16>, vector<16x512xf32> -> vector<16x512xf32>
    %c19 = arith.constant 19 : index
    %c0_20 = arith.constant 0 : index
    %27 = vector.load %arg8[%c19, %c0_20] : memref<36x512xbf16, #tpu.memory_space<vmem>>, vector<16x512xbf16>
    %c512_21 = arith.constant 512 : index
    %c0_22 = arith.constant 0 : index
    %28 = vector.load %arg2[%c512_21, %c0_22] : memref<1536x512xbf16, #tpu.memory_space<vmem>>, vector<512x512xbf16>
    %cst_23 = arith.constant dense<0.000000e+00> : vector<16x512xf32>
    %29 = tpu.matmul %27, %28, %cst_23 {dimension_numbers = #tpu.dot_dimension_numbers<[1], [0], [0], [1], [0, 0, 1, 1], [], []>} : vector<16x512xbf16>, vector<512x512xbf16>, vector<16x512xf32> -> vector<16x512xf32>
    %30 = arith.addf %26, %29 : vector<16x512xf32>
    %c20 = arith.constant 20 : index
    %c0_24 = arith.constant 0 : index
    %31 = vector.load %arg8[%c20, %c0_24] : memref<36x512xbf16, #tpu.memory_space<vmem>>, vector<16x512xbf16>
    %c1024_25 = arith.constant 1024 : index
    %c0_26 = arith.constant 0 : index
    %32 = vector.load %arg2[%c1024_25, %c0_26] : memref<1536x512xbf16, #tpu.memory_space<vmem>>, vector<512x512xbf16>
    %cst_27 = arith.constant dense<0.000000e+00> : vector<16x512xf32>
    %33 = tpu.matmul %31, %32, %cst_27 {dimension_numbers = #tpu.dot_dimension_numbers<[1], [0], [0], [1], [0, 0, 1, 1], [], []>} : vector<16x512xbf16>, vector<512x512xbf16>, vector<16x512xf32> -> vector<16x512xf32>
    %34 = arith.addf %30, %33 : vector<16x512xf32>
    %cst_28 = arith.constant dense<0.000000e+00> : vector<512xf32>
    %35 = vector.multi_reduction <add>, %34, %cst_28 [0] : vector<16x512xf32> to vector<512xf32>
    %36 = vector.shape_cast %35 : vector<512xf32> to vector<1x512xf32>
    %37 = arith.addf %18, %36 : vector<1x512xf32>
    %38 = arith.mulf %34, %34 : vector<16x512xf32>
    %cst_29 = arith.constant dense<0.000000e+00> : vector<512xf32>
    %39 = vector.multi_reduction <add>, %38, %cst_29 [0] : vector<16x512xf32> to vector<512xf32>
    %40 = vector.shape_cast %39 : vector<512xf32> to vector<1x512xf32>
    %41 = arith.addf %22, %40 : vector<1x512xf32>
    %c16 = arith.constant 16 : index
    %c0_30 = arith.constant 0 : index
    %42 = vector.load %arg9[%c16, %c0_30] : memref<32x512xf32, #tpu.memory_space<vmem>>, vector<16x512xf32>
    tpu.vector_store %arg9[%c16, %c0_30], %34 {strides = array<i32>} : memref<32x512xf32, #tpu.memory_space<vmem>>, vector<16x512xf32>,
    %cst_31 = arith.constant 0.000000e+00 : f32
    %43 = vector.broadcast %cst_31 : f32 to vector<1x32xf32>
    %cst_32 = arith.constant 0.000000e+00 : f32
    %44 = vector.broadcast %cst_32 : f32 to vector<1x32xf32>
    %45 = vector.extract_strided_slice %37 {offsets = [0, 0], sizes = [1, 32], strides = [1, 1]} : vector<1x512xf32> to vector<1x32xf32>
    %46 = arith.addf %43, %45 : vector<1x32xf32>
    %47 = vector.extract_strided_slice %41 {offsets = [0, 0], sizes = [1, 32], strides = [1, 1]} : vector<1x512xf32> to vector<1x32xf32>
    %48 = arith.addf %44, %47 : vector<1x32xf32>
    %49 = vector.extract_strided_slice %37 {offsets = [0, 32], sizes = [1, 32], strides = [1, 1]} : vector<1x512xf32> to vector<1x32xf32>
    %50 = arith.addf %46, %49 : vector<1x32xf32>
    %51 = vector.extract_strided_slice %41 {offsets = [0, 32], sizes = [1, 32], strides = [1, 1]} : vector<1x512xf32> to vector<1x32xf32>
    %52 = arith.addf %48, %51 : vector<1x32xf32>
    %53 = vector.extract_strided_slice %37 {offsets = [0, 64], sizes = [1, 32], strides = [1, 1]} : vector<1x512xf32> to vector<1x32xf32>
    %54 = arith.addf %50, %53 : vector<1x32xf32>
    %55 = vector.extract_strided_slice %41 {offsets = [0, 64], sizes = [1, 32], strides = [1, 1]} : vector<1x512xf32> to vector<1x32xf32>
    %56 = arith.addf %52, %55 : vector<1x32xf32>
    %57 = vector.extract_strided_slice %37 {offsets = [0, 96], sizes = [1, 32], strides = [1, 1]} : vector<1x512xf32> to vector<1x32xf32>
    %58 = arith.addf %54, %57 : vector<1x32xf32>
    %59 = vector.extract_strided_slice %41 {offsets = [0, 96], sizes = [1, 32], strides = [1, 1]} : vector<1x512xf32> to vector<1x32xf32>
    %60 = arith.addf %56, %59 : vector<1x32xf32>
    %61 = vector.extract_strided_slice %37 {offsets = [0, 128], sizes = [1, 32], strides = [1, 1]} : vector<1x512xf32> to vector<1x32xf32>
    %62 = arith.addf %58, %61 : vector<1x32xf32>
    %63 = vector.extract_strided_slice %41 {offsets = [0, 128], sizes = [1, 32], strides = [1, 1]} : vector<1x512xf32> to vector<1x32xf32>
    %64 = arith.addf %60, %63 : vector<1x32xf32>
    %65 = vector.extract_strided_slice %37 {offsets = [0, 160], sizes = [1, 32], strides = [1, 1]} : vector<1x512xf32> to vector<1x32xf32>
    %66 = arith.addf %62, %65 : vector<1x32xf32>
    %67 = vector.extract_strided_slice %41 {offsets = [0, 160], sizes = [1, 32], strides = [1, 1]} : vector<1x512xf32> to vector<1x32xf32>
    %68 = arith.addf %64, %67 : vector<1x32xf32>
    %69 = vector.extract_strided_slice %37 {offsets = [0, 192], sizes = [1, 32], strides = [1, 1]} : vector<1x512xf32> to vector<1x32xf32>
    %70 = arith.addf %66, %69 : vector<1x32xf32>
    %71 = vector.extract_strided_slice %41 {offsets = [0, 192], sizes = [1, 32], strides = [1, 1]} : vector<1x512xf32> to vector<1x32xf32>
    %72 = arith.addf %68, %71 : vector<1x32xf32>
    %73 = vector.extract_strided_slice %37 {offsets = [0, 224], sizes = [1, 32], strides = [1, 1]} : vector<1x512xf32> to vector<1x32xf32>
    %74 = arith.addf %70, %73 : vector<1x32xf32>
    %75 = vector.extract_strided_slice %41 {offsets = [0, 224], sizes = [1, 32], strides = [1, 1]} : vector<1x512xf32> to vector<1x32xf32>
    %76 = arith.addf %72, %75 : vector<1x32xf32>
    %77 = vector.extract_strided_slice %37 {offsets = [0, 256], sizes = [1, 32], strides = [1, 1]} : vector<1x512xf32> to vector<1x32xf32>
    %78 = arith.addf %74, %77 : vector<1x32xf32>
    %79 = vector.extract_strided_slice %41 {offsets = [0, 256], sizes = [1, 32], strides = [1, 1]} : vector<1x512xf32> to vector<1x32xf32>
    %80 = arith.addf %76, %79 : vector<1x32xf32>
    %81 = vector.extract_strided_slice %37 {offsets = [0, 288], sizes = [1, 32], strides = [1, 1]} : vector<1x512xf32> to vector<1x32xf32>
    %82 = arith.addf %78, %81 : vector<1x32xf32>
    %83 = vector.extract_strided_slice %41 {offsets = [0, 288], sizes = [1, 32], strides = [1, 1]} : vector<1x512xf32> to vector<1x32xf32>
    %84 = arith.addf %80, %83 : vector<1x32xf32>
    %85 = vector.extract_strided_slice %37 {offsets = [0, 320], sizes = [1, 32], strides = [1, 1]} : vector<1x512xf32> to vector<1x32xf32>
    %86 = arith.addf %82, %85 : vector<1x32xf32>
    %87 = vector.extract_strided_slice %41 {offsets = [0, 320], sizes = [1, 32], strides = [1, 1]} : vector<1x512xf32> to vector<1x32xf32>
    %88 = arith.addf %84, %87 : vector<1x32xf32>
    %89 = vector.extract_strided_slice %37 {offsets = [0, 352], sizes = [1, 32], strides = [1, 1]} : vector<1x512xf32> to vector<1x32xf32>
    %90 = arith.addf %86, %89 : vector<1x32xf32>
    %91 = vector.extract_strided_slice %41 {offsets = [0, 352], sizes = [1, 32], strides = [1, 1]} : vector<1x512xf32> to vector<1x32xf32>
    %92 = arith.addf %88, %91 : vector<1x32xf32>
    %93 = vector.extract_strided_slice %37 {offsets = [0, 384], sizes = [1, 32], strides = [1, 1]} : vector<1x512xf32> to vector<1x32xf32>
    %94 = arith.addf %90, %93 : vector<1x32xf32>
    %95 = vector.extract_strided_slice %41 {offsets = [0, 384], sizes = [1, 32], strides = [1, 1]} : vector<1x512xf32> to vector<1x32xf32>
    %96 = arith.addf %92, %95 : vector<1x32xf32>
    %97 = vector.extract_strided_slice %37 {offsets = [0, 416], sizes = [1, 32], strides = [1, 1]} : vector<1x512xf32> to vector<1x32xf32>
    %98 = arith.addf %94, %97 : vector<1x32xf32>
    %99 = vector.extract_strided_slice %41 {offsets = [0, 416], sizes = [1, 32], strides = [1, 1]} : vector<1x512xf32> to vector<1x32xf32>
    %100 = arith.addf %96, %99 : vector<1x32xf32>
    %101 = vector.extract_strided_slice %37 {offsets = [0, 448], sizes = [1, 32], strides = [1, 1]} : vector<1x512xf32> to vector<1x32xf32>
    %102 = arith.addf %98, %101 : vector<1x32xf32>
    %103 = vector.extract_strided_slice %41 {offsets = [0, 448], sizes = [1, 32], strides = [1, 1]} : vector<1x512xf32> to vector<1x32xf32>
    %104 = arith.addf %100, %103 : vector<1x32xf32>
    %105 = vector.extract_strided_slice %37 {offsets = [0, 480], sizes = [1, 32], strides = [1, 1]} : vector<1x512xf32> to vector<1x32xf32>
    %106 = arith.addf %102, %105 : vector<1x32xf32>
    %107 = vector.extract_strided_slice %41 {offsets = [0, 480], sizes = [1, 32], strides = [1, 1]} : vector<1x512xf32> to vector<1x32xf32>
    %108 = arith.addf %104, %107 : vector<1x32xf32>
    %cst_33 = arith.constant 0.001953125 : f32
    %109 = vector.broadcast %cst_33 : f32 to vector<1x32xf32>
    %110 = arith.mulf %106, %109 : vector<1x32xf32>
    %cst_34 = arith.constant 0.001953125 : f32
    %111 = vector.broadcast %cst_34 : f32 to vector<1x32xf32>
    %112 = arith.mulf %108, %111 : vector<1x32xf32>
    %113 = arith.mulf %110, %110 : vector<1x32xf32>
    %114 = arith.subf %112, %113 : vector<1x32xf32>
    %c0_i32_35 = arith.constant 0 : i32
    %115 = arith.cmpi eq, %arg0, %c0_i32_35 : i32
    %116 = arith.extui %115 : i1 to i32
    %c0_i32_36 = arith.constant 0 : i32
    %117 = arith.cmpi ne, %116, %c0_i32_36 : i32
    scf.if %117 {
      %c0_38 = arith.constant 0 : index
      %c0_39 = arith.constant 0 : index
      %121 = vector.load %arg3[%c0_38, %c0_39] : memref<1x32xf32, #tpu.memory_space<vmem>>, vector<1x32xf32>
      %c0_40 = arith.constant 0 : index
      %c0_41 = arith.constant 0 : index
      %122 = vector.load %arg4[%c0_40, %c0_41] : memref<1x32xf32, #tpu.memory_space<vmem>>, vector<1x32xf32>
      %cst_42 = arith.constant 9.99999974E-6 : f32
      %123 = vector.broadcast %cst_42 : f32 to vector<1x32xf32>
      %124 = arith.addf %114, %123 : vector<1x32xf32>
      %125 = math.rsqrt %124 : vector<1x32xf32>
      %126 = arith.mulf %121, %125 : vector<1x32xf32>
      %127 = arith.mulf %110, %126 : vector<1x32xf32>
      %128 = arith.subf %122, %127 : vector<1x32xf32>
      %129 = tpu.concatenate %126, %126, %126, %126, %126, %126, %126, %126, %126, %126, %126, %126, %126, %126, %126, %126 in 1 : vector<1x32xf32>, vector<1x32xf32>, vector<1x32xf32>, vector<1x32xf32>, vector<1x32xf32>, vector<1x32xf32>, vector<1x32xf32>, vector<1x32xf32>, vector<1x32xf32>, vector<1x32xf32>, vector<1x32xf32>, vector<1x32xf32>, vector<1x32xf32>, vector<1x32xf32>, vector<1x32xf32>, vector<1x32xf32> -> vector<1x512xf32>
      %130 = tpu.concatenate %128, %128, %128, %128, %128, %128, %128, %128, %128, %128, %128, %128, %128, %128, %128, %128 in 1 : vector<1x32xf32>, vector<1x32xf32>, vector<1x32xf32>, vector<1x32xf32>, vector<1x32xf32>, vector<1x32xf32>, vector<1x32xf32>, vector<1x32xf32>, vector<1x32xf32>, vector<1x32xf32>, vector<1x32xf32>, vector<1x32xf32>, vector<1x32xf32>, vector<1x32xf32>, vector<1x32xf32>, vector<1x32xf32> -> vector<1x512xf32>
      %c0_43 = arith.constant 0 : index
      %c0_44 = arith.constant 0 : index
      %131 = vector.load %arg9[%c0_43, %c0_44] : memref<32x512xf32, #tpu.memory_space<vmem>>, vector<16x512xf32>
      %132 = vector.broadcast %129 : vector<1x512xf32> to vector<16x512xf32>
      %133 = arith.mulf %131, %132 : vector<16x512xf32>
      %134 = vector.broadcast %130 : vector<1x512xf32> to vector<16x512xf32>
      %135 = arith.addf %133, %134 : vector<16x512xf32>
      %cst_45 = arith.constant 0.000000e+00 : f32
      %136 = vector.broadcast %cst_45 : f32 to vector<16x512xf32>
      %137 = arith.maximumf %135, %136 : vector<16x512xf32>
      %138 = arith.truncf %137 : vector<16x512xf32> to vector<16x512xbf16>
      %c1_46 = arith.constant 1 : index
      %c0_47 = arith.constant 0 : index
      %139 = vector.load %arg8[%c1_46, %c0_47] : memref<36x512xbf16, #tpu.memory_space<vmem>>, vector<16x512xbf16>
      tpu.vector_store %arg8[%c1_46, %c0_47], %138 {strides = array<i32>} : memref<36x512xbf16, #tpu.memory_space<vmem>>, vector<16x512xbf16>,
      %c16_48 = arith.constant 16 : index
      %c0_49 = arith.constant 0 : index
      %140 = vector.load %arg9[%c16_48, %c0_49] : memref<32x512xf32, #tpu.memory_space<vmem>>, vector<16x512xf32>
      %141 = vector.broadcast %129 : vector<1x512xf32> to vector<16x512xf32>
      %142 = arith.mulf %140, %141 : vector<16x512xf32>
      %143 = vector.broadcast %130 : vector<1x512xf32> to vector<16x512xf32>
      %144 = arith.addf %142, %143 : vector<16x512xf32>
      %cst_50 = arith.constant 0.000000e+00 : f32
      %145 = vector.broadcast %cst_50 : f32 to vector<16x512xf32>
      %146 = arith.maximumf %144, %145 : vector<16x512xf32>
      %147 = arith.truncf %146 : vector<16x512xf32> to vector<16x512xbf16>
      %c19_51 = arith.constant 19 : index
      %c0_52 = arith.constant 0 : index
      %148 = vector.load %arg8[%c19_51, %c0_52] : memref<36x512xbf16, #tpu.memory_space<vmem>>, vector<16x512xbf16>
      tpu.vector_store %arg8[%c19_51, %c0_52], %147 {strides = array<i32>} : memref<36x512xbf16, #tpu.memory_space<vmem>>, vector<16x512xbf16>,
    } else {
    }
    %c1_i32 = arith.constant 1 : i32
    %118 = arith.cmpi eq, %arg0, %c1_i32 : i32
    %119 = arith.extui %118 : i1 to i32
    %c0_i32_37 = arith.constant 0 : i32
    %120 = arith.cmpi ne, %119, %c0_i32_37 : i32
    scf.if %120 {
      %c0_38 = arith.constant 0 : index
      %c0_39 = arith.constant 0 : index
      %121 = vector.load %arg5[%c0_38, %c0_39] : memref<1x32xf32, #tpu.memory_space<vmem>>, vector<1x32xf32>
      %c0_40 = arith.constant 0 : index
      %c0_41 = arith.constant 0 : index
      %122 = vector.load %arg6[%c0_40, %c0_41] : memref<1x32xf32, #tpu.memory_space<vmem>>, vector<1x32xf32>
      %cst_42 = arith.constant 9.99999974E-6 : f32
      %123 = vector.broadcast %cst_42 : f32 to vector<1x32xf32>
      %124 = arith.addf %114, %123 : vector<1x32xf32>
      %125 = math.rsqrt %124 : vector<1x32xf32>
      %126 = arith.mulf %121, %125 : vector<1x32xf32>
      %127 = arith.mulf %110, %126 : vector<1x32xf32>
      %128 = arith.subf %122, %127 : vector<1x32xf32>
      %129 = tpu.concatenate %126, %126, %126, %126, %126, %126, %126, %126, %126, %126, %126, %126, %126, %126, %126, %126 in 1 : vector<1x32xf32>, vector<1x32xf32>, vector<1x32xf32>, vector<1x32xf32>, vector<1x32xf32>, vector<1x32xf32>, vector<1x32xf32>, vector<1x32xf32>, vector<1x32xf32>, vector<1x32xf32>, vector<1x32xf32>, vector<1x32xf32>, vector<1x32xf32>, vector<1x32xf32>, vector<1x32xf32>, vector<1x32xf32> -> vector<1x512xf32>
      %130 = tpu.concatenate %128, %128, %128, %128, %128, %128, %128, %128, %128, %128, %128, %128, %128, %128, %128, %128 in 1 : vector<1x32xf32>, vector<1x32xf32>, vector<1x32xf32>, vector<1x32xf32>, vector<1x32xf32>, vector<1x32xf32>, vector<1x32xf32>, vector<1x32xf32>, vector<1x32xf32>, vector<1x32xf32>, vector<1x32xf32>, vector<1x32xf32>, vector<1x32xf32>, vector<1x32xf32>, vector<1x32xf32>, vector<1x32xf32> -> vector<1x512xf32>
      %c0_43 = arith.constant 0 : index
      %c0_44 = arith.constant 0 : index
      %131 = vector.load %arg9[%c0_43, %c0_44] : memref<32x512xf32, #tpu.memory_space<vmem>>, vector<32x512xf32>
      %132 = vector.broadcast %129 : vector<1x512xf32> to vector<32x512xf32>
      %133 = arith.mulf %131, %132 : vector<32x512xf32>
      %134 = vector.broadcast %130 : vector<1x512xf32> to vector<32x512xf32>
      %135 = arith.addf %133, %134 : vector<32x512xf32>
      %cst_45 = arith.constant 0.000000e+00 : f32
      %136 = vector.broadcast %cst_45 : f32 to vector<32x512xf32>
      %137 = arith.maximumf %135, %136 : vector<32x512xf32>
      %c0_46 = arith.constant 0 : index
      %c0_47 = arith.constant 0 : index
      %138 = vector.load %arg1[%c0_46, %c0_47] : memref<32x512xf32, #tpu.memory_space<vmem>>, vector<32x512xf32>
      %139 = arith.addf %137, %138 : vector<32x512xf32>
      %c0_48 = arith.constant 0 : index
      %c0_49 = arith.constant 0 : index
      %140 = vector.load %arg7[%c0_48, %c0_49] : memref<32x512xf32, #tpu.memory_space<vmem>>, vector<32x512xf32>
      tpu.vector_store %arg7[%c0_48, %c0_49], %139 {strides = array<i32>} : memref<32x512xf32, #tpu.memory_space<vmem>>, vector<32x512xf32>,
    } else {
    }
    return
  }
  func.func @transform_0(%arg0: i32) -> (i32, i32) {
    %c0_i32 = arith.constant 0 : i32
    %c0_i32_0 = arith.constant 0 : i32
    %c0_i32_1 = arith.constant 0 : i32
    return %c0_i32, %c0_i32_0 : i32, i32
  }
  func.func @transform_1(%arg0: i32) -> (i32, i32) {
    %c0_i32 = arith.constant 0 : i32
    %c0_i32_0 = arith.constant 0 : i32
    return %arg0, %c0_i32 : i32, i32
  }
  func.func @transform_2(%arg0: i32) -> (i32, i32) {
    %c0_i32 = arith.constant 0 : i32
    %c0_i32_0 = arith.constant 0 : i32
    %c0_i32_1 = arith.constant 0 : i32
    return %c0_i32, %c0_i32_0 : i32, i32
  }
  func.func @transform_3(%arg0: i32) -> (i32, i32) {
    %c0_i32 = arith.constant 0 : i32
    %c0_i32_0 = arith.constant 0 : i32
    %c0_i32_1 = arith.constant 0 : i32
    return %c0_i32, %c0_i32_0 : i32, i32
  }
  func.func @transform_4(%arg0: i32) -> (i32, i32) {
    %c0_i32 = arith.constant 0 : i32
    %c0_i32_0 = arith.constant 0 : i32
    %c0_i32_1 = arith.constant 0 : i32
    return %c0_i32, %c0_i32_0 : i32, i32
  }
  func.func @transform_5(%arg0: i32) -> (i32, i32) {
    %c0_i32 = arith.constant 0 : i32
    %c0_i32_0 = arith.constant 0 : i32
    %c0_i32_1 = arith.constant 0 : i32
    return %c0_i32, %c0_i32_0 : i32, i32
  }
  func.func @transform_6(%arg0: i32) -> (i32, i32) {
    %c0_i32 = arith.constant 0 : i32
    %c0_i32_0 = arith.constant 0 : i32
    %c0_i32_1 = arith.constant 0 : i32
    return %c0_i32, %c0_i32_0 : i32, i32
  }
}

</mosaic_0001>

<bundles_post_ra>
// kernel: res_layer_forward.1
= control target key start
LH: loop header
LB: loop body
LE: loop exit
PB: predicated region body
PF: predicated region fallthrough
CT: control target
= control target key end

     0   :  { %s11360_s21 = smov 0   ;;  %s14109_s0 = inlined_call_operand.vmem [shape: f32[32,512], index: 0, kind: input, shape index: {}]   ;;  %s14110_s1 = inlined_call_operand.vmem [shape: bf16[3072,512], index: 1, kind: input, shape index: {}]   ;;  %s14111_s2 = inlined_call_operand.vmem [shape: f32[1,32], index: 2, kind: input, shape index: {}]   ;;  %s14112_s3 = inlined_call_operand.vmem [shape: f32[1,32], index: 3, kind: input, shape index: {}]   ;;  %s14113_s4 = inlined_call_operand.vmem [shape: f32[1,32], index: 4, kind: input, shape index: {}]   ;;  %s14114_s5 = inlined_call_operand.vmem [shape: f32[1,32], index: 5, kind: input, shape index: {}]   ;;  %s14115_s6 = inlined_call_operand.vmem [shape: f32[32,512], index: 6, kind: output, shape index: {}]  }
   0x1 LB: > { %s11366_s22 = sadd.s32 4294967295, %s11314_s21   ;;  %p7438_p0 = scmp.ge.s32.totalorder %s11314_s21, 1  ;;  %s11314_s21 = sphi %s11360_s21, %s16_s21  }
   0x2   : > { %p209_p1 = scmp.lt.s32.totalorder %s11314_s21, 3 }
   0x4   : > { %p210_p2 = pnand %p7438_p0, %p209_p1 }
   0x6   : > { %213 = sbr.rel (%p210_p2) target bundleno = 1486 (0x5ce), region = 44 }
   0xb   : > { %s235_s23 = smul.u32 192, %s11366_s22  ;;  %p7441_p4 = scmp.ne.s32.totalorder %s11366_s22, 0 }
   0xd   : > { %p236_p3 = scmp.lt.s32.totalorder %s235_s23, 383  ;;  %246 = sbr.rel (%p7441_p4) target bundleno = 50 (0x32), region = 48 }
   0xf   : > { %s14192_s23 = smov (!%p236_p3, %s235_s23), 383 }
  0x10   : > { %s10518_s24 = sshll.u32 %s14192_s23, 4 }
  0x11   : > { %s11374_s27 = scalar_lea.vmem %s14110_s1, %s10518_s24 }
  0x12   : > { %vm247_vm0 = vcmask 1040384   ;;  %vm248_vm1 = vsmask.f32 256  ;;  %vm250_vm2 = vcmask 1044484   ;;  %vm251_vm3 = vsmask.f32 4352 }
  0x13   : > { %vm249_vm4 = vmand %vm247_vm0, %vm248_vm1  ;;  %v254_v0 = vld [vmem:[#allocation2 + $0x40] sm:$0x11]  ;;  %vm260_vm5 = vsmask.f32 7938  ;;  %vm262_vm7 = vsmask.f32 7954 }
  0x14   : > { %v257_v1 = vld [vmem:[#allocation2] sm:$0x11]  ;;  %vm252_vm6 = vmand %vm250_vm2, %vm251_vm3  ;;  %v265_v5 = vld [vmem:[#allocation2 + $0x28] sm:$0x11]  ;;  %vm325_vm11 = vcmask 1043456   ;;  %vm327_vm13 = vcmask 1047556  }
  0x15   : > { %vm11381_vm8 = vmor %vm252_vm6, %vm249_vm4  ;;  %v268_v6 = vld [vmem:[#allocation2 + $0x20] sm:$0x11]  ;;  %vm344_vm14 = vcmask 1041409   ;;  %vm345_vm15 = vsmask.f32 1280  ;;  %v272_v14 = vld [vmem:[%s14109_s0 + $0x8] sm:$0xff] }
  0x16   : > { %v255_v3 = vsel %vm11381_vm8, 0, %v254_v0  ;;  %v258_v4 = vsel %vm11381_vm8, 0, %v257_v1  ;;  %vm261_vm9 = vmand %vm247_vm0, %vm260_vm5  ;;  %vm348_vm3 = vsmask.f32 5376  ;;  %vm347_vm0 = vcmask 1045509   ;;  %v271_v12 = vld [vmem:[%s14109_s0] sm:$0xff] }
  0x17   : > { %256 = vst [vmem:[#allocation2 + $0x40] sm:$0x11] %v255_v3  ;;  %vm263_vm10 = vmand %vm250_vm2, %vm262_vm7  ;;  %v351_v10 = vld [vmem:[#allocation2 + $0x28] sm:$0x22]  ;;  %v354_v11 = vld [vmem:[#allocation2 + $0x20] sm:$0x22]  ;;  %v279_v17 = vpack.c.bf16 %v272_v14, %v271_v12 }
  0x18   : > { %259 = vst [vmem:[#allocation2] sm:$0x11] %v258_v4  ;;  %vm264_vm12 = vmor %vm263_vm10, %vm261_vm9  ;;  %v273_v15 = vld [vmem:[%s14109_s0 + $0x10] sm:$0xff]  ;;  %vm357_vm6 = vsmask.f32 7942  ;;  %v274_v18 = vld [vmem:[%s14109_s0 + $0x18] sm:$0xff] }
  0x19   : > { %v266_v7 = vsel %vm264_vm12, 0, %v265_v5  ;;  %v269_v8 = vsel %vm264_vm12, 0, %v268_v6  ;;  %vm11393_vm4 = vmand %vm325_vm11, %vm260_vm5  ;;  %v275_v19 = vld [vmem:[%s14109_s0 + $0x20] sm:$0xff]  ;;  %vm359_vm9 = vsmask.f32 7958  ;;  %vm426_vm10 = vcmask 1043457  }
  0x1a   : > { %267 = vst [vmem:[#allocation2 + $0x28] sm:$0x11] %v266_v7  ;;  %vm11401_vm2 = vmand %vm327_vm13, %vm262_vm7  ;;  %vm428_vm11 = vcmask 1047557   ;;  %v280_v20 = vpack.c.bf16 %v274_v18, %v273_v15  ;;  %v276_v21 = vld [vmem:[%s14109_s0 + $0x28] sm:$0xff]  ;;  %v277_v22 = vld [vmem:[%s14109_s0 + $0x30] sm:$0xff]  ;;  %v286_v23 = vshrl.u32 %v279_v17, 16 }
  0x1b   : > { %270 = vst [vmem:[#allocation2 + $0x20] sm:$0x11] %v269_v8  ;;  %vm11413_vm5 = vmand %vm344_vm14, %vm345_vm15  ;;  %v289_v24 = vshll.u32 %v279_v17, 16  ;;  %v281_v25 = vpack.c.bf16 %v276_v21, %v275_v19  ;;  %vm283_vm13 = vsmask.f32 4368  ;;  %v278_v26 = vld [vmem:[%s14109_s0 + $0x38] sm:$0xff] }
  0x1c   : > { %vm349_vm7 = vmand %vm347_vm0, %vm348_vm3  ;;  %v293_v30 = vshrl.u32 %v280_v20, 16  ;;  %v296_v31 = vshll.u32 %v280_v20, 16  ;;  %v368_v32 = vld [vmem:[%s14109_s0 + $0x40] sm:$0xff]  ;;  %v362_v33 = vld [vmem:[#allocation2 + $0x8] sm:$0x22]  ;;  %v288_v35 = vrot.slane %v286_v23, 7  ;;  %v282_v38 = vpack.c.bf16 %v278_v26, %v277_v22 }
  0x1d   : > { %vm350_vm12 = vmor %vm349_vm7, %vm11413_vm5  ;;  %v365_v34 = vld [vmem:[#allocation2 + $0x10] sm:$0x22]  ;;  %v301_v36 = vshrl.u32 %v281_v25, 16  ;;  %v304_v37 = vshll.u32 %v281_v25, 16  ;;  %v369_v39 = vld [vmem:[%s14109_s0 + $0x48] sm:$0xff] }
  0x1e   : > { %v352_v27 = vsel %vm350_vm12, 0, %v351_v10  ;;  %v355_v28 = vsel %vm350_vm12, 0, %v354_v11  ;;  %v330_v29 = vld [vmem:[#allocation2 + $0x40] sm:$0xff]  ;;  %vm329_vm5 = vmor %vm11401_vm2, %vm11393_vm4  ;;  %v295_v40 = vrot.slane %v293_v30, 7  ;;  %v376_v43 = vpack.c.bf16 %v369_v39, %v368_v32  ;;  %v370_v49 = vld [vmem:[%s14109_s0 + $0x50] sm:$0xff] }
  0x1f   : > { %353 = vst [vmem:[#allocation2 + $0x28] sm:$0x22] %v352_v27  ;;  %v333_v41 = vld [vmem:[#allocation2] sm:$0xff]  ;;  %vm11448_vm7 = vmand %vm344_vm14, %vm357_vm6  ;;  %v291_v45 = vor.u32 %v289_v24, %v288_v35  ;;  %v299_v46 = vrot.slane %v288_v35, 4  ;;  %v303_v47 = vrot.slane %v301_v36, 7  ;;  %v310_v48 = vshrl.u32 %v282_v38, 16 }
  0x20   : > { %356 = vst [vmem:[#allocation2 + $0x20] sm:$0x22] %v355_v28  ;;  %v371_v50 = vld [vmem:[%s14109_s0 + $0x58] sm:$0xff]  ;;  %vm11460_vm12 = vmand %vm347_vm0, %vm359_vm9  ;;  %v298_v52 = vor.u32 %v296_v31, %v295_v40  ;;  %v308_v53 = vrot.slane %v295_v40, 4  ;;  %v313_v54 = vshll.u32 %v282_v38, 16  ;;  %v383_v55 = vshrl.u32 %v376_v43, 16 }
  0x21   : > { %v338_v42 = vld [vmem:[#allocation2 + $0x28] sm:$0x11]  ;;  %v372_v56 = vld [vmem:[%s14109_s0 + $0x60] sm:$0xff]  ;;  %vm361_vm14 = vmor %vm11460_vm12, %vm11448_vm7  ;;  %v331_v58 = vsel %vm329_vm5, %v291_v45, %v330_v29  ;;  %v306_v59 = vor.u32 %v304_v37, %v303_v47  ;;  %v312_v60 = vrot.slane %v310_v48, 7  ;;  %v317_v61 = vrot.slane %v303_v47, 4 }
  0x22   : > { %v373_v57 = vld [vmem:[%s14109_s0 + $0x68] sm:$0xff]  ;;  %v374_v62 = vld [vmem:[%s14109_s0 + $0x70] sm:$0xff]  ;;  %v375_v63 = vld [vmem:[%s14109_s0 + $0x78] sm:$0xff]  ;;  %v363_v0 = vsel %vm361_vm14, 0, %v362_v33  ;;  %v366_v3 = vsel %vm361_vm14, 0, %v365_v34  ;;  %332 = vst [vmem:[#allocation2 + $0x40] sm:$0xff] %v331_v58  ;;  %v334_v4 = vsel %vm329_vm5, %v298_v52, %v333_v41  ;;  %v377_v9 = vpack.c.bf16 %v371_v50, %v370_v49 }
  0x23   : > { %vm11487_vm0 = vmand %vm426_vm10, %vm357_vm6  ;;  %v341_v5 = vld [vmem:[#allocation2 + $0x20] sm:$0x11]  ;;  %v385_v6 = vrot.slane %v383_v55, 6  ;;  %364 = vst [vmem:[#allocation2 + $0x8] sm:$0x22] %v363_v0  ;;  %v315_v8 = vor.u32 %v313_v54, %v312_v60  ;;  %v339_v10 = vsel %vm11381_vm8, %v317_v61, %v338_v42  ;;  %v318_v11 = vrot.slane %v312_v60, 4 }
  0x24   : > { %vm11498_vm7 = vmand %vm428_vm11, %vm359_vm9  ;;  %v386_v12 = vshll.u32 %v376_v43, 16  ;;  %vm439_vm6 = vcmask 1041408   ;;  %367 = vst [vmem:[#allocation2 + $0x10] sm:$0x22] %v366_v3  ;;  %v378_v13 = vpack.c.bf16 %v373_v57, %v372_v56  ;;  %v379_v14 = vpack.c.bf16 %v375_v63, %v374_v62 }
  0x25   : > { %vm441_vm4 = vcmask 1045508   ;;  %335 = vst [vmem:[#allocation2] sm:$0xff] %v334_v4  ;;  %vm284_vm2 = vmor %vm248_vm1, %vm283_vm13  ;;  %v342_v15 = vsel %vm11381_vm8, %v318_v11, %v341_v5  ;;  %vm380_vm9 = vsmask.f32 5392  ;;  %v391_v20 = vshrl.u32 %v377_v9, 16 }
  0x26   : > { %v388_v16 = vrot.slane %v386_v12, 7  ;;  %vm430_vm10 = vmor %vm11498_vm7, %vm11487_vm0  ;;  %v307_v17 = vsel %vm284_vm2, %v299_v46, %v306_v59  ;;  %v316_v18 = vsel %vm284_vm2, %v308_v53, %v315_v8  ;;  %340 = vst [vmem:[#allocation2 + $0x28] sm:$0x11] %v339_v10  ;;  %v431_v19 = vld [vmem:[#allocation2 + $0x28] sm:$0xee]  ;;  %v394_v21 = vshll.u32 %v377_v9, 16 }
  0x27   : > { %336 = vst [vmem:[#allocation2 + $0x38] sm:$0xff] %v307_v17  ;;  %v400_v23 = vshrl.u32 %v378_v13, 16  ;;  %v403_v24 = vshll.u32 %v378_v13, 16  ;;  %v410_v25 = vshrl.u32 %v379_v14, 16  ;;  %vm11514_vm1 = vmand %vm439_vm6, %vm345_vm15  ;;  %v393_v26 = vrot.slane %v391_v20, 6 }
  0x28   : > { %v389_v22 = vor.u32 %v388_v16, %v385_v6  ;;  %337 = vst [vmem:[#allocation2 + $0x18] sm:$0xff] %v316_v18  ;;  %v396_v27 = vrot.slane %v394_v21, 7  ;;  %v434_v28 = vld [vmem:[#allocation2 + $0x20] sm:$0xee]  ;;  %v413_v29 = vshll.u32 %v379_v14, 16  ;;  %vm11520_vm8 = vmand %vm441_vm4, %vm348_vm3 }
  0x29   : > { %343 = vst [vmem:[#allocation2 + $0x20] sm:$0x11] %v342_v15  ;;  %v402_v33 = vrot.slane %v400_v23, 6  ;;  %v405_v34 = vrot.slane %v403_v24, 7  ;;  %vm381_vm11 = vmor %vm345_vm15, %vm380_vm9  ;;  %v412_v36 = vrot.slane %v410_v25, 6 }
  0x2a   : > { %v432_v31 = vsel %vm430_vm10, %v389_v22, %v431_v19  ;;  %v398_v32 = vrot.slane %v389_v22, 4  ;;  %v397_v35 = vor.u32 %v396_v27, %v393_v26  ;;  %v415_v37 = vrot.slane %v413_v29, 7  ;;  %vm443_vm3 = vmor %vm11520_vm8, %vm11514_vm1  ;;  %v444_v42 = vld [vmem:[#allocation2 + $0x8] sm:$0x33] }
  0x2b   : > { %433 = vst [vmem:[#allocation2 + $0x28] sm:$0xee] %v432_v31  ;;  %v406_v38 = vor.u32 %v405_v34, %v402_v33  ;;  %v447_v45 = vld [vmem:[#allocation2 + $0x10] sm:$0x33] }
  0x2c   : > { %v435_v39 = vsel %vm430_vm10, %v397_v35, %v434_v28  ;;  %v408_v40 = vrot.slane %v397_v35, 4  ;;  %v416_v41 = vor.u32 %v415_v37, %v412_v36 }
  0x2d   : > { %436 = vst [vmem:[#allocation2 + $0x20] sm:$0xee] %v435_v39  ;;  %v407_v43 = vsel %vm381_vm11, %v398_v32, %v406_v38  ;;  %v418_v44 = vrot.slane %v406_v38, 4 }
  0x2e   : > { %437 = vst [vmem:[#allocation2 + $0x30] sm:$0xff] %v407_v43  ;;  %v417_v46 = vsel %vm381_vm11, %v408_v40, %v416_v41  ;;  %v419_v47 = vrot.slane %v416_v41, 4 }
  0x2f   : > { %438 = vst [vmem:[#allocation2 + $0x48] sm:$0xff] %v417_v46  ;;  %v445_v48 = vsel %vm443_vm3, %v418_v44, %v444_v42 }
  0x30   : > { %446 = vst [vmem:[#allocation2 + $0x8] sm:$0x33] %v445_v48  ;;  %v448_v49 = vsel %vm443_vm3, %v419_v47, %v447_v45 }
  0x31   : > { %449 = vst [vmem:[#allocation2 + $0x10] sm:$0x33] %v448_v49 }
  0x32 PF: > { %v7556_v50 = vld [vmem:[%s11374_s27 + $0x4e0] sm:$0xf]  ;;  %v10677_v51 = vld [vmem:[%s11374_s27 + $0x4ec] sm:$0xf0]  ;;  %vm738_vm15 = vsmask.f32 7424 }
  0x33   : > { %v7684_v52 = vld [vmem:[%s11374_s27 + $0x5e0] sm:$0xf]  ;;  %v7557_v53 = vor.u32 %v10677_v51, %v7556_v50  ;;  %v10709_v54 = vld [vmem:[%s11374_s27 + $0x5ec] sm:$0xf0]  ;;  %vm2663_vm13 = vcmask 1046528   ;;  %vm5889_vm12 = vcmask 1045504  }
  0x34   : > { %v7812_v55 = vld [vmem:[%s11374_s27 + $0x6e0] sm:$0xf]  ;;  %v10741_v56 = vld [vmem:[%s11374_s27 + $0x6ec] sm:$0xf0]  ;;  %v7685_v57 = vor.u32 %v10709_v54, %v7684_v52  ;;  %vm3922_vm5 = vsmask.f32 6400 }
  0x35   : > { %v7813_v58 = vor.u32 %v10741_v56, %v7812_v55  ;;  %v7940_v59 = vld [vmem:[%s11374_s27 + $0x7e0] sm:$0xf]  ;;  %v10773_v60 = vld [vmem:[%s11374_s27 + $0x7ec] sm:$0xf0]  ;;  %1431 = vmatpush.bf16.msra.mxu0 %v7557_v53  ;;  %s11317_s15 = smov 64   ;;  %s11318_s16 = smov 96  }
  0x36   : > { %v7540_v61 = vld [vmem:[%s11374_s27 + $0x4c0] sm:$0xf]  ;;  %v7941_v62 = vor.u32 %v10773_v60, %v7940_v59  ;;  %v10673_v63 = vld [vmem:[%s11374_s27 + $0x4cc] sm:$0xf0]  ;;  %1445 = vmatpush.bf16.msra.mxu1 %v7685_v57  ;;  %s11319_s23 = smov (!%p7441_p4), 96   ;;  %s11320_s24 = smov (!%p7441_p4), 32  }
  0x37   : > { %v7668_v0 = vld [vmem:[%s11374_s27 + $0x5c0] sm:$0xf]  ;;  %v10705_v1 = vld [vmem:[%s11374_s27 + $0x5cc] sm:$0xf0]  ;;  %1459 = vmatpush.bf16.msra.mxu2 %v7813_v58  ;;  %v7541_v3 = vor.u32 %v10673_v63, %v7540_v61  ;;  %s11321_s25 = smov (!%p7441_p4), 64  }
  0x38   : > { %v7669_v4 = vor.u32 %v10705_v1, %v7668_v0  ;;  %v7796_v5 = vld [vmem:[%s11374_s27 + $0x6c0] sm:$0xf]  ;;  %v10737_v6 = vld [vmem:[%s11374_s27 + $0x6cc] sm:$0xf0]  ;;  %1473 = vmatpush.bf16.msra.mxu3 %v7941_v62 }
  0x39   : > { %v7924_v7 = vld [vmem:[%s11374_s27 + $0x7c0] sm:$0xf]  ;;  %v7797_v8 = vor.u32 %v10737_v6, %v7796_v5  ;;  %v10769_v10 = vld [vmem:[%s11374_s27 + $0x7cc] sm:$0xf0]  ;;  %1432 = vmatpush.bf16.msra.mxu0 %v7541_v3 }
  0x3a   : > { %v7524_v11 = vld [vmem:[%s11374_s27 + $0x4a0] sm:$0xf]  ;;  %v10669_v12 = vld [vmem:[%s11374_s27 + $0x4ac] sm:$0xf0]  ;;  %v7925_v9 = vor.u32 %v10769_v10, %v7924_v7  ;;  %1446 = vmatpush.bf16.msra.mxu1 %v7669_v4 }
  0x3b   : > { %v7652_v13 = vld [vmem:[%s11374_s27 + $0x5a0] sm:$0xf]  ;;  %v10701_v14 = vld [vmem:[%s11374_s27 + $0x5ac] sm:$0xf0]  ;;  %v7525_v16 = vor.u32 %v10669_v12, %v7524_v11  ;;  %1460 = vmatpush.bf16.msra.mxu2 %v7797_v8 }
  0x3c   : > { %v7780_v15 = vld [vmem:[%s11374_s27 + $0x6a0] sm:$0xf]  ;;  %v10733_v17 = vld [vmem:[%s11374_s27 + $0x6ac] sm:$0xf0]  ;;  %v7653_v20 = vor.u32 %v10701_v14, %v7652_v13  ;;  %1474 = vmatpush.bf16.msra.mxu3 %v7925_v9 }
  0x3d   : > { %v7908_v18 = vld [vmem:[%s11374_s27 + $0x7a0] sm:$0xf]  ;;  %v10765_v19 = vld [vmem:[%s11374_s27 + $0x7ac] sm:$0xf0]  ;;  %v7781_v21 = vor.u32 %v10733_v17, %v7780_v15  ;;  %1433 = vmatpush.bf16.msra.mxu0 %v7525_v16  ;;  %v10675_v15 = vld [vmem:[%s11374_s27 + $0x4e4] sm:$0xf] }
  0x3e   : > { %v7508_v22 = vld [vmem:[%s11374_s27 + $0x480] sm:$0xf]  ;;  %v10665_v23 = vld [vmem:[%s11374_s27 + $0x48c] sm:$0xf0]  ;;  %v7909_v25 = vor.u32 %v10765_v19, %v7908_v18  ;;  %1447 = vmatpush.bf16.msra.mxu1 %v7653_v20  ;;  %v7558_v16 = vld [vmem:[%s11374_s27 + $0x4f0] sm:$0xf0] }
  0x3f   : > { %v7636_v24 = vld [vmem:[%s11374_s27 + $0x580] sm:$0xf]  ;;  %v10697_v2 = vld [vmem:[%s11374_s27 + $0x58c] sm:$0xf0]  ;;  %v7509_v30 = vor.u32 %v10665_v23, %v7508_v22  ;;  %1461 = vmatpush.bf16.msra.mxu2 %v7781_v21  ;;  %v10707_v17 = vld [vmem:[%s11374_s27 + $0x5e4] sm:$0xf] }
  0x40   : > { %v7764_v26 = vld [vmem:[%s11374_s27 + $0x680] sm:$0xf]  ;;  %v10729_v27 = vld [vmem:[%s11374_s27 + $0x68c] sm:$0xf0]  ;;  %v7637_v31 = vor.u32 %v10697_v2, %v7636_v24  ;;  %1475 = vmatpush.bf16.msra.mxu3 %v7909_v25  ;;  %v7686_v19 = vld [vmem:[%s11374_s27 + $0x5f0] sm:$0xf0] }
  0x41   : > { %v7892_v28 = vld [vmem:[%s11374_s27 + $0x780] sm:$0xf]  ;;  %v10761_v29 = vld [vmem:[%s11374_s27 + $0x78c] sm:$0xf0]  ;;  %v7765_v32 = vor.u32 %v10729_v27, %v7764_v26  ;;  %1434 = vmatpush.bf16.msra.mxu0 %v7509_v30  ;;  %v10739_v20 = vld [vmem:[%s11374_s27 + $0x6e4] sm:$0xf]  ;;  %v7561_v27 = vor.u32 %v10675_v15, %v7558_v16 }
  0x42   : > { %v7492_v33 = vld [vmem:[%s11374_s27 + $0x460] sm:$0xf]  ;;  %v10661_v34 = vld [vmem:[%s11374_s27 + $0x46c] sm:$0xf0]  ;;  %v7893_v36 = vor.u32 %v10761_v29, %v7892_v28  ;;  %1448 = vmatpush.bf16.msra.mxu1 %v7637_v31  ;;  %v7814_v21 = vld [vmem:[%s11374_s27 + $0x6f0] sm:$0xf0]  ;;  %v7689_v31 = vor.u32 %v10707_v17, %v7686_v19 }
  0x43   : > { %v7620_v35 = vld [vmem:[%s11374_s27 + $0x560] sm:$0xf]  ;;  %v10693_v37 = vld [vmem:[%s11374_s27 + $0x56c] sm:$0xf0]  ;;  %v7493_v42 = vor.u32 %v10661_v34, %v7492_v33  ;;  %1462 = vmatpush.bf16.msra.mxu2 %v7765_v32  ;;  %v10771_v24 = vld [vmem:[%s11374_s27 + $0x7e4] sm:$0xf]  ;;  %v7817_v32 = vor.u32 %v10739_v20, %v7814_v21 }
  0x44   : > { %v7748_v38 = vld [vmem:[%s11374_s27 + $0x660] sm:$0xf]  ;;  %v10725_v39 = vld [vmem:[%s11374_s27 + $0x66c] sm:$0xf0]  ;;  %v7621_v43 = vor.u32 %v10693_v37, %v7620_v35  ;;  %1476 = vmatpush.bf16.msra.mxu3 %v7893_v36  ;;  %v7942_v25 = vld [vmem:[%s11374_s27 + $0x7f0] sm:$0xf0] }
  0x45   : > { %v7876_v40 = vld [vmem:[%s11374_s27 + $0x760] sm:$0xf]  ;;  %v10757_v41 = vld [vmem:[%s11374_s27 + $0x76c] sm:$0xf0]  ;;  %v7749_v44 = vor.u32 %v10725_v39, %v7748_v38  ;;  %1435 = vmatpush.bf16.msra.mxu0 %v7493_v42  ;;  %v10671_v2 = vld [vmem:[%s11374_s27 + $0x4c4] sm:$0xf]  ;;  %v7945_v36 = vor.u32 %v10771_v24, %v7942_v25 }
  0x46   : > { %v7476_v45 = vld [vmem:[%s11374_s27 + $0x440] sm:$0xf]  ;;  %v10657_v46 = vld [vmem:[%s11374_s27 + $0x44c] sm:$0xf0]  ;;  %v7877_v48 = vor.u32 %v10757_v41, %v7876_v40  ;;  %1449 = vmatpush.bf16.msra.mxu1 %v7621_v43  ;;  %v7542_v28 = vld [vmem:[%s11374_s27 + $0x4d0] sm:$0xf0] }
  0x47   : > { %v7604_v47 = vld [vmem:[%s11374_s27 + $0x540] sm:$0xf]  ;;  %v10689_v49 = vld [vmem:[%s11374_s27 + $0x54c] sm:$0xf0]  ;;  %v7477_v54 = vor.u32 %v10657_v46, %v7476_v45  ;;  %1463 = vmatpush.bf16.msra.mxu2 %v7749_v44  ;;  %v10703_v29 = vld [vmem:[%s11374_s27 + $0x5c4] sm:$0xf]  ;;  %v7545_v45 = vor.u32 %v10671_v2, %v7542_v28 }
  0x48   : > { %v7732_v50 = vld [vmem:[%s11374_s27 + $0x640] sm:$0xf]  ;;  %v10721_v51 = vld [vmem:[%s11374_s27 + $0x64c] sm:$0xf0]  ;;  %v7605_v55 = vor.u32 %v10689_v49, %v7604_v47  ;;  %1477 = vmatpush.bf16.msra.mxu3 %v7877_v48  ;;  %v7670_v30 = vld [vmem:[%s11374_s27 + $0x5d0] sm:$0xf0] }
  0x49   : > { %v7860_v52 = vld [vmem:[%s11374_s27 + $0x740] sm:$0xf]  ;;  %v10753_v53 = vld [vmem:[%s11374_s27 + $0x74c] sm:$0xf0]  ;;  %v7733_v56 = vor.u32 %v10721_v51, %v7732_v50  ;;  %1436 = vmatpush.bf16.msra.mxu0 %v7477_v54  ;;  %v10735_v33 = vld [vmem:[%s11374_s27 + $0x6c4] sm:$0xf]  ;;  %v7673_v49 = vor.u32 %v10703_v29, %v7670_v30 }
  0x4a   : > { %v7460_v57 = vld [vmem:[%s11374_s27 + $0x420] sm:$0xf]  ;;  %v10653_v58 = vld [vmem:[%s11374_s27 + $0x42c] sm:$0xf0]  ;;  %v7861_v60 = vor.u32 %v10753_v53, %v7860_v52  ;;  %1450 = vmatpush.bf16.msra.mxu1 %v7605_v55  ;;  %v7798_v34 = vld [vmem:[%s11374_s27 + $0x6d0] sm:$0xf0] }
  0x4b   : > { %v7588_v59 = vld [vmem:[%s11374_s27 + $0x520] sm:$0xf]  ;;  %v10685_v61 = vld [vmem:[%s11374_s27 + $0x52c] sm:$0xf0]  ;;  %v7461_v3 = vor.u32 %v10653_v58, %v7460_v57  ;;  %1464 = vmatpush.bf16.msra.mxu2 %v7733_v56  ;;  %v10767_v35 = vld [vmem:[%s11374_s27 + $0x7c4] sm:$0xf]  ;;  %v7801_v50 = vor.u32 %v10735_v33, %v7798_v34 }
  0x4c   : > { %v7716_v62 = vld [vmem:[%s11374_s27 + $0x620] sm:$0xf]  ;;  %v10717_v63 = vld [vmem:[%s11374_s27 + $0x62c] sm:$0xf0]  ;;  %v7589_v6 = vor.u32 %v10685_v61, %v7588_v59  ;;  %1478 = vmatpush.bf16.msra.mxu3 %v7861_v60  ;;  %v7926_v37 = vld [vmem:[%s11374_s27 + $0x7d0] sm:$0xf0] }
  0x4d   : > { %v7844_v0 = vld [vmem:[%s11374_s27 + $0x720] sm:$0xf]  ;;  %v10749_v1 = vld [vmem:[%s11374_s27 + $0x72c] sm:$0xf0]  ;;  %v7717_v7 = vor.u32 %v10717_v63, %v7716_v62  ;;  %1437 = vmatpush.bf16.msra.mxu0 %v7461_v3  ;;  %v10667_v38 = vld [vmem:[%s11374_s27 + $0x4a4] sm:$0xf]  ;;  %v7929_v54 = vor.u32 %v10767_v35, %v7926_v37 }
  0x4e   : > { %v7444_v4 = vld [vmem:[%s11374_s27 + $0x400] sm:$0xf]  ;;  %v10649_v5 = vld [vmem:[%s11374_s27 + $0x40c] sm:$0xf0]  ;;  %v7845_v12 = vor.u32 %v10749_v1, %v7844_v0  ;;  %1451 = vmatpush.bf16.msra.mxu1 %v7589_v6  ;;  %v7526_v39 = vld [vmem:[%s11374_s27 + $0x4b0] sm:$0xf0] }
  0x4f   : > { %v7572_v8 = vld [vmem:[%s11374_s27 + $0x500] sm:$0xf]  ;;  %v10681_v10 = vld [vmem:[%s11374_s27 + $0x50c] sm:$0xf0]  ;;  %v7445_v18 = vor.u32 %v10649_v5, %v7444_v4  ;;  %1465 = vmatpush.bf16.msra.mxu2 %v7717_v7  ;;  %v10699_v40 = vld [vmem:[%s11374_s27 + $0x5a4] sm:$0xf]  ;;  %v7529_v58 = vor.u32 %v10667_v38, %v7526_v39 }
  0x50   : > { %v7700_v11 = vld [vmem:[%s11374_s27 + $0x600] sm:$0xf]  ;;  %v10713_v9 = vld [vmem:[%s11374_s27 + $0x60c] sm:$0xf0]  ;;  %v7573_v22 = vor.u32 %v10681_v10, %v7572_v8  ;;  %1479 = vmatpush.bf16.msra.mxu3 %v7845_v12  ;;  %v7654_v41 = vld [vmem:[%s11374_s27 + $0x5b0] sm:$0xf0] }
  0x51   : > { %v7828_v13 = vld [vmem:[%s11374_s27 + $0x700] sm:$0xf]  ;;  %v10745_v14 = vld [vmem:[%s11374_s27 + $0x70c] sm:$0xf0]  ;;  %v7701_v23 = vor.u32 %v10713_v9, %v7700_v11  ;;  %1438 = vmatpush.bf16.msra.mxu0 %v7445_v18  ;;  %v10731_v42 = vld [vmem:[%s11374_s27 + $0x6a4] sm:$0xf]  ;;  %v7657_v62 = vor.u32 %v10699_v40, %v7654_v41 }
  0x52   : > { %v7829_v26 = vor.u32 %v10745_v14, %v7828_v13  ;;  %1452 = vmatpush.bf16.msra.mxu1 %v7573_v22  ;;  %v7782_v43 = vld [vmem:[%s11374_s27 + $0x6b0] sm:$0xf0]  ;;  %v11627_v44 = vld [vmem:[%s11374_s27 + $0x7a4] sm:$0xf]  ;;  %v11669_v5 = vld [vmem:[#allocation2 + $0x18] sm:$0xff] }
  0x53   : > { %1466 = vmatpush.bf16.msra.mxu2 %v7701_v23  ;;  %v7910_v46 = vld [vmem:[%s11374_s27 + $0x7b0] sm:$0xf0]  ;;  %v11631_v47 = vld [vmem:[%s11374_s27 + $0x484] sm:$0xf]  ;;  %v7785_v63 = vor.u32 %v10731_v42, %v7782_v43  ;;  %v724_v12 = vunpack.c.l.b16 %v11669_v5  ;;  %v725_v15 = vunpack.c.h.b16 %v11669_v5  ;;  %v11703_v2 = vld [vmem:[#allocation2 + $0x38] sm:$0xff] }
  0x54   : > { %1480 = vmatpush.bf16.msra.mxu3 %v7829_v26  ;;  %v11634_v48 = vld [vmem:[%s11374_s27 + $0x490] sm:$0xf0]  ;;  %v11637_v51 = vld [vmem:[%s11374_s27 + $0x584] sm:$0xf]  ;;  %v7913_v0 = vor.u32 %v11627_v44, %v7910_v46  ;;  %v582_v26 = vld [vmem:[#allocation2 + $0x28] sm:$0x11]  ;;  %v722_v39 = vunpack.c.l.b16 %v11703_v2 }
  0x55   : > { %1487 = vmatpush.bf16.msrb.mxu0 %v7561_v27  ;;  %v11640_v52 = vld [vmem:[%s11374_s27 + $0x590] sm:$0xf0]  ;;  %v11643_v53 = vld [vmem:[%s11374_s27 + $0x684] sm:$0xf]  ;;  %v7513_v1 = vor.u32 %v11631_v47, %v11634_v48  ;;  %v726_v40 = vunpack.c.l.b16 %v582_v26 }
  0x56   : > { %1501 = vmatpush.bf16.msrb.mxu1 %v7689_v31  ;;  %v11646_v55 = vld [vmem:[%s11374_s27 + $0x690] sm:$0xf0]  ;;  %v11649_v56 = vld [vmem:[%s11374_s27 + $0x784] sm:$0xf]  ;;  %v7641_v6 = vor.u32 %v11637_v51, %v11640_v52  ;;  %v727_v51 = vunpack.c.h.b16 %v582_v26 }
  0x57   : > { %1515 = vmatpush.bf16.msrb.mxu2 %v7817_v32  ;;  %v11652_v57 = vld [vmem:[%s11374_s27 + $0x790] sm:$0xf0]  ;;  %v11655_v59 = vld [vmem:[%s11374_s27 + $0x464] sm:$0xf]  ;;  %v7769_v13 = vor.u32 %v11643_v53, %v11646_v55 }
  0x58   : > { %1529 = vmatpush.bf16.msrb.mxu3 %v7945_v36  ;;  %v11658_v60 = vld [vmem:[%s11374_s27 + $0x470] sm:$0xf0]  ;;  %v11661_v61 = vld [vmem:[%s11374_s27 + $0x564] sm:$0xf]  ;;  %v7897_v17 = vor.u32 %v11649_v56, %v11652_v57 }
  0x59   : > { %1488 = vmatpush.bf16.msrb.mxu0 %v7545_v45  ;;  %v11667_v3 = vld [vmem:[%s11374_s27 + $0x570] sm:$0xf0]  ;;  %v451_v4 = vld [vmem:[#allocation2] sm:$0xff]  ;;  %v7497_v18 = vor.u32 %v11655_v59, %v11658_v60  ;;  %v723_v45 = vunpack.c.h.b16 %v11703_v2 }
  0x5a   : > { %1502 = vmatpush.bf16.msrb.mxu1 %v7673_v49  ;;  %v11674_v7 = vld [vmem:[%s11374_s27 + $0x664] sm:$0xf]  ;;  %v11677_v8 = vld [vmem:[%s11374_s27 + $0x670] sm:$0xf0]  ;;  %v720_v11 = vunpack.c.l.b16 %v451_v4  ;;  %v721_v9 = vunpack.c.h.b16 %v451_v4  ;;  %v7625_v19 = vor.u32 %v11661_v61, %v11667_v3  ;;  %v11745_v4 = vpack.c.b16 %v727_v51, %v727_v51 }
  0x5b   : > { %1516 = vmatpush.bf16.msrb.mxu2 %v7801_v50  ;;  %v583_v10 = vld [vmem:[#allocation2 + $0x20] sm:$0x11]  ;;  %v7753_v21 = vor.u32 %v11674_v7, %v11677_v8  ;;  %v7878_v31 = vld [vmem:[%s11374_s27 + $0x770] sm:$0xf0]  ;;  %v11723_v50 = vpack.c.b16 %v726_v40, %v726_v40 }
  0x5c   : > { %1530 = vmatpush.bf16.msrb.mxu3 %v7929_v54  ;;  %v728_v14 = vunpack.c.l.b16 %v583_v10  ;;  %v729_v16 = vunpack.c.h.b16 %v583_v10  ;;  %v11691_v20 = vpack.c.b16 %v724_v12, %v720_v11  ;;  %v11699_v23 = vpack.c.b16 %v725_v15, %v721_v9  ;;  %v450_v25 = vld [vmem:[#allocation2 + $0x40] sm:$0xff]  ;;  %v7478_v37 = vld [vmem:[%s11374_s27 + $0x450] sm:$0xf0] }
  0x5d   : > { %1489 = vmatpush.bf16.msrb.mxu0 %v7529_v58  ;;  %v10755_v27 = vld [vmem:[%s11374_s27 + $0x764] sm:$0xf]  ;;  %v718_v30 = vunpack.c.l.b16 %v450_v25  ;;  %v719_v41 = vunpack.c.h.b16 %v450_v25  ;;  %v7606_v47 = vld [vmem:[%s11374_s27 + $0x550] sm:$0xf0]  ;;  %v759_v26 = vshll.u32 %v11745_v4, 16 }
  0x5e   : > { %v11695_v22 = vpack.c.b16 %v728_v14, %v728_v14  ;;  %v11701_v24 = vpack.c.b16 %v729_v16, %v729_v16  ;;  %1503 = vmatpush.bf16.msrb.mxu1 %v7657_v62  ;;  %v764_v28 = vshrl.u32 %v11691_v20, 16  ;;  %v766_v29 = vshll.u32 %v11691_v20, 16  ;;  %v10655_v36 = vld [vmem:[%s11374_s27 + $0x444] sm:$0xf]  ;;  %v7734_v55 = vld [vmem:[%s11374_s27 + $0x650] sm:$0xf0] }
  0x5f   : > { %1517 = vmatpush.bf16.msrb.mxu2 %v7785_v63  ;;  %v776_v33 = vshrl.u32 %v11699_v23, 16  ;;  %v778_v34 = vshll.u32 %v11699_v23, 16  ;;  %v10687_v46 = vld [vmem:[%s11374_s27 + $0x544] sm:$0xf]  ;;  %v11721_v49 = vpack.c.b16 %v722_v39, %v718_v30  ;;  %v7881_v52 = vor.u32 %v10755_v27, %v7878_v31  ;;  %v7862_v59 = vld [vmem:[%s11374_s27 + $0x750] sm:$0xf0] }
  0x60   : > { %1531 = vmatpush.bf16.msrb.mxu3 %v7913_v0  ;;  %v771_v32 = vshll.u32 %v11695_v22, 16  ;;  %v783_v35 = vshll.u32 %v11701_v24, 16  ;;  %v768_v38 = vrot.slane %v766_v29, 1  ;;  %v7481_v53 = vor.u32 %v10655_v36, %v7478_v37  ;;  %v10719_v54 = vld [vmem:[%s11374_s27 + $0x644] sm:$0xf] }
  0x61   : > { %1490 = vmatpush.bf16.msrb.mxu0 %v7513_v1  ;;  %v780_v43 = vrot.slane %v778_v34, 1  ;;  %v10751_v56 = vld [vmem:[%s11374_s27 + $0x744] sm:$0xf]  ;;  %v11730_v58 = vpack.c.b16 %v723_v45, %v719_v41  ;;  %v740_v61 = vshrl.u32 %v11721_v49, 16  ;;  %v742_v62 = vshll.u32 %v11721_v49, 16 }
  0x62   : > { %v773_v42 = vrot.slane %v771_v32, 1  ;;  %v785_v44 = vrot.slane %v783_v35, 1  ;;  %1504 = vmatpush.bf16.msrb.mxu1 %v7641_v6  ;;  %v769_v48 = vor.u32 %v768_v38, %v764_v28  ;;  %v747_v63 = vshll.u32 %v11723_v50, 16  ;;  %v10651_v1 = vld [vmem:[%s11374_s27 + $0x424] sm:$0xf] }
  0x63   : > { %1518 = vmatpush.bf16.msrb.mxu2 %v7769_v13  ;;  %v781_v57 = vor.u32 %v780_v43, %v776_v33  ;;  %v7462_v3 = vld [vmem:[%s11374_s27 + $0x430] sm:$0xf0]  ;;  %v752_v6 = vshrl.u32 %v11730_v58, 16  ;;  %v754_v7 = vshll.u32 %v11730_v58, 16  ;;  %v7609_v8 = vor.u32 %v10687_v46, %v7606_v47  ;;  %v10683_v11 = vld [vmem:[%s11374_s27 + $0x524] sm:$0xf] }
  0x64   : > { %1532 = vmatpush.bf16.msrb.mxu3 %v7897_v17  ;;  %v11734_v60 = vsel %vm738_vm15, %v769_v48, %v773_v42  ;;  %v7737_v10 = vor.u32 %v10719_v54, %v7734_v55  ;;  %v7590_v9 = vld [vmem:[%s11374_s27 + $0x530] sm:$0xf0]  ;;  %v744_v13 = vrot.slane %v742_v62, 1  ;;  %v749_v14 = vrot.slane %v747_v63, 1  ;;  %v10715_v17 = vld [vmem:[%s11374_s27 + $0x624] sm:$0xf] }
  0x65   : > { %1491 = vmatpush.bf16.msrb.mxu0 %v7497_v18  ;;  %1467 = vmatmul.bf16.vlgmr.msra.gmra.mxu2 %v11734_v60  ;;  %v11741_v0 = vsel %vm738_vm15, %v781_v57, %v785_v44  ;;  %v7865_v16 = vor.u32 %v10751_v56, %v7862_v59  ;;  %v7718_v18 = vld [vmem:[%s11374_s27 + $0x630] sm:$0xf0]  ;;  %v756_v25 = vrot.slane %v754_v7, 1  ;;  %v7465_v28 = vor.u32 %v10651_v1, %v7462_v3  ;;  %v10647_v31 = vld [vmem:[%s11374_s27 + $0x404] sm:$0xf] }
  0x66   : > { %1505 = vmatpush.bf16.msrb.mxu1 %v7625_v19  ;;  %1481 = vmatmul.bf16.vlgmr.msra.gmra.mxu3 %v11741_v0  ;;  %v10747_v19 = vld [vmem:[%s11374_s27 + $0x724] sm:$0xf]  ;;  %v745_v27 = vor.u32 %v744_v13, %v740_v61  ;;  %v761_v30 = vrot.slane %v759_v26, 1  ;;  %v7446_v32 = vld [vmem:[%s11374_s27 + $0x410] sm:$0xf0]  ;;  %v7593_v33 = vor.u32 %v10683_v11, %v7590_v9  ;;  %v7721_v34 = vor.u32 %v10715_v17, %v7718_v18 }
  0x67   : > { %1519 = vmatpush.bf16.msrb.mxu2 %v7753_v21  ;;  %v7846_v21 = vld [vmem:[%s11374_s27 + $0x730] sm:$0xf0]  ;;  %v757_v29 = vor.u32 %v756_v25, %v752_v6  ;;  %v10679_v36 = vld [vmem:[%s11374_s27 + $0x504] sm:$0xf]  ;;  %v7564_v46 = vld [vmem:[%s11374_s27 + $0x4e8] sm:$0xf]  ;;  %v7449_v51 = vor.u32 %v10647_v31, %v7446_v32 }
  0x68   : > { %1533 = vmatpush.bf16.msrb.mxu3 %v7881_v52  ;;  %v11760_v35 = vsel %vm738_vm15, %v745_v27, %v749_v14  ;;  %v7574_v37 = vld [vmem:[%s11374_s27 + $0x510] sm:$0xf0]  ;;  %v10711_v38 = vld [vmem:[%s11374_s27 + $0x604] sm:$0xf]  ;;  %v7849_v40 = vor.u32 %v10747_v19, %v7846_v21  ;;  %v10678_v47 = vld [vmem:[%s11374_s27 + $0x4f4] sm:$0xf0] }
  0x69   : > { %1492 = vmatpush.bf16.msrb.mxu0 %v7481_v53  ;;  %v11767_v41 = vsel %vm738_vm15, %v757_v29, %v761_v30  ;;  %v7702_v42 = vld [vmem:[%s11374_s27 + $0x610] sm:$0xf0]  ;;  %v10743_v43 = vld [vmem:[%s11374_s27 + $0x704] sm:$0xf]  ;;  %v7692_v48 = vld [vmem:[%s11374_s27 + $0x5e8] sm:$0xf]  ;;  %v7577_v55 = vor.u32 %v10679_v36, %v7574_v37  ;;  %v7565_v62 = vor.u32 %v10678_v47, %v7564_v46 }
  0x6a   : > { %1506 = vmatpush.bf16.msrb.mxu1 %v7609_v8  ;;  %1439 = vmatmul.bf16.vlgmr.msra.gmra.mxu0 %v11760_v35  ;;  %v7830_v44 = vld [vmem:[%s11374_s27 + $0x710] sm:$0xf0]  ;;  %v10710_v52 = vld [vmem:[%s11374_s27 + $0x5f4] sm:$0xf0]  ;;  %v7820_v53 = vld [vmem:[%s11374_s27 + $0x6e8] sm:$0xf]  ;;  %v7705_v56 = vor.u32 %v10711_v38, %v7702_v42 }
  0x6b   : > { %1520 = vmatpush.bf16.msrb.mxu2 %v7737_v10  ;;  %1453 = vmatmul.bf16.vlgmr.msra.gmra.mxu1 %v11767_v41  ;;  %v10742_v54 = vld [vmem:[%s11374_s27 + $0x6f4] sm:$0xf0]  ;;  %v7948_v57 = vld [vmem:[%s11374_s27 + $0x7e8] sm:$0xf]  ;;  %v7833_v61 = vor.u32 %v10743_v43, %v7830_v44  ;;  %v7693_v63 = vor.u32 %v10710_v52, %v7692_v48  ;;  %v2671_v2 = vrot.slane %v11695_v22, 1 }
  0x6c   : > { %1534 = vmatpush.bf16.msrb.mxu3 %v7865_v16  ;;  %v10774_v59 = vld [vmem:[%s11374_s27 + $0x7f4] sm:$0xf0]  ;;  %v7821_v1 = vor.u32 %v10742_v54, %v7820_v53  ;;  %v7548_v3 = vld [vmem:[%s11374_s27 + $0x4c8] sm:$0xf] }
  0x6d   : > { %1493 = vmatpush.bf16.msrb.mxu0 %v7465_v28  ;;  %v10674_v6 = vld [vmem:[%s11374_s27 + $0x4d4] sm:$0xf0]  ;;  %v7676_v7 = vld [vmem:[%s11374_s27 + $0x5c8] sm:$0xf]  ;;  %v7949_v8 = vor.u32 %v10774_v59, %v7948_v57 }
  0x6e   : > { %1507 = vmatpush.bf16.msrb.mxu1 %v7593_v33  ;;  %v10706_v10 = vld [vmem:[%s11374_s27 + $0x5d4] sm:$0xf0]  ;;  %v7804_v11 = vld [vmem:[%s11374_s27 + $0x6c8] sm:$0xf]  ;;  %v7549_v16 = vor.u32 %v10674_v6, %v7548_v3 }
  0x6f   : > { %1521 = vmatpush.bf16.msrb.mxu2 %v7721_v34  ;;  %v10738_v9 = vld [vmem:[%s11374_s27 + $0x6d4] sm:$0xf0]  ;;  %v7932_v13 = vld [vmem:[%s11374_s27 + $0x7c8] sm:$0xf]  ;;  %v7677_v17 = vor.u32 %v10706_v10, %v7676_v7 }
  0x70   : > { %1535 = vmatpush.bf16.msrb.mxu3 %v7849_v40  ;;  %v10770_v14 = vld [vmem:[%s11374_s27 + $0x7d4] sm:$0xf0]  ;;  %v7805_v18 = vor.u32 %v10738_v9, %v7804_v11  ;;  %v7532_v25 = vld [vmem:[%s11374_s27 + $0x4a8] sm:$0xf] }
  0x71   : > { %1494 = vmatpush.bf16.msrb.mxu0 %v7449_v51  ;;  %v10670_v26 = vld [vmem:[%s11374_s27 + $0x4b4] sm:$0xf0]  ;;  %v7660_v19 = vld [vmem:[%s11374_s27 + $0x5a8] sm:$0xf]  ;;  %v7933_v21 = vor.u32 %v10770_v14, %v7932_v13 }
  0x72   : > { %1508 = vmatpush.bf16.msrb.mxu1 %v7577_v55  ;;  %v10702_v27 = vld [vmem:[%s11374_s27 + $0x5b4] sm:$0xf0]  ;;  %v7788_v28 = vld [vmem:[%s11374_s27 + $0x6a8] sm:$0xf]  ;;  %v7533_v32 = vor.u32 %v10670_v26, %v7532_v25 }
  0x73   : > { %1522 = vmatpush.bf16.msrb.mxu2 %v7705_v56  ;;  %v10734_v29 = vld [vmem:[%s11374_s27 + $0x6b4] sm:$0xf0]  ;;  %v7916_v30 = vld [vmem:[%s11374_s27 + $0x7a8] sm:$0xf]  ;;  %v7661_v33 = vor.u32 %v10702_v27, %v7660_v19 }
  0x74   : > { %1536 = vmatpush.bf16.msrb.mxu3 %v7833_v61  ;;  %v10766_v31 = vld [vmem:[%s11374_s27 + $0x7b4] sm:$0xf0]  ;;  %v7789_v34 = vor.u32 %v10734_v29, %v7788_v28  ;;  %v7516_v36 = vld [vmem:[%s11374_s27 + $0x488] sm:$0xf] }
  0x75   : > { %1543 = vmatpush.bf16.msra.mxu0 %v7565_v62  ;;  %v10666_v37 = vld [vmem:[%s11374_s27 + $0x494] sm:$0xf0]  ;;  %v7644_v38 = vld [vmem:[%s11374_s27 + $0x588] sm:$0xf]  ;;  %v7917_v40 = vor.u32 %v10766_v31, %v7916_v30 }
  0x76   : > { %1557 = vmatpush.bf16.msra.mxu1 %v7693_v63  ;;  %1523 = vmatmul.bf16.vlgmr.msrb.gmra.mxu2 %v11734_v60  ;;  %v10698_v42 = vld [vmem:[%s11374_s27 + $0x594] sm:$0xf0]  ;;  %v7772_v43 = vld [vmem:[%s11374_s27 + $0x688] sm:$0xf]  ;;  %v7517_v48 = vor.u32 %v10666_v37, %v7516_v36 }
  0x77   : > { %1571 = vmatpush.bf16.msra.mxu2 %v7821_v1  ;;  %v10730_v44 = vld [vmem:[%s11374_s27 + $0x694] sm:$0xf0]  ;;  %v7900_v46 = vld [vmem:[%s11374_s27 + $0x788] sm:$0xf]  ;;  %1537 = vmatmul.bf16.vlgmr.msrb.gmra.mxu3 %v11741_v0  ;;  %v7645_v51 = vor.u32 %v10698_v42, %v7644_v38 }
  0x78   : > { %1585 = vmatpush.bf16.msra.mxu3 %v7949_v8  ;;  %v10762_v47 = vld [vmem:[%s11374_s27 + $0x794] sm:$0xf0]  ;;  %v7773_v52 = vor.u32 %v10730_v44, %v7772_v43  ;;  %v7500_v53 = vld [vmem:[%s11374_s27 + $0x468] sm:$0xf] }
  0x79   : > { %1544 = vmatpush.bf16.msra.mxu0 %v7549_v16  ;;  %v10662_v54 = vld [vmem:[%s11374_s27 + $0x474] sm:$0xf0]  ;;  %v7628_v55 = vld [vmem:[%s11374_s27 + $0x568] sm:$0xf]  ;;  %v7901_v56 = vor.u32 %v10762_v47, %v7900_v46 }
  0x7a   : > { %1558 = vmatpush.bf16.msra.mxu1 %v7677_v17  ;;  %v10694_v57 = vld [vmem:[%s11374_s27 + $0x574] sm:$0xf0]  ;;  %v7756_v59 = vld [vmem:[%s11374_s27 + $0x668] sm:$0xf]  ;;  %1495 = vmatmul.bf16.vlgmr.msrb.gmra.mxu0 %v11760_v35  ;;  %v7501_v1 = vor.u32 %v10662_v54, %v7500_v53  ;;  %v7566_v53 = vld [vmem:[%s11374_s27 + $0x4f8] sm:$0xf0] }
  0x7b   : > { %1572 = vmatpush.bf16.msra.mxu2 %v7805_v18  ;;  %v10726_v61 = vld [vmem:[%s11374_s27 + $0x674] sm:$0xf0]  ;;  %v7884_v62 = vld [vmem:[%s11374_s27 + $0x768] sm:$0xf]  ;;  %1509 = vmatmul.bf16.vlgmr.msrb.gmra.mxu1 %v11767_v41  ;;  %v7629_v3 = vor.u32 %v10694_v57, %v7628_v55  ;;  %v10708_v54 = vld [vmem:[%s11374_s27 + $0x5ec] sm:$0xf] }
  0x7c   : > { %1586 = vmatpush.bf16.msra.mxu3 %v7933_v21  ;;  %v10758_v63 = vld [vmem:[%s11374_s27 + $0x774] sm:$0xf0]  ;;  %v7757_v6 = vor.u32 %v10726_v61, %v7756_v59  ;;  %v7484_v7 = vld [vmem:[%s11374_s27 + $0x448] sm:$0xf]  ;;  %v10740_v57 = vld [vmem:[%s11374_s27 + $0x6ec] sm:$0xf] }
  0x7d   : > { %1545 = vmatpush.bf16.msra.mxu0 %v7533_v32  ;;  %v10658_v8 = vld [vmem:[%s11374_s27 + $0x454] sm:$0xf0]  ;;  %v7612_v10 = vld [vmem:[%s11374_s27 + $0x548] sm:$0xf]  ;;  %v7885_v11 = vor.u32 %v10758_v63, %v7884_v62  ;;  %v7822_v59 = vld [vmem:[%s11374_s27 + $0x6f8] sm:$0xf0] }
  0x7e   : > { %1559 = vmatpush.bf16.msra.mxu1 %v7661_v33  ;;  %v10690_v9 = vld [vmem:[%s11374_s27 + $0x554] sm:$0xf0]  ;;  %v7740_v13 = vld [vmem:[%s11374_s27 + $0x648] sm:$0xf]  ;;  %v7485_v18 = vor.u32 %v10658_v8, %v7484_v7  ;;  %v10772_v63 = vld [vmem:[%s11374_s27 + $0x7ec] sm:$0xf]  ;;  %v7825_v8 = vor.u32 %v10740_v57, %v7822_v59 }
  0x7f   : > { %1573 = vmatpush.bf16.msra.mxu2 %v7789_v34  ;;  %v10722_v14 = vld [vmem:[%s11374_s27 + $0x654] sm:$0xf0]  ;;  %v7868_v16 = vld [vmem:[%s11374_s27 + $0x748] sm:$0xf]  ;;  %v7613_v25 = vor.u32 %v10690_v9, %v7612_v10  ;;  %v10672_v10 = vld [vmem:[%s11374_s27 + $0x4cc] sm:$0xf] }
  0x80   : > { %1587 = vmatpush.bf16.msra.mxu3 %v7917_v40  ;;  %v10754_v17 = vld [vmem:[%s11374_s27 + $0x754] sm:$0xf0]  ;;  %v7741_v26 = vor.u32 %v10722_v14, %v7740_v13  ;;  %v7468_v19 = vld [vmem:[%s11374_s27 + $0x428] sm:$0xf]  ;;  %v10704_v9 = vld [vmem:[%s11374_s27 + $0x5cc] sm:$0xf] }
  0x81   : > { %1546 = vmatpush.bf16.msra.mxu0 %v7517_v48  ;;  %v10654_v21 = vld [vmem:[%s11374_s27 + $0x434] sm:$0xf0]  ;;  %v7596_v27 = vld [vmem:[%s11374_s27 + $0x528] sm:$0xf]  ;;  %v7869_v28 = vor.u32 %v10754_v17, %v7868_v16  ;;  %v7678_v14 = vld [vmem:[%s11374_s27 + $0x5d8] sm:$0xf0] }
  0x82   : > { %1560 = vmatpush.bf16.msra.mxu1 %v7645_v51  ;;  %v10686_v29 = vld [vmem:[%s11374_s27 + $0x534] sm:$0xf0]  ;;  %v7724_v30 = vld [vmem:[%s11374_s27 + $0x628] sm:$0xf]  ;;  %v7469_v34 = vor.u32 %v10654_v21, %v7468_v19  ;;  %v10736_v16 = vld [vmem:[%s11374_s27 + $0x6cc] sm:$0xf]  ;;  %v7681_v19 = vor.u32 %v10704_v9, %v7678_v14 }
  0x83   : > { %1574 = vmatpush.bf16.msra.mxu2 %v7773_v52  ;;  %v10718_v31 = vld [vmem:[%s11374_s27 + $0x634] sm:$0xf0]  ;;  %v7852_v32 = vld [vmem:[%s11374_s27 + $0x728] sm:$0xf]  ;;  %v7597_v38 = vor.u32 %v10686_v29, %v7596_v27  ;;  %v10676_v52 = vld [vmem:[%s11374_s27 + $0x4ec] sm:$0xf] }
  0x84   : > { %1588 = vmatpush.bf16.msra.mxu3 %v7901_v56  ;;  %v10750_v33 = vld [vmem:[%s11374_s27 + $0x734] sm:$0xf0]  ;;  %v7452_v36 = vld [vmem:[%s11374_s27 + $0x408] sm:$0xf]  ;;  %v7725_v40 = vor.u32 %v10718_v31, %v7724_v30  ;;  %v7694_v56 = vld [vmem:[%s11374_s27 + $0x5f8] sm:$0xf0] }
  0x85   : > { %1547 = vmatpush.bf16.msra.mxu0 %v7501_v1  ;;  %v10650_v37 = vld [vmem:[%s11374_s27 + $0x414] sm:$0xf0]  ;;  %v7580_v42 = vld [vmem:[%s11374_s27 + $0x508] sm:$0xf]  ;;  %v7853_v46 = vor.u32 %v10750_v33, %v7852_v32  ;;  %v7950_v1 = vld [vmem:[%s11374_s27 + $0x7f8] sm:$0xf0]  ;;  %v7697_v7 = vor.u32 %v10708_v54, %v7694_v56 }
  0x86   : > { %1561 = vmatpush.bf16.msra.mxu1 %v7629_v3  ;;  %v10682_v43 = vld [vmem:[%s11374_s27 + $0x514] sm:$0xf0]  ;;  %v7708_v44 = vld [vmem:[%s11374_s27 + $0x608] sm:$0xf]  ;;  %v7453_v55 = vor.u32 %v10650_v37, %v7452_v36  ;;  %v7953_v13 = vor.u32 %v10772_v63, %v7950_v1  ;;  %v7806_v17 = vld [vmem:[%s11374_s27 + $0x6d8] sm:$0xf0] }
  0x87   : > { %1575 = vmatpush.bf16.msra.mxu2 %v7757_v6  ;;  %v10714_v47 = vld [vmem:[%s11374_s27 + $0x614] sm:$0xf0]  ;;  %v7836_v48 = vld [vmem:[%s11374_s27 + $0x708] sm:$0xf]  ;;  %v7581_v61 = vor.u32 %v10682_v43, %v7580_v42  ;;  %v7569_v6 = vor.u32 %v10676_v52, %v7566_v53  ;;  %v7809_v21 = vor.u32 %v10736_v16, %v7806_v17  ;;  %v10668_v27 = vld [vmem:[%s11374_s27 + $0x4ac] sm:$0xf] }
  0x88   : > { %1589 = vmatpush.bf16.msra.mxu3 %v7885_v11  ;;  %v10746_v51 = vld [vmem:[%s11374_s27 + $0x714] sm:$0xf0]  ;;  %v7709_v62 = vor.u32 %v10714_v47, %v7708_v44  ;;  %v7550_v11 = vld [vmem:[%s11374_s27 + $0x4d8] sm:$0xf0]  ;;  %v10700_v29 = vld [vmem:[%s11374_s27 + $0x5ac] sm:$0xf] }
  0x89   : > { %1548 = vmatpush.bf16.msra.mxu0 %v7485_v18  ;;  %v7837_v3 = vor.u32 %v10746_v51, %v7836_v48  ;;  %v10768_v18 = vld [vmem:[%s11374_s27 + $0x7cc] sm:$0xf]  ;;  %v7662_v31 = vld [vmem:[%s11374_s27 + $0x5b8] sm:$0xf0] }
  0x8a   : > { %1562 = vmatpush.bf16.msra.mxu1 %v7613_v25  ;;  %v7934_v25 = vld [vmem:[%s11374_s27 + $0x7d8] sm:$0xf0]  ;;  %v10732_v32 = vld [vmem:[%s11374_s27 + $0x6ac] sm:$0xf] }
  0x8b   : > { %1576 = vmatpush.bf16.msra.mxu2 %v7741_v26  ;;  %v7553_v26 = vor.u32 %v10672_v10, %v7550_v11  ;;  %v7937_v30 = vor.u32 %v10768_v18, %v7934_v25  ;;  %v7790_v33 = vld [vmem:[%s11374_s27 + $0x6b8] sm:$0xf0]  ;;  %v10664_v42 = vld [vmem:[%s11374_s27 + $0x48c] sm:$0xf] }
  0x8c   : > { %1590 = vmatpush.bf16.msra.mxu3 %v7869_v28  ;;  %v7534_v28 = vld [vmem:[%s11374_s27 + $0x4b8] sm:$0xf0]  ;;  %v10696_v44 = vld [vmem:[%s11374_s27 + $0x58c] sm:$0xf] }
  0x8d   : > { %1549 = vmatpush.bf16.msra.mxu0 %v7469_v34  ;;  %v10764_v34 = vld [vmem:[%s11374_s27 + $0x7ac] sm:$0xf]  ;;  %v7918_v36 = vld [vmem:[%s11374_s27 + $0x7b8] sm:$0xf0]  ;;  %v7537_v37 = vor.u32 %v10668_v27, %v7534_v28 }
  0x8e   : > { %1563 = vmatpush.bf16.msra.mxu1 %v7597_v38  ;;  %v7665_v38 = vor.u32 %v10700_v29, %v7662_v31  ;;  %v7518_v43 = vld [vmem:[%s11374_s27 + $0x498] sm:$0xf0]  ;;  %v10728_v48 = vld [vmem:[%s11374_s27 + $0x68c] sm:$0xf] }
  0x8f   : > { %1577 = vmatpush.bf16.msra.mxu2 %v7725_v40  ;;  %v7793_v40 = vor.u32 %v10732_v32, %v7790_v33  ;;  %v7646_v47 = vld [vmem:[%s11374_s27 + $0x598] sm:$0xf0]  ;;  %v10760_v52 = vld [vmem:[%s11374_s27 + $0x78c] sm:$0xf]  ;;  %v7521_v54 = vor.u32 %v10664_v42, %v7518_v43 }
  0x90   : > { %1591 = vmatpush.bf16.msra.mxu3 %v7853_v46  ;;  %v7921_v46 = vor.u32 %v10764_v34, %v7918_v36  ;;  %v7774_v51 = vld [vmem:[%s11374_s27 + $0x698] sm:$0xf0]  ;;  %v10660_v57 = vld [vmem:[%s11374_s27 + $0x46c] sm:$0xf] }
  0x91   : > { %1550 = vmatpush.bf16.msra.mxu0 %v7453_v55  ;;  %v7902_v53 = vld [vmem:[%s11374_s27 + $0x798] sm:$0xf0]  ;;  %v7649_v55 = vor.u32 %v10696_v44, %v7646_v47  ;;  %v7777_v56 = vor.u32 %v10728_v48, %v7774_v51  ;;  %v10724_v1 = vld [vmem:[%s11374_s27 + $0x66c] sm:$0xf] }
  0x92   : > { %1564 = vmatpush.bf16.msra.mxu1 %v7581_v61  ;;  %v7502_v59 = vld [vmem:[%s11374_s27 + $0x478] sm:$0xf0]  ;;  %v10692_v61 = vld [vmem:[%s11374_s27 + $0x56c] sm:$0xf] }
  0x93   : > { %1578 = vmatpush.bf16.msra.mxu2 %v7709_v62  ;;  %v7905_v62 = vor.u32 %v10760_v52, %v7902_v53  ;;  %v7630_v63 = vld [vmem:[%s11374_s27 + $0x578] sm:$0xf0]  ;;  %v10656_v9 = vld [vmem:[%s11374_s27 + $0x44c] sm:$0xf] }
  0x94   : > { %1592 = vmatpush.bf16.msra.mxu3 %v7837_v3  ;;  %1551 = vmatmul.bf16.vlgmr.msra.gmra.mxu0 %v11760_v35  ;;  %v7758_v3 = vld [vmem:[%s11374_s27 + $0x678] sm:$0xf0]  ;;  %v7633_v10 = vor.u32 %v10692_v61, %v7630_v63  ;;  %v10688_v14 = vld [vmem:[%s11374_s27 + $0x54c] sm:$0xf]  ;;  %v8324_v63 = vld [vmem:[%s11374_s27 + $0x2e0] sm:$0xf] }
  0x95   : > { %1599 = vmatpush.bf16.msrb.mxu0 %v7569_v6  ;;  %1565 = vmatmul.bf16.vlgmr.msra.gmra.mxu1 %v11767_v41  ;;  %v10756_v6 = vld [vmem:[%s11374_s27 + $0x76c] sm:$0xf]  ;;  %v7761_v11 = vor.u32 %v10724_v1, %v7758_v3  ;;  %v7614_v17 = vld [vmem:[%s11374_s27 + $0x558] sm:$0xf0]  ;;  %v10613_v1 = vld [vmem:[%s11374_s27 + $0x2ec] sm:$0xf0] }
  0x96   : > { %1613 = vmatpush.bf16.msrb.mxu1 %v7697_v7  ;;  %1579 = vmatmul.bf16.vlgmr.msra.gmra.mxu2 %v11734_v60  ;;  %v7886_v7 = vld [vmem:[%s11374_s27 + $0x778] sm:$0xf0]  ;;  %v10720_v18 = vld [vmem:[%s11374_s27 + $0x64c] sm:$0xf]  ;;  %v7617_v27 = vor.u32 %v10688_v14, %v7614_v17  ;;  %v8052_v14 = vld [vmem:[%s11374_s27 + $0xc0] sm:$0xf] }
  0x97   : > { %1627 = vmatpush.bf16.msrb.mxu2 %v7825_v8  ;;  %1593 = vmatmul.bf16.vlgmr.msra.gmra.mxu3 %v11741_v0  ;;  %v7505_v8 = vor.u32 %v10660_v57, %v7502_v59  ;;  %v7889_v16 = vor.u32 %v10756_v6, %v7886_v7  ;;  %v7742_v25 = vld [vmem:[%s11374_s27 + $0x658] sm:$0xf0]  ;;  %v10652_v29 = vld [vmem:[%s11374_s27 + $0x42c] sm:$0xf]  ;;  %v10549_v57 = vld [vmem:[%s11374_s27 + $0xec] sm:$0xf0] }
  0x98   : > { %1641 = vmatpush.bf16.msrb.mxu3 %v7953_v13  ;;  %v7486_v13 = vld [vmem:[%s11374_s27 + $0x458] sm:$0xf0]  ;;  %v7745_v28 = vor.u32 %v10720_v18, %v7742_v25  ;;  %v10684_v31 = vld [vmem:[%s11374_s27 + $0x52c] sm:$0xf]  ;;  %v8196_v59 = vld [vmem:[%s11374_s27 + $0x1e0] sm:$0xf] }
  0x99   : > { %1600 = vmatpush.bf16.msrb.mxu0 %v7553_v26  ;;  %v10752_v26 = vld [vmem:[%s11374_s27 + $0x74c] sm:$0xf]  ;;  %v7598_v33 = vld [vmem:[%s11374_s27 + $0x538] sm:$0xf0]  ;;  %v8452_v7 = vld [vmem:[%s11374_s27 + $0x3e0] sm:$0xf] }
  0x9a   : > { %1614 = vmatpush.bf16.msrb.mxu1 %v7681_v19  ;;  %v7870_v19 = vld [vmem:[%s11374_s27 + $0x758] sm:$0xf0]  ;;  %v10716_v34 = vld [vmem:[%s11374_s27 + $0x62c] sm:$0xf]  ;;  %v7601_v44 = vor.u32 %v10684_v31, %v7598_v33  ;;  %v8180_v17 = vld [vmem:[%s11374_s27 + $0x1c0] sm:$0xf] }
  0x9b   : > { %1628 = vmatpush.bf16.msrb.mxu2 %v7809_v21  ;;  %v7489_v21 = vor.u32 %v10656_v9, %v7486_v13  ;;  %v7873_v32 = vor.u32 %v10752_v26, %v7870_v19  ;;  %v7726_v36 = vld [vmem:[%s11374_s27 + $0x638] sm:$0xf0]  ;;  %v10648_v42 = vld [vmem:[%s11374_s27 + $0x40c] sm:$0xf]  ;;  %v8325_v13 = vor.u32 %v10613_v1, %v8324_v63  ;;  %v10577_v25 = vld [vmem:[%s11374_s27 + $0x1cc] sm:$0xf0] }
  0x9c   : > { %1642 = vmatpush.bf16.msrb.mxu3 %v7937_v30  ;;  %v7470_v30 = vld [vmem:[%s11374_s27 + $0x438] sm:$0xf0]  ;;  %v10680_v47 = vld [vmem:[%s11374_s27 + $0x50c] sm:$0xf]  ;;  %v8308_v26 = vld [vmem:[%s11374_s27 + $0x2c0] sm:$0xf] }
  0x9d   : > { %1601 = vmatpush.bf16.msrb.mxu0 %v7537_v37  ;;  %v10748_v37 = vld [vmem:[%s11374_s27 + $0x72c] sm:$0xf]  ;;  %v7454_v43 = vld [vmem:[%s11374_s27 + $0x418] sm:$0xf0]  ;;  %v10609_v19 = vld [vmem:[%s11374_s27 + $0x2cc] sm:$0xf0] }
  0x9e   : > { %1615 = vmatpush.bf16.msrb.mxu1 %v7665_v38  ;;  %v7854_v38 = vld [vmem:[%s11374_s27 + $0x738] sm:$0xf0]  ;;  %v10712_v51 = vld [vmem:[%s11374_s27 + $0x60c] sm:$0xf]  ;;  %v7457_v61 = vor.u32 %v10648_v42, %v7454_v43  ;;  %v8036_v31 = vld [vmem:[%s11374_s27 + $0xa0] sm:$0xf] }
  0x9f   : > { %1629 = vmatpush.bf16.msrb.mxu2 %v7793_v40  ;;  %v7473_v40 = vor.u32 %v10652_v29, %v7470_v30  ;;  %v7582_v48 = vld [vmem:[%s11374_s27 + $0x518] sm:$0xf0]  ;;  %v7857_v52 = vor.u32 %v10748_v37, %v7854_v38  ;;  %v8181_v29 = vor.u32 %v10577_v25, %v8180_v17  ;;  %v8309_v30 = vor.u32 %v10609_v19, %v8308_v26  ;;  %v8164_v33 = vld [vmem:[%s11374_s27 + $0x1a0] sm:$0xf]  ;;  %v10605_v38 = vld [vmem:[%s11374_s27 + $0x2ac] sm:$0xf0] }
  0xa0   : > { %1643 = vmatpush.bf16.msrb.mxu3 %v7921_v46  ;;  %v7729_v46 = vor.u32 %v10716_v34, %v7726_v36  ;;  %v7710_v53 = vld [vmem:[%s11374_s27 + $0x618] sm:$0xf0]  ;;  %v7585_v3 = vor.u32 %v10680_v47, %v7582_v48  ;;  %v10573_v36 = vld [vmem:[%s11374_s27 + $0x1ac] sm:$0xf0]  ;;  %v8292_v37 = vld [vmem:[%s11374_s27 + $0x2a0] sm:$0xf] }
  0xa1   : > { %1602 = vmatpush.bf16.msrb.mxu0 %v7521_v54  ;;  %v10744_v54 = vld [vmem:[%s11374_s27 + $0x70c] sm:$0xf]  ;;  %v7713_v6 = vor.u32 %v10712_v51, %v7710_v53  ;;  %v10637_v42 = vld [vmem:[%s11374_s27 + $0x3ac] sm:$0xf0]  ;;  %v8148_v48 = vld [vmem:[%s11374_s27 + $0x180] sm:$0xf] }
  0xa2   : > { %1616 = vmatpush.bf16.msrb.mxu1 %v7649_v55  ;;  %v7838_v55 = vld [vmem:[%s11374_s27 + $0x718] sm:$0xf0]  ;;  %v10537_v47 = vld [vmem:[%s11374_s27 + $0x8c] sm:$0xf0]  ;;  %v8404_v53 = vld [vmem:[%s11374_s27 + $0x380] sm:$0xf] }
  0xa3   : > { %1630 = vmatpush.bf16.msrb.mxu2 %v7777_v56  ;;  %v8068_v56 = vld [vmem:[%s11374_s27 + $0xe0] sm:$0xf]  ;;  %v10569_v51 = vld [vmem:[%s11374_s27 + $0x18c] sm:$0xf0] }
  0xa4   : > { %1644 = vmatpush.bf16.msrb.mxu3 %v7905_v62  ;;  %v10581_v62 = vld [vmem:[%s11374_s27 + $0x1ec] sm:$0xf0]  ;;  %v8260_v1 = vld [vmem:[%s11374_s27 + $0x260] sm:$0xf] }
  0xa5   : > { %1603 = vmatpush.bf16.msrb.mxu0 %v7505_v8  ;;  %v10645_v8 = vld [vmem:[%s11374_s27 + $0x3ec] sm:$0xf0]  ;;  %v8197_v9 = vor.u32 %v10581_v62, %v8196_v59  ;;  %v8372_v26 = vld [vmem:[%s11374_s27 + $0x340] sm:$0xf] }
  0xa6   : > { %1617 = vmatpush.bf16.msrb.mxu1 %v7633_v10  ;;  %v7841_v10 = vor.u32 %v10744_v54, %v7838_v55  ;;  %v8453_v18 = vor.u32 %v10645_v8, %v8452_v7  ;;  %v8149_v55 = vor.u32 %v10569_v51, %v8148_v48  ;;  %v10533_v59 = vld [vmem:[%s11374_s27 + $0x6c] sm:$0xf0]  ;;  %v8212_v48 = vld [vmem:[%s11374_s27 + $0x200] sm:$0xf] }
  0xa7   : > { %1631 = vmatpush.bf16.msrb.mxu2 %v7761_v11  ;;  %v8069_v11 = vor.u32 %v10549_v57, %v8068_v56  ;;  %v8004_v57 = vld [vmem:[%s11374_s27 + $0x60] sm:$0xf]  ;;  %v10565_v63 = vld [vmem:[%s11374_s27 + $0x16c] sm:$0xf0] }
  0xa8   : > { %1645 = vmatpush.bf16.msrb.mxu3 %v7889_v16  ;;  %v10545_v16 = vld [vmem:[%s11374_s27 + $0xcc] sm:$0xf0]  ;;  %v8005_v8 = vor.u32 %v10533_v59, %v8004_v57  ;;  %v10611_v57 = vld [vmem:[%s11374_s27 + $0x2e4] sm:$0xf]  ;;  %v8326_v59 = vld [vmem:[%s11374_s27 + $0x2f0] sm:$0xf0] }
  0xa9   : > { %1604 = vmatpush.bf16.msrb.mxu0 %v7489_v21  ;;  %v8436_v21 = vld [vmem:[%s11374_s27 + $0x3c0] sm:$0xf]  ;;  %v10629_v7 = vld [vmem:[%s11374_s27 + $0x36c] sm:$0xf0] }
  0xaa   : > { %1618 = vmatpush.bf16.msrb.mxu1 %v7617_v27  ;;  %v10641_v27 = vld [vmem:[%s11374_s27 + $0x3cc] sm:$0xf0] }
  0xab   : > { %1632 = vmatpush.bf16.msrb.mxu2 %v7745_v28  ;;  %v8053_v28 = vor.u32 %v10545_v16, %v8052_v14  ;;  %v8437_v34 = vor.u32 %v10641_v27, %v8436_v21  ;;  %v8116_v14 = vld [vmem:[%s11374_s27 + $0x140] sm:$0xf]  ;;  %v10561_v17 = vld [vmem:[%s11374_s27 + $0x14c] sm:$0xf0] }
  0xac   : > { %1646 = vmatpush.bf16.msrb.mxu3 %v7873_v32  ;;  %v10541_v32 = vld [vmem:[%s11374_s27 + $0xac] sm:$0xf0]  ;;  %v8117_v27 = vor.u32 %v10561_v17, %v8116_v14  ;;  %v8182_v14 = vld [vmem:[%s11374_s27 + $0x1d0] sm:$0xf0] }
  0xad   : > { %1605 = vmatpush.bf16.msrb.mxu0 %v7473_v40  ;;  %v8420_v40 = vld [vmem:[%s11374_s27 + $0x3a0] sm:$0xf]  ;;  %v8037_v43 = vor.u32 %v10541_v32, %v8036_v31  ;;  %v10593_v25 = vld [vmem:[%s11374_s27 + $0x24c] sm:$0xf0]  ;;  %v8310_v17 = vld [vmem:[%s11374_s27 + $0x2d0] sm:$0xf0] }
  0xae   : > { %1619 = vmatpush.bf16.msrb.mxu1 %v7601_v44  ;;  %v8165_v44 = vor.u32 %v10573_v36, %v8164_v33  ;;  %v10625_v19 = vld [vmem:[%s11374_s27 + $0x34c] sm:$0xf0]  ;;  %v8100_v31 = vld [vmem:[%s11374_s27 + $0x120] sm:$0xf] }
  0xaf   : > { %1633 = vmatpush.bf16.msrb.mxu2 %v7729_v46  ;;  %v8293_v46 = vor.u32 %v10605_v38, %v8292_v37  ;;  %v8373_v32 = vor.u32 %v10625_v19, %v8372_v26  ;;  %v10557_v33 = vld [vmem:[%s11374_s27 + $0x12c] sm:$0xf0]  ;;  %v8356_v37 = vld [vmem:[%s11374_s27 + $0x320] sm:$0xf] }
  0xb0   : > { %1647 = vmatpush.bf16.msrb.mxu3 %v7857_v52  ;;  %v10601_v52 = vld [vmem:[%s11374_s27 + $0x28c] sm:$0xf0] }
  0xb1   : > { %1606 = vmatpush.bf16.msrb.mxu0 %v7457_v61  ;;  %v8132_v61 = vld [vmem:[%s11374_s27 + $0x160] sm:$0xf]  ;;  %v10589_v36 = vld [vmem:[%s11374_s27 + $0x22c] sm:$0xf0] }
  0xb2   : > { %1620 = vmatpush.bf16.msrb.mxu1 %v7585_v3  ;;  %v10597_v3 = vld [vmem:[%s11374_s27 + $0x26c] sm:$0xf0] }
  0xb3   : > { %1634 = vmatpush.bf16.msrb.mxu2 %v7713_v6  ;;  %v8388_v6 = vld [vmem:[%s11374_s27 + $0x360] sm:$0xf]  ;;  %v10621_v38 = vld [vmem:[%s11374_s27 + $0x32c] sm:$0xf0] }
  0xb4   : > { %1648 = vmatpush.bf16.msrb.mxu3 %v7841_v10  ;;  %1607 = vmatmul.bf16.vlgmr.msrb.gmra.mxu0 %v11760_v35  ;;  %v8020_v35 = vld [vmem:[%s11374_s27 + $0x80] sm:$0xf]  ;;  %v8133_v10 = vor.u32 %v10565_v63, %v8132_v61  ;;  %v8389_v16 = vor.u32 %v10629_v7, %v8388_v6  ;;  %v10585_v51 = vld [vmem:[%s11374_s27 + $0x20c] sm:$0xf0]  ;;  %v10643_v63 = vld [vmem:[%s11374_s27 + $0x3e4] sm:$0xf] }
  0xb5   : > { %2299 = vmatpush.bf16.msra.mxu0 %v8069_v11  ;;  %1621 = vmatmul.bf16.vlgmr.msrb.gmra.mxu1 %v11767_v41  ;;  %v8276_v41 = vld [vmem:[%s11374_s27 + $0x280] sm:$0xf]  ;;  %v8021_v54 = vor.u32 %v10537_v47, %v8020_v35  ;;  %v8261_v11 = vor.u32 %v10597_v3, %v8260_v1  ;;  %v10553_v47 = vld [vmem:[%s11374_s27 + $0x10c] sm:$0xf0]  ;;  %v8454_v1 = vld [vmem:[%s11374_s27 + $0x3f0] sm:$0xf0] }
  0xb6   : > { %2313 = vmatpush.bf16.msra.mxu1 %v8197_v9  ;;  %1635 = vmatmul.bf16.vlgmr.msrb.gmra.mxu2 %v11734_v60  ;;  %v8421_v60 = vor.u32 %v10637_v42, %v8420_v40  ;;  %v8277_v56 = vor.u32 %v10601_v52, %v8276_v41  ;;  %v7988_v9 = vld [vmem:[%s11374_s27 + $0x40] sm:$0xf]  ;;  %v10617_v52 = vld [vmem:[%s11374_s27 + $0x30c] sm:$0xf0] }
  0xb7   : > { %2327 = vmatpush.bf16.msra.mxu2 %v8325_v13  ;;  %1649 = vmatmul.bf16.vlgmr.msrb.gmra.mxu3 %v11741_v0  ;;  %v10633_v0 = vld [vmem:[%s11374_s27 + $0x38c] sm:$0xf0]  ;;  %v7956_v42 = vld [vmem:[%s11374_s27] sm:$0xf] }
  0xb8   : > { %2341 = vmatpush.bf16.msra.mxu3 %v8453_v18  ;;  %v8405_v62 = vor.u32 %v10633_v0, %v8404_v53  ;;  %v10529_v13 = vld [vmem:[%s11374_s27 + $0x4c] sm:$0xf0]  ;;  %v8244_v18 = vld [vmem:[%s11374_s27 + $0x240] sm:$0xf]  ;;  %v10547_v53 = vld [vmem:[%s11374_s27 + $0xe4] sm:$0xf] }
  0xb9   : > { %2300 = vmatpush.bf16.msra.mxu0 %v8053_v28  ;;  %v7989_v21 = vor.u32 %v10529_v13, %v7988_v9  ;;  %v8245_v28 = vor.u32 %v10593_v25, %v8244_v18  ;;  %v8084_v35 = vld [vmem:[%s11374_s27 + $0x100] sm:$0xf]  ;;  %v8070_v0 = vld [vmem:[%s11374_s27 + $0xf0] sm:$0xf0]  ;;  %v10575_v9 = vld [vmem:[%s11374_s27 + $0x1c4] sm:$0xf]  ;;  %v8457_v13 = vor.u32 %v10643_v63, %v8454_v1 }
  0xba   : > { %2314 = vmatpush.bf16.msra.mxu1 %v8181_v29  ;;  %v7972_v29 = vld [vmem:[%s11374_s27 + $0x20] sm:$0xf]  ;;  %v8085_v61 = vor.u32 %v10553_v47, %v8084_v35  ;;  %v8073_v6 = vor.u32 %v10547_v53, %v8070_v0  ;;  %v10639_v18 = vld [vmem:[%s11374_s27 + $0x3c4] sm:$0xf]  ;;  %v8438_v25 = vld [vmem:[%s11374_s27 + $0x3d0] sm:$0xf0]  ;;  %v8185_v19 = vor.u32 %v10575_v9, %v8182_v14 }
  0xbb   : > { %2328 = vmatpush.bf16.msra.mxu2 %v8309_v30  ;;  %v10525_v30 = vld [vmem:[%s11374_s27 + $0x2c] sm:$0xf0]  ;;  %v8340_v41 = vld [vmem:[%s11374_s27 + $0x300] sm:$0xf]  ;;  %v8150_v35 = vld [vmem:[%s11374_s27 + $0x190] sm:$0xf0] }
  0xbc   : > { %2342 = vmatpush.bf16.msra.mxu3 %v8437_v34  ;;  %v8228_v34 = vld [vmem:[%s11374_s27 + $0x220] sm:$0xf]  ;;  %v7973_v40 = vor.u32 %v10525_v30, %v7972_v29  ;;  %v8341_v3 = vor.u32 %v10617_v52, %v8340_v41  ;;  %v10571_v29 = vld [vmem:[%s11374_s27 + $0x1a4] sm:$0xf]  ;;  %v8441_v30 = vor.u32 %v10639_v18, %v8438_v25  ;;  %v8390_v63 = vld [vmem:[%s11374_s27 + $0x370] sm:$0xf0] }
  0xbd   : > { %2301 = vmatpush.bf16.msra.mxu0 %v8037_v43  ;;  %v10521_v43 = vld [vmem:[%s11374_s27 + $0xc] sm:$0xf0]  ;;  %v10599_v47 = vld [vmem:[%s11374_s27 + $0x284] sm:$0xf]  ;;  %v8118_v9 = vld [vmem:[%s11374_s27 + $0x150] sm:$0xf0] }
  0xbe   : > { %2315 = vmatpush.bf16.msra.mxu1 %v8165_v44  ;;  %v8101_v44 = vor.u32 %v10557_v33, %v8100_v31  ;;  %v8166_v31 = vld [vmem:[%s11374_s27 + $0x1b0] sm:$0xf0]  ;;  %v10531_v0 = vld [vmem:[%s11374_s27 + $0x64] sm:$0xf] }
  0xbf   : > { %2329 = vmatpush.bf16.msra.mxu2 %v8293_v46  ;;  %v8229_v46 = vor.u32 %v10589_v36, %v8228_v34  ;;  %v8294_v33 = vld [vmem:[%s11374_s27 + $0x2b0] sm:$0xf0]  ;;  %v10635_v34 = vld [vmem:[%s11374_s27 + $0x3a4] sm:$0xf] }
  0xc0   : > { %2343 = vmatpush.bf16.msra.mxu3 %v8421_v60  ;;  %v8357_v60 = vor.u32 %v10621_v38, %v8356_v37  ;;  %v8422_v36 = vld [vmem:[%s11374_s27 + $0x3b0] sm:$0xf0]  ;;  %v8169_v38 = vor.u32 %v10571_v29, %v8166_v31 }
  0xc1   : > { %2302 = vmatpush.bf16.msra.mxu0 %v8021_v54  ;;  %v10579_v54 = vld [vmem:[%s11374_s27 + $0x1e4] sm:$0xf]  ;;  %v8246_v14 = vld [vmem:[%s11374_s27 + $0x250] sm:$0xf0] }
  0xc2   : > { %2316 = vmatpush.bf16.msra.mxu1 %v8149_v55  ;;  %v7957_v55 = vor.u32 %v10521_v43, %v7956_v42  ;;  %v10535_v42 = vld [vmem:[%s11374_s27 + $0x84] sm:$0xf]  ;;  %v8022_v43 = vld [vmem:[%s11374_s27 + $0x90] sm:$0xf0] }
  0xc3   : > { %2330 = vmatpush.bf16.msra.mxu2 %v8277_v56  ;;  %v8198_v56 = vld [vmem:[%s11374_s27 + $0x1f0] sm:$0xf0]  ;;  %v8025_v41 = vor.u32 %v10535_v42, %v8022_v43  ;;  %v10551_v42 = vld [vmem:[%s11374_s27 + $0x104] sm:$0xf] }
  0xc4   : > { %2344 = vmatpush.bf16.msra.mxu3 %v8405_v62  ;;  %v8213_v62 = vor.u32 %v10585_v51, %v8212_v48  ;;  %v8201_v7 = vor.u32 %v10579_v54, %v8198_v56  ;;  %v8278_v48 = vld [vmem:[%s11374_s27 + $0x290] sm:$0xf0] }
  0xc5   : > { %2303 = vmatpush.bf16.msra.mxu0 %v8005_v8  ;;  %v8329_v8 = vor.u32 %v10611_v57, %v8326_v59  ;;  %v8406_v51 = vld [vmem:[%s11374_s27 + $0x390] sm:$0xf0]  ;;  %v8281_v53 = vor.u32 %v10599_v47, %v8278_v48  ;;  %v10595_v59 = vld [vmem:[%s11374_s27 + $0x264] sm:$0xf] }
  0xc6   : > { %2317 = vmatpush.bf16.msra.mxu1 %v8133_v10  ;;  %v10543_v10 = vld [vmem:[%s11374_s27 + $0xc4] sm:$0xf]  ;;  %v8006_v54 = vld [vmem:[%s11374_s27 + $0x70] sm:$0xf0] }
  0xc7   : > { %2331 = vmatpush.bf16.msra.mxu2 %v8261_v11  ;;  %v8054_v11 = vld [vmem:[%s11374_s27 + $0xd0] sm:$0xf0]  ;;  %v8009_v1 = vor.u32 %v10531_v0, %v8006_v54  ;;  %v10615_v47 = vld [vmem:[%s11374_s27 + $0x304] sm:$0xf]  ;;  %v8332_v0 = vld [vmem:[%s11374_s27 + $0x2e8] sm:$0xf] }
  0xc8   : > { %2345 = vmatpush.bf16.msra.mxu3 %v8389_v16  ;;  %v10607_v16 = vld [vmem:[%s11374_s27 + $0x2c4] sm:$0xf]  ;;  %v8057_v26 = vor.u32 %v10543_v10, %v8054_v11  ;;  %v8134_v57 = vld [vmem:[%s11374_s27 + $0x170] sm:$0xf0]  ;;  %v10614_v54 = vld [vmem:[%s11374_s27 + $0x2f4] sm:$0xf0] }
  0xc9   : > { %2304 = vmatpush.bf16.msra.mxu0 %v7989_v21  ;;  %v8313_v21 = vor.u32 %v10607_v16, %v8310_v17  ;;  %v10559_v10 = vld [vmem:[%s11374_s27 + $0x144] sm:$0xf]  ;;  %v8374_v17 = vld [vmem:[%s11374_s27 + $0x350] sm:$0xf0] }
  0xca   : > { %2318 = vmatpush.bf16.msra.mxu1 %v8117_v27  ;;  %v10539_v27 = vld [vmem:[%s11374_s27 + $0xa4] sm:$0xf]  ;;  %v8121_v25 = vor.u32 %v10559_v10, %v8118_v9  ;;  %v8102_v29 = vld [vmem:[%s11374_s27 + $0x130] sm:$0xf0]  ;;  %v10578_v10 = vld [vmem:[%s11374_s27 + $0x1d4] sm:$0xf0] }
  0xcb   : > { %2332 = vmatpush.bf16.msra.mxu2 %v8245_v28  ;;  %v8038_v28 = vld [vmem:[%s11374_s27 + $0xb0] sm:$0xf0]  ;;  %v10623_v16 = vld [vmem:[%s11374_s27 + $0x344] sm:$0xf]  ;;  %v10610_v9 = vld [vmem:[%s11374_s27 + $0x2d4] sm:$0xf0] }
  0xcc   : > { %2346 = vmatpush.bf16.msra.mxu3 %v8373_v32  ;;  %v10603_v32 = vld [vmem:[%s11374_s27 + $0x2a4] sm:$0xf]  ;;  %v8041_v37 = vor.u32 %v10539_v27, %v8038_v28  ;;  %v8377_v28 = vor.u32 %v10623_v16, %v8374_v17  ;;  %v8230_v31 = vld [vmem:[%s11374_s27 + $0x230] sm:$0xf0]  ;;  %v8444_v16 = vld [vmem:[%s11374_s27 + $0x3c8] sm:$0xf] }
  0xcd   : > { %2305 = vmatpush.bf16.msra.mxu0 %v7973_v40  ;;  %v8297_v40 = vor.u32 %v10603_v32, %v8294_v33  ;;  %v10555_v27 = vld [vmem:[%s11374_s27 + $0x124] sm:$0xf]  ;;  %v8358_v33 = vld [vmem:[%s11374_s27 + $0x330] sm:$0xf0]  ;;  %v10642_v17 = vld [vmem:[%s11374_s27 + $0x3d4] sm:$0xf0] }
  0xce   : > { %2319 = vmatpush.bf16.msra.mxu1 %v8101_v44  ;;  %v10567_v44 = vld [vmem:[%s11374_s27 + $0x184] sm:$0xf]  ;;  %v8086_v43 = vld [vmem:[%s11374_s27 + $0x110] sm:$0xf0] }
  0xcf   : > { %2333 = vmatpush.bf16.msra.mxu2 %v8229_v46  ;;  %v8425_v46 = vor.u32 %v10635_v34, %v8422_v36  ;;  %v8153_v52 = vor.u32 %v10567_v44, %v8150_v35  ;;  %v10619_v32 = vld [vmem:[%s11374_s27 + $0x324] sm:$0xf]  ;;  %v8214_v35 = vld [vmem:[%s11374_s27 + $0x210] sm:$0xf0] }
  0xd0   : > { %2347 = vmatpush.bf16.msra.mxu3 %v8357_v60  ;;  %v10631_v60 = vld [vmem:[%s11374_s27 + $0x384] sm:$0xf]  ;;  %v8342_v48 = vld [vmem:[%s11374_s27 + $0x310] sm:$0xf0] }
  0xd1   : > { %2306 = vmatpush.bf16.msra.mxu0 %v7957_v55  ;;  %v10563_v55 = vld [vmem:[%s11374_s27 + $0x164] sm:$0xf]  ;;  %v8409_v56 = vor.u32 %v10631_v60, %v8406_v51  ;;  %v8076_v60 = vld [vmem:[%s11374_s27 + $0xe8] sm:$0xf]  ;;  %v10550_v51 = vld [vmem:[%s11374_s27 + $0xf4] sm:$0xf0] }
  0xd2   : > { %2320 = vmatpush.bf16.msra.mxu1 %v8085_v61  ;;  %v8262_v61 = vld [vmem:[%s11374_s27 + $0x270] sm:$0xf0]  ;;  %v10519_v36 = vld [vmem:[%s11374_s27 + $0x4] sm:$0xf] }
  0xd3   : > { %2334 = vmatpush.bf16.msra.mxu2 %v8213_v62  ;;  %v10627_v62 = vld [vmem:[%s11374_s27 + $0x364] sm:$0xf] }
  0xd4   : > { %2348 = vmatpush.bf16.msra.mxu3 %v8341_v3  ;;  %2307 = vmatmul.bf16.vlgmr.msra.gmra.mxu0 %v11721_v49  ;;  %v8137_v3 = vor.u32 %v10563_v55, %v8134_v57  ;;  %v8393_v11 = vor.u32 %v10627_v62, %v8390_v63  ;;  %v10583_v44 = vld [vmem:[%s11374_s27 + $0x204] sm:$0xf]  ;;  %v8089_v55 = vor.u32 %v10551_v42, %v8086_v43  ;;  %v8460_v57 = vld [vmem:[%s11374_s27 + $0x3e8] sm:$0xf] }
  0xd5   : > { %2355 = vmatpush.bf16.msrb.mxu0 %v8073_v6  ;;  %2321 = vmatmul.bf16.vlgmr.msra.gmra.mxu1 %v11730_v58  ;;  %v8265_v6 = vor.u32 %v10595_v59, %v8262_v61  ;;  %v10646_v59 = vld [vmem:[%s11374_s27 + $0x3f4] sm:$0xf0]  ;;  %v8345_v61 = vor.u32 %v10615_v47, %v8342_v48  ;;  %v8077_v62 = vor.u32 %v10550_v51, %v8076_v60  ;;  %v8156_v47 = vld [vmem:[%s11374_s27 + $0x188] sm:$0xf] }
  0xd6   : > { %2369 = vmatpush.bf16.msrb.mxu1 %v8201_v7  ;;  %2335 = vmatmul.bf16.vlgmr.msra.gmra.mxu2 %v11691_v20  ;;  %v10527_v7 = vld [vmem:[%s11374_s27 + $0x44] sm:$0xf]  ;;  %v10570_v60 = vld [vmem:[%s11374_s27 + $0x194] sm:$0xf0]  ;;  %v8284_v51 = vld [vmem:[%s11374_s27 + $0x288] sm:$0xf] }
  0xd7   : > { %2383 = vmatpush.bf16.msrb.mxu2 %v8329_v8  ;;  %2349 = vmatmul.bf16.vlgmr.msra.gmra.mxu3 %v11699_v23  ;;  %v7990_v8 = vld [vmem:[%s11374_s27 + $0x50] sm:$0xf0] }
  0xd8   : > { %2397 = vmatpush.bf16.msrb.mxu3 %v8457_v13  ;;  %v10591_v13 = vld [vmem:[%s11374_s27 + $0x244] sm:$0xf]  ;;  %v7993_v18 = vor.u32 %v10527_v7, %v7990_v8  ;;  %v8188_v7 = vld [vmem:[%s11374_s27 + $0x1c8] sm:$0xf]  ;;  %v8461_v8 = vor.u32 %v10646_v59, %v8460_v57 }
  0xd9   : > { %2356 = vmatpush.bf16.msrb.mxu0 %v8057_v26  ;;  %v8249_v26 = vor.u32 %v10591_v13, %v8246_v14  ;;  %v8012_v59 = vld [vmem:[%s11374_s27 + $0x68] sm:$0xf] }
  0xda   : > { %2370 = vmatpush.bf16.msrb.mxu1 %v8185_v19  ;;  %v10523_v19 = vld [vmem:[%s11374_s27 + $0x24] sm:$0xf] }
  0xdb   : > { %2384 = vmatpush.bf16.msrb.mxu2 %v8313_v21  ;;  %v7974_v21 = vld [vmem:[%s11374_s27 + $0x30] sm:$0xf0] }
  0xdc   : > { %2398 = vmatpush.bf16.msrb.mxu3 %v8441_v30  ;;  %v10587_v30 = vld [vmem:[%s11374_s27 + $0x224] sm:$0xf]  ;;  %v7977_v34 = vor.u32 %v10523_v19, %v7974_v21  ;;  %v8189_v19 = vor.u32 %v10578_v10, %v8188_v7  ;;  %v10598_v7 = vld [vmem:[%s11374_s27 + $0x274] sm:$0xf0] }
  0xdd   : > { %2357 = vmatpush.bf16.msrb.mxu0 %v8041_v37  ;;  %v7958_v37 = vld [vmem:[%s11374_s27 + $0x10] sm:$0xf0]  ;;  %v10630_v10 = vld [vmem:[%s11374_s27 + $0x374] sm:$0xf0] }
  0xde   : > { %2371 = vmatpush.bf16.msrb.mxu1 %v8169_v38  ;;  %v8105_v38 = vor.u32 %v10555_v27, %v8102_v29  ;;  %v10542_v29 = vld [vmem:[%s11374_s27 + $0xb4] sm:$0xf0] }
  0xdf   : > { %2385 = vmatpush.bf16.msrb.mxu2 %v8297_v40  ;;  %v8233_v40 = vor.u32 %v10587_v30, %v8230_v31  ;;  %v8172_v30 = vld [vmem:[%s11374_s27 + $0x1a8] sm:$0xf]  ;;  %v8445_v31 = vor.u32 %v10642_v17, %v8444_v16  ;;  %v10530_v17 = vld [vmem:[%s11374_s27 + $0x54] sm:$0xf0] }
  0xe0   : > { %2399 = vmatpush.bf16.msrb.mxu3 %v8425_v46  ;;  %v8361_v46 = vor.u32 %v10619_v32, %v8358_v33  ;;  %v10574_v32 = vld [vmem:[%s11374_s27 + $0x1b4] sm:$0xf0]  ;;  %v8300_v33 = vld [vmem:[%s11374_s27 + $0x2a8] sm:$0xf] }
  0xe1   : > { %2358 = vmatpush.bf16.msrb.mxu0 %v8025_v41  ;;  %v8204_v41 = vld [vmem:[%s11374_s27 + $0x1e8] sm:$0xf]  ;;  %v8173_v43 = vor.u32 %v10574_v32, %v8172_v30 }
  0xe2   : > { %2372 = vmatpush.bf16.msrb.mxu1 %v8153_v52  ;;  %v7961_v52 = vor.u32 %v10519_v36, %v7958_v37  ;;  %v8428_v37 = vld [vmem:[%s11374_s27 + $0x3a8] sm:$0xf] }
  0xe3   : > { %2386 = vmatpush.bf16.msrb.mxu2 %v8281_v53  ;;  %v10582_v53 = vld [vmem:[%s11374_s27 + $0x1f4] sm:$0xf0]  ;;  %v7996_v16 = vld [vmem:[%s11374_s27 + $0x48] sm:$0xf] }
  0xe4   : > { %2400 = vmatpush.bf16.msrb.mxu3 %v8409_v56  ;;  %v8217_v56 = vor.u32 %v10583_v44, %v8214_v35  ;;  %v8205_v63 = vor.u32 %v10582_v53, %v8204_v41  ;;  %v10538_v35 = vld [vmem:[%s11374_s27 + $0x94] sm:$0xf0] }
  0xe5   : > { %2359 = vmatpush.bf16.msrb.mxu0 %v8009_v1  ;;  %v8333_v1 = vor.u32 %v10614_v54, %v8332_v0  ;;  %v10602_v41 = vld [vmem:[%s11374_s27 + $0x294] sm:$0xf0] }
  0xe6   : > { %2373 = vmatpush.bf16.msrb.mxu1 %v8137_v3  ;;  %v8060_v3 = vld [vmem:[%s11374_s27 + $0xc8] sm:$0xf]  ;;  %v10634_v53 = vld [vmem:[%s11374_s27 + $0x394] sm:$0xf0]  ;;  %v8285_v57 = vor.u32 %v10602_v41, %v8284_v51 }
  0xe7   : > { %2387 = vmatpush.bf16.msrb.mxu2 %v8265_v6  ;;  %v10546_v6 = vld [vmem:[%s11374_s27 + $0xd4] sm:$0xf0]  ;;  %v1440_v13 = vpop.f32.mrf.mxu0  ;;  %v7964_v41 = vld [vmem:[%s11374_s27 + $0x8] sm:$0xf] }
  0xe8   : > { %2401 = vmatpush.bf16.msrb.mxu3 %v8393_v11  ;;  %v8316_v11 = vld [vmem:[%s11374_s27 + $0x2c8] sm:$0xf]  ;;  %v1454_v14 = vpop.f32.mrf.mxu1 }
  0xe9   : > { %2360 = vmatpush.bf16.msrb.mxu0 %v7993_v18  ;;  %v1455_v18 = vadd.f32 %v1454_v14, %v1440_v13  ;;  %v8317_v21 = vor.u32 %v10610_v9, %v8316_v11  ;;  %v1482_v36 = vpop.f32.mrf.mxu3 }
  0xea   : > { %2374 = vmatpush.bf16.msrb.mxu1 %v8121_v25  ;;  %v8061_v25 = vor.u32 %v10546_v6, %v8060_v3  ;;  %v10566_v3 = vld [vmem:[%s11374_s27 + $0x174] sm:$0xf0]  ;;  %v8268_v6 = vld [vmem:[%s11374_s27 + $0x268] sm:$0xf] }
  0xeb   : > { %2388 = vmatpush.bf16.msrb.mxu2 %v8249_v26  ;;  %v1468_v26 = vpop.f32.mrf.mxu2  ;;  %v8269_v14 = vor.u32 %v10598_v7, %v8268_v6  ;;  %v8348_v6 = vld [vmem:[%s11374_s27 + $0x308] sm:$0xf]  ;;  %v10618_v7 = vld [vmem:[%s11374_s27 + $0x314] sm:$0xf0] }
  0xec   : > { %2402 = vmatpush.bf16.msrb.mxu3 %v8377_v28  ;;  %v1469_v27 = vadd.f32 %v1468_v26, %v1455_v18  ;;  %v8044_v28 = vld [vmem:[%s11374_s27 + $0xa8] sm:$0xf]  ;;  %v10562_v26 = vld [vmem:[%s11374_s27 + $0x154] sm:$0xf0] }
  0xed   : > { %2361 = vmatpush.bf16.msrb.mxu0 %v7977_v34  ;;  %v10606_v34 = vld [vmem:[%s11374_s27 + $0x2b4] sm:$0xf0]  ;;  %v8045_v42 = vor.u32 %v10542_v29, %v8044_v28  ;;  %v8124_v18 = vld [vmem:[%s11374_s27 + $0x148] sm:$0xf]  ;;  %v7997_v29 = vor.u32 %v10530_v17, %v7996_v16  ;;  %v10612_v16 = vld [vmem:[%s11374_s27 + $0x2ec] sm:$0xf] }
  0xee   : > { %2375 = vmatpush.bf16.msrb.mxu1 %v8105_v38  ;;  %v10638_v38 = vld [vmem:[%s11374_s27 + $0x3b4] sm:$0xf0]  ;;  %v8301_v44 = vor.u32 %v10606_v34, %v8300_v33  ;;  %v8125_v32 = vor.u32 %v10562_v26, %v8124_v18  ;;  %v7980_v34 = vld [vmem:[%s11374_s27 + $0x28] sm:$0xf]  ;;  %v8334_v17 = vld [vmem:[%s11374_s27 + $0x2f8] sm:$0xf0] }
  0xef   : > { %2389 = vmatpush.bf16.msrb.mxu2 %v8233_v40  ;;  %v12072_v40 = vadd.f32 %v1482_v36, %v1469_v27  ;;  %v8429_v48 = vor.u32 %v10638_v38, %v8428_v37  ;;  %v12083_v54 = vpop.f32.mrf.mxu0  ;;  %v8380_v27 = vld [vmem:[%s11374_s27 + $0x348] sm:$0xf]  ;;  %v10626_v28 = vld [vmem:[%s11374_s27 + $0x354] sm:$0xf0]  ;;  %v10644_v26 = vld [vmem:[%s11374_s27 + $0x3ec] sm:$0xf] }
  0xf0   : > { %2403 = vmatpush.bf16.msrb.mxu3 %v8361_v46  ;;  %v8028_v46 = vld [vmem:[%s11374_s27 + $0x88] sm:$0xf]  ;;  %v10526_v36 = vld [vmem:[%s11374_s27 + $0x34] sm:$0xf0] }
  0xf1   : > { %2362 = vmatpush.bf16.msrb.mxu0 %v7961_v52  ;;  %v8412_v52 = vld [vmem:[%s11374_s27 + $0x388] sm:$0xf]  ;;  %v8029_v0 = vor.u32 %v10538_v35, %v8028_v46  ;;  %v12097_v9 = vpop.f32.mrf.mxu3  ;;  %v10590_v46 = vld [vmem:[%s11374_s27 + $0x234] sm:$0xf0]  ;;  %v7981_v51 = vor.u32 %v10526_v36, %v7980_v34  ;;  %v8190_v34 = vld [vmem:[%s11374_s27 + $0x1d8] sm:$0xf0] }
  0xf2   : > { %2376 = vmatpush.bf16.msrb.mxu1 %v8089_v55  ;;  %v12085_v55 = vpop.f32.mrf.mxu1  ;;  %v8108_v37 = vld [vmem:[%s11374_s27 + $0x128] sm:$0xf]  ;;  %v10608_v36 = vld [vmem:[%s11374_s27 + $0x2cc] sm:$0xf] }
  0xf3   : > { %2390 = vmatpush.bf16.msrb.mxu2 %v8217_v56  ;;  %v8157_v56 = vor.u32 %v10570_v60, %v8156_v47  ;;  %v8364_v47 = vld [vmem:[%s11374_s27 + $0x328] sm:$0xf] }
  0xf4   : > { %2404 = vmatpush.bf16.msrb.mxu3 %v8345_v61  ;;  %2363 = vmatmul.bf16.vlgmr.msrb.gmra.mxu0 %v11721_v49  ;;  %v10534_v61 = vld [vmem:[%s11374_s27 + $0x74] sm:$0xf0] }
  0xf5   : > { %2411 = vmatpush.bf16.msra.mxu0 %v8077_v62  ;;  %2377 = vmatmul.bf16.vlgmr.msrb.gmra.mxu1 %v11730_v58  ;;  %v8140_v62 = vld [vmem:[%s11374_s27 + $0x168] sm:$0xf]  ;;  %v8013_v11 = vor.u32 %v10534_v61, %v8012_v59  ;;  %v10554_v59 = vld [vmem:[%s11374_s27 + $0x114] sm:$0xf0] }
  0xf6   : > { %2425 = vmatpush.bf16.msra.mxu1 %v8205_v63  ;;  %2391 = vmatmul.bf16.vlgmr.msrb.gmra.mxu2 %v11691_v20  ;;  %v8413_v63 = vor.u32 %v10634_v53, %v8412_v52  ;;  %v8141_v13 = vor.u32 %v10566_v3, %v8140_v62  ;;  %v10522_v52 = vld [vmem:[%s11374_s27 + $0x14] sm:$0xf0]  ;;  %v8220_v61 = vld [vmem:[%s11374_s27 + $0x208] sm:$0xf] }
  0xf7   : > { %2439 = vmatpush.bf16.msra.mxu2 %v8333_v1  ;;  %2405 = vmatmul.bf16.vlgmr.msrb.gmra.mxu3 %v11699_v23  ;;  %v12090_v1 = vpop.f32.mrf.mxu2  ;;  %v1496_v30 = vpop.f32.mrf.mxu0  ;;  %v10586_v3 = vld [vmem:[%s11374_s27 + $0x214] sm:$0xf0] }
  0xf8   : > { %2453 = vmatpush.bf16.msra.mxu3 %v8461_v8  ;;  %v8396_v8 = vld [vmem:[%s11374_s27 + $0x368] sm:$0xf] }
  0xf9   : > { %2412 = vmatpush.bf16.msra.mxu0 %v8061_v25  ;;  %v8397_v25 = vor.u32 %v10630_v10, %v8396_v8  ;;  %v10548_v8 = vld [vmem:[%s11374_s27 + $0xec] sm:$0xf]  ;;  %v8078_v10 = vld [vmem:[%s11374_s27 + $0xf8] sm:$0xf0] }
  0xfa   : > { %2426 = vmatpush.bf16.msra.mxu1 %v8189_v19  ;;  %v8252_v19 = vld [vmem:[%s11374_s27 + $0x248] sm:$0xf]  ;;  %v1538_v53 = vpop.f32.mrf.mxu3 }
  0xfb   : > { %2440 = vmatpush.bf16.msra.mxu2 %v8317_v21  ;;  %v10594_v21 = vld [vmem:[%s11374_s27 + $0x254] sm:$0xf0] }
  0xfc   : > { %2454 = vmatpush.bf16.msra.mxu3 %v8445_v31  ;;  %v1510_v31 = vpop.f32.mrf.mxu1  ;;  %v8253_v33 = vor.u32 %v10594_v21, %v8252_v19  ;;  %v8462_v19 = vld [vmem:[%s11374_s27 + $0x3f8] sm:$0xf0]  ;;  %v8349_v21 = vor.u32 %v10618_v7, %v8348_v6  ;;  %v10568_v7 = vld [vmem:[%s11374_s27 + $0x18c] sm:$0xf] }
  0xfd   : > { %2413 = vmatpush.bf16.msra.mxu0 %v8045_v42  ;;  %v1511_v38 = vadd.f32 %v1510_v31, %v1496_v30  ;;  %v8381_v42 = vor.u32 %v10626_v28, %v8380_v27  ;;  %v8081_v27 = vor.u32 %v10548_v8, %v8078_v10  ;;  %v10544_v30 = vld [vmem:[%s11374_s27 + $0xcc] sm:$0xf]  ;;  %v8062_v31 = vld [vmem:[%s11374_s27 + $0xd8] sm:$0xf0] }
  0xfe   : > { %2427 = vmatpush.bf16.msra.mxu1 %v8173_v43  ;;  %v10558_v43 = vld [vmem:[%s11374_s27 + $0x134] sm:$0xf0]  ;;  %v8030_v6 = vld [vmem:[%s11374_s27 + $0x98] sm:$0xf0] }
  0xff   : > { %2441 = vmatpush.bf16.msra.mxu2 %v8301_v44  ;;  %v8236_v44 = vld [vmem:[%s11374_s27 + $0x228] sm:$0xf]  ;;  %v1524_v35 = vpop.f32.mrf.mxu2 }
 0x100   : > { %2455 = vmatpush.bf16.msra.mxu3 %v8429_v48  ;;  %v10622_v48 = vld [vmem:[%s11374_s27 + $0x334] sm:$0xf0]  ;;  %v1525_v60 = vadd.f32 %v1524_v35, %v1511_v38  ;;  %v10640_v38 = vld [vmem:[%s11374_s27 + $0x3cc] sm:$0xf] }
 0x101   : > { %2414 = vmatpush.bf16.msra.mxu0 %v8029_v0  ;;  %v8109_v0 = vor.u32 %v10558_v43, %v8108_v37  ;;  %v8318_v37 = vld [vmem:[%s11374_s27 + $0x2d8] sm:$0xf0]  ;;  %v8065_v43 = vor.u32 %v10544_v30, %v8062_v31  ;;  %v10540_v35 = vld [vmem:[%s11374_s27 + $0xac] sm:$0xf] }
 0x102   : > { %2428 = vmatpush.bf16.msra.mxu1 %v8157_v56  ;;  %v8237_v56 = vor.u32 %v10590_v46, %v8236_v44  ;;  %v12120_v62 = vadd.f32 %v1538_v53, %v1525_v60  ;;  %v8321_v46 = vor.u32 %v10608_v36, %v8318_v37  ;;  %v12144_v60 = vpop.f32.mrf.mxu0  ;;  %v10604_v53 = vld [vmem:[%s11374_s27 + $0x2ac] sm:$0xf] }
 0x103   : > { %2442 = vmatpush.bf16.msra.mxu2 %v8285_v57  ;;  %v8092_v57 = vld [vmem:[%s11374_s27 + $0x108] sm:$0xf]  ;;  %v10628_v37 = vld [vmem:[%s11374_s27 + $0x36c] sm:$0xf] }
 0x104   : > { %2456 = vmatpush.bf16.msra.mxu3 %v8413_v63  ;;  %v8365_v63 = vor.u32 %v10622_v48, %v8364_v47  ;;  %v8093_v18 = vor.u32 %v10554_v59, %v8092_v57  ;;  %v8046_v47 = vld [vmem:[%s11374_s27 + $0xb8] sm:$0xf0]  ;;  %v10572_v48 = vld [vmem:[%s11374_s27 + $0x1ac] sm:$0xf] }
 0x105   : > { %2415 = vmatpush.bf16.msra.mxu0 %v8013_v11  ;;  %v10580_v11 = vld [vmem:[%s11374_s27 + $0x1ec] sm:$0xf]  ;;  %v8430_v57 = vld [vmem:[%s11374_s27 + $0x3b8] sm:$0xf0]  ;;  %v8049_v59 = vor.u32 %v10540_v35, %v8046_v47 }
 0x106   : > { %2429 = vmatpush.bf16.msra.mxu1 %v8141_v13  ;;  %v7965_v13 = vor.u32 %v10522_v52, %v7964_v41  ;;  %v8174_v52 = vld [vmem:[%s11374_s27 + $0x1b8] sm:$0xf0]  ;;  %v10560_v47 = vld [vmem:[%s11374_s27 + $0x14c] sm:$0xf] }
 0x107   : > { %2443 = vmatpush.bf16.msra.mxu2 %v8269_v14  ;;  %v8206_v14 = vld [vmem:[%s11374_s27 + $0x1f8] sm:$0xf0]  ;;  %v12160_v8 = vpop.f32.mrf.mxu2 }
 0x108   : > { %2457 = vmatpush.bf16.msra.mxu3 %v8397_v25  ;;  %v8221_v25 = vor.u32 %v10586_v3, %v8220_v61  ;;  %v8209_v28 = vor.u32 %v10580_v11, %v8206_v14  ;;  %v8177_v61 = vor.u32 %v10572_v48, %v8174_v52  ;;  %v10536_v3 = vld [vmem:[%s11374_s27 + $0x8c] sm:$0xf]  ;;  %v8158_v11 = vld [vmem:[%s11374_s27 + $0x198] sm:$0xf0] }
 0x109   : > { %2416 = vmatpush.bf16.msra.mxu0 %v7997_v29  ;;  %v8337_v29 = vor.u32 %v10612_v16, %v8334_v17  ;;  %v8286_v14 = vld [vmem:[%s11374_s27 + $0x298] sm:$0xf0]  ;;  %v10632_v16 = vld [vmem:[%s11374_s27 + $0x38c] sm:$0xf] }
 0x10a   : > { %2430 = vmatpush.bf16.msra.mxu1 %v8125_v32  ;;  %v10576_v32 = vld [vmem:[%s11374_s27 + $0x1cc] sm:$0xf]  ;;  %v8414_v17 = vld [vmem:[%s11374_s27 + $0x398] sm:$0xf0] }
 0x10b   : > { %2444 = vmatpush.bf16.msra.mxu2 %v8253_v33  ;;  %v8465_v33 = vor.u32 %v10644_v26, %v8462_v19  ;;  %v8193_v44 = vor.u32 %v10576_v32, %v8190_v34  ;;  %v8161_v26 = vor.u32 %v10568_v7, %v8158_v11  ;;  %v8417_v31 = vor.u32 %v10632_v16, %v8414_v17  ;;  %v8142_v32 = vld [vmem:[%s11374_s27 + $0x178] sm:$0xf0]  ;;  %v10588_v17 = vld [vmem:[%s11374_s27 + $0x22c] sm:$0xf] }
 0x10c   : > { %2458 = vmatpush.bf16.msra.mxu3 %v8381_v42  ;;  %v8446_v42 = vld [vmem:[%s11374_s27 + $0x3d8] sm:$0xf0] }
 0x10d   : > { %2417 = vmatpush.bf16.msra.mxu0 %v7981_v51  ;;  %v12146_v51 = vpop.f32.mrf.mxu1  ;;  %v8449_v41 = vor.u32 %v10640_v38, %v8446_v42  ;;  %v8270_v34 = vld [vmem:[%s11374_s27 + $0x278] sm:$0xf0] }
 0x10e   : > { %2431 = vmatpush.bf16.msra.mxu1 %v8109_v0  ;;  %v8302_v0 = vld [vmem:[%s11374_s27 + $0x2b8] sm:$0xf0] }
 0x10f   : > { %2445 = vmatpush.bf16.msra.mxu2 %v8237_v56  ;;  %v10636_v56 = vld [vmem:[%s11374_s27 + $0x3ac] sm:$0xf]  ;;  %v8398_v38 = vld [vmem:[%s11374_s27 + $0x378] sm:$0xf0] }
 0x110   : > { %2459 = vmatpush.bf16.msra.mxu3 %v8365_v63  ;;  %v8305_v63 = vor.u32 %v10604_v53, %v8302_v0  ;;  %v8433_v10 = vor.u32 %v10636_v56, %v8430_v57  ;;  %v7998_v35 = vld [vmem:[%s11374_s27 + $0x58] sm:$0xf0]  ;;  %v10592_v53 = vld [vmem:[%s11374_s27 + $0x24c] sm:$0xf] }
 0x111   : > { %2418 = vmatpush.bf16.msra.mxu0 %v7965_v13  ;;  %v10600_v13 = vld [vmem:[%s11374_s27 + $0x28c] sm:$0xf]  ;;  %v8126_v52 = vld [vmem:[%s11374_s27 + $0x158] sm:$0xf0] }
 0x112   : > { %2432 = vmatpush.bf16.msra.mxu1 %v8093_v18  ;;  %v12167_v18 = vpop.f32.mrf.mxu3  ;;  %v8289_v19 = vor.u32 %v10600_v13, %v8286_v14  ;;  %v8254_v0 = vld [vmem:[%s11374_s27 + $0x258] sm:$0xf0]  ;;  %v10624_v57 = vld [vmem:[%s11374_s27 + $0x34c] sm:$0xf] }
 0x113   : > { %2446 = vmatpush.bf16.msra.mxu2 %v8221_v25  ;;  %v8033_v25 = vor.u32 %v10536_v3, %v8030_v6  ;;  %v8129_v6 = vor.u32 %v10560_v47, %v8126_v52  ;;  %v8257_v7 = vor.u32 %v10592_v53, %v8254_v0  ;;  %v7982_v11 = vld [vmem:[%s11374_s27 + $0x38] sm:$0xf0]  ;;  %v10556_v13 = vld [vmem:[%s11374_s27 + $0x12c] sm:$0xf]  ;;  %v8836_v47 = vld [vmem:[%s11374_s27 + $0xae0] sm:$0xf] }
 0x114   : > { %2460 = vmatpush.bf16.msra.mxu3 %v8349_v21  ;;  %2419 = vmatmul.bf16.vlgmr.msra.gmra.mxu0 %v11721_v49  ;;  %v10532_v21 = vld [vmem:[%s11374_s27 + $0x6c] sm:$0xf]  ;;  %v8110_v16 = vld [vmem:[%s11374_s27 + $0x138] sm:$0xf0]  ;;  %v8964_v53 = vld [vmem:[%s11374_s27 + $0xbe0] sm:$0xf] }
 0x115   : > { %2467 = vmatpush.bf16.msrb.mxu0 %v8081_v27  ;;  %2433 = vmatmul.bf16.vlgmr.msra.gmra.mxu1 %v11730_v58  ;;  %v8014_v27 = vld [vmem:[%s11374_s27 + $0x78] sm:$0xf0]  ;;  %v1566_v30 = vpop.f32.mrf.mxu1  ;;  %v10901_v0 = vld [vmem:[%s11374_s27 + $0xbec] sm:$0xf0] }
 0x116   : > { %2481 = vmatpush.bf16.msrb.mxu1 %v8209_v28  ;;  %2447 = vmatmul.bf16.vlgmr.msra.gmra.mxu2 %v11691_v20  ;;  %v10564_v28 = vld [vmem:[%s11374_s27 + $0x16c] sm:$0xf]  ;;  %v8017_v42 = vor.u32 %v10532_v21, %v8014_v27 }
 0x117   : > { %2495 = vmatpush.bf16.msrb.mxu2 %v8337_v29  ;;  %2461 = vmatmul.bf16.vlgmr.msra.gmra.mxu3 %v11699_v23  ;;  %v1552_v29 = vpop.f32.mrf.mxu0  ;;  %v10520_v27 = vld [vmem:[%s11374_s27 + $0xc] sm:$0xf] }
 0x118   : > { %2509 = vmatpush.bf16.msrb.mxu3 %v8465_v33  ;;  %v10596_v33 = vld [vmem:[%s11374_s27 + $0x26c] sm:$0xf]  ;;  %v1567_v36 = vadd.f32 %v1566_v30, %v1552_v29  ;;  %v8113_v29 = vor.u32 %v10556_v13, %v8110_v16  ;;  %v8820_v13 = vld [vmem:[%s11374_s27 + $0xac0] sm:$0xf] }
 0x119   : > { %2468 = vmatpush.bf16.msrb.mxu0 %v8065_v43  ;;  %v8145_v43 = vor.u32 %v10564_v28, %v8142_v32  ;;  %v1580_v48 = vpop.f32.mrf.mxu2  ;;  %v7966_v28 = vld [vmem:[%s11374_s27 + $0x18] sm:$0xf0]  ;;  %v8948_v16 = vld [vmem:[%s11374_s27 + $0xbc0] sm:$0xf] }
 0x11a   : > { %2482 = vmatpush.bf16.msrb.mxu1 %v8193_v44  ;;  %v8273_v44 = vor.u32 %v10596_v33, %v8270_v34  ;;  %v1581_v56 = vadd.f32 %v1580_v48, %v1567_v36  ;;  %v8094_v32 = vld [vmem:[%s11374_s27 + $0x118] sm:$0xf0]  ;;  %v10584_v33 = vld [vmem:[%s11374_s27 + $0x20c] sm:$0xf]  ;;  %v10869_v48 = vld [vmem:[%s11374_s27 + $0xaec] sm:$0xf0] }
 0x11b   : > { %2496 = vmatpush.bf16.msrb.mxu2 %v8321_v46  ;;  %v10528_v46 = vld [vmem:[%s11374_s27 + $0x4c] sm:$0xf]  ;;  %v8222_v36 = vld [vmem:[%s11374_s27 + $0x218] sm:$0xf0] }
 0x11c   : > { %2510 = vmatpush.bf16.msrb.mxu3 %v8449_v41  ;;  %v8401_v41 = vor.u32 %v10628_v37, %v8398_v38  ;;  %v10616_v37 = vld [vmem:[%s11374_s27 + $0x30c] sm:$0xf]  ;;  %v8350_v38 = vld [vmem:[%s11374_s27 + $0x318] sm:$0xf0]  ;;  %v8225_v52 = vor.u32 %v10584_v33, %v8222_v36  ;;  %v8804_v33 = vld [vmem:[%s11374_s27 + $0xaa0] sm:$0xf] }
 0x11d   : > { %2469 = vmatpush.bf16.msrb.mxu0 %v8049_v59  ;;  %v8382_v59 = vld [vmem:[%s11374_s27 + $0x358] sm:$0xf0]  ;;  %v8932_v36 = vld [vmem:[%s11374_s27 + $0xba0] sm:$0xf] }
 0x11e   : > { %2483 = vmatpush.bf16.msrb.mxu1 %v8177_v61  ;;  %v1594_v61 = vpop.f32.mrf.mxu3  ;;  %v8385_v14 = vor.u32 %v10624_v57, %v8382_v59 }
 0x11f   : > { %2497 = vmatpush.bf16.msrb.mxu2 %v8305_v63  ;;  %v8001_v63 = vor.u32 %v10528_v46, %v7998_v35  ;;  %v12185_v3 = vadd.f32 %v1594_v61, %v1581_v56  ;;  %v7969_v46 = vor.u32 %v10520_v27, %v7966_v28  ;;  %v10837_v35 = vld [vmem:[%s11374_s27 + $0x9ec] sm:$0xf0]  ;;  %v8353_v56 = vor.u32 %v10616_v37, %v8350_v38  ;;  %v8548_v28 = vld [vmem:[%s11374_s27 + $0x8a0] sm:$0xf] }
 0x120   : > { %2511 = vmatpush.bf16.msrb.mxu3 %v8433_v10  ;;  %v10524_v10 = vld [vmem:[%s11374_s27 + $0x2c] sm:$0xf]  ;;  %v8837_v61 = vor.u32 %v10869_v48, %v8836_v47  ;;  %v10893_v37 = vld [vmem:[%s11374_s27 + $0xbac] sm:$0xf0]  ;;  %v8916_v48 = vld [vmem:[%s11374_s27 + $0xb80] sm:$0xf] }
 0x121   : > { %2470 = vmatpush.bf16.msrb.mxu0 %v8033_v25  ;;  %v8238_v25 = vld [vmem:[%s11374_s27 + $0x238] sm:$0xf0]  ;;  %v7985_v21 = vor.u32 %v10524_v10, %v7982_v11  ;;  %v8965_v10 = vor.u32 %v10901_v0, %v8964_v53  ;;  %v10833_v11 = vld [vmem:[%s11374_s27 + $0x9cc] sm:$0xf0] }
 0x122   : > { %2484 = vmatpush.bf16.msrb.mxu1 %v8161_v26  ;;  %v10620_v26 = vld [vmem:[%s11374_s27 + $0x32c] sm:$0xf]  ;;  %v8241_v30 = vor.u32 %v10588_v17, %v8238_v25  ;;  %v10897_v17 = vld [vmem:[%s11374_s27 + $0xbcc] sm:$0xf0] }
 0x123   : > { %2498 = vmatpush.bf16.msrb.mxu2 %v8289_v19  ;;  %v8366_v19 = vld [vmem:[%s11374_s27 + $0x338] sm:$0xf0]  ;;  %v10857_v47 = vld [vmem:[%s11374_s27 + $0xa8c] sm:$0xf0] }
 0x124   : > { %2512 = vmatpush.bf16.msrb.mxu3 %v8417_v31  ;;  %v10552_v31 = vld [vmem:[%s11374_s27 + $0x10c] sm:$0xf]  ;;  %v8369_v34 = vor.u32 %v10620_v26, %v8366_v19  ;;  %v12219_v26 = vpop.f32.mrf.mxu0  ;;  %v12221_v19 = vpop.f32.mrf.mxu1 }
 0x125   : > { %2471 = vmatpush.bf16.msrb.mxu0 %v8017_v42  ;;  %v8580_v42 = vld [vmem:[%s11374_s27 + $0x8e0] sm:$0xf] }
 0x126   : > { %2485 = vmatpush.bf16.msrb.mxu1 %v8145_v43  ;;  %v10805_v43 = vld [vmem:[%s11374_s27 + $0x8ec] sm:$0xf0] }
 0x127   : > { %2499 = vmatpush.bf16.msrb.mxu2 %v8273_v44  ;;  %v8708_v44 = vld [vmem:[%s11374_s27 + $0x9e0] sm:$0xf]  ;;  %v8581_v57 = vor.u32 %v10805_v43, %v8580_v42 }
 0x128   : > { %2513 = vmatpush.bf16.msrb.mxu3 %v8401_v41  ;;  %v8097_v41 = vor.u32 %v10552_v31, %v8094_v32  ;;  %v8709_v59 = vor.u32 %v10837_v35, %v8708_v44  ;;  %v8949_v31 = vor.u32 %v10897_v17, %v8948_v16  ;;  %v10829_v32 = vld [vmem:[%s11374_s27 + $0x9ac] sm:$0xf0]  ;;  %v8532_v43 = vld [vmem:[%s11374_s27 + $0x880] sm:$0xf] }
 0x129   : > { %2472 = vmatpush.bf16.msrb.mxu0 %v8001_v63  ;;  %v8564_v63 = vld [vmem:[%s11374_s27 + $0x8c0] sm:$0xf]  ;;  %v10793_v44 = vld [vmem:[%s11374_s27 + $0x88c] sm:$0xf0] }
 0x12a   : > { %2486 = vmatpush.bf16.msrb.mxu1 %v8129_v6  ;;  %v10801_v6 = vld [vmem:[%s11374_s27 + $0x8cc] sm:$0xf0]  ;;  %v8788_v35 = vld [vmem:[%s11374_s27 + $0xa80] sm:$0xf]  ;;  %v8533_v53 = vor.u32 %v10793_v44, %v8532_v43 }
 0x12b   : > { %2500 = vmatpush.bf16.msrb.mxu2 %v8257_v7  ;;  %v8692_v7 = vld [vmem:[%s11374_s27 + $0x9c0] sm:$0xf]  ;;  %v8565_v25 = vor.u32 %v10801_v6, %v8564_v63  ;;  %v10789_v63 = vld [vmem:[%s11374_s27 + $0x86c] sm:$0xf0] }
 0x12c   : > { %2514 = vmatpush.bf16.msrb.mxu3 %v8385_v14  ;;  %v10865_v14 = vld [vmem:[%s11374_s27 + $0xacc] sm:$0xf0]  ;;  %v8644_v6 = vld [vmem:[%s11374_s27 + $0x960] sm:$0xf] }
 0x12d   : > { %2473 = vmatpush.bf16.msrb.mxu0 %v7985_v21  ;;  %v8693_v21 = vor.u32 %v10833_v11, %v8692_v7  ;;  %v8821_v27 = vor.u32 %v10865_v14, %v8820_v13  ;;  %v10821_v11 = vld [vmem:[%s11374_s27 + $0x96c] sm:$0xf0]  ;;  %v8772_v13 = vld [vmem:[%s11374_s27 + $0xa60] sm:$0xf] }
 0x12e   : > { %2487 = vmatpush.bf16.msrb.mxu1 %v8113_v29  ;;  %v10797_v29 = vld [vmem:[%s11374_s27 + $0x8ac] sm:$0xf0]  ;;  %v8900_v16 = vld [vmem:[%s11374_s27 + $0xb60] sm:$0xf] }
 0x12f   : > { %2501 = vmatpush.bf16.msrb.mxu2 %v8241_v30  ;;  %v8676_v30 = vld [vmem:[%s11374_s27 + $0x9a0] sm:$0xf]  ;;  %v10853_v14 = vld [vmem:[%s11374_s27 + $0xa6c] sm:$0xf0] }
 0x130   : > { %2515 = vmatpush.bf16.msrb.mxu3 %v8369_v34  ;;  %v10861_v34 = vld [vmem:[%s11374_s27 + $0xaac] sm:$0xf0]  ;;  %v8677_v38 = vor.u32 %v10829_v32, %v8676_v30  ;;  %v8628_v30 = vld [vmem:[%s11374_s27 + $0x940] sm:$0xf] }
 0x131   : > { %2474 = vmatpush.bf16.msrb.mxu0 %v7969_v46  ;;  %v8805_v42 = vor.u32 %v10861_v34, %v8804_v33  ;;  %v8933_v46 = vor.u32 %v10893_v37, %v8932_v36  ;;  %v1608_v0 = vpop.f32.mrf.mxu0  ;;  %v10885_v17 = vld [vmem:[%s11374_s27 + $0xb6c] sm:$0xf0]  ;;  %v8756_v33 = vld [vmem:[%s11374_s27 + $0xa40] sm:$0xf] }
 0x132   : > { %2488 = vmatpush.bf16.msrb.mxu1 %v8097_v41  ;;  %v10889_v41 = vld [vmem:[%s11374_s27 + $0xb8c] sm:$0xf0]  ;;  %v8901_v32 = vor.u32 %v10885_v17, %v8900_v16  ;;  %v2524_v37 = vld [vmem:[#allocation2] sm:$0xee] }
 0x133   : > { %2502 = vmatpush.bf16.msrb.mxu2 %v8225_v52  ;;  %v12245_v52 = vpop.f32.mrf.mxu3  ;;  %v10849_v34 = vld [vmem:[%s11374_s27 + $0xa4c] sm:$0xf0]  ;;  %v2523_v43 = vld [vmem:[#allocation2 + $0x40] sm:$0xee] }
 0x134   : > { %2516 = vmatpush.bf16.msrb.mxu3 %v8353_v56  ;;  %2475 = vmatmul.bf16.vlgmr.msrb.gmra.mxu0 %v11721_v49  ;;  %v8549_v49 = vor.u32 %v10797_v29, %v8548_v28  ;;  %14139 = vst [vmem:[#allocation4_spill] sm:$0xff] %v12245_v52  ;;  %v1622_v56 = vpop.f32.mrf.mxu1  ;;  %v8773_v28 = vor.u32 %v10853_v14, %v8772_v13  ;;  %v10785_v29 = vld [vmem:[%s11374_s27 + $0x84c] sm:$0xf0]  ;;  %v2656_v13 = vunpack.c.h.b16 %v2523_v43  ;;  %v8596_v16 = vld [vmem:[%s11374_s27 + $0x900] sm:$0xf] }
 0x135   : > { %3320 = vmatpush.bf16.msra.mxu0 %v8581_v57  ;;  %2489 = vmatmul.bf16.vlgmr.msrb.gmra.mxu1 %v11730_v58  ;;  %v10825_v58 = vld [vmem:[%s11374_s27 + $0x98c] sm:$0xf0]  ;;  %v1623_v7 = vadd.f32 %v1622_v56, %v1608_v0 }
 0x136   : > { %3334 = vmatpush.bf16.msra.mxu1 %v8709_v59  ;;  %2503 = vmatmul.bf16.vlgmr.msrb.gmra.mxu2 %v11691_v20  ;;  %v8660_v20 = vld [vmem:[%s11374_s27 + $0x980] sm:$0xf]  ;;  %v8789_v59 = vor.u32 %v10857_v47, %v8788_v35  ;;  %v8757_v35 = vor.u32 %v10849_v34, %v8756_v33  ;;  %v10781_v47 = vld [vmem:[%s11374_s27 + $0x82c] sm:$0xf0]  ;;  %v10803_v33 = vld [vmem:[%s11374_s27 + $0x8e4] sm:$0xf] }
 0x137   : > { %3348 = vmatpush.bf16.msra.mxu2 %v8837_v61  ;;  %2517 = vmatmul.bf16.vlgmr.msrb.gmra.mxu3 %v11699_v23  ;;  %v12241_v23 = vpop.f32.mrf.mxu2  ;;  %v8661_v57 = vor.u32 %v10825_v58, %v8660_v20  ;;  %v8516_v61 = vld [vmem:[%s11374_s27 + $0x860] sm:$0xf]  ;;  %v10809_v17 = vld [vmem:[%s11374_s27 + $0x90c] sm:$0xf0]  ;;  %v8582_v34 = vld [vmem:[%s11374_s27 + $0x8f0] sm:$0xf0] }
 0x138   : > { %3362 = vmatpush.bf16.msra.mxu3 %v8965_v10  ;;  %v8917_v10 = vor.u32 %v10889_v41, %v8916_v48  ;;  %v8484_v20 = vld [vmem:[%s11374_s27 + $0x820] sm:$0xf]  ;;  %v10813_v41 = vld [vmem:[%s11374_s27 + $0x92c] sm:$0xf0]  ;;  %v8585_v5 = vor.u32 %v10803_v33, %v8582_v34  ;;  %v8678_v33 = vld [vmem:[%s11374_s27 + $0x9b0] sm:$0xf0] }
 0x139   : > { %3321 = vmatpush.bf16.msra.mxu0 %v8565_v25  ;;  %v8517_v25 = vor.u32 %v10789_v63, %v8516_v61  ;;  %v8612_v48 = vld [vmem:[%s11374_s27 + $0x920] sm:$0xf]  ;;  %v2658_v63 = vunpack.c.h.b16 %v2524_v37  ;;  %v8485_v14 = vor.u32 %v10781_v47, %v8484_v20  ;;  %v2674_v47 = vrot.slane %v11701_v24, 1  ;;  %v8822_v24 = vld [vmem:[%s11374_s27 + $0xad0] sm:$0xf0] }
 0x13a   : > { %3335 = vmatpush.bf16.msra.mxu1 %v8693_v21  ;;  %v8500_v21 = vld [vmem:[%s11374_s27 + $0x840] sm:$0xf]  ;;  %v10859_v34 = vld [vmem:[%s11374_s27 + $0xaa4] sm:$0xf]  ;;  %v12713_v52 = vld [vmem:[#allocation2 + $0x30] sm:$0xff] }
 0x13b   : > { %3349 = vmatpush.bf16.msra.mxu2 %v8821_v27  ;;  %v8645_v27 = vor.u32 %v10821_v11, %v8644_v6  ;;  %v8501_v44 = vor.u32 %v10785_v29, %v8500_v21  ;;  %v8868_v61 = vld [vmem:[%s11374_s27 + $0xb20] sm:$0xf]  ;;  %v2655_v6 = vunpack.c.l.b16 %v2523_v43  ;;  %v10777_v11 = vld [vmem:[%s11374_s27 + $0x80c] sm:$0xf0]  ;;  %v8613_v21 = vor.u32 %v10813_v41, %v8612_v48  ;;  %v10799_v48 = vld [vmem:[%s11374_s27 + $0x8c4] sm:$0xf] }
 0x13c   : > { %3363 = vmatpush.bf16.msra.mxu3 %v8949_v31  ;;  %v10817_v31 = vld [vmem:[%s11374_s27 + $0x94c] sm:$0xf0]  ;;  %v8852_v29 = vld [vmem:[%s11374_s27 + $0xb00] sm:$0xf]  ;;  %v8597_v43 = vor.u32 %v10809_v17, %v8596_v16  ;;  %v8950_v16 = vld [vmem:[%s11374_s27 + $0xbd0] sm:$0xf0] }
 0x13d   : > { %3322 = vmatpush.bf16.msra.mxu0 %v8549_v49  ;;  %v8884_v49 = vld [vmem:[%s11374_s27 + $0xb40] sm:$0xf]  ;;  %v8629_v58 = vor.u32 %v10817_v31, %v8628_v30  ;;  %v10873_v30 = vld [vmem:[%s11374_s27 + $0xb0c] sm:$0xf0] }
 0x13e   : > { %3336 = vmatpush.bf16.msra.mxu1 %v8677_v38  ;;  %v10881_v38 = vld [vmem:[%s11374_s27 + $0xb4c] sm:$0xf0]  ;;  %v8853_v20 = vor.u32 %v10873_v30, %v8852_v29  ;;  %v10795_v29 = vld [vmem:[%s11374_s27 + $0x8a4] sm:$0xf]  ;;  %v8550_v30 = vld [vmem:[%s11374_s27 + $0x8b0] sm:$0xf0] }
 0x13f   : > { %3350 = vmatpush.bf16.msra.mxu2 %v8805_v42  ;;  %v1636_v36 = vpop.f32.mrf.mxu2  ;;  %v8885_v56 = vor.u32 %v10881_v38, %v8884_v49  ;;  %v10835_v49 = vld [vmem:[%s11374_s27 + $0x9e4] sm:$0xf]  ;;  %v8710_v38 = vld [vmem:[%s11374_s27 + $0x9f0] sm:$0xf0] }
 0x140   : > { %3364 = vmatpush.bf16.msra.mxu3 %v8933_v46  ;;  %v1637_v42 = vadd.f32 %v1636_v36, %v1623_v7  ;;  %v1650_v46 = vpop.f32.mrf.mxu3  ;;  %v10877_v7 = vld [vmem:[%s11374_s27 + $0xb2c] sm:$0xf0]  ;;  %v2662_v36 = vpack.c.b16 %v725_v15, %v2658_v63  ;;  %v8966_v15 = vld [vmem:[%s11374_s27 + $0xbf0] sm:$0xf0]  ;;  %v10831_v63 = vld [vmem:[%s11374_s27 + $0x9c4] sm:$0xf] }
 0x141   : > { %3323 = vmatpush.bf16.msra.mxu0 %v8533_v53  ;;  %v2657_v53 = vunpack.c.l.b16 %v2524_v37  ;;  %v2659_v37 = vpack.c.b16 %v722_v39, %v2655_v6  ;;  %v2668_v6 = vrot.slane %v11745_v4, 1 }
 0x142   : > { %3337 = vmatpush.bf16.msra.mxu1 %v8661_v57  ;;  %v12267_v0 = vadd.f32 %v1650_v46, %v1637_v42  ;;  %v8740_v57 = vld [vmem:[%s11374_s27 + $0xa20] sm:$0xf]  ;;  %v2660_v42 = vpack.c.b16 %v723_v45, %v2656_v13  ;;  %v10867_v46 = vld [vmem:[%s11374_s27 + $0xae4] sm:$0xf]  ;;  %v2673_v45 = vrot.slane %v2662_v36, 1  ;;  %v12309_v13 = vpop.f32.mrf.mxu1 }
 0x143   : > { %3351 = vmatpush.bf16.msra.mxu2 %v8789_v59  ;;  %v10845_v59 = vld [vmem:[%s11374_s27 + $0xa2c] sm:$0xf0]  ;;  %v2661_v31 = vpack.c.b16 %v724_v12, %v2657_v53  ;;  %v2664_v41 = vrot.slane %v2659_v37, 1  ;;  %v2665_v53 = vrot.slane %v11723_v50, 1  ;;  %14141 = vst [vmem:[#allocation6_spill] sm:$0xff] %v12309_v13 }
 0x144   : > { %3365 = vmatpush.bf16.msra.mxu3 %v8917_v10  ;;  %v8468_v10 = vld [vmem:[%s11374_s27 + $0x800] sm:$0xf]  ;;  %v2667_v22 = vrot.slane %v2660_v42, 1  ;;  %v12317_v4 = vsel %vm2663_vm13, %v2673_v45, %v2674_v47  ;;  %v8806_v36 = vld [vmem:[%s11374_s27 + $0xab0] sm:$0xf0] }
 0x145   : > { %3324 = vmatpush.bf16.msra.mxu0 %v8517_v25  ;;  %v8724_v25 = vld [vmem:[%s11374_s27 + $0xa00] sm:$0xf]  ;;  %v8469_v12 = vor.u32 %v10777_v11, %v8468_v10  ;;  %v2670_v39 = vrot.slane %v2661_v31, 1  ;;  %v8694_v10 = vld [vmem:[%s11374_s27 + $0x9d0] sm:$0xf0] }
 0x146   : > { %3338 = vmatpush.bf16.msra.mxu1 %v8645_v27  ;;  %v8741_v27 = vor.u32 %v10845_v59, %v8740_v57  ;;  %v12301_v59 = vpop.f32.mrf.mxu0  ;;  %v10863_v11 = vld [vmem:[%s11374_s27 + $0xac4] sm:$0xf]  ;;  %v8918_v47 = vld [vmem:[%s11374_s27 + $0xb90] sm:$0xf0]  ;;  %v12685_v13 = vld [vmem:[%s11374_s27 + $0x50c] sm:$0xf0] }
 0x147   : > { %3352 = vmatpush.bf16.msra.mxu2 %v8773_v28  ;;  %v10841_v28 = vld [vmem:[%s11374_s27 + $0xa0c] sm:$0xf0]  ;;  %14140 = vst [vmem:[#allocation5_spill] sm:$0xff] %v12301_v59  ;;  %v12312_v50 = vsel %vm2663_vm13, %v2670_v39, %v2671_v2  ;;  %v10827_v31 = vld [vmem:[%s11374_s27 + $0x9a4] sm:$0xf]  ;;  %v12337_v42 = vpop.f32.mrf.mxu2 }
 0x148   : > { %3366 = vmatpush.bf16.msra.mxu3 %v8901_v32  ;;  %v8869_v32 = vor.u32 %v10877_v7, %v8868_v61  ;;  %v8566_v61 = vld [vmem:[%s11374_s27 + $0x8d0] sm:$0xf0]  ;;  %v10891_v37 = vld [vmem:[%s11374_s27 + $0xba4] sm:$0xf]  ;;  %14142 = vst [vmem:[#allocation7_spill] sm:$0xff] %v12337_v42 }
 0x149   : > { %3325 = vmatpush.bf16.msra.mxu0 %v8501_v44  ;;  %v8725_v44 = vor.u32 %v10841_v28, %v8724_v25  ;;  %v8569_v17 = vor.u32 %v10799_v48, %v8566_v61  ;;  %v12320_v25 = vsel %vm2663_vm13, %v2664_v41, %v2665_v53  ;;  %v12323_v28 = vsel %vm2663_vm13, %v2667_v22, %v2668_v6  ;;  %v8790_v39 = vld [vmem:[%s11374_s27 + $0xa90] sm:$0xf0]  ;;  %v10887_v45 = vld [vmem:[%s11374_s27 + $0xb84] sm:$0xf]  ;;  %v12682_v42 = vld [vmem:[%s11374_s27 + $0x500] sm:$0xf] }
 0x14a   : > { %3339 = vmatpush.bf16.msra.mxu1 %v8629_v58  ;;  %v8838_v58 = vld [vmem:[%s11374_s27 + $0xaf0] sm:$0xf0]  ;;  %v10787_v61 = vld [vmem:[%s11374_s27 + $0x864] sm:$0xf]  ;;  %v8921_v6 = vor.u32 %v10887_v45, %v8918_v47  ;;  %v12688_v59 = vld [vmem:[%s11374_s27 + $0x600] sm:$0xf] }
 0x14b   : > { %3353 = vmatpush.bf16.msra.mxu2 %v8757_v35  ;;  %v10899_v35 = vld [vmem:[%s11374_s27 + $0xbe4] sm:$0xf]  ;;  %v8841_v57 = vor.u32 %v10867_v46, %v8838_v58  ;;  %v8534_v46 = vld [vmem:[%s11374_s27 + $0x890] sm:$0xf0] }
 0x14c   : > { %3367 = vmatpush.bf16.msra.mxu3 %v8885_v56  ;;  %v8713_v56 = vor.u32 %v10835_v49, %v8710_v38  ;;  %v8969_v7 = vor.u32 %v10899_v35, %v8966_v15  ;;  %v8934_v49 = vld [vmem:[%s11374_s27 + $0xbb0] sm:$0xf0]  ;;  %v8553_v38 = vor.u32 %v10795_v29, %v8550_v30  ;;  %v10823_v58 = vld [vmem:[%s11374_s27 + $0x984] sm:$0xf] }
 0x14d   : > { %3326 = vmatpush.bf16.msra.mxu0 %v8485_v14  ;;  %v10895_v14 = vld [vmem:[%s11374_s27 + $0xbc4] sm:$0xf]  ;;  %v8937_v35 = vor.u32 %v10891_v37, %v8934_v49  ;;  %v8502_v29 = vld [vmem:[%s11374_s27 + $0x850] sm:$0xf0] }
 0x14e   : > { %3340 = vmatpush.bf16.msra.mxu1 %v8613_v21  ;;  %v8697_v21 = vor.u32 %v10831_v63, %v8694_v10  ;;  %v10855_v15 = vld [vmem:[%s11374_s27 + $0xa84] sm:$0xf]  ;;  %v8518_v63 = vld [vmem:[%s11374_s27 + $0x870] sm:$0xf0] }
 0x14f   : > { %3354 = vmatpush.bf16.msra.mxu2 %v8741_v27  ;;  %v8825_v27 = vor.u32 %v10863_v11, %v8822_v24  ;;  %v10819_v22 = vld [vmem:[%s11374_s27 + $0x964] sm:$0xf]  ;;  %v8646_v10 = vld [vmem:[%s11374_s27 + $0x970] sm:$0xf0] }
 0x150   : > { %3368 = vmatpush.bf16.msra.mxu3 %v8869_v32  ;;  %v8953_v32 = vor.u32 %v10895_v14, %v8950_v16  ;;  %v10851_v11 = vld [vmem:[%s11374_s27 + $0xa64] sm:$0xf]  ;;  %v8902_v14 = vld [vmem:[%s11374_s27 + $0xb70] sm:$0xf0]  ;;  %v8521_v16 = vor.u32 %v10787_v61, %v8518_v63 }
 0x151   : > { %3327 = vmatpush.bf16.msra.mxu0 %v8469_v12  ;;  %v8681_v12 = vor.u32 %v10827_v31, %v8678_v33  ;;  %v2308_v2 = vpop.f32.mrf.mxu0  ;;  %v10883_v24 = vld [vmem:[%s11374_s27 + $0xb64] sm:$0xf]  ;;  %v8630_v33 = vld [vmem:[%s11374_s27 + $0x950] sm:$0xf0] }
 0x152   : > { %3341 = vmatpush.bf16.msra.mxu1 %v8597_v43  ;;  %v8809_v43 = vor.u32 %v10859_v34, %v8806_v36  ;;  %v2309_v48 = vadd.f32 %v2308_v2, %v12072_v40  ;;  %v2322_v53 = vpop.f32.mrf.mxu1  ;;  %v8774_v40 = vld [vmem:[%s11374_s27 + $0xa70] sm:$0xf0]  ;;  %v10815_v30 = vld [vmem:[%s11374_s27 + $0x944] sm:$0xf]  ;;  %v8905_v31 = vor.u32 %v10883_v24, %v8902_v14  ;;  %v8588_v14 = vld [vmem:[%s11374_s27 + $0x8e8] sm:$0xf] }
 0x153   : > { %3355 = vmatpush.bf16.msra.mxu2 %v8725_v44  ;;  %v12339_v44 = vpop.f32.mrf.mxu3  ;;  %v10847_v34 = vld [vmem:[%s11374_s27 + $0xa44] sm:$0xf]  ;;  %v8758_v36 = vld [vmem:[%s11374_s27 + $0xa50] sm:$0xf0] }
 0x154   : > { %3369 = vmatpush.bf16.msra.mxu3 %v8853_v20  ;;  %3328 = vmatmul.bf16.vlgmr.msra.gmra.mxu0 %v12320_v25  ;;  %14143 = vst [vmem:[#allocation8_spill] sm:$0xff] %v12339_v44  ;;  %v10791_v20 = vld [vmem:[%s11374_s27 + $0x884] sm:$0xf]  ;;  %v8614_v2 = vld [vmem:[%s11374_s27 + $0x930] sm:$0xf0] }
 0x155   : > { %3376 = vmatpush.bf16.msrb.mxu0 %v8585_v5  ;;  %3342 = vmatmul.bf16.vlgmr.msra.gmra.mxu1 %v12323_v28  ;;  %v8662_v5 = vld [vmem:[%s11374_s27 + $0x990] sm:$0xf0]  ;;  %v8537_v41 = vor.u32 %v10791_v20, %v8534_v46  ;;  %v8633_v46 = vor.u32 %v10815_v30, %v8630_v33  ;;  %v10843_v45 = vld [vmem:[%s11374_s27 + $0xa24] sm:$0xf]  ;;  %v10870_v30 = vld [vmem:[%s11374_s27 + $0xaf4] sm:$0xf0] }
 0x156   : > { %3390 = vmatpush.bf16.msrb.mxu1 %v8713_v56  ;;  %3356 = vmatmul.bf16.vlgmr.msra.gmra.mxu2 %v12312_v50  ;;  %v8665_v56 = vor.u32 %v10823_v58, %v8662_v5  ;;  %v8761_v58 = vor.u32 %v10847_v34, %v8758_v36  ;;  %v8486_v5 = vld [vmem:[%s11374_s27 + $0x830] sm:$0xf0]  ;;  %v8972_v33 = vld [vmem:[%s11374_s27 + $0xbe8] sm:$0xf]  ;;  %v10902_v34 = vld [vmem:[%s11374_s27 + $0xbf4] sm:$0xf0] }
 0x157   : > { %3404 = vmatpush.bf16.msrb.mxu2 %v8841_v57  ;;  %3370 = vmatmul.bf16.vlgmr.msra.gmra.mxu3 %v12317_v4  ;;  %v8793_v57 = vor.u32 %v10855_v15, %v8790_v39  ;;  %v10811_v15 = vld [vmem:[%s11374_s27 + $0x924] sm:$0xf]  ;;  %v8742_v47 = vld [vmem:[%s11374_s27 + $0xa30] sm:$0xf0] }
 0x158   : > { %3418 = vmatpush.bf16.msrb.mxu3 %v8969_v7  ;;  %v2323_v7 = vadd.f32 %v2322_v53, %v2309_v48  ;;  %v10875_v48 = vld [vmem:[%s11374_s27 + $0xb24] sm:$0xf]  ;;  %v8617_v61 = vor.u32 %v10811_v15, %v8614_v2  ;;  %v8745_v63 = vor.u32 %v10843_v45, %v8742_v47  ;;  %v8854_v24 = vld [vmem:[%s11374_s27 + $0xb10] sm:$0xf0]  ;;  %v10866_v15 = vld [vmem:[%s11374_s27 + $0xad4] sm:$0xf0] }
 0x159   : > { %3377 = vmatpush.bf16.msrb.mxu0 %v8569_v17  ;;  %v8649_v17 = vor.u32 %v10819_v22, %v8646_v10  ;;  %v10807_v22 = vld [vmem:[%s11374_s27 + $0x904] sm:$0xf]  ;;  %v8956_v2 = vld [vmem:[%s11374_s27 + $0xbc8] sm:$0xf]  ;;  %v10898_v45 = vld [vmem:[%s11374_s27 + $0xbd4] sm:$0xf0] }
 0x15a   : > { %3391 = vmatpush.bf16.msrb.mxu1 %v8697_v21  ;;  %v8777_v21 = vor.u32 %v10851_v11, %v8774_v40  ;;  %v8726_v11 = vld [vmem:[%s11374_s27 + $0xa10] sm:$0xf0]  ;;  %v10871_v40 = vld [vmem:[%s11374_s27 + $0xb04] sm:$0xf]  ;;  %v12402_v47 = vpop.f32.mrf.mxu1 }
 0x15b   : > { %3405 = vmatpush.bf16.msrb.mxu2 %v8825_v27  ;;  %v10783_v27 = vld [vmem:[%s11374_s27 + $0x844] sm:$0xf]  ;;  %v2350_v49 = vpop.f32.mrf.mxu3  ;;  %v8857_v36 = vor.u32 %v10871_v40, %v8854_v24 }
 0x15c   : > { %3419 = vmatpush.bf16.msrb.mxu3 %v8953_v32  ;;  %v2336_v32 = vpop.f32.mrf.mxu2 }
 0x15d   : > { %3378 = vmatpush.bf16.msrb.mxu0 %v8553_v38  ;;  %v2337_v37 = vadd.f32 %v2336_v32, %v2323_v7  ;;  %v10879_v38 = vld [vmem:[%s11374_s27 + $0xb44] sm:$0xf] }
 0x15e   : > { %3392 = vmatpush.bf16.msrb.mxu1 %v8681_v12  ;;  %v8886_v12 = vld [vmem:[%s11374_s27 + $0xb50] sm:$0xf0]  ;;  %v10839_v7 = vld [vmem:[%s11374_s27 + $0xa04] sm:$0xf] }
 0x15f   : > { %3406 = vmatpush.bf16.msrb.mxu2 %v8809_v43  ;;  %v8505_v43 = vor.u32 %v10783_v27, %v8502_v29  ;;  %v12366_v20 = vadd.f32 %v2350_v49, %v2337_v37  ;;  %v8889_v39 = vor.u32 %v10879_v38, %v8886_v12  ;;  %v10838_v27 = vld [vmem:[%s11374_s27 + $0x9f4] sm:$0xf0]  ;;  %v8844_v29 = vld [vmem:[%s11374_s27 + $0xae8] sm:$0xf]  ;;  %v8729_v32 = vor.u32 %v10839_v7, %v8726_v11 }
 0x160   : > { %3420 = vmatpush.bf16.msrb.mxu3 %v8937_v35  ;;  %v10779_v35 = vld [vmem:[%s11374_s27 + $0x824] sm:$0xf]  ;;  %v8845_v38 = vor.u32 %v10870_v30, %v8844_v29  ;;  %v8572_v12 = vld [vmem:[%s11374_s27 + $0x8c8] sm:$0xf]  ;;  %v10862_v7 = vld [vmem:[%s11374_s27 + $0xab4] sm:$0xf0] }
 0x161   : > { %3379 = vmatpush.bf16.msrb.mxu0 %v8537_v41  ;;  %v8870_v41 = vld [vmem:[%s11374_s27 + $0xb30] sm:$0xf0]  ;;  %v8489_v53 = vor.u32 %v10779_v35, %v8486_v5  ;;  %v10834_v35 = vld [vmem:[%s11374_s27 + $0x9d4] sm:$0xf0]  ;;  %v8828_v5 = vld [vmem:[%s11374_s27 + $0xac8] sm:$0xf] }
 0x162   : > { %3393 = vmatpush.bf16.msrb.mxu1 %v8665_v56  ;;  %v10775_v56 = vld [vmem:[%s11374_s27 + $0x804] sm:$0xf]  ;;  %v8873_v10 = vor.u32 %v10875_v48, %v8870_v41  ;;  %v10894_v11 = vld [vmem:[%s11374_s27 + $0xbb4] sm:$0xf0] }
 0x163   : > { %3407 = vmatpush.bf16.msrb.mxu2 %v8793_v57  ;;  %v8470_v57 = vld [vmem:[%s11374_s27 + $0x810] sm:$0xf0]  ;;  %v10826_v30 = vld [vmem:[%s11374_s27 + $0x994] sm:$0xf0] }
 0x164   : > { %3421 = vmatpush.bf16.msrb.mxu3 %v8921_v6  ;;  %v8598_v6 = vld [vmem:[%s11374_s27 + $0x910] sm:$0xf0] }
 0x165   : > { %3380 = vmatpush.bf16.msrb.mxu0 %v8521_v16  ;;  %v10806_v16 = vld [vmem:[%s11374_s27 + $0x8f4] sm:$0xf0] }
 0x166   : > { %3394 = vmatpush.bf16.msrb.mxu1 %v8649_v17  ;;  %v8716_v17 = vld [vmem:[%s11374_s27 + $0x9e8] sm:$0xf]  ;;  %v8589_v37 = vor.u32 %v10806_v16, %v8588_v14 }
 0x167   : > { %3408 = vmatpush.bf16.msrb.mxu2 %v8777_v21  ;;  %v8473_v21 = vor.u32 %v10775_v56, %v8470_v57  ;;  %v8717_v49 = vor.u32 %v10838_v27, %v8716_v17  ;;  %v8556_v56 = vld [vmem:[%s11374_s27 + $0x8a8] sm:$0xf]  ;;  %v10798_v57 = vld [vmem:[%s11374_s27 + $0x8b4] sm:$0xf0]  ;;  %v12419_v27 = vpop.f32.mrf.mxu2 }
 0x168   : > { %3422 = vmatpush.bf16.msrb.mxu3 %v8905_v31  ;;  %v8601_v31 = vor.u32 %v10807_v22, %v8598_v6  ;;  %v10830_v22 = vld [vmem:[%s11374_s27 + $0x9b4] sm:$0xf0]  ;;  %v8812_v6 = vld [vmem:[%s11374_s27 + $0xaa8] sm:$0xf]  ;;  %v8557_v40 = vor.u32 %v10798_v57, %v8556_v56 }
 0x169   : > { %3381 = vmatpush.bf16.msrb.mxu0 %v8505_v43  ;;  %v10802_v43 = vld [vmem:[%s11374_s27 + $0x8d4] sm:$0xf0]  ;;  %v8813_v14 = vor.u32 %v10862_v7, %v8812_v6  ;;  %v8540_v16 = vld [vmem:[%s11374_s27 + $0x888] sm:$0xf] }
 0x16a   : > { %3395 = vmatpush.bf16.msrb.mxu1 %v8633_v46  ;;  %v8700_v46 = vld [vmem:[%s11374_s27 + $0x9c8] sm:$0xf]  ;;  %v8573_v48 = vor.u32 %v10802_v43, %v8572_v12  ;;  %v10794_v17 = vld [vmem:[%s11374_s27 + $0x894] sm:$0xf0] }
 0x16b   : > { %3409 = vmatpush.bf16.msrb.mxu2 %v8761_v58  ;;  %v8973_v58 = vor.u32 %v10902_v34, %v8972_v33  ;;  %v8701_v41 = vor.u32 %v10834_v35, %v8700_v46  ;;  %v12424_v33 = vpop.f32.mrf.mxu3  ;;  %v10790_v35 = vld [vmem:[%s11374_s27 + $0x874] sm:$0xf0]  ;;  %v8636_v6 = vld [vmem:[%s11374_s27 + $0x948] sm:$0xf] }
 0x16c   : > { %3423 = vmatpush.bf16.msrb.mxu3 %v8889_v39  ;;  %v12398_v39 = vpop.f32.mrf.mxu0 }
 0x16d   : > { %3382 = vmatpush.bf16.msrb.mxu0 %v8489_v53  ;;  %v8829_v53 = vor.u32 %v10866_v15, %v8828_v5  ;;  %v8652_v5 = vld [vmem:[%s11374_s27 + $0x968] sm:$0xf] }
 0x16e   : > { %3396 = vmatpush.bf16.msrb.mxu1 %v8617_v61  ;;  %v8684_v61 = vld [vmem:[%s11374_s27 + $0x9a8] sm:$0xf] }
 0x16f   : > { %3410 = vmatpush.bf16.msrb.mxu2 %v8745_v63  ;;  %v8957_v63 = vor.u32 %v10898_v45, %v8956_v2  ;;  %v8685_v24 = vor.u32 %v10830_v22, %v8684_v61  ;;  %v10822_v45 = vld [vmem:[%s11374_s27 + $0x974] sm:$0xf0] }
 0x170   : > { %3424 = vmatpush.bf16.msrb.mxu3 %v8873_v10  ;;  %v8940_v10 = vld [vmem:[%s11374_s27 + $0xba8] sm:$0xf]  ;;  %v8653_v57 = vor.u32 %v10822_v45, %v8652_v5  ;;  %v10786_v22 = vld [vmem:[%s11374_s27 + $0x854] sm:$0xf0] }
 0x171   : > { %3383 = vmatpush.bf16.msrb.mxu0 %v8473_v21  ;;  %v8668_v21 = vld [vmem:[%s11374_s27 + $0x988] sm:$0xf]  ;;  %v8941_v29 = vor.u32 %v10894_v11, %v8940_v10  ;;  %v10818_v11 = vld [vmem:[%s11374_s27 + $0x954] sm:$0xf0] }
 0x172   : > { %3397 = vmatpush.bf16.msrb.mxu1 %v8601_v31  ;;  %v8796_v31 = vld [vmem:[%s11374_s27 + $0xa88] sm:$0xf]  ;;  %v2378_v12 = vpop.f32.mrf.mxu1  ;;  %v8669_v43 = vor.u32 %v10826_v30, %v8668_v21  ;;  %v10882_v21 = vld [vmem:[%s11374_s27 + $0xb54] sm:$0xf0] }
 0x173   : > { %3411 = vmatpush.bf16.msrb.mxu2 %v8729_v32  ;;  %v10858_v32 = vld [vmem:[%s11374_s27 + $0xa94] sm:$0xf0]  ;;  %v8476_v5 = vld [vmem:[%s11374_s27 + $0x808] sm:$0xf] }
 0x174   : > { %3425 = vmatpush.bf16.msrb.mxu3 %v8857_v36  ;;  %3384 = vmatmul.bf16.vlgmr.msrb.gmra.mxu0 %v12320_v25  ;;  %v2364_v34 = vpop.f32.mrf.mxu0  ;;  %v8924_v36 = vld [vmem:[%s11374_s27 + $0xb88] sm:$0xf]  ;;  %v8797_v46 = vor.u32 %v10858_v32, %v8796_v31  ;;  %v8637_v31 = vor.u32 %v10818_v11, %v8636_v6  ;;  %v10836_v6 = vld [vmem:[%s11374_s27 + $0x9ec] sm:$0xf] }
 0x175   : > { %3432 = vmatpush.bf16.msra.mxu0 %v8589_v37  ;;  %3398 = vmatmul.bf16.vlgmr.msrb.gmra.mxu1 %v12323_v28  ;;  %v10890_v37 = vld [vmem:[%s11374_s27 + $0xb94] sm:$0xf0]  ;;  %v10868_v11 = vld [vmem:[%s11374_s27 + $0xaec] sm:$0xf] }
 0x176   : > { %3446 = vmatpush.bf16.msra.mxu1 %v8717_v49  ;;  %3412 = vmatmul.bf16.vlgmr.msrb.gmra.mxu2 %v12312_v50  ;;  %v2365_v49 = vadd.f32 %v2364_v34, %v12120_v62  ;;  %v8925_v15 = vor.u32 %v10890_v37, %v8924_v36  ;;  %v10854_v62 = vld [vmem:[%s11374_s27 + $0xa74] sm:$0xf0]  ;;  %v8492_v34 = vld [vmem:[%s11374_s27 + $0x828] sm:$0xf] }
 0x177   : > { %3460 = vmatpush.bf16.msra.mxu2 %v8845_v38  ;;  %3426 = vmatmul.bf16.vlgmr.msrb.gmra.mxu3 %v12317_v4  ;;  %v8541_v38 = vor.u32 %v10794_v17, %v8540_v16  ;;  %v8892_v17 = vld [vmem:[%s11374_s27 + $0xb48] sm:$0xf]  ;;  %v10782_v36 = vld [vmem:[%s11374_s27 + $0x834] sm:$0xf0] }
 0x178   : > { %3474 = vmatpush.bf16.msra.mxu3 %v8973_v58  ;;  %v8524_v58 = vld [vmem:[%s11374_s27 + $0x868] sm:$0xf]  ;;  %v2379_v2 = vadd.f32 %v2378_v12, %v2365_v49  ;;  %v8893_v49 = vor.u32 %v10882_v21, %v8892_v17  ;;  %v8974_v17 = vld [vmem:[%s11374_s27 + $0xbf8] sm:$0xf0] }
 0x179   : > { %3433 = vmatpush.bf16.msra.mxu0 %v8573_v48  ;;  %v8780_v48 = vld [vmem:[%s11374_s27 + $0xa68] sm:$0xf]  ;;  %v8525_v56 = vor.u32 %v10790_v35, %v8524_v58  ;;  %v2392_v10 = vpop.f32.mrf.mxu2  ;;  %v10878_v58 = vld [vmem:[%s11374_s27 + $0xb34] sm:$0xf0]  ;;  %v8493_v35 = vor.u32 %v10782_v36, %v8492_v34  ;;  %v10800_v34 = vld [vmem:[%s11374_s27 + $0x8cc] sm:$0xf] }
 0x17a   : > { %3447 = vmatpush.bf16.msra.mxu1 %v8701_v41  ;;  %v8908_v41 = vld [vmem:[%s11374_s27 + $0xb68] sm:$0xf]  ;;  %v8781_v61 = vor.u32 %v10854_v62, %v8780_v48  ;;  %v2406_v16 = vpop.f32.mrf.mxu3  ;;  %v10810_v62 = vld [vmem:[%s11374_s27 + $0x914] sm:$0xf0]  ;;  %v8574_v36 = vld [vmem:[%s11374_s27 + $0x8d8] sm:$0xf0] }
 0x17b   : > { %3461 = vmatpush.bf16.msra.mxu2 %v8829_v53  ;;  %v10886_v53 = vld [vmem:[%s11374_s27 + $0xb74] sm:$0xf0]  ;;  %v8620_v37 = vld [vmem:[%s11374_s27 + $0x928] sm:$0xf] }
 0x17c   : > { %3475 = vmatpush.bf16.msra.mxu3 %v8957_v63  ;;  %v8508_v63 = vld [vmem:[%s11374_s27 + $0x848] sm:$0xf]  ;;  %v8909_v7 = vor.u32 %v10886_v53, %v8908_v41 }
 0x17d   : > { %3434 = vmatpush.bf16.msra.mxu0 %v8557_v40  ;;  %v8764_v40 = vld [vmem:[%s11374_s27 + $0xa48] sm:$0xf] }
 0x17e   : > { %3448 = vmatpush.bf16.msra.mxu1 %v8685_v24  ;;  %v10850_v24 = vld [vmem:[%s11374_s27 + $0xa54] sm:$0xf0]  ;;  %v8748_v12 = vld [vmem:[%s11374_s27 + $0xa28] sm:$0xf] }
 0x17f   : > { %3462 = vmatpush.bf16.msra.mxu2 %v8813_v14  ;;  %v2393_v14 = vadd.f32 %v2392_v10, %v2379_v2  ;;  %v8765_v32 = vor.u32 %v10850_v24, %v8764_v40  ;;  %v8604_v48 = vld [vmem:[%s11374_s27 + $0x908] sm:$0xf]  ;;  %v8718_v10 = vld [vmem:[%s11374_s27 + $0x9f8] sm:$0xf0] }
 0x180   : > { %3476 = vmatpush.bf16.msra.mxu3 %v8941_v29  ;;  %v8509_v29 = vor.u32 %v10786_v22, %v8508_v63  ;;  %v8732_v41 = vld [vmem:[%s11374_s27 + $0xa08] sm:$0xf]  ;;  %v10804_v63 = vld [vmem:[%s11374_s27 + $0x8ec] sm:$0xf]  ;;  %v8590_v22 = vld [vmem:[%s11374_s27 + $0x8f8] sm:$0xf0]  ;;  %v8605_v24 = vor.u32 %v10810_v62, %v8604_v48 }
 0x181   : > { %3435 = vmatpush.bf16.msra.mxu0 %v8541_v38  ;;  %v12445_v30 = vadd.f32 %v2406_v16, %v2393_v14  ;;  %v10814_v38 = vld [vmem:[%s11374_s27 + $0x934] sm:$0xf0]  ;;  %v8846_v40 = vld [vmem:[%s11374_s27 + $0xaf8] sm:$0xf0]  ;;  %v10900_v16 = vld [vmem:[%s11374_s27 + $0xbec] sm:$0xf] }
 0x182   : > { %3449 = vmatpush.bf16.msra.mxu1 %v8669_v43  ;;  %v10846_v43 = vld [vmem:[%s11374_s27 + $0xa34] sm:$0xf0]  ;;  %v8621_v2 = vor.u32 %v10814_v38, %v8620_v37  ;;  %v10832_v37 = vld [vmem:[%s11374_s27 + $0x9cc] sm:$0xf]  ;;  %v8702_v38 = vld [vmem:[%s11374_s27 + $0x9d8] sm:$0xf0] }
 0x183   : > { %3463 = vmatpush.bf16.msra.mxu2 %v8797_v46  ;;  %v8876_v46 = vld [vmem:[%s11374_s27 + $0xb28] sm:$0xf]  ;;  %v8749_v45 = vor.u32 %v10846_v43, %v8748_v12  ;;  %v10864_v12 = vld [vmem:[%s11374_s27 + $0xacc] sm:$0xf]  ;;  %v8830_v43 = vld [vmem:[%s11374_s27 + $0xad8] sm:$0xf0] }
 0x184   : > { %3477 = vmatpush.bf16.msra.mxu3 %v8925_v15  ;;  %v10778_v15 = vld [vmem:[%s11374_s27 + $0x814] sm:$0xf0]  ;;  %v8877_v53 = vor.u32 %v10878_v58, %v8876_v46  ;;  %v12477_v46 = vpop.f32.mrf.mxu0  ;;  %v10896_v58 = vld [vmem:[%s11374_s27 + $0xbcc] sm:$0xf]  ;;  %v8558_v62 = vld [vmem:[%s11374_s27 + $0x8b8] sm:$0xf0] }
 0x185   : > { %3436 = vmatpush.bf16.msra.mxu0 %v8525_v56  ;;  %v10842_v56 = vld [vmem:[%s11374_s27 + $0xa14] sm:$0xf0]  ;;  %v10796_v48 = vld [vmem:[%s11374_s27 + $0x8ac] sm:$0xf] }
 0x186   : > { %3450 = vmatpush.bf16.msra.mxu1 %v8653_v57  ;;  %v8860_v57 = vld [vmem:[%s11374_s27 + $0xb08] sm:$0xf]  ;;  %v8733_v14 = vor.u32 %v10842_v56, %v8732_v41  ;;  %v10828_v41 = vld [vmem:[%s11374_s27 + $0x9ac] sm:$0xf]  ;;  %v8686_v56 = vld [vmem:[%s11374_s27 + $0x9b8] sm:$0xf0] }
 0x187   : > { %3464 = vmatpush.bf16.msra.mxu2 %v8781_v61  ;;  %v10874_v61 = vld [vmem:[%s11374_s27 + $0xb14] sm:$0xf0] }
 0x188   : > { %3478 = vmatpush.bf16.msra.mxu3 %v8909_v7  ;;  %v8477_v7 = vor.u32 %v10778_v15, %v8476_v5  ;;  %v8861_v21 = vor.u32 %v10874_v61, %v8860_v57  ;;  %v12481_v5 = vpop.f32.mrf.mxu1  ;;  %v8577_v15 = vor.u32 %v10800_v34, %v8574_v36  ;;  %v10860_v57 = vld [vmem:[%s11374_s27 + $0xaac] sm:$0xf]  ;;  %v8814_v61 = vld [vmem:[%s11374_s27 + $0xab8] sm:$0xf0] }
 0x189   : > { %3437 = vmatpush.bf16.msra.mxu0 %v8509_v29  ;;  %v8593_v29 = vor.u32 %v10804_v63, %v8590_v22  ;;  %v10892_v63 = vld [vmem:[%s11374_s27 + $0xbac] sm:$0xf]  ;;  %v8942_v22 = vld [vmem:[%s11374_s27 + $0xbb8] sm:$0xf0] }
 0x18a   : > { %3451 = vmatpush.bf16.msra.mxu1 %v8637_v31  ;;  %v8721_v31 = vor.u32 %v10836_v6, %v8718_v10  ;;  %v8561_v6 = vor.u32 %v10796_v48, %v8558_v62  ;;  %v8817_v10 = vor.u32 %v10860_v57, %v8814_v61  ;;  %v10888_v34 = vld [vmem:[%s11374_s27 + $0xb8c] sm:$0xf]  ;;  %v8926_v36 = vld [vmem:[%s11374_s27 + $0xb98] sm:$0xf0] }
 0x18b   : > { %3465 = vmatpush.bf16.msra.mxu2 %v8765_v32  ;;  %v8849_v32 = vor.u32 %v10868_v11, %v8846_v40  ;;  %v10792_v11 = vld [vmem:[%s11374_s27 + $0x88c] sm:$0xf]  ;;  %v8542_v40 = vld [vmem:[%s11374_s27 + $0x898] sm:$0xf0] }
 0x18c   : > { %3479 = vmatpush.bf16.msra.mxu3 %v8893_v49  ;;  %v8977_v49 = vor.u32 %v10900_v16, %v8974_v17  ;;  %v8945_v16 = vor.u32 %v10892_v63, %v8942_v22  ;;  %v8670_v17 = vld [vmem:[%s11374_s27 + $0x998] sm:$0xf0]  ;;  %v10852_v62 = vld [vmem:[%s11374_s27 + $0xa6c] sm:$0xf] }
 0x18d   : > { %3438 = vmatpush.bf16.msra.mxu0 %v8493_v35  ;;  %v8958_v35 = vld [vmem:[%s11374_s27 + $0xbd8] sm:$0xf0]  ;;  %v10784_v63 = vld [vmem:[%s11374_s27 + $0x84c] sm:$0xf] }
 0x18e   : > { %3452 = vmatpush.bf16.msra.mxu1 %v8621_v2  ;;  %v8705_v2 = vor.u32 %v10832_v37, %v8702_v38  ;;  %v8654_v48 = vld [vmem:[%s11374_s27 + $0x978] sm:$0xf0] }
 0x18f   : > { %3466 = vmatpush.bf16.msra.mxu2 %v8749_v45  ;;  %v8833_v45 = vor.u32 %v10864_v12, %v8830_v43  ;;  %v8510_v22 = vld [vmem:[%s11374_s27 + $0x858] sm:$0xf0] }
 0x190   : > { %3480 = vmatpush.bf16.msra.mxu3 %v8877_v53  ;;  %v8961_v53 = vor.u32 %v10896_v58, %v8958_v35  ;;  %v10788_v58 = vld [vmem:[%s11374_s27 + $0x86c] sm:$0xf]  ;;  %v8526_v35 = vld [vmem:[%s11374_s27 + $0x878] sm:$0xf0] }
 0x191   : > { %3439 = vmatpush.bf16.msra.mxu0 %v8477_v7  ;;  %v8689_v7 = vor.u32 %v10828_v41, %v8686_v56  ;;  %v10884_v41 = vld [vmem:[%s11374_s27 + $0xb6c] sm:$0xf]  ;;  %v8529_v56 = vor.u32 %v10788_v58, %v8526_v35  ;;  %v8622_v58 = vld [vmem:[%s11374_s27 + $0x938] sm:$0xf0] }
 0x192   : > { %3453 = vmatpush.bf16.msra.mxu1 %v8605_v24  ;;  %v10824_v24 = vld [vmem:[%s11374_s27 + $0x98c] sm:$0xf]  ;;  %v2434_v38 = vpop.f32.mrf.mxu1 }
 0x193   : > { %3467 = vmatpush.bf16.msra.mxu2 %v8733_v14  ;;  %v12498_v14 = vpop.f32.mrf.mxu2  ;;  %v8673_v12 = vor.u32 %v10824_v24, %v8670_v17  ;;  %v8766_v24 = vld [vmem:[%s11374_s27 + $0xa58] sm:$0xf0]  ;;  %v10844_v35 = vld [vmem:[%s11374_s27 + $0xa2c] sm:$0xf] }
 0x194   : > { %3481 = vmatpush.bf16.msra.mxu3 %v8861_v21  ;;  %3440 = vmatmul.bf16.vlgmr.msra.gmra.mxu0 %v12320_v25  ;;  %v10856_v21 = vld [vmem:[%s11374_s27 + $0xa8c] sm:$0xf] }
 0x195   : > { %3488 = vmatpush.bf16.msrb.mxu0 %v8593_v29  ;;  %3454 = vmatmul.bf16.vlgmr.msra.gmra.mxu1 %v12323_v28  ;;  %v8798_v29 = vld [vmem:[%s11374_s27 + $0xa98] sm:$0xf0] }
 0x196   : > { %3502 = vmatpush.bf16.msrb.mxu1 %v8721_v31  ;;  %3468 = vmatmul.bf16.vlgmr.msra.gmra.mxu2 %v12312_v50  ;;  %v12503_v31 = vpop.f32.mrf.mxu3  ;;  %v8801_v43 = vor.u32 %v10856_v21, %v8798_v29  ;;  %v10880_v21 = vld [vmem:[%s11374_s27 + $0xb4c] sm:$0xf]  ;;  %v8894_v29 = vld [vmem:[%s11374_s27 + $0xb58] sm:$0xf0] }
 0x197   : > { %3516 = vmatpush.bf16.msrb.mxu2 %v8849_v32  ;;  %3482 = vmatmul.bf16.vlgmr.msra.gmra.mxu3 %v12317_v4  ;;  %v2420_v32 = vpop.f32.mrf.mxu0 }
 0x198   : > { %3530 = vmatpush.bf16.msrb.mxu3 %v8977_v49  ;;  %v2421_v37 = vadd.f32 %v2420_v32, %v12185_v3  ;;  %v8545_v49 = vor.u32 %v10792_v11, %v8542_v40  ;;  %v8782_v3 = vld [vmem:[%s11374_s27 + $0xa78] sm:$0xf0]  ;;  %v10848_v40 = vld [vmem:[%s11374_s27 + $0xa4c] sm:$0xf]  ;;  %v8513_v32 = vor.u32 %v10784_v63, %v8510_v22 }
 0x199   : > { %3489 = vmatpush.bf16.msrb.mxu0 %v8577_v15  ;;  %v10820_v15 = vld [vmem:[%s11374_s27 + $0x96c] sm:$0xf]  ;;  %v8785_v61 = vor.u32 %v10852_v62, %v8782_v3  ;;  %v8638_v11 = vld [vmem:[%s11374_s27 + $0x958] sm:$0xf0] }
 0x19a   : > { %3503 = vmatpush.bf16.msrb.mxu1 %v8705_v2  ;;  %v8929_v2 = vor.u32 %v10888_v34, %v8926_v36  ;;  %v8657_v57 = vor.u32 %v10820_v15, %v8654_v48  ;;  %v8750_v15 = vld [vmem:[%s11374_s27 + $0xa38] sm:$0xf0]  ;;  %v10776_v62 = vld [vmem:[%s11374_s27 + $0x80c] sm:$0xf] }
 0x19b   : > { %3517 = vmatpush.bf16.msrb.mxu2 %v8833_v45  ;;  %v2435_v45 = vadd.f32 %v2434_v38, %v2421_v37  ;;  %v8769_v37 = vor.u32 %v10848_v40, %v8766_v24  ;;  %v8494_v38 = vld [vmem:[%s11374_s27 + $0x838] sm:$0xf0]  ;;  %v9220_v40 = vld [vmem:[%s11374_s27 + $0x5e0] sm:$0xf] }
 0x19c   : > { %3531 = vmatpush.bf16.msrb.mxu3 %v8961_v53  ;;  %v8910_v53 = vld [vmem:[%s11374_s27 + $0xb78] sm:$0xf0] }
 0x19d   : > { %3490 = vmatpush.bf16.msrb.mxu0 %v8561_v6  ;;  %v10816_v6 = vld [vmem:[%s11374_s27 + $0x94c] sm:$0xf]  ;;  %v8478_v3 = vld [vmem:[%s11374_s27 + $0x818] sm:$0xf0] }
 0x19e   : > { %3504 = vmatpush.bf16.msrb.mxu1 %v8689_v7  ;;  %v8913_v7 = vor.u32 %v10884_v41, %v8910_v53  ;;  %v2462_v17 = vpop.f32.mrf.mxu3  ;;  %v8641_v36 = vor.u32 %v10816_v6, %v8638_v11  ;;  %v8753_v53 = vor.u32 %v10844_v35, %v8750_v15  ;;  %v8734_v22 = vld [vmem:[%s11374_s27 + $0xa18] sm:$0xf0]  ;;  %v10872_v6 = vld [vmem:[%s11374_s27 + $0xb0c] sm:$0xf]  ;;  %v11061_v11 = vld [vmem:[%s11374_s27 + $0x4ec] sm:$0xf0]  ;;  %v8481_v24 = vor.u32 %v10776_v62, %v8478_v3 }
 0x19f   : > { %3518 = vmatpush.bf16.msrb.mxu2 %v8817_v10  ;;  %v2448_v10 = vpop.f32.mrf.mxu2  ;;  %v11057_v35 = vld [vmem:[%s11374_s27 + $0x4cc] sm:$0xf0]  ;;  %v9204_v15 = vld [vmem:[%s11374_s27 + $0x5c0] sm:$0xf]  ;;  %v12556_v3 = vpop.f32.mrf.mxu0 }
 0x1a0   : > { %3532 = vmatpush.bf16.msrb.mxu3 %v8945_v16  ;;  %v2449_v16 = vadd.f32 %v2448_v10, %v2435_v45  ;;  %v8878_v45 = vld [vmem:[%s11374_s27 + $0xb38] sm:$0xf0]  ;;  %v9092_v10 = vld [vmem:[%s11374_s27 + $0x4e0] sm:$0xf]  ;;  %v11121_v62 = vld [vmem:[%s11374_s27 + $0x6cc] sm:$0xf0] }
 0x1a1   : > { %3491 = vmatpush.bf16.msrb.mxu0 %v8545_v49  ;;  %v10780_v49 = vld [vmem:[%s11374_s27 + $0x82c] sm:$0xf]  ;;  %14145 = vst [vmem:[#allocation10_spill] sm:$0xff] %v12556_v3 }
 0x1a2   : > { %3505 = vmatpush.bf16.msrb.mxu1 %v8673_v12  ;;  %v12524_v34 = vadd.f32 %v2462_v17, %v2449_v16  ;;  %v10812_v12 = vld [vmem:[%s11374_s27 + $0x92c] sm:$0xf]  ;;  %v8497_v48 = vor.u32 %v10780_v49, %v8494_v38  ;;  %v11093_v16 = vld [vmem:[%s11374_s27 + $0x5ec] sm:$0xf0]  ;;  %v9348_v17 = vld [vmem:[%s11374_s27 + $0x6e0] sm:$0xf]  ;;  %v9093_v38 = vor.u32 %v11061_v11, %v9092_v10 }
 0x1a3   : > { %3519 = vmatpush.bf16.msrb.mxu2 %v8801_v43  ;;  %v8897_v43 = vor.u32 %v10880_v21, %v8894_v29  ;;  %v8625_v41 = vor.u32 %v10812_v12, %v8622_v58  ;;  %v11125_v21 = vld [vmem:[%s11374_s27 + $0x6ec] sm:$0xf0]  ;;  %v9221_v12 = vor.u32 %v11093_v16, %v9220_v40  ;;  %v9076_v58 = vld [vmem:[%s11374_s27 + $0x4c0] sm:$0xf]  ;;  %v12711_v3 = vld [vmem:[#allocation2 + $0x28] sm:$0xee] }
 0x1a4   : > { %3533 = vmatpush.bf16.msrb.mxu3 %v8929_v2  ;;  %14144 = vst [vmem:[#allocation9_spill] sm:$0xff] %v12524_v34  ;;  %v10876_v2 = vld [vmem:[%s11374_s27 + $0xb2c] sm:$0xf]  ;;  %v11085_v11 = vld [vmem:[%s11374_s27 + $0x5ac] sm:$0xf0] }
 0x1a5   : > { %3492 = vmatpush.bf16.msrb.mxu0 %v8529_v56  ;;  %v10808_v56 = vld [vmem:[%s11374_s27 + $0x90c] sm:$0xf]  ;;  %v8881_v63 = vor.u32 %v10876_v2, %v8878_v45  ;;  %v11089_v45 = vld [vmem:[%s11374_s27 + $0x5cc] sm:$0xf0]  ;;  %v9316_v40 = vld [vmem:[%s11374_s27 + $0x6a0] sm:$0xf] }
 0x1a6   : > { %3506 = vmatpush.bf16.msrb.mxu1 %v8657_v57  ;;  %v8606_v57 = vld [vmem:[%s11374_s27 + $0x918] sm:$0xf0]  ;;  %v9444_v16 = vld [vmem:[%s11374_s27 + $0x7a0] sm:$0xf] }
 0x1a7   : > { %3520 = vmatpush.bf16.msrb.mxu2 %v8785_v61  ;;  %v10840_v61 = vld [vmem:[%s11374_s27 + $0xa0c] sm:$0xf]  ;;  %v8609_v29 = vor.u32 %v10808_v56, %v8606_v57  ;;  %v12560_v56 = vpop.f32.mrf.mxu1  ;;  %v9077_v57 = vor.u32 %v11057_v35, %v9076_v58  ;;  %v12585_v58 = vld [vmem:[%s11374_s27 + $0x460] sm:$0xf]  ;;  %v12587_v35 = vpop.f32.mrf.mxu3 }
 0x1a8   : > { %3534 = vmatpush.bf16.msrb.mxu3 %v8913_v7  ;;  %v8862_v7 = vld [vmem:[%s11374_s27 + $0xb18] sm:$0xf0]  ;;  %14146 = vst [vmem:[#allocation11_spill] sm:$0xff] %v12560_v56  ;;  %v12709_v56 = vld [vmem:[%s11374_s27 + $0x70c] sm:$0xf0] }
 0x1a9   : > { %3493 = vmatpush.bf16.msrb.mxu0 %v8513_v32  ;;  %v8737_v32 = vor.u32 %v10840_v61, %v8734_v22  ;;  %v8865_v49 = vor.u32 %v10872_v6, %v8862_v7  ;;  %v9205_v61 = vor.u32 %v11089_v45, %v9204_v15  ;;  %v9060_v22 = vld [vmem:[%s11374_s27 + $0x4a0] sm:$0xf]  ;;  %v11053_v6 = vld [vmem:[%s11374_s27 + $0x4ac] sm:$0xf0]  ;;  %14148 = vst [vmem:[#allocation13_spill] sm:$0xff] %v12587_v35 }
 0x1aa   : > { %3507 = vmatpush.bf16.msrb.mxu1 %v8641_v36  ;;  %v9476_v36 = vld [vmem:[%s11374_s27 + $0x7e0] sm:$0xf]  ;;  %v12691_v35 = vld [vmem:[%s11374_s27 + $0x60c] sm:$0xf0] }
 0x1ab   : > { %3521 = vmatpush.bf16.msrb.mxu2 %v8769_v37  ;;  %v11157_v37 = vld [vmem:[%s11374_s27 + $0x7ec] sm:$0xf0]  ;;  %v9188_v7 = vld [vmem:[%s11374_s27 + $0x5a0] sm:$0xf] }
 0x1ac   : > { %3535 = vmatpush.bf16.msrb.mxu3 %v8897_v43  ;;  %v9349_v43 = vor.u32 %v11125_v21, %v9348_v17  ;;  %v9477_v2 = vor.u32 %v11157_v37, %v9476_v36  ;;  %v11149_v17 = vld [vmem:[%s11374_s27 + $0x7ac] sm:$0xf0]  ;;  %v9061_v21 = vor.u32 %v11053_v6, %v9060_v22  ;;  %v9300_v37 = vld [vmem:[%s11374_s27 + $0x680] sm:$0xf] }
 0x1ad   : > { %3494 = vmatpush.bf16.msrb.mxu0 %v8497_v48  ;;  %v9332_v48 = vld [vmem:[%s11374_s27 + $0x6c0] sm:$0xf]  ;;  %v12609_v22 = vld [vmem:[%s11374_s27 + $0x76c] sm:$0xf0] }
 0x1ae   : > { %3508 = vmatpush.bf16.msrb.mxu1 %v8625_v41  ;;  %v9460_v41 = vld [vmem:[%s11374_s27 + $0x7c0] sm:$0xf] }
 0x1af   : > { %3522 = vmatpush.bf16.msrb.mxu2 %v8753_v53  ;;  %v11153_v53 = vld [vmem:[%s11374_s27 + $0x7cc] sm:$0xf0]  ;;  %v12593_v45 = vld [vmem:[%s11374_s27 + $0x560] sm:$0xf] }
 0x1b0   : > { %3536 = vmatpush.bf16.msrb.mxu3 %v8881_v63  ;;  %v9333_v63 = vor.u32 %v11121_v62, %v9332_v48  ;;  %v9461_v10 = vor.u32 %v11153_v53, %v9460_v41  ;;  %v12596_v48 = vld [vmem:[%s11374_s27 + $0x56c] sm:$0xf0] }
 0x1b1   : > { %3495 = vmatpush.bf16.msrb.mxu0 %v8481_v24  ;;  %v11117_v24 = vld [vmem:[%s11374_s27 + $0x6ac] sm:$0xf0]  ;;  %v2476_v15 = vpop.f32.mrf.mxu0 }
 0x1b2   : > { %3509 = vmatpush.bf16.msrb.mxu1 %v8609_v29  ;;  %v11049_v29 = vld [vmem:[%s11374_s27 + $0x48c] sm:$0xf0]  ;;  %v9317_v36 = vor.u32 %v11117_v24, %v9316_v40  ;;  %v2477_v62 = vadd.f32 %v2476_v15, %v12267_v0  ;;  %v2490_v53 = vpop.f32.mrf.mxu1 }
 0x1b3   : > { %3523 = vmatpush.bf16.msrb.mxu2 %v8737_v32  ;;  %v9172_v32 = vld [vmem:[%s11374_s27 + $0x580] sm:$0xf]  ;;  %v12615_v0 = vld [vmem:[%s11374_s27 + $0x44c] sm:$0xf0] }
 0x1b4   : > { %3537 = vmatpush.bf16.msrb.mxu3 %v8865_v49  ;;  %3496 = vmatmul.bf16.vlgmr.msrb.gmra.mxu0 %v12320_v25  ;;  %v11081_v25 = vld [vmem:[%s11374_s27 + $0x58c] sm:$0xf0] }
 0x1b5   : > { %4635 = vmatpush.bf16.msra.mxu0 %v9093_v38  ;;  %3510 = vmatmul.bf16.vlgmr.msrb.gmra.mxu1 %v12323_v28  ;;  %v11113_v49 = vld [vmem:[%s11374_s27 + $0x68c] sm:$0xf0]  ;;  %v12580_v38 = vpop.f32.mrf.mxu2  ;;  %v9445_v28 = vor.u32 %v11149_v17, %v9444_v16  ;;  %v9173_v6 = vor.u32 %v11081_v25, %v9172_v32  ;;  %v2491_v16 = vadd.f32 %v2490_v53, %v2477_v62  ;;  %v12624_v17 = vld [vmem:[%s11374_s27 + $0x640] sm:$0xf] }
 0x1b6   : > { %4649 = vmatpush.bf16.msra.mxu1 %v9221_v12  ;;  %3524 = vmatmul.bf16.vlgmr.msrb.gmra.mxu2 %v12312_v50  ;;  %v9044_v50 = vld [vmem:[%s11374_s27 + $0x480] sm:$0xf]  ;;  %14147 = vst [vmem:[#allocation12_spill] sm:$0xff] %v12580_v38  ;;  %v12621_v40 = vld [vmem:[%s11374_s27 + $0x54c] sm:$0xf0]  ;;  %v9157_v32 = vor.u32 %v12596_v48, %v12593_v45 }
 0x1b7   : > { %4663 = vmatpush.bf16.msra.mxu2 %v9349_v43  ;;  %3538 = vmatmul.bf16.vlgmr.msrb.gmra.mxu3 %v12317_v4  ;;  %v9189_v4 = vor.u32 %v11085_v11, %v9188_v7  ;;  %v9428_v12 = vld [vmem:[%s11374_s27 + $0x780] sm:$0xf]  ;;  %v11145_v43 = vld [vmem:[%s11374_s27 + $0x78c] sm:$0xf0]  ;;  %v9045_v41 = vor.u32 %v11049_v29, %v9044_v50  ;;  %v9301_v7 = vor.u32 %v11113_v49, %v9300_v37 }
 0x1b8   : > { %4677 = vmatpush.bf16.msra.mxu3 %v9477_v2  ;;  %v12590_v2 = vld [vmem:[%s11374_s27 + $0x46c] sm:$0xf0]  ;;  %v12618_v11 = vld [vmem:[%s11374_s27 + $0x540] sm:$0xf]  ;;  %v9429_v24 = vor.u32 %v11145_v43, %v9428_v12 }
 0x1b9   : > { %4636 = vmatpush.bf16.msra.mxu0 %v9077_v57  ;;  %v12600_v57 = vld [vmem:[%s11374_s27 + $0x660] sm:$0xf]  ;;  %v9029_v29 = vor.u32 %v12590_v2, %v12585_v58  ;;  %v3767_v25 = vld [vmem:[#allocation2 + $0x10] sm:$0x33]  ;;  %v9141_v44 = vor.u32 %v12621_v40, %v12618_v11 }
 0x1ba   : > { %4650 = vmatpush.bf16.msra.mxu1 %v9205_v61  ;;  %v12603_v61 = vld [vmem:[%s11374_s27 + $0x66c] sm:$0xf0]  ;;  %v12630_v50 = vld [vmem:[%s11374_s27 + $0x740] sm:$0xf]  ;;  %v3912_v58 = vunpack.c.l.b16 %v3767_v25 }
 0x1bb   : > { %4664 = vmatpush.bf16.msra.mxu2 %v9333_v63  ;;  %v12606_v63 = vld [vmem:[%s11374_s27 + $0x760] sm:$0xf]  ;;  %v12639_v37 = vld [vmem:[%s11374_s27 + $0x74c] sm:$0xf0]  ;;  %v9285_v2 = vor.u32 %v12603_v61, %v12600_v57 }
 0x1bc   : > { %4678 = vmatpush.bf16.msra.mxu3 %v9461_v10  ;;  %v12612_v10 = vld [vmem:[%s11374_s27 + $0x440] sm:$0xf]  ;;  %v9413_v45 = vor.u32 %v12609_v22, %v12606_v63  ;;  %v12656_v62 = vld [vmem:[%s11374_s27 + $0x52c] sm:$0xf0]  ;;  %v3913_v22 = vunpack.c.h.b16 %v3767_v25  ;;  %v12700_v63 = vpack.c.b16 %v3912_v58, %v3912_v58  ;;  %v9397_v40 = vor.u32 %v12639_v37, %v12630_v50  ;;  %v12722_v37 = vld [vmem:[#allocation2 + $0x8] sm:$0x33] }
 0x1bd   : > { %4637 = vmatpush.bf16.msra.mxu0 %v9061_v21  ;;  %v12627_v21 = vld [vmem:[%s11374_s27 + $0x64c] sm:$0xf0]  ;;  %v12642_v49 = vld [vmem:[%s11374_s27 + $0x420] sm:$0xf]  ;;  %v9013_v43 = vor.u32 %v12615_v0, %v12612_v10  ;;  %v2518_v0 = vpop.f32.mrf.mxu3  ;;  %v14116_v58 = vunpack.c.l.b16 %v12713_v52 }
 0x1be   : > { %4651 = vmatpush.bf16.msra.mxu1 %v9189_v4  ;;  %v3633_v4 = vld [vmem:[#allocation2 + $0x20] sm:$0xee]  ;;  %v12662_v53 = vld [vmem:[%s11374_s27 + $0x62c] sm:$0xf0]  ;;  %14150 = vst [vmem:[#allocation14_spill] sm:$0xff] %v12700_v63  ;;  %v9269_v11 = vor.u32 %v12627_v21, %v12624_v17  ;;  %v3966_v17 = vshrl.u32 %v12700_v63, 16 }
 0x1bf   : > { %4665 = vmatpush.bf16.msra.mxu2 %v9317_v36  ;;  %v12636_v36 = vld [vmem:[#allocation2 + $0x48] sm:$0xff]  ;;  %v3904_v12 = vunpack.c.l.b16 %v3633_v4  ;;  %v3905_v15 = vunpack.c.h.b16 %v3633_v4  ;;  %v12653_v48 = vld [vmem:[%s11374_s27 + $0x520] sm:$0xf]  ;;  %v12674_v61 = vld [vmem:[%s11374_s27 + $0x40c] sm:$0xf0]  ;;  %v2504_v4 = vpop.f32.mrf.mxu2 }
 0x1c0   : > { %4679 = vmatpush.bf16.msra.mxu3 %v9445_v28  ;;  %v12645_v28 = vld [vmem:[%s11374_s27 + $0x42c] sm:$0xf0]  ;;  %v12671_v57 = vld [vmem:[%s11374_s27 + $0x400] sm:$0xf]  ;;  %v2505_v10 = vadd.f32 %v2504_v4, %v2491_v16  ;;  %v14151_v21 = vunpack.c.h.b16 %v12636_v36 }
 0x1c1   : > { %4638 = vmatpush.bf16.msra.mxu0 %v9045_v41  ;;  %v12659_v41 = vld [vmem:[%s11374_s27 + $0x620] sm:$0xf]  ;;  %v8997_v34 = vor.u32 %v12645_v28, %v12642_v49  ;;  %v3902_v28 = vunpack.c.l.b16 %v12711_v3 }
 0x1c2   : > { %4652 = vmatpush.bf16.msra.mxu1 %v9173_v6  ;;  %v12665_v6 = vld [vmem:[%s11374_s27 + $0x720] sm:$0xf]  ;;  %v12720_v50 = vpack.c.b16 %v14151_v21, %v3905_v15  ;;  %v12724_v49 = vadd.f32 %v2518_v0, %v2505_v10  ;;  %v9125_v15 = vor.u32 %v12656_v62, %v12653_v48  ;;  %v9253_v4 = vor.u32 %v12662_v53, %v12659_v41  ;;  %v12745_v10 = vld [vmem:[%s11374_s27 + $0x5e4] sm:$0xf]  ;;  %v12754_v41 = vld [vmem:[%s11374_s27 + $0x5f0] sm:$0xf0] }
 0x1c3   : > { %4666 = vmatpush.bf16.msra.mxu2 %v9301_v7  ;;  %v12668_v7 = vld [vmem:[%s11374_s27 + $0x72c] sm:$0xf0]  ;;  %v12694_v38 = vld [vmem:[%s11374_s27 + $0x700] sm:$0xf]  ;;  %v9237_v48 = vor.u32 %v12691_v35, %v12688_v59  ;;  %v12757_v53 = vld [vmem:[%s11374_s27 + $0x6e4] sm:$0xf]  ;;  %v12765_v59 = vpack.c.b16 %v14116_v58, %v3902_v28 }
 0x1c4   : > { %4680 = vmatpush.bf16.msra.mxu3 %v9429_v24  ;;  %v14149_v24 = vunpack.c.l.b16 %v12636_v36  ;;  %v3975_v35 = vshrl.u32 %v12720_v50, 16  ;;  %v3978_v0 = vshll.u32 %v12720_v50, 16  ;;  %v9478_v21 = vld [vmem:[%s11374_s27 + $0x7f0] sm:$0xf0] }
 0x1c5   : > { %4639 = vmatpush.bf16.msra.mxu0 %v9029_v29  ;;  %v12726_v29 = vpack.c.b16 %v3913_v22, %v3913_v22  ;;  %v12739_v22 = vld [vmem:[%s11374_s27 + $0x4e4] sm:$0xf] }
 0x1c6   : > { %v12698_v25 = vpack.c.b16 %v14149_v24, %v3904_v12  ;;  %4653 = vmatpush.bf16.msra.mxu1 %v9157_v32  ;;  %v9381_v32 = vor.u32 %v12668_v7, %v12665_v6  ;;  %v12742_v24 = vld [vmem:[%s11374_s27 + $0x4f0] sm:$0xf0]  ;;  %v3910_v7 = vunpack.c.l.b16 %v12722_v37  ;;  %v3977_v58 = vrot.slane %v3975_v35, 1 }
 0x1c7   : > { %4667 = vmatpush.bf16.msra.mxu2 %v9285_v2  ;;  %14152 = vst [vmem:[#allocation15_spill] sm:$0xff] %v12726_v29  ;;  %v8981_v2 = vor.u32 %v12674_v61, %v12671_v57  ;;  %v12760_v6 = vld [vmem:[%s11374_s27 + $0x6f0] sm:$0xf0]  ;;  %v3980_v62 = vrot.slane %v3978_v0, 2 }
 0x1c8   : > { %v3958_v12 = vshrl.u32 %v12698_v25, 16  ;;  %v3961_v16 = vshll.u32 %v12698_v25, 16  ;;  %4681 = vmatpush.bf16.msra.mxu3 %v9413_v45  ;;  %v9109_v45 = vor.u32 %v12685_v13, %v12682_v42  ;;  %v3968_v13 = vrot.slane %v3966_v17, 1  ;;  %v12796_v35 = vld [vmem:[%s11374_s27 + $0x5d0] sm:$0xf0] }
 0x1c9   : > { %4640 = vmatpush.bf16.msra.mxu0 %v9013_v43  ;;  %v3969_v42 = vshll.u32 %v12700_v63, 16  ;;  %v3983_v43 = vshrl.u32 %v12726_v29, 16  ;;  %v3986_v17 = vshll.u32 %v12726_v29, 16  ;;  %v3981_v0 = vor.u32 %v3980_v62, %v3977_v58  ;;  %v11151_v62 = vld [vmem:[%s11374_s27 + $0x7c4] sm:$0xf] }
 0x1ca   : > { %v3960_v57 = vrot.slane %v3958_v12, 1  ;;  %v3963_v61 = vrot.slane %v3961_v16, 2  ;;  %4654 = vmatpush.bf16.msra.mxu1 %v9141_v44  ;;  %v9097_v12 = vor.u32 %v12739_v22, %v12742_v24  ;;  %v9225_v16 = vor.u32 %v12745_v10, %v12754_v41  ;;  %v12785_v22 = vld [vmem:[%s11374_s27 + $0x4c4] sm:$0xf]  ;;  %v12788_v24 = vld [vmem:[%s11374_s27 + $0x4d0] sm:$0xf0] }
 0x1cb   : > { %4668 = vmatpush.bf16.msra.mxu2 %v9269_v11  ;;  %v9353_v44 = vor.u32 %v12757_v53, %v12760_v6  ;;  %v12778_v11 = vld [vmem:[%s11374_s27 + $0x7e4] sm:$0xf]  ;;  %v3971_v28 = vrot.slane %v3969_v42, 2  ;;  %v3985_v10 = vrot.slane %v3983_v43, 1  ;;  %v3988_v41 = vrot.slane %v3986_v17, 2 }
 0x1cc   : > { %4682 = vmatpush.bf16.msra.mxu3 %v9397_v40  ;;  %v12782_v40 = vpack.c.b16 %v3910_v7, %v3910_v7  ;;  %v3903_v53 = vunpack.c.h.b16 %v12711_v3  ;;  %v12793_v42 = vld [vmem:[%s11374_s27 + $0x5c4] sm:$0xf]  ;;  %v3964_v7 = vor.u32 %v3963_v61, %v3960_v57  ;;  %v3924_v29 = vshrl.u32 %v12765_v59, 16  ;;  %v9334_v6 = vld [vmem:[%s11374_s27 + $0x6d0] sm:$0xf0] }
 0x1cd   : > { %4641 = vmatpush.bf16.msra.mxu0 %v8997_v34  ;;  %v3972_v34 = vor.u32 %v3971_v28, %v3968_v13  ;;  %v9481_v43 = vor.u32 %v12778_v11, %v9478_v21  ;;  %v11119_v3 = vld [vmem:[%s11374_s27 + $0x6c4] sm:$0xf]  ;;  %v3989_v17 = vor.u32 %v3988_v41, %v3985_v10  ;;  %v9462_v61 = vld [vmem:[%s11374_s27 + $0x7d0] sm:$0xf0]  ;;  %v3911_v11 = vunpack.c.h.b16 %v12722_v37  ;;  %v12822_v10 = vpop.f32.mrf.mxu0 }
 0x1ce   : > { %4655 = vmatpush.bf16.msra.mxu1 %v9125_v15  ;;  %v3927_v15 = vshll.u32 %v12765_v59, 16  ;;  %v3926_v63 = vrot.slane %v3924_v29, 1  ;;  %v3932_v57 = vshrl.u32 %v12782_v40, 16  ;;  %v3935_v58 = vshll.u32 %v12782_v40, 16 }
 0x1cf   : > { %4669 = vmatpush.bf16.msra.mxu2 %v9253_v4  ;;  %v9081_v4 = vor.u32 %v12785_v22, %v12788_v24  ;;  %v14153_v21 = vunpack.c.h.b16 %v12713_v52  ;;  %v12817_v29 = vsel %vm3922_vm5, %v3964_v7, %v3972_v34  ;;  %v14154_v37 = vor.u32 %v12709_v56, %v12694_v38  ;;  %v12833_v7 = vpop.f32.mrf.mxu1  ;;  %v11083_v34 = vld [vmem:[%s11374_s27 + $0x5a4] sm:$0xf] }
 0x1d0   : > { %4683 = vmatpush.bf16.msra.mxu3 %v9381_v32  ;;  %v9209_v32 = vor.u32 %v12793_v42, %v12796_v35  ;;  %v3929_v13 = vrot.slane %v3927_v15, 2  ;;  %v3934_v22 = vrot.slane %v3932_v57, 1  ;;  %v3937_v24 = vrot.slane %v3935_v58, 2 }
 0x1d1   : > { %4642 = vmatpush.bf16.msra.mxu0 %v8981_v2  ;;  %v12814_v28 = vpack.c.b16 %v14153_v21, %v3903_v53  ;;  %v12820_v2 = vsel %vm3922_vm5, %v3981_v0, %v3989_v17  ;;  %v12829_v53 = vpack.c.b16 %v3911_v11, %v3911_v11  ;;  %v9337_v56 = vor.u32 %v11119_v3, %v9334_v6  ;;  %v11115_v0 = vld [vmem:[%s11374_s27 + $0x6a4] sm:$0xf]  ;;  %v9446_v6 = vld [vmem:[%s11374_s27 + $0x7b0] sm:$0xf0]  ;;  %v12850_v21 = vpop.f32.mrf.mxu2 }
 0x1d2   : > { %4656 = vmatpush.bf16.msra.mxu1 %v9109_v45  ;;  %v11051_v45 = vld [vmem:[%s11374_s27 + $0x4a4] sm:$0xf]  ;;  %v3930_v41 = vor.u32 %v3929_v13, %v3926_v63  ;;  %v9465_v38 = vor.u32 %v11151_v62, %v9462_v61  ;;  %v3938_v17 = vor.u32 %v3937_v24, %v3934_v22  ;;  %v9318_v63 = vld [vmem:[%s11374_s27 + $0x6b0] sm:$0xf0] }
 0x1d3   : > { %4670 = vmatpush.bf16.msra.mxu2 %v9237_v48  ;;  %v9062_v48 = vld [vmem:[%s11374_s27 + $0x4b0] sm:$0xf0]  ;;  %v3941_v42 = vshrl.u32 %v12814_v28, 16  ;;  %v3944_v35 = vshll.u32 %v12814_v28, 16  ;;  %v3949_v58 = vshrl.u32 %v12829_v53, 16  ;;  %v3952_v13 = vshll.u32 %v12829_v53, 16 }
 0x1d4   : > { %4684 = vmatpush.bf16.msra.mxu3 %v14154_v37  ;;  %v9065_v3 = vor.u32 %v11051_v45, %v9062_v48  ;;  %v11047_v22 = vld [vmem:[%s11374_s27 + $0x484] sm:$0xf]  ;;  %v9046_v24 = vld [vmem:[%s11374_s27 + $0x490] sm:$0xf0] }
 0x1d5   : > { %4691 = vmatpush.bf16.msrb.mxu0 %v9097_v12  ;;  %v9190_v12 = vld [vmem:[%s11374_s27 + $0x5b0] sm:$0xf0]  ;;  %v3943_v15 = vrot.slane %v3941_v42, 1  ;;  %v3946_v57 = vrot.slane %v3944_v35, 2  ;;  %v3951_v61 = vrot.slane %v3949_v58, 1  ;;  %v3954_v11 = vrot.slane %v3952_v13, 2 }
 0x1d6   : > { %4705 = vmatpush.bf16.msrb.mxu1 %v9225_v16  ;;  %4671 = vmatmul.bf16.vlgmr.msra.gmra.mxu2 %v12817_v29  ;;  %v1457_v16 = vadd.f32 %v12085_v55, %v12083_v54  ;;  %v9193_v54 = vor.u32 %v11083_v34, %v9190_v12  ;;  %v9321_v55 = vor.u32 %v11115_v0, %v9318_v63  ;;  %v11079_v37 = vld [vmem:[%s11374_s27 + $0x584] sm:$0xf]  ;;  %v9174_v45 = vld [vmem:[%s11374_s27 + $0x590] sm:$0xf0] }
 0x1d7   : > { %4719 = vmatpush.bf16.msrb.mxu2 %v9353_v44  ;;  %v11147_v44 = vld [vmem:[%s11374_s27 + $0x7a4] sm:$0xf]  ;;  %4685 = vmatmul.bf16.vlgmr.msra.gmra.mxu3 %v12820_v2  ;;  %v3947_v62 = vor.u32 %v3946_v57, %v3943_v15  ;;  %v9302_v42 = vld [vmem:[%s11374_s27 + $0x690] sm:$0xf0]  ;;  %v9049_v12 = vor.u32 %v11047_v22, %v9046_v24  ;;  %v3343_v15 = vpop.f32.mrf.mxu1 }
 0x1d8   : > { %4733 = vmatpush.bf16.msrb.mxu3 %v9481_v43  ;;  %v12848_v43 = vsel %vm3922_vm5, %v3930_v41, %v3938_v17  ;;  %v12855_v41 = vpop.f32.mrf.mxu3  ;;  %v11111_v48 = vld [vmem:[%s11374_s27 + $0x684] sm:$0xf]  ;;  %v1471_v34 = vadd.f32 %v12090_v1, %v1457_v16  ;;  %v9177_v17 = vor.u32 %v11079_v37, %v9174_v45  ;;  %v9030_v58 = vld [vmem:[%s11374_s27 + $0x470] sm:$0xf0] }
 0x1d9   : > { %4692 = vmatpush.bf16.msrb.mxu0 %v9081_v4  ;;  %v9449_v4 = vor.u32 %v11147_v44, %v9446_v6  ;;  %v11143_v35 = vld [vmem:[%s11374_s27 + $0x784] sm:$0xf]  ;;  %v9305_v63 = vor.u32 %v11111_v48, %v9302_v42  ;;  %v9158_v44 = vld [vmem:[%s11374_s27 + $0x570] sm:$0xf0]  ;;  %v3357_v24 = vpop.f32.mrf.mxu2 }
 0x1da   : > { %4706 = vmatpush.bf16.msrb.mxu1 %v9209_v32  ;;  %4643 = vmatmul.bf16.vlgmr.msra.gmra.mxu0 %v12848_v43  ;;  %v3955_v32 = vor.u32 %v3954_v11, %v3951_v61  ;;  %v11043_v57 = vld [vmem:[%s11374_s27 + $0x464] sm:$0xf]  ;;  %v9414_v61 = vld [vmem:[%s11374_s27 + $0x770] sm:$0xf0]  ;;  %v1485_v11 = vadd.f32 %v12097_v9, %v1471_v34 }
 0x1db   : > { %4720 = vmatpush.bf16.msrb.mxu2 %v9337_v56  ;;  %v9430_v56 = vld [vmem:[%s11374_s27 + $0x790] sm:$0xf0]  ;;  %v11075_v13 = vld [vmem:[%s11374_s27 + $0x564] sm:$0xf] }
 0x1dc   : > { %4734 = vmatpush.bf16.msrb.mxu3 %v9465_v38  ;;  %v3329_v38 = vpop.f32.mrf.mxu0  ;;  %v12865_v0 = vsel %vm3922_vm5, %v3947_v62, %v3955_v32  ;;  %v9433_v1 = vor.u32 %v11143_v35, %v9430_v56  ;;  %v11107_v6 = vld [vmem:[%s11374_s27 + $0x664] sm:$0xf]  ;;  %v2311_v48 = vadd.f32 %v12398_v39, %v1485_v11  ;;  %v9142_v35 = vld [vmem:[%s11374_s27 + $0x550] sm:$0xf0] }
 0x1dd   : > { %4693 = vmatpush.bf16.msrb.mxu0 %v9065_v3  ;;  %v3344_v16 = vadd.f32 %v3343_v15, %v3329_v38  ;;  %v9286_v3 = vld [vmem:[%s11374_s27 + $0x670] sm:$0xf0]  ;;  %4657 = vmatmul.bf16.vlgmr.msra.gmra.mxu1 %v12865_v0  ;;  %v11139_v62 = vld [vmem:[%s11374_s27 + $0x764] sm:$0xf] }
 0x1de   : > { %4707 = vmatpush.bf16.msrb.mxu1 %v9193_v54  ;;  %v9033_v54 = vor.u32 %v11043_v57, %v9030_v58  ;;  %v9289_v22 = vor.u32 %v11107_v6, %v9286_v3  ;;  %v11039_v37 = vld [vmem:[%s11374_s27 + $0x444] sm:$0xf]  ;;  %v9417_v9 = vor.u32 %v11139_v62, %v9414_v61  ;;  %v9270_v34 = vld [vmem:[%s11374_s27 + $0x650] sm:$0xf0]  ;;  %v2325_v6 = vadd.f32 %v12402_v47, %v2311_v48 }
 0x1df   : > { %4721 = vmatpush.bf16.msrb.mxu2 %v9321_v55  ;;  %v9161_v55 = vor.u32 %v11075_v13, %v9158_v44  ;;  %v11071_v45 = vld [vmem:[%s11374_s27 + $0x544] sm:$0xf]  ;;  %v3358_v42 = vadd.f32 %v3357_v24, %v3344_v16  ;;  %v9398_v38 = vld [vmem:[%s11374_s27 + $0x750] sm:$0xf0]  ;;  %v3345_v13 = vpop.f32.mrf.mxu1 }
 0x1e0   : > { %4735 = vmatpush.bf16.msrb.mxu3 %v9449_v4  ;;  %v9014_v4 = vld [vmem:[%s11374_s27 + $0x450] sm:$0xf0]  ;;  %v3371_v32 = vpop.f32.mrf.mxu3  ;;  %v11103_v56 = vld [vmem:[%s11374_s27 + $0x644] sm:$0xf]  ;;  %v9145_v39 = vor.u32 %v11071_v45, %v9142_v35 }
 0x1e1   : > { %4694 = vmatpush.bf16.msrb.mxu0 %v9049_v12  ;;  %v11135_v12 = vld [vmem:[%s11374_s27 + $0x744] sm:$0xf]  ;;  %v9273_v58 = vor.u32 %v11103_v56, %v9270_v34  ;;  %v9126_v44 = vld [vmem:[%s11374_s27 + $0x530] sm:$0xf0] }
 0x1e2   : > { %4708 = vmatpush.bf16.msrb.mxu1 %v9177_v17  ;;  %v3372_v17 = vadd.f32 %v3371_v32, %v3358_v42  ;;  %v11035_v57 = vld [vmem:[%s11374_s27 + $0x424] sm:$0xf]  ;;  %v9401_v62 = vor.u32 %v11135_v12, %v9398_v38  ;;  %v3359_v42 = vpop.f32.mrf.mxu2  ;;  %v9238_v35 = vld [vmem:[%s11374_s27 + $0x610] sm:$0xf0] }
 0x1e3   : > { %4722 = vmatpush.bf16.msrb.mxu2 %v9305_v63  ;;  %v9017_v63 = vor.u32 %v11039_v37, %v9014_v4  ;;  %v11067_v16 = vld [vmem:[%s11374_s27 + $0x524] sm:$0xf]  ;;  %v8982_v37 = vld [vmem:[%s11374_s27 + $0x410] sm:$0xf0]  ;;  %v2339_v4 = vadd.f32 %v12419_v27, %v2325_v6  ;;  %v11158_v6 = vld [vmem:[%s11374_s27 + $0x7f4] sm:$0xf0] }
 0x1e4   : > { %4736 = vmatpush.bf16.msrb.mxu3 %v9433_v1  ;;  %v3331_v15 = vpop.f32.mrf.mxu0  ;;  %v8998_v1 = vld [vmem:[%s11374_s27 + $0x430] sm:$0xf0]  ;;  %v3544_v3 = vadd.f32 %v3372_v17, %v12366_v20  ;;  %v11099_v11 = vld [vmem:[%s11374_s27 + $0x624] sm:$0xf]  ;;  %v9129_v48 = vor.u32 %v11067_v16, %v9126_v44  ;;  %v9100_v17 = vld [vmem:[%s11374_s27 + $0x4e8] sm:$0xf] }
 0x1e5   : > { %4695 = vmatpush.bf16.msrb.mxu0 %v9033_v54  ;;  %v3346_v61 = vadd.f32 %v3345_v13, %v3331_v15  ;;  %v9254_v54 = vld [vmem:[%s11374_s27 + $0x630] sm:$0xf0]  ;;  %v11031_v24 = vld [vmem:[%s11374_s27 + $0x404] sm:$0xf]  ;;  %v9001_v47 = vor.u32 %v11035_v57, %v8998_v1  ;;  %v9228_v15 = vld [vmem:[%s11374_s27 + $0x5e8] sm:$0xf] }
 0x1e6   : > { %4709 = vmatpush.bf16.msrb.mxu1 %v9161_v55  ;;  %v11131_v55 = vld [vmem:[%s11374_s27 + $0x724] sm:$0xf]  ;;  %3624 = vst [vmem:[#allocation3 + $0x48] sm:$0xff] %v3544_v3  ;;  %v9110_v20 = vld [vmem:[%s11374_s27 + $0x510] sm:$0xf0]  ;;  %v8985_v1 = vor.u32 %v11031_v24, %v8982_v37 }
 0x1e7   : > { %4723 = vmatpush.bf16.msrb.mxu2 %v9289_v22  ;;  %v9382_v22 = vld [vmem:[%s11374_s27 + $0x730] sm:$0xf0]  ;;  %v11063_v45 = vld [vmem:[%s11374_s27 + $0x504] sm:$0xf]  ;;  %v3360_v34 = vadd.f32 %v3359_v42, %v3346_v61  ;;  %v11094_v57 = vld [vmem:[%s11374_s27 + $0x5f4] sm:$0xf0] }
 0x1e8   : > { %4737 = vmatpush.bf16.msrb.mxu3 %v9417_v9  ;;  %v9257_v9 = vor.u32 %v11099_v11, %v9254_v54  ;;  %v11095_v32 = vld [vmem:[%s11374_s27 + $0x604] sm:$0xf]  ;;  %v9385_v56 = vor.u32 %v11131_v55, %v9382_v22  ;;  %v3373_v12 = vpop.f32.mrf.mxu3  ;;  %v9366_v38 = vld [vmem:[%s11374_s27 + $0x710] sm:$0xf0]  ;;  %v11126_v16 = vld [vmem:[%s11374_s27 + $0x6f4] sm:$0xf0]  ;;  %v9229_v22 = vor.u32 %v11094_v57, %v9228_v15 }
 0x1e9   : > { %4696 = vmatpush.bf16.msrb.mxu0 %v9017_v63  ;;  %v11127_v27 = vld [vmem:[%s11374_s27 + $0x704] sm:$0xf]  ;;  %v11062_v63 = vld [vmem:[%s11374_s27 + $0x4f4] sm:$0xf0]  ;;  %v3374_v13 = vadd.f32 %v3373_v12, %v3360_v34  ;;  %v9484_v44 = vld [vmem:[%s11374_s27 + $0x7e8] sm:$0xf]  ;;  %v9241_v61 = vor.u32 %v11095_v32, %v9238_v35  ;;  %v3584_v34 = vmul.f32 %v3544_v3, %v3544_v3 }
 0x1ea   : > { %4710 = vmatpush.bf16.msrb.mxu1 %v9145_v39  ;;  %v9356_v39 = vld [vmem:[%s11374_s27 + $0x6e8] sm:$0xf]  ;;  %v9369_v54 = vor.u32 %v11127_v27, %v9366_v38  ;;  %v9101_v55 = vor.u32 %v11062_v63, %v9100_v17  ;;  %v9485_v37 = vor.u32 %v11158_v6, %v9484_v44  ;;  %v11090_v42 = vld [vmem:[%s11374_s27 + $0x5d4] sm:$0xf0] }
 0x1eb   : > { %4724 = vmatpush.bf16.msrb.mxu2 %v9273_v58  ;;  %v2353_v58 = vadd.f32 %v12424_v33, %v2339_v4  ;;  %v9084_v33 = vld [vmem:[%s11374_s27 + $0x4c8] sm:$0xf]  ;;  %v9357_v24 = vor.u32 %v11126_v16, %v9356_v39  ;;  %v11058_v4 = vld [vmem:[%s11374_s27 + $0x4d4] sm:$0xf0]  ;;  %v1513_v16 = vadd.f32 %v12146_v51, %v12144_v60 }
 0x1ec   : > { %4738 = vmatpush.bf16.msrb.mxu3 %v9401_v62  ;;  %v9113_v62 = vor.u32 %v11063_v45, %v9110_v20  ;;  %v9340_v20 = vld [vmem:[%s11374_s27 + $0x6c8] sm:$0xf]  ;;  %v11154_v35 = vld [vmem:[%s11374_s27 + $0x7d4] sm:$0xf0] }
 0x1ed   : > { %4697 = vmatpush.bf16.msrb.mxu0 %v9001_v47  ;;  %v3548_v11 = vadd.f32 %v3374_v13, %v2353_v58  ;;  %v9212_v47 = vld [vmem:[%s11374_s27 + $0x5c8] sm:$0xf]  ;;  %v11054_v17 = vld [vmem:[%s11374_s27 + $0x4b4] sm:$0xf0] }
 0x1ee   : > { %4711 = vmatpush.bf16.msrb.mxu1 %v9129_v48  ;;  %v9468_v32 = vld [vmem:[%s11374_s27 + $0x7c8] sm:$0xf]  ;;  %v11086_v57 = vld [vmem:[%s11374_s27 + $0x5b4] sm:$0xf0] }
 0x1ef   : > { %4725 = vmatpush.bf16.msrb.mxu2 %v9257_v9  ;;  %v12918_v48 = vadd.f32 %v3548_v11, %v3544_v3  ;;  %v3588_v45 = vmul.f32 %v3548_v11, %v3548_v11  ;;  %3628 = vst [vmem:[#allocation3 + $0x38] sm:$0xff] %v3548_v11  ;;  %v11122_v9 = vld [vmem:[%s11374_s27 + $0x6d4] sm:$0xf0]  ;;  %v9085_v3 = vor.u32 %v11058_v4, %v9084_v33  ;;  %v9068_v38 = vld [vmem:[%s11374_s27 + $0x4a8] sm:$0xf] }
 0x1f0   : > { %4739 = vmatpush.bf16.msrb.mxu3 %v9385_v56  ;;  %v9213_v56 = vor.u32 %v11090_v42, %v9212_v47  ;;  %v9341_v12 = vor.u32 %v11122_v9, %v9340_v20  ;;  %v9196_v63 = vld [vmem:[%s11374_s27 + $0x5a8] sm:$0xf]  ;;  %v9469_v15 = vor.u32 %v11154_v35, %v9468_v32  ;;  %v11118_v58 = vld [vmem:[%s11374_s27 + $0x6b4] sm:$0xf0]  ;;  %v9069_v44 = vor.u32 %v11054_v17, %v9068_v38 }
 0x1f1   : > { %4698 = vmatpush.bf16.msrb.mxu0 %v8985_v1  ;;  %v12924_v27 = vadd.f32 %v3588_v45, %v3584_v34  ;;  %v9324_v39 = vld [vmem:[%s11374_s27 + $0x6a8] sm:$0xf]  ;;  %v11150_v1 = vld [vmem:[%s11374_s27 + $0x7b4] sm:$0xf0]  ;;  %v9197_v6 = vor.u32 %v11086_v57, %v9196_v63  ;;  %v3385_v47 = vpop.f32.mrf.mxu0 }
 0x1f2   : > { %4712 = vmatpush.bf16.msrb.mxu1 %v9113_v62  ;;  %v9452_v13 = vld [vmem:[%s11374_s27 + $0x7a8] sm:$0xf]  ;;  %v9325_v62 = vor.u32 %v11118_v58, %v9324_v39  ;;  %v11050_v11 = vld [vmem:[%s11374_s27 + $0x494] sm:$0xf0]  ;;  %v3399_v45 = vpop.f32.mrf.mxu1 }
 0x1f3   : > { %4726 = vmatpush.bf16.msrb.mxu2 %v9241_v61  ;;  %v9052_v61 = vld [vmem:[%s11374_s27 + $0x488] sm:$0xf]  ;;  %v11082_v33 = vld [vmem:[%s11374_s27 + $0x594] sm:$0xf0] }
 0x1f4   : > { %4740 = vmatpush.bf16.msrb.mxu3 %v9369_v54  ;;  %4699 = vmatmul.bf16.vlgmr.msrb.gmra.mxu0 %v12848_v43  ;;  %v9180_v54 = vld [vmem:[%s11374_s27 + $0x588] sm:$0xf]  ;;  %v11114_v51 = vld [vmem:[%s11374_s27 + $0x694] sm:$0xf0]  ;;  %v9053_v4 = vor.u32 %v11050_v11, %v9052_v61 }
 0x1f5   : > { %4747 = vmatpush.bf16.msra.mxu0 %v9101_v55  ;;  %4713 = vmatmul.bf16.vlgmr.msrb.gmra.mxu1 %v12865_v0  ;;  %v9453_v55 = vor.u32 %v11150_v1, %v9452_v13  ;;  %v9308_v60 = vld [vmem:[%s11374_s27 + $0x688] sm:$0xf]  ;;  %v9181_v42 = vor.u32 %v11082_v33, %v9180_v54  ;;  %v11046_v9 = vld [vmem:[%s11374_s27 + $0x474] sm:$0xf0] }
 0x1f6   : > { %4761 = vmatpush.bf16.msra.mxu1 %v9229_v22  ;;  %4727 = vmatmul.bf16.vlgmr.msrb.gmra.mxu2 %v12817_v29  ;;  %v9436_v22 = vld [vmem:[%s11374_s27 + $0x788] sm:$0xf]  ;;  %v9309_v34 = vor.u32 %v11114_v51, %v9308_v60  ;;  %v11142_v17 = vld [vmem:[%s11374_s27 + $0x774] sm:$0xf0] }
 0x1f7   : > { %4775 = vmatpush.bf16.msra.mxu2 %v9357_v24  ;;  %4741 = vmatmul.bf16.vlgmr.msrb.gmra.mxu3 %v12820_v2  ;;  %v11146_v24 = vld [vmem:[%s11374_s27 + $0x794] sm:$0xf0]  ;;  %v9036_v20 = vld [vmem:[%s11374_s27 + $0x468] sm:$0xf] }
 0x1f8   : > { %4789 = vmatpush.bf16.msra.mxu3 %v9485_v37  ;;  %v1527_v37 = vadd.f32 %v12160_v8, %v1513_v16  ;;  %v9164_v32 = vld [vmem:[%s11374_s27 + $0x568] sm:$0xf]  ;;  %v9437_v35 = vor.u32 %v11146_v24, %v9436_v22  ;;  %v3400_v8 = vadd.f32 %v3399_v45, %v3385_v47  ;;  %v11042_v1 = vld [vmem:[%s11374_s27 + $0x454] sm:$0xf0] }
 0x1f9   : > { %4748 = vmatpush.bf16.msra.mxu0 %v9085_v3  ;;  %v11078_v3 = vld [vmem:[%s11374_s27 + $0x574] sm:$0xf0]  ;;  %v9420_v38 = vld [vmem:[%s11374_s27 + $0x768] sm:$0xf]  ;;  %v3413_v58 = vpop.f32.mrf.mxu2  ;;  %v3387_v22 = vpop.f32.mrf.mxu0 }
 0x1fa   : > { %4762 = vmatpush.bf16.msra.mxu1 %v9213_v56  ;;  %v9292_v56 = vld [vmem:[%s11374_s27 + $0x668] sm:$0xf]  ;;  %v1541_v63 = vadd.f32 %v12167_v18, %v1527_v37  ;;  %v9165_v57 = vor.u32 %v11078_v3, %v9164_v32  ;;  %v9421_v18 = vor.u32 %v11142_v17, %v9420_v38  ;;  %v11074_v61 = vld [vmem:[%s11374_s27 + $0x554] sm:$0xf0] }
 0x1fb   : > { %4776 = vmatpush.bf16.msra.mxu2 %v9341_v12  ;;  %v11110_v12 = vld [vmem:[%s11374_s27 + $0x674] sm:$0xf0]  ;;  %v9020_v13 = vld [vmem:[%s11374_s27 + $0x448] sm:$0xf] }
 0x1fc   : > { %4790 = vmatpush.bf16.msra.mxu3 %v9469_v15  ;;  %v9037_v15 = vor.u32 %v11046_v9, %v9036_v20  ;;  %v9293_v39 = vor.u32 %v11110_v12, %v9292_v56  ;;  %v9148_v16 = vld [vmem:[%s11374_s27 + $0x548] sm:$0xf]  ;;  %v11106_v54 = vld [vmem:[%s11374_s27 + $0x654] sm:$0xf0]  ;;  %v9021_v51 = vor.u32 %v11042_v1, %v9020_v13 }
 0x1fd   : > { %4749 = vmatpush.bf16.msra.mxu0 %v9069_v44  ;;  %v2367_v44 = vadd.f32 %v12477_v46, %v1541_v63  ;;  %v9276_v11 = vld [vmem:[%s11374_s27 + $0x648] sm:$0xf]  ;;  %v11138_v33 = vld [vmem:[%s11374_s27 + $0x754] sm:$0xf0]  ;;  %v9149_v46 = vor.u32 %v11074_v61, %v9148_v16  ;;  %v11092_v61 = vld [vmem:[%s11374_s27 + $0x5ec] sm:$0xf] }
 0x1fe   : > { %4763 = vmatpush.bf16.msra.mxu1 %v9197_v6  ;;  %v3414_v6 = vadd.f32 %v3413_v58, %v3400_v8  ;;  %v9004_v24 = vld [vmem:[%s11374_s27 + $0x428] sm:$0xf]  ;;  %v9277_v37 = vor.u32 %v11106_v54, %v9276_v11  ;;  %v11038_v47 = vld [vmem:[%s11374_s27 + $0x434] sm:$0xf0]  ;;  %v9230_v11 = vld [vmem:[%s11374_s27 + $0x5f8] sm:$0xf0] }
 0x1ff   : > { %4777 = vmatpush.bf16.msra.mxu2 %v9325_v62  ;;  %v3427_v62 = vpop.f32.mrf.mxu3  ;;  %v2381_v45 = vadd.f32 %v12481_v5, %v2367_v44  ;;  %v11102_v8 = vld [vmem:[%s11374_s27 + $0x634] sm:$0xf0]  ;;  %v9388_v3 = vld [vmem:[%s11374_s27 + $0x728] sm:$0xf]  ;;  %v9005_v5 = vor.u32 %v11038_v47, %v9004_v24  ;;  %v11124_v54 = vld [vmem:[%s11374_s27 + $0x6ec] sm:$0xf] }
 0x200   : > { %4791 = vmatpush.bf16.msra.mxu3 %v9453_v55  ;;  %v9404_v55 = vld [vmem:[%s11374_s27 + $0x748] sm:$0xf]  ;;  %v3428_v60 = vadd.f32 %v3427_v62, %v3414_v6  ;;  %v11134_v56 = vld [vmem:[%s11374_s27 + $0x734] sm:$0xf0]  ;;  %v11060_v6 = vld [vmem:[%s11374_s27 + $0x4ec] sm:$0xf] }
 0x201   : > { %4750 = vmatpush.bf16.msra.mxu0 %v9053_v4  ;;  %v3401_v4 = vpop.f32.mrf.mxu1  ;;  %v9405_v9 = vor.u32 %v11138_v33, %v9404_v55  ;;  %v8988_v12 = vld [vmem:[%s11374_s27 + $0x408] sm:$0xf]  ;;  %v11034_v38 = vld [vmem:[%s11374_s27 + $0x414] sm:$0xf0]  ;;  %v2395_v17 = vadd.f32 %v12498_v14, %v2381_v45  ;;  %v9389_v1 = vor.u32 %v11134_v56, %v9388_v3  ;;  %v9102_v62 = vld [vmem:[%s11374_s27 + $0x4f8] sm:$0xf0] }
 0x202   : > { %4764 = vmatpush.bf16.msra.mxu1 %v9181_v42  ;;  %v9132_v42 = vld [vmem:[%s11374_s27 + $0x528] sm:$0xf]  ;;  %v3545_v20 = vadd.f32 %v3428_v60, %v12445_v30  ;;  %v3402_v32 = vadd.f32 %v3401_v4, %v3387_v22  ;;  %v11066_v30 = vld [vmem:[%s11374_s27 + $0x514] sm:$0xf0]  ;;  %v8989_v60 = vor.u32 %v11034_v38, %v8988_v12  ;;  %v11156_v22 = vld [vmem:[%s11374_s27 + $0x7ec] sm:$0xf] }
 0x203   : > { %4778 = vmatpush.bf16.msra.mxu2 %v9309_v34  ;;  %v11070_v34 = vld [vmem:[%s11374_s27 + $0x534] sm:$0xf0]  ;;  %v9116_v63 = vld [vmem:[%s11374_s27 + $0x508] sm:$0xf]  ;;  %v2409_v55 = vadd.f32 %v12503_v31, %v2395_v17  ;;  %v9486_v24 = vld [vmem:[%s11374_s27 + $0x7f8] sm:$0xf0] }
 0x204   : > { %4792 = vmatpush.bf16.msra.mxu3 %v9437_v35  ;;  %v9260_v35 = vld [vmem:[%s11374_s27 + $0x628] sm:$0xf]  ;;  %3625 = vst [vmem:[#allocation3 + $0x50] sm:$0xff] %v3545_v20  ;;  %v11098_v13 = vld [vmem:[%s11374_s27 + $0x614] sm:$0xf0]  ;;  %v3585_v3 = vmul.f32 %v3545_v20, %v3545_v20 }
 0x205   : > { %4751 = vmatpush.bf16.msra.mxu0 %v9037_v15  ;;  %v9133_v15 = vor.u32 %v11070_v34, %v9132_v42  ;;  %v9244_v58 = vld [vmem:[%s11374_s27 + $0x608] sm:$0xf]  ;;  %v9105_v42 = vor.u32 %v11060_v6, %v9102_v62  ;;  %v11056_v31 = vld [vmem:[%s11374_s27 + $0x4cc] sm:$0xf]  ;;  %v9233_v34 = vor.u32 %v11092_v61, %v9230_v11  ;;  %v9342_v17 = vld [vmem:[%s11374_s27 + $0x6d8] sm:$0xf0]  ;;  %v1569_v62 = vadd.f32 %v12221_v19, %v12219_v26 }
 0x206   : > { %4765 = vmatpush.bf16.msra.mxu1 %v9165_v57  ;;  %v9261_v57 = vor.u32 %v11102_v8, %v9260_v35  ;;  %v9372_v14 = vld [vmem:[%s11374_s27 + $0x708] sm:$0xf]  ;;  %v11088_v35 = vld [vmem:[%s11374_s27 + $0x5cc] sm:$0xf]  ;;  %v9214_v8 = vld [vmem:[%s11374_s27 + $0x5d8] sm:$0xf0] }
 0x207   : > { %4779 = vmatpush.bf16.msra.mxu2 %v9293_v39  ;;  %v3415_v39 = vpop.f32.mrf.mxu2  ;;  %v3429_v44 = vpop.f32.mrf.mxu3  ;;  %v11120_v38 = vld [vmem:[%s11374_s27 + $0x6cc] sm:$0xf]  ;;  %v9454_v6 = vld [vmem:[%s11374_s27 + $0x7b8] sm:$0xf0] }
 0x208   : > { %4793 = vmatpush.bf16.msra.mxu3 %v9421_v18  ;;  %v3416_v16 = vadd.f32 %v3415_v39, %v3402_v32  ;;  %v11130_v18 = vld [vmem:[%s11374_s27 + $0x714] sm:$0xf0]  ;;  %v9086_v32 = vld [vmem:[%s11374_s27 + $0x4d8] sm:$0xf0]  ;;  %v11052_v39 = vld [vmem:[%s11374_s27 + $0x4ac] sm:$0xf] }
 0x209   : > { %4752 = vmatpush.bf16.msra.mxu0 %v9021_v51  ;;  %v9358_v51 = vld [vmem:[%s11374_s27 + $0x6f8] sm:$0xf0]  ;;  %v9373_v47 = vor.u32 %v11130_v18, %v9372_v14  ;;  %v11148_v18 = vld [vmem:[%s11374_s27 + $0x7ac] sm:$0xf] }
 0x20a   : > { %4766 = vmatpush.bf16.msra.mxu1 %v9149_v46  ;;  %v3430_v33 = vadd.f32 %v3429_v44, %v3416_v16  ;;  %v9117_v46 = vor.u32 %v11066_v30, %v9116_v63  ;;  %v9361_v45 = vor.u32 %v11124_v54, %v9358_v51  ;;  %v9470_v63 = vld [vmem:[%s11374_s27 + $0x7d8] sm:$0xf0]  ;;  %v11116_v16 = vld [vmem:[%s11374_s27 + $0x6ac] sm:$0xf]  ;;  %v9457_v51 = vor.u32 %v11148_v18, %v9454_v6 }
 0x20b   : > { %4780 = vmatpush.bf16.msra.mxu2 %v9277_v37  ;;  %v9245_v37 = vor.u32 %v11098_v13, %v9244_v58  ;;  %v9070_v58 = vld [vmem:[%s11374_s27 + $0x4b8] sm:$0xf0]  ;;  %v11084_v13 = vld [vmem:[%s11374_s27 + $0x5ac] sm:$0xf] }
 0x20c   : > { %4794 = vmatpush.bf16.msra.mxu3 %v9405_v9  ;;  %v3549_v4 = vadd.f32 %v3430_v33, %v2409_v55  ;;  %v9489_v9 = vor.u32 %v11156_v22, %v9486_v24  ;;  %v9326_v44 = vld [vmem:[%s11374_s27 + $0x6b8] sm:$0xf0]  ;;  %v9073_v61 = vor.u32 %v11052_v39, %v9070_v58  ;;  %v11048_v55 = vld [vmem:[%s11374_s27 + $0x48c] sm:$0xf] }
 0x20d   : > { %4753 = vmatpush.bf16.msra.mxu0 %v9005_v5  ;;  %v11152_v5 = vld [vmem:[%s11374_s27 + $0x7cc] sm:$0xf]  ;;  %v9329_v54 = vor.u32 %v11116_v16, %v9326_v44  ;;  %v9054_v33 = vld [vmem:[%s11374_s27 + $0x498] sm:$0xf0] }
 0x20e   : > { %4767 = vmatpush.bf16.msra.mxu1 %v9133_v15  ;;  %v12999_v56 = vadd.f32 %v3549_v4, %v3545_v20  ;;  %v3589_v12 = vmul.f32 %v3549_v4, %v3549_v4  ;;  %3629 = vst [vmem:[#allocation3 + $0x10] sm:$0xff] %v3549_v4  ;;  %v9089_v20 = vor.u32 %v11056_v31, %v9086_v32  ;;  %v9182_v22 = vld [vmem:[%s11374_s27 + $0x598] sm:$0xf0]  ;;  %v11112_v26 = vld [vmem:[%s11374_s27 + $0x68c] sm:$0xf] }
 0x20f   : > { %4781 = vmatpush.bf16.msra.mxu2 %v9261_v57  ;;  %v9217_v15 = vor.u32 %v11088_v35, %v9214_v8  ;;  %v9345_v57 = vor.u32 %v11120_v38, %v9342_v17  ;;  %v9473_v14 = vor.u32 %v11152_v5, %v9470_v63  ;;  %v9310_v19 = vld [vmem:[%s11374_s27 + $0x698] sm:$0xf0]  ;;  %v11144_v24 = vld [vmem:[%s11374_s27 + $0x78c] sm:$0xf]  ;;  %v9057_v4 = vor.u32 %v11048_v55, %v9054_v33  ;;  %v14155_v5 = vld [vmem:[#allocation4_spill] sm:$0xff] }
 0x210   : > { %4795 = vmatpush.bf16.msra.mxu3 %v9389_v1  ;;  %v13005_v30 = vadd.f32 %v3589_v12, %v3585_v3  ;;  %v9198_v1 = vld [vmem:[%s11374_s27 + $0x5b8] sm:$0xf0]  ;;  %v9313_v31 = vor.u32 %v11112_v26, %v9310_v19  ;;  %v11076_v32 = vld [vmem:[%s11374_s27 + $0x56c] sm:$0xf] }
 0x211   : > { %4754 = vmatpush.bf16.msra.mxu0 %v8989_v60  ;;  %v9201_v11 = vor.u32 %v11084_v13, %v9198_v1  ;;  %v11080_v60 = vld [vmem:[%s11374_s27 + $0x58c] sm:$0xf]  ;;  %v9166_v8 = vld [vmem:[%s11374_s27 + $0x578] sm:$0xf0]  ;;  %v14156_v1 = vld [vmem:[#allocation10_spill] sm:$0xff] }
 0x212   : > { %4768 = vmatpush.bf16.msra.mxu1 %v9117_v46  ;;  %v9438_v46 = vld [vmem:[%s11374_s27 + $0x798] sm:$0xf0]  ;;  %v11108_v3 = vld [vmem:[%s11374_s27 + $0x66c] sm:$0xf] }
 0x213   : > { %4782 = vmatpush.bf16.msra.mxu2 %v9245_v37  ;;  %v1583_v37 = vadd.f32 %v12241_v23, %v1569_v62  ;;  %v9441_v35 = vor.u32 %v11144_v24, %v9438_v46  ;;  %v9294_v12 = vld [vmem:[%s11374_s27 + $0x678] sm:$0xf0]  ;;  %v11140_v38 = vld [vmem:[%s11374_s27 + $0x76c] sm:$0xf] }
 0x214   : > { %4796 = vmatpush.bf16.msra.mxu3 %v9373_v47  ;;  %4755 = vmatmul.bf16.vlgmr.msra.gmra.mxu0 %v12848_v43  ;;  %v3441_v47 = vpop.f32.mrf.mxu0  ;;  %v9422_v17 = vld [vmem:[%s11374_s27 + $0x778] sm:$0xf0]  ;;  %v11040_v58 = vld [vmem:[%s11374_s27 + $0x44c] sm:$0xf] }
 0x215   : > { %4803 = vmatpush.bf16.msrb.mxu0 %v9105_v42  ;;  %4769 = vmatmul.bf16.vlgmr.msra.gmra.mxu1 %v12865_v0  ;;  %v9185_v42 = vor.u32 %v11080_v60, %v9182_v22  ;;  %v1597_v63 = vadd.f32 %v14155_v5, %v1583_v37  ;;  %v9022_v13 = vld [vmem:[%s11374_s27 + $0x458] sm:$0xf0]  ;;  %v9425_v44 = vor.u32 %v11140_v38, %v9422_v17  ;;  %v11036_v22 = vld [vmem:[%s11374_s27 + $0x42c] sm:$0xf]  ;;  %v14159_v38 = vld [vmem:[#allocation12_spill] sm:$0xff] }
 0x216   : > { %4817 = vmatpush.bf16.msrb.mxu1 %v9233_v34  ;;  %4783 = vmatmul.bf16.vlgmr.msra.gmra.mxu2 %v12817_v29  ;;  %v3455_v34 = vpop.f32.mrf.mxu1  ;;  %v9150_v62 = vld [vmem:[%s11374_s27 + $0x558] sm:$0xf0]  ;;  %v9025_v60 = vor.u32 %v11040_v58, %v9022_v13  ;;  %v11068_v37 = vld [vmem:[%s11374_s27 + $0x52c] sm:$0xf] }
 0x217   : > { %4831 = vmatpush.bf16.msrb.mxu2 %v9361_v45  ;;  %4797 = vmatmul.bf16.vlgmr.msra.gmra.mxu3 %v12820_v2  ;;  %v11044_v45 = vld [vmem:[%s11374_s27 + $0x46c] sm:$0xf]  ;;  %v3456_v23 = vadd.f32 %v3455_v34, %v3441_v47  ;;  %v2423_v16 = vadd.f32 %v14156_v1, %v1597_v63  ;;  %v9406_v55 = vld [vmem:[%s11374_s27 + $0x758] sm:$0xf0] }
 0x218   : > { %4845 = vmatpush.bf16.msrb.mxu3 %v9489_v9  ;;  %v9038_v9 = vld [vmem:[%s11374_s27 + $0x478] sm:$0xf0]  ;;  %v14157_v47 = vld [vmem:[#allocation11_spill] sm:$0xff] }
 0x219   : > { %4804 = vmatpush.bf16.msrb.mxu0 %v9089_v20  ;;  %v9041_v20 = vor.u32 %v11044_v45, %v9038_v9  ;;  %v3469_v39 = vpop.f32.mrf.mxu2  ;;  %v9006_v46 = vld [vmem:[%s11374_s27 + $0x438] sm:$0xf0]  ;;  %v11064_v63 = vld [vmem:[%s11374_s27 + $0x50c] sm:$0xf] }
 0x21a   : > { %4818 = vmatpush.bf16.msrb.mxu1 %v9217_v15  ;;  %v9169_v15 = vor.u32 %v11076_v32, %v9166_v8  ;;  %v3470_v18 = vadd.f32 %v3469_v39, %v3456_v23  ;;  %v3483_v6 = vpop.f32.mrf.mxu3  ;;  %v11100_v32 = vld [vmem:[%s11374_s27 + $0x62c] sm:$0xf]  ;;  %v9390_v8 = vld [vmem:[%s11374_s27 + $0x738] sm:$0xf0]  ;;  %v9009_v5 = vor.u32 %v11036_v22, %v9006_v46  ;;  %v10997_v22 = vld [vmem:[%s11374_s27 + $0x2ec] sm:$0xf0] }
 0x21b   : > { %4832 = vmatpush.bf16.msrb.mxu2 %v9345_v57  ;;  %v9297_v57 = vor.u32 %v11108_v3, %v9294_v12  ;;  %v11132_v23 = vld [vmem:[%s11374_s27 + $0x72c] sm:$0xf]  ;;  %v8990_v12 = vld [vmem:[%s11374_s27 + $0x418] sm:$0xf0] }
 0x21c   : > { %4846 = vmatpush.bf16.msrb.mxu3 %v9473_v14  ;;  %v11072_v14 = vld [vmem:[%s11374_s27 + $0x54c] sm:$0xf]  ;;  %v3484_v33 = vadd.f32 %v3483_v6, %v3470_v18  ;;  %v9246_v13 = vld [vmem:[%s11374_s27 + $0x618] sm:$0xf0]  ;;  %v9393_v1 = vor.u32 %v11132_v23, %v9390_v8  ;;  %v9604_v6 = vld [vmem:[%s11374_s27 + $0xe0] sm:$0xf] }
 0x21d   : > { %4805 = vmatpush.bf16.msrb.mxu0 %v9073_v61  ;;  %v11104_v61 = vld [vmem:[%s11374_s27 + $0x64c] sm:$0xf]  ;;  %v9153_v26 = vor.u32 %v11072_v14, %v9150_v62  ;;  %v9374_v18 = vld [vmem:[%s11374_s27 + $0x718] sm:$0xf0]  ;;  %v10933_v62 = vld [vmem:[%s11374_s27 + $0xec] sm:$0xf0] }
 0x21e   : > { %4819 = vmatpush.bf16.msrb.mxu1 %v9201_v11  ;;  %v9278_v11 = vld [vmem:[%s11374_s27 + $0x658] sm:$0xf0]  ;;  %v3457_v24 = vpop.f32.mrf.mxu1  ;;  %v11032_v3 = vld [vmem:[%s11374_s27 + $0x40c] sm:$0xf]  ;;  %v10961_v23 = vld [vmem:[%s11374_s27 + $0x1cc] sm:$0xf0] }
 0x21f   : > { %4833 = vmatpush.bf16.msrb.mxu2 %v9329_v54  ;;  %v11136_v54 = vld [vmem:[%s11374_s27 + $0x74c] sm:$0xf]  ;;  %v9281_v19 = vor.u32 %v11104_v61, %v9278_v11  ;;  %v9732_v61 = vld [vmem:[%s11374_s27 + $0x1e0] sm:$0xf]  ;;  %v10965_v11 = vld [vmem:[%s11374_s27 + $0x1ec] sm:$0xf0] }
 0x220   : > { %4847 = vmatpush.bf16.msrb.mxu3 %v9457_v51  ;;  %v3443_v51 = vpop.f32.mrf.mxu0  ;;  %v9409_v45 = vor.u32 %v11136_v54, %v9406_v55  ;;  %v11096_v58 = vld [vmem:[%s11374_s27 + $0x60c] sm:$0xf]  ;;  %v9860_v54 = vld [vmem:[%s11374_s27 + $0x2e0] sm:$0xf]  ;;  %v14160_v55 = vld [vmem:[#allocation13_spill] sm:$0xff] }
 0x221   : > { %4806 = vmatpush.bf16.msrb.mxu0 %v9057_v4  ;;  %v9134_v4 = vld [vmem:[%s11374_s27 + $0x538] sm:$0xf0]  ;;  %v3458_v9 = vadd.f32 %v3457_v24, %v3443_v51  ;;  %v3471_v39 = vpop.f32.mrf.mxu2  ;;  %v11128_v14 = vld [vmem:[%s11374_s27 + $0x70c] sm:$0xf]  ;;  %v8993_v51 = vor.u32 %v11032_v3, %v8990_v12  ;;  %v9249_v46 = vor.u32 %v11096_v58, %v9246_v13  ;;  %v10925_v58 = vld [vmem:[%s11374_s27 + $0xac] sm:$0xf0] }
 0x222   : > { %4820 = vmatpush.bf16.msrb.mxu1 %v9185_v42  ;;  %v2437_v42 = vadd.f32 %v14157_v47, %v2423_v16  ;;  %v9605_v47 = vor.u32 %v10933_v62, %v9604_v6  ;;  %v9700_v13 = vld [vmem:[%s11374_s27 + $0x1a0] sm:$0xf]  ;;  %v10989_v62 = vld [vmem:[%s11374_s27 + $0x2ac] sm:$0xf0] }
 0x223   : > { %4834 = vmatpush.bf16.msrb.mxu2 %v9313_v31  ;;  %v14158_v31 = vld [vmem:[#allocation9_spill] sm:$0xff]  ;;  %v3472_v16 = vadd.f32 %v3471_v39, %v3458_v9  ;;  %v9572_v39 = vld [vmem:[%s11374_s27 + $0xa0] sm:$0xf] }
 0x224   : > { %4848 = vmatpush.bf16.msrb.mxu3 %v9441_v35  ;;  %v3546_v34 = vadd.f32 %v3484_v33, %v14158_v31  ;;  %v9262_v35 = vld [vmem:[%s11374_s27 + $0x638] sm:$0xf0]  ;;  %v2451_v17 = vadd.f32 %v14159_v38, %v2437_v42  ;;  %v9588_v42 = vld [vmem:[%s11374_s27 + $0xc0] sm:$0xf]  ;;  %v9733_v31 = vor.u32 %v10965_v11, %v9732_v61  ;;  %v11021_v11 = vld [vmem:[%s11374_s27 + $0x3ac] sm:$0xf0] }
 0x225   : > { %4807 = vmatpush.bf16.msrb.mxu0 %v9041_v20  ;;  %v9118_v20 = vld [vmem:[%s11374_s27 + $0x518] sm:$0xf0]  ;;  %v9844_v38 = vld [vmem:[%s11374_s27 + $0x2c0] sm:$0xf] }
 0x226   : > { %4821 = vmatpush.bf16.msrb.mxu1 %v9169_v15  ;;  %3626 = vst [vmem:[#allocation3 + $0x8] sm:$0xff] %v3546_v34  ;;  %v9137_v15 = vor.u32 %v11068_v37, %v9134_v4  ;;  %v2465_v33 = vadd.f32 %v14160_v55, %v2451_v17  ;;  %v9121_v24 = vor.u32 %v11064_v63, %v9118_v20  ;;  %v10993_v17 = vld [vmem:[%s11374_s27 + $0x2cc] sm:$0xf0]  ;;  %v9828_v6 = vld [vmem:[%s11374_s27 + $0x2a0] sm:$0xf] }
 0x227   : > { %4835 = vmatpush.bf16.msrb.mxu2 %v9297_v57  ;;  %v9265_v57 = vor.u32 %v11100_v32, %v9262_v35  ;;  %v9377_v4 = vor.u32 %v11128_v14, %v9374_v18  ;;  %v10929_v32 = vld [vmem:[%s11374_s27 + $0xcc] sm:$0xf0]  ;;  %v9716_v35 = vld [vmem:[%s11374_s27 + $0x1c0] sm:$0xf]  ;;  %v3586_v8 = vmul.f32 %v3546_v34, %v3546_v34  ;;  %v14161_v14 = vld [vmem:[#allocation5_spill] sm:$0xff] }
 0x228   : > { %4849 = vmatpush.bf16.msrb.mxu3 %v9425_v44  ;;  %v3485_v44 = vpop.f32.mrf.mxu3  ;;  %v11025_v63 = vld [vmem:[%s11374_s27 + $0x3cc] sm:$0xf0]  ;;  %v9956_v61 = vld [vmem:[%s11374_s27 + $0x3a0] sm:$0xf] }
 0x229   : > { %4808 = vmatpush.bf16.msrb.mxu0 %v9025_v60  ;;  %v3486_v60 = vadd.f32 %v3485_v44, %v3472_v16  ;;  %v10957_v18 = vld [vmem:[%s11374_s27 + $0x1ac] sm:$0xf0] }
 0x22a   : > { %4822 = vmatpush.bf16.msrb.mxu1 %v9153_v26  ;;  %v9988_v26 = vld [vmem:[%s11374_s27 + $0x3e0] sm:$0xf]  ;;  %v9701_v55 = vor.u32 %v10957_v18, %v9700_v13 }
 0x22b   : > { %4836 = vmatpush.bf16.msrb.mxu2 %v9281_v19  ;;  %v11029_v19 = vld [vmem:[%s11374_s27 + $0x3ec] sm:$0xf0]  ;;  %v3550_v37 = vadd.f32 %v3486_v60, %v2465_v33  ;;  %v9829_v33 = vor.u32 %v10989_v62, %v9828_v6  ;;  %v9780_v18 = vld [vmem:[%s11374_s27 + $0x240] sm:$0xf] }
 0x22c   : > { %4850 = vmatpush.bf16.msrb.mxu3 %v9409_v45  ;;  %v9861_v45 = vor.u32 %v10997_v22, %v9860_v54  ;;  %v9989_v9 = vor.u32 %v11029_v19, %v9988_v26  ;;  %v9573_v54 = vor.u32 %v10925_v58, %v9572_v39  ;;  %v10921_v60 = vld [vmem:[%s11374_s27 + $0x8c] sm:$0xf0]  ;;  %v14163_v22 = vld [vmem:[#allocation7_spill] sm:$0xff]  ;;  %v9812_v19 = vld [vmem:[%s11374_s27 + $0x280] sm:$0xf] }
 0x22d   : > { %4809 = vmatpush.bf16.msrb.mxu0 %v9009_v5  ;;  %v13080_v3 = vadd.f32 %v3550_v37, %v3546_v34  ;;  %v3590_v12 = vmul.f32 %v3550_v37, %v3550_v37  ;;  %3630 = vst [vmem:[#allocation3 + $0x30] sm:$0xff] %v3550_v37  ;;  %v9972_v5 = vld [vmem:[%s11374_s27 + $0x3c0] sm:$0xf]  ;;  %v9589_v34 = vor.u32 %v10929_v32, %v9588_v42  ;;  %v11017_v37 = vld [vmem:[%s11374_s27 + $0x38c] sm:$0xf0] }
 0x22e   : > { %4823 = vmatpush.bf16.msrb.mxu1 %v9137_v15  ;;  %v9717_v15 = vor.u32 %v10961_v23, %v9716_v35  ;;  %v9973_v44 = vor.u32 %v11025_v63, %v9972_v5  ;;  %v9668_v32 = vld [vmem:[%s11374_s27 + $0x160] sm:$0xf]  ;;  %v14164_v35 = vld [vmem:[#allocation8_spill] sm:$0xff] }
 0x22f   : > { %4837 = vmatpush.bf16.msrb.mxu2 %v9265_v57  ;;  %v13086_v20 = vadd.f32 %v3590_v12, %v3586_v8  ;;  %v9845_v57 = vor.u32 %v10993_v17, %v9844_v38  ;;  %v10949_v38 = vld [vmem:[%s11374_s27 + $0x16c] sm:$0xf0]  ;;  %v9796_v17 = vld [vmem:[%s11374_s27 + $0x260] sm:$0xf] }
 0x230   : > { %4851 = vmatpush.bf16.msrb.mxu3 %v9393_v1  ;;  %v14162_v1 = vld [vmem:[#allocation6_spill] sm:$0xff]  ;;  %v10981_v5 = vld [vmem:[%s11374_s27 + $0x26c] sm:$0xf0]  ;;  %v9669_v13 = vor.u32 %v10949_v38, %v9668_v32 }
 0x231   : > { %4810 = vmatpush.bf16.msrb.mxu0 %v8993_v51  ;;  %v1625_v16 = vadd.f32 %v14162_v1, %v14161_v14  ;;  %v9684_v51 = vld [vmem:[%s11374_s27 + $0x180] sm:$0xf]  ;;  %v10913_v58 = vld [vmem:[%s11374_s27 + $0x4c] sm:$0xf0]  ;;  %v9797_v14 = vor.u32 %v10981_v5, %v9796_v17 }
 0x232   : > { %4824 = vmatpush.bf16.msrb.mxu1 %v9121_v24  ;;  %v10985_v24 = vld [vmem:[%s11374_s27 + $0x28c] sm:$0xf0]  ;;  %v9924_v63 = vld [vmem:[%s11374_s27 + $0x360] sm:$0xf] }
 0x233   : > { %4838 = vmatpush.bf16.msrb.mxu2 %v9249_v46  ;;  %v1639_v26 = vadd.f32 %v14163_v22, %v1625_v16  ;;  %v9940_v46 = vld [vmem:[%s11374_s27 + $0x380] sm:$0xf]  ;;  %v9813_v42 = vor.u32 %v10985_v24, %v9812_v19  ;;  %v10941_v19 = vld [vmem:[%s11374_s27 + $0x12c] sm:$0xf0] }
 0x234   : > { %4852 = vmatpush.bf16.msrb.mxu3 %v9377_v4  ;;  %4811 = vmatmul.bf16.vlgmr.msrb.gmra.mxu0 %v12848_v43  ;;  %v9556_v43 = vld [vmem:[%s11374_s27 + $0x80] sm:$0xf]  ;;  %v3497_v4 = vpop.f32.mrf.mxu0  ;;  %v9941_v8 = vor.u32 %v11017_v37, %v9940_v46  ;;  %v11005_v32 = vld [vmem:[%s11374_s27 + $0x32c] sm:$0xf0] }
 0x235   : > { %5525 = vmatpush.bf16.msra.mxu0 %v9605_v47  ;;  %4825 = vmatmul.bf16.vlgmr.msrb.gmra.mxu1 %v12865_v0  ;;  %v10953_v0 = vld [vmem:[%s11374_s27 + $0x18c] sm:$0xf0]  ;;  %v1653_v23 = vadd.f32 %v14164_v35, %v1639_v26  ;;  %v9524_v39 = vld [vmem:[%s11374_s27 + $0x40] sm:$0xf] }
 0x236   : > { %5539 = vmatpush.bf16.msra.mxu1 %v9733_v31  ;;  %4839 = vmatmul.bf16.vlgmr.msrb.gmra.mxu2 %v12817_v29  ;;  %v9957_v29 = vor.u32 %v11021_v11, %v9956_v61  ;;  %v9685_v47 = vor.u32 %v10953_v0, %v9684_v51  ;;  %v3511_v31 = vpop.f32.mrf.mxu1  ;;  %v9652_v16 = vld [vmem:[%s11374_s27 + $0x140] sm:$0xf]  ;;  %v10977_v61 = vld [vmem:[%s11374_s27 + $0x24c] sm:$0xf0]  ;;  %v3636_v11 = vld [vmem:[#allocation2 + $0x8] sm:$0x11]  ;;  %v9525_v22 = vor.u32 %v10913_v58, %v9524_v39 }
 0x237   : > { %5553 = vmatpush.bf16.msra.mxu2 %v9861_v45  ;;  %4853 = vmatmul.bf16.vlgmr.msrb.gmra.mxu3 %v12820_v2  ;;  %v9557_v2 = vor.u32 %v10921_v60, %v9556_v43  ;;  %v9540_v45 = vld [vmem:[%s11374_s27 + $0x60] sm:$0xf]  ;;  %v3512_v12 = vadd.f32 %v3511_v31, %v3497_v4  ;;  %v9781_v46 = vor.u32 %v10977_v61, %v9780_v18  ;;  %v13152_v17 = vld [vmem:[%s11374_s27 + $0x10c] sm:$0xf0] }
 0x238   : > { %5567 = vmatpush.bf16.msra.mxu3 %v9989_v9  ;;  %v10917_v9 = vld [vmem:[%s11374_s27 + $0x6c] sm:$0xf0]  ;;  %v9508_v43 = vld [vmem:[%s11374_s27 + $0x20] sm:$0xf] }
 0x239   : > { %5526 = vmatpush.bf16.msra.mxu0 %v9589_v34  ;;  %v11013_v34 = vld [vmem:[%s11374_s27 + $0x36c] sm:$0xf0]  ;;  %v3525_v1 = vpop.f32.mrf.mxu2  ;;  %v9636_v0 = vld [vmem:[%s11374_s27 + $0x120] sm:$0xf] }
 0x23a   : > { %5540 = vmatpush.bf16.msra.mxu1 %v9717_v15  ;;  %v2479_v15 = vadd.f32 %v12822_v10, %v1653_v23  ;;  %v9925_v10 = vor.u32 %v11013_v34, %v9924_v63  ;;  %v3526_v6 = vadd.f32 %v3525_v1, %v3512_v12  ;;  %v3539_v62 = vpop.f32.mrf.mxu3  ;;  %v9892_v4 = vld [vmem:[%s11374_s27 + $0x320] sm:$0xf]  ;;  %v13145_v23 = vld [vmem:[%s11374_s27 + $0xc] sm:$0xf0]  ;;  %v9637_v34 = vor.u32 %v10941_v19, %v9636_v0  ;;  %v9990_v0 = vld [vmem:[%s11374_s27 + $0x3f0] sm:$0xf0] }
 0x23b   : > { %5554 = vmatpush.bf16.msra.mxu2 %v9845_v57  ;;  %v9541_v57 = vor.u32 %v10917_v9, %v9540_v45  ;;  %v13142_v35 = vld [vmem:[%s11374_s27] sm:$0xf]  ;;  %v11001_v58 = vld [vmem:[%s11374_s27 + $0x30c] sm:$0xf0]  ;;  %v4869_v19 = vrot.slane %v12765_v59, 1  ;;  %v4878_v59 = vrot.slane %v12720_v50, 1 }
 0x23c   : > { %5568 = vmatpush.bf16.msra.mxu3 %v9973_v44  ;;  %v10945_v44 = vld [vmem:[%s11374_s27 + $0x14c] sm:$0xf0]  ;;  %v2493_v60 = vadd.f32 %v12833_v7, %v2479_v15  ;;  %v3540_v51 = vadd.f32 %v3539_v62, %v3526_v6  ;;  %v3499_v26 = vpop.f32.mrf.mxu0  ;;  %v13149_v38 = vld [vmem:[%s11374_s27 + $0x100] sm:$0xf]  ;;  %v9493_v61 = vor.u32 %v13145_v23, %v13142_v35  ;;  %v10959_v23 = vld [vmem:[%s11374_s27 + $0x1c4] sm:$0xf] }
 0x23d   : > { %5527 = vmatpush.bf16.msra.mxu0 %v9573_v54  ;;  %v3637_v54 = vld [vmem:[#allocation2 + $0x10] sm:$0x11]  ;;  %v9653_v24 = vor.u32 %v10945_v44, %v9652_v16  ;;  %v9893_v44 = vor.u32 %v11005_v32, %v9892_v4  ;;  %v4872_v4 = vrot.slane %v12814_v28, 1 }
 0x23e   : > { %5541 = vmatpush.bf16.msra.mxu1 %v9701_v55  ;;  %v9908_v55 = vld [vmem:[%s11374_s27 + $0x340] sm:$0xf]  ;;  %v3513_v37 = vpop.f32.mrf.mxu1  ;;  %v10973_v7 = vld [vmem:[%s11374_s27 + $0x22c] sm:$0xf0]  ;;  %v13138_v31 = vadd.f32 %v3540_v51, %v12724_v49  ;;  %v2507_v12 = vadd.f32 %v12850_v21, %v2493_v60  ;;  %v4864_v5 = vunpack.c.h.b16 %v3637_v54 }
 0x23f   : > { %5555 = vmatpush.bf16.msra.mxu2 %v9829_v33  ;;  %v11009_v33 = vld [vmem:[%s11374_s27 + $0x34c] sm:$0xf0]  ;;  %v3514_v9 = vadd.f32 %v3513_v37, %v3499_v26  ;;  %v13155_v49 = vld [vmem:[%s11374_s27 + $0x200] sm:$0xf] }
 0x240   : > { %5569 = vmatpush.bf16.msra.mxu3 %v9957_v29  ;;  %v10909_v29 = vld [vmem:[%s11374_s27 + $0x2c] sm:$0xf0]  ;;  %v9909_v45 = vor.u32 %v11009_v33, %v9908_v55  ;;  %3627 = vst [vmem:[#allocation3 + $0x58] sm:$0xff] %v13138_v31  ;;  %v2521_v62 = vadd.f32 %v12855_v41, %v2507_v12  ;;  %v9734_v55 = vld [vmem:[%s11374_s27 + $0x1f0] sm:$0xf0] }
 0x241   : > { %5528 = vmatpush.bf16.msra.mxu0 %v9557_v2  ;;  %v9764_v2 = vld [vmem:[%s11374_s27 + $0x220] sm:$0xf]  ;;  %v9509_v63 = vor.u32 %v10909_v29, %v9508_v43  ;;  %v10969_v15 = vld [vmem:[%s11374_s27 + $0x20c] sm:$0xf0]  ;;  %v3527_v39 = vpop.f32.mrf.mxu2  ;;  %v10995_v33 = vld [vmem:[%s11374_s27 + $0x2e4] sm:$0xf]  ;;  %v4868_v43 = vpack.c.b16 %v4864_v5, %v4864_v5 }
 0x242   : > { %5542 = vmatpush.bf16.msra.mxu1 %v9685_v47  ;;  %v4861_v47 = vunpack.c.l.b16 %v3636_v11  ;;  %v9765_v21 = vor.u32 %v10973_v7, %v9764_v2  ;;  %v3528_v18 = vadd.f32 %v3527_v39, %v3514_v9  ;;  %v9749_v51 = vor.u32 %v10969_v15, %v13155_v49  ;;  %v9862_v41 = vld [vmem:[%s11374_s27 + $0x2f0] sm:$0xf0]  ;;  %v11027_v29 = vld [vmem:[%s11374_s27 + $0x3e4] sm:$0xf] }
 0x243   : > { %5556 = vmatpush.bf16.msra.mxu2 %v9813_v42  ;;  %v4863_v42 = vunpack.c.l.b16 %v3637_v54  ;;  %v10963_v54 = vld [vmem:[%s11374_s27 + $0x1e4] sm:$0xf]  ;;  %v9865_v9 = vor.u32 %v10995_v33, %v9862_v41  ;;  %v9993_v32 = vor.u32 %v11027_v29, %v9990_v0  ;;  %v4879_v35 = vrot.slane %v4868_v43, 1  ;;  %v9942_v41 = vld [vmem:[%s11374_s27 + $0x390] sm:$0xf0] }
 0x244   : > { %5570 = vmatpush.bf16.msra.mxu3 %v9941_v8  ;;  %v4862_v8 = vunpack.c.h.b16 %v3636_v11  ;;  %v4865_v1 = vpack.c.b16 %v4861_v47, %v4861_v47  ;;  %v9621_v11 = vor.u32 %v13152_v17, %v13149_v38  ;;  %v9737_v7 = vor.u32 %v10963_v54, %v9734_v55  ;;  %v10991_v38 = vld [vmem:[%s11374_s27 + $0x2c4] sm:$0xf]  ;;  %v9846_v17 = vld [vmem:[%s11374_s27 + $0x2d0] sm:$0xf0] }
 0x245   : > { %5529 = vmatpush.bf16.msra.mxu0 %v9541_v57  ;;  %v13160_v57 = vld [vmem:[%s11374_s27 + $0x300] sm:$0xf]  ;;  %v4867_v16 = vpack.c.b16 %v4863_v42, %v4863_v42  ;;  %v10927_v42 = vld [vmem:[%s11374_s27 + $0xc4] sm:$0xf]  ;;  %v9849_v39 = vor.u32 %v10991_v38, %v9846_v17  ;;  %v9558_v55 = vld [vmem:[%s11374_s27 + $0x90] sm:$0xf0] }
 0x246   : > { %5543 = vmatpush.bf16.msra.mxu1 %v9669_v13  ;;  %v10931_v13 = vld [vmem:[%s11374_s27 + $0xe4] sm:$0xf]  ;;  %v4866_v6 = vpack.c.b16 %v4862_v8, %v4862_v8  ;;  %v3587_v8 = vmul.f32 %v13138_v31, %v13138_v31  ;;  %v9654_v17 = vld [vmem:[%s11374_s27 + $0x150] sm:$0xf0] }
 0x247   : > { %5557 = vmatpush.bf16.msra.mxu2 %v9797_v14  ;;  %v9606_v14 = vld [vmem:[%s11374_s27 + $0xf0] sm:$0xf0]  ;;  %v4876_v37 = vrot.slane %v4867_v16, 1  ;;  %v11023_v5 = vld [vmem:[%s11374_s27 + $0x3c4] sm:$0xf] }
 0x248   : > { %5571 = vmatpush.bf16.msra.mxu3 %v9925_v10  ;;  %v3541_v10 = vpop.f32.mrf.mxu3  ;;  %v9609_v26 = vor.u32 %v10931_v13, %v9606_v14  ;;  %v4873_v47 = vrot.slane %v4866_v6, 1  ;;  %v9574_v13 = vld [vmem:[%s11374_s27 + $0xb0] sm:$0xf0]  ;;  %v10955_v14 = vld [vmem:[%s11374_s27 + $0x1a4] sm:$0xf] }
 0x249   : > { %5530 = vmatpush.bf16.msra.mxu0 %v9525_v22  ;;  %v3542_v60 = vadd.f32 %v3541_v10, %v3528_v18  ;;  %v9877_v22 = vor.u32 %v11001_v58, %v13160_v57  ;;  %v13207_v57 = vsel %vm2663_vm13, %v4878_v59, %v4879_v35  ;;  %v10923_v58 = vld [vmem:[%s11374_s27 + $0xa4] sm:$0xf]  ;;  %v9702_v16 = vld [vmem:[%s11374_s27 + $0x1b0] sm:$0xf0] }
 0x24a   : > { %5544 = vmatpush.bf16.msra.mxu1 %v9653_v24  ;;  %v4870_v24 = vrot.slane %v4865_v1, 1  ;;  %v9830_v18 = vld [vmem:[%s11374_s27 + $0x2b0] sm:$0xf0]  ;;  %v11019_v10 = vld [vmem:[%s11374_s27 + $0x3a4] sm:$0xf] }
 0x24b   : > { %5558 = vmatpush.bf16.msra.mxu2 %v9781_v46  ;;  %v4875_v46 = vrot.slane %v12698_v25, 1  ;;  %v3551_v2 = vadd.f32 %v3542_v60, %v2521_v62  ;;  %v9718_v25 = vld [vmem:[%s11374_s27 + $0x1d0] sm:$0xf0]  ;;  %v9577_v62 = vor.u32 %v10923_v58, %v9574_v13  ;;  %v10919_v54 = vld [vmem:[%s11374_s27 + $0x84] sm:$0xf] }
 0x24c   : > { %5572 = vmatpush.bf16.msra.mxu3 %v9909_v45  ;;  %v9590_v45 = vld [vmem:[%s11374_s27 + $0xd0] sm:$0xf0]  ;;  %v13194_v50 = vsel %vm2663_vm13, %v4869_v19, %v4870_v24  ;;  %v10951_v33 = vld [vmem:[%s11374_s27 + $0x184] sm:$0xf]  ;;  %v9561_v29 = vor.u32 %v10919_v54, %v9558_v55 }
 0x24d   : > { %5531 = vmatpush.bf16.msra.mxu0 %v9509_v63  ;;  %v13189_v12 = vadd.f32 %v3551_v2, %v13138_v31  ;;  %v3591_v28 = vmul.f32 %v3551_v2, %v3551_v2  ;;  %3631 = vst [vmem:[#allocation3 + $0x60] sm:$0xff] %v3551_v2  ;;  %v13197_v49 = vsel %vm2663_vm13, %v4875_v46, %v4876_v37  ;;  %v9974_v63 = vld [vmem:[%s11374_s27 + $0x3d0] sm:$0xf0]  ;;  %v10915_v24 = vld [vmem:[%s11374_s27 + $0x64] sm:$0xf] }
 0x24e   : > { %5545 = vmatpush.bf16.msra.mxu1 %v9637_v34  ;;  %v13204_v34 = vsel %vm2663_vm13, %v4872_v4, %v4873_v47  ;;  %v9593_v15 = vor.u32 %v10927_v42, %v9590_v45  ;;  %v9977_v1 = vor.u32 %v11023_v5, %v9974_v63  ;;  %v9958_v6 = vld [vmem:[%s11374_s27 + $0x3b0] sm:$0xf0]  ;;  %v10947_v37 = vld [vmem:[%s11374_s27 + $0x164] sm:$0xf] }
 0x24f   : > { %5559 = vmatpush.bf16.msra.mxu2 %v9765_v21  ;;  %v13201_v31 = vadd.f32 %v3591_v28, %v3587_v8  ;;  %v9721_v21 = vor.u32 %v10959_v23, %v9718_v25  ;;  %v9961_v43 = vor.u32 %v11019_v10, %v9958_v6  ;;  %v9686_v60 = vld [vmem:[%s11374_s27 + $0x190] sm:$0xf0]  ;;  %v10979_v4 = vld [vmem:[%s11374_s27 + $0x264] sm:$0xf] }
 0x250   : > { %5573 = vmatpush.bf16.msra.mxu3 %v9893_v44  ;;  %v10987_v44 = vld [vmem:[%s11374_s27 + $0x2a4] sm:$0xf]  ;;  %v9689_v0 = vor.u32 %v10951_v33, %v9686_v60  ;;  %v9542_v46 = vld [vmem:[%s11374_s27 + $0x70] sm:$0xf0] }
 0x251   : > { %5532 = vmatpush.bf16.msra.mxu0 %v9493_v61  ;;  %v9705_v61 = vor.u32 %v10955_v14, %v9702_v16  ;;  %v9798_v47 = vld [vmem:[%s11374_s27 + $0x270] sm:$0xf0]  ;;  %v11011_v42 = vld [vmem:[%s11374_s27 + $0x364] sm:$0xf] }
 0x252   : > { %5546 = vmatpush.bf16.msra.mxu1 %v9621_v11  ;;  %v9833_v11 = vor.u32 %v10987_v44, %v9830_v18  ;;  %v9926_v45 = vld [vmem:[%s11374_s27 + $0x370] sm:$0xf0]  ;;  %v9801_v35 = vor.u32 %v10979_v4, %v9798_v47  ;;  %v10911_v23 = vld [vmem:[%s11374_s27 + $0x44] sm:$0xf]  ;;  %v9612_v4 = vld [vmem:[%s11374_s27 + $0xe8] sm:$0xf] }
 0x253   : > { %5560 = vmatpush.bf16.msra.mxu2 %v9749_v51  ;;  %v10983_v51 = vld [vmem:[%s11374_s27 + $0x284] sm:$0xf]  ;;  %v9526_v25 = vld [vmem:[%s11374_s27 + $0x50] sm:$0xf0]  ;;  %v9929_v38 = vor.u32 %v11011_v42, %v9926_v45  ;;  %v10934_v47 = vld [vmem:[%s11374_s27 + $0xf4] sm:$0xf0] }
 0x254   : > { %5574 = vmatpush.bf16.msra.mxu3 %v9877_v22  ;;  %5533 = vmatmul.bf16.vlgmr.msra.gmra.mxu0 %v13194_v50  ;;  %v9814_v22 = vld [vmem:[%s11374_s27 + $0x290] sm:$0xf0]  ;;  %v10943_v8 = vld [vmem:[%s11374_s27 + $0x144] sm:$0xf]  ;;  %v9529_v13 = vor.u32 %v10911_v23, %v9526_v25  ;;  %v9740_v42 = vld [vmem:[%s11374_s27 + $0x1e8] sm:$0xf] }
 0x255   : > { %5581 = vmatpush.bf16.msrb.mxu0 %v9609_v26  ;;  %5547 = vmatmul.bf16.vlgmr.msra.gmra.mxu1 %v13204_v34  ;;  %v11015_v26 = vld [vmem:[%s11374_s27 + $0x384] sm:$0xf]  ;;  %v9817_v19 = vor.u32 %v10983_v51, %v9814_v22  ;;  %v9782_v63 = vld [vmem:[%s11374_s27 + $0x250] sm:$0xf0]  ;;  %v10998_v23 = vld [vmem:[%s11374_s27 + $0x2f4] sm:$0xf0] }
 0x256   : > { %5595 = vmatpush.bf16.msrb.mxu1 %v9737_v7  ;;  %5561 = vmatmul.bf16.vlgmr.msra.gmra.mxu2 %v13197_v49  ;;  %v9945_v2 = vor.u32 %v11015_v26, %v9942_v41  ;;  %v9670_v7 = vld [vmem:[%s11374_s27 + $0x170] sm:$0xf0]  ;;  %v10975_v5 = vld [vmem:[%s11374_s27 + $0x244] sm:$0xf] }
 0x257   : > { %5609 = vmatpush.bf16.msrb.mxu2 %v9865_v9  ;;  %5575 = vmatmul.bf16.vlgmr.msra.gmra.mxu3 %v13207_v57  ;;  %v4644_v9 = vpop.f32.mrf.mxu0  ;;  %v9673_v59 = vor.u32 %v10947_v37, %v9670_v7  ;;  %v9785_v16 = vor.u32 %v10975_v5, %v9782_v63  ;;  %v10907_v44 = vld [vmem:[%s11374_s27 + $0x24] sm:$0xf]  ;;  %v9510_v18 = vld [vmem:[%s11374_s27 + $0x30] sm:$0xf0] }
 0x258   : > { %5623 = vmatpush.bf16.msrb.mxu3 %v9993_v32  ;;  %v9545_v32 = vor.u32 %v10915_v24, %v9542_v46  ;;  %v10939_v10 = vld [vmem:[%s11374_s27 + $0x124] sm:$0xf]  ;;  %v9894_v33 = vld [vmem:[%s11374_s27 + $0x330] sm:$0xf0] }
 0x259   : > { %5582 = vmatpush.bf16.msrb.mxu0 %v9593_v15  ;;  %v4672_v28 = vpop.f32.mrf.mxu2  ;;  %v11007_v15 = vld [vmem:[%s11374_s27 + $0x344] sm:$0xf]  ;;  %v9494_v51 = vld [vmem:[%s11374_s27 + $0x10] sm:$0xf0] }
 0x25a   : > { %5596 = vmatpush.bf16.msrb.mxu1 %v9721_v21  ;;  %v9910_v21 = vld [vmem:[%s11374_s27 + $0x350] sm:$0xf0]  ;;  %v4686_v58 = vpop.f32.mrf.mxu3  ;;  %v11003_v55 = vld [vmem:[%s11374_s27 + $0x324] sm:$0xf] }
 0x25b   : > { %5610 = vmatpush.bf16.msrb.mxu2 %v9849_v39  ;;  %v4658_v39 = vpop.f32.mrf.mxu1  ;;  %v9913_v6 = vor.u32 %v11007_v15, %v9910_v21  ;;  %v10903_v60 = vld [vmem:[%s11374_s27 + $0x4] sm:$0xf]  ;;  %v9897_v46 = vor.u32 %v11003_v55, %v9894_v33  ;;  %v9750_v37 = vld [vmem:[%s11374_s27 + $0x210] sm:$0xf0]  ;;  %v9613_v15 = vor.u32 %v10934_v47, %v9612_v4  ;;  %v9580_v33 = vld [vmem:[%s11374_s27 + $0xa8] sm:$0xf] }
 0x25c   : > { %5624 = vmatpush.bf16.msrb.mxu3 %v9977_v1  ;;  %v4659_v14 = vadd.f32 %v4658_v39, %v4644_v9  ;;  %v9657_v1 = vor.u32 %v10943_v8, %v9654_v17  ;;  %v9878_v7 = vld [vmem:[%s11374_s27 + $0x310] sm:$0xf0]  ;;  %v11030_v17 = vld [vmem:[%s11374_s27 + $0x3f4] sm:$0xf0]  ;;  %v9692_v4 = vld [vmem:[%s11374_s27 + $0x188] sm:$0xf] }
 0x25d   : > { %5583 = vmatpush.bf16.msrb.mxu0 %v9577_v62  ;;  %v9638_v62 = vld [vmem:[%s11374_s27 + $0x130] sm:$0xf0] }
 0x25e   : > { %5597 = vmatpush.bf16.msrb.mxu1 %v9705_v61  ;;  %v10971_v61 = vld [vmem:[%s11374_s27 + $0x224] sm:$0xf]  ;;  %v4673_v54 = vadd.f32 %v4672_v28, %v4659_v14  ;;  %v9641_v26 = vor.u32 %v10939_v10, %v9638_v62  ;;  %v10930_v14 = vld [vmem:[%s11374_s27 + $0xd4] sm:$0xf0]  ;;  %v9980_v62 = vld [vmem:[%s11374_s27 + $0x3c8] sm:$0xf] }
 0x25f   : > { %5611 = vmatpush.bf16.msrb.mxu2 %v9833_v11  ;;  %v9766_v11 = vld [vmem:[%s11374_s27 + $0x230] sm:$0xf0]  ;;  %v4646_v24 = vpop.f32.mrf.mxu0  ;;  %v10994_v10 = vld [vmem:[%s11374_s27 + $0x2d4] sm:$0xf0] }
 0x260   : > { %5625 = vmatpush.bf16.msrb.mxu3 %v9961_v43  ;;  %v9513_v43 = vor.u32 %v10907_v44, %v9510_v18  ;;  %v13255_v22 = vadd.f32 %v4686_v58, %v4673_v54  ;;  %v9769_v41 = vor.u32 %v10971_v61, %v9766_v11  ;;  %v10962_v44 = vld [vmem:[%s11374_s27 + $0x1d4] sm:$0xf0]  ;;  %v9852_v18 = vld [vmem:[%s11374_s27 + $0x2c8] sm:$0xf] }
 0x261   : > { %5584 = vmatpush.bf16.msrb.mxu0 %v9561_v29  ;;  %v10935_v29 = vld [vmem:[%s11374_s27 + $0x104] sm:$0xf]  ;;  %v4674_v9 = vpop.f32.mrf.mxu2  ;;  %v11026_v61 = vld [vmem:[%s11374_s27 + $0x3d4] sm:$0xf0]  ;;  %v9853_v55 = vor.u32 %v10994_v10, %v9852_v18  ;;  %v9532_v18 = vld [vmem:[%s11374_s27 + $0x48] sm:$0xf] }
 0x262   : > { %5598 = vmatpush.bf16.msrb.mxu1 %v9689_v0  ;;  %v9622_v0 = vld [vmem:[%s11374_s27 + $0x110] sm:$0xf0]  ;;  %v4688_v5 = vpop.f32.mrf.mxu3  ;;  %v10914_v10 = vld [vmem:[%s11374_s27 + $0x54] sm:$0xf0] }
 0x263   : > { %5612 = vmatpush.bf16.msrb.mxu2 %v9817_v19  ;;  %v10967_v19 = vld [vmem:[%s11374_s27 + $0x204] sm:$0xf]  ;;  %v4660_v45 = vpop.f32.mrf.mxu1  ;;  %v9625_v8 = vor.u32 %v10935_v29, %v9622_v0  ;;  %v10990_v29 = vld [vmem:[%s11374_s27 + $0x2b4] sm:$0xf0]  ;;  %v9964_v0 = vld [vmem:[%s11374_s27 + $0x3a8] sm:$0xf] }
 0x264   : > { %5626 = vmatpush.bf16.msrb.mxu3 %v9945_v2  ;;  %v10999_v2 = vld [vmem:[%s11374_s27 + $0x304] sm:$0xf]  ;;  %v4661_v25 = vadd.f32 %v4660_v45, %v4646_v24  ;;  %v9753_v28 = vor.u32 %v10967_v19, %v9750_v37  ;;  %v11022_v19 = vld [vmem:[%s11374_s27 + $0x3b4] sm:$0xf0]  ;;  %v9820_v45 = vld [vmem:[%s11374_s27 + $0x288] sm:$0xf] }
 0x265   : > { %5585 = vmatpush.bf16.msrb.mxu0 %v9545_v32  ;;  %v9497_v32 = vor.u32 %v10903_v60, %v9494_v51  ;;  %v9881_v63 = vor.u32 %v10999_v2, %v9878_v7  ;;  %v9708_v60 = vld [vmem:[%s11374_s27 + $0x1a8] sm:$0xf]  ;;  %v9981_v51 = vor.u32 %v11026_v61, %v9980_v62  ;;  %v10922_v7 = vld [vmem:[%s11374_s27 + $0x94] sm:$0xf0]  ;;  %v9965_v47 = vor.u32 %v11022_v19, %v9964_v0 }
 0x266   : > { %5599 = vmatpush.bf16.msrb.mxu1 %v9673_v59  ;;  %v10966_v59 = vld [vmem:[%s11374_s27 + $0x1f4] sm:$0xf0]  ;;  %v4675_v21 = vadd.f32 %v4674_v9, %v4661_v25  ;;  %v9564_v2 = vld [vmem:[%s11374_s27 + $0x88] sm:$0xf] }
 0x267   : > { %5613 = vmatpush.bf16.msrb.mxu2 %v9801_v35  ;;  %v9868_v35 = vld [vmem:[%s11374_s27 + $0x2e8] sm:$0xf]  ;;  %v9741_v39 = vor.u32 %v10966_v59, %v9740_v42  ;;  %v10954_v42 = vld [vmem:[%s11374_s27 + $0x194] sm:$0xf0] }
 0x268   : > { %5627 = vmatpush.bf16.msrb.mxu3 %v9929_v38  ;;  %v9996_v38 = vld [vmem:[%s11374_s27 + $0x3e8] sm:$0xf]  ;;  %v9869_v58 = vor.u32 %v10998_v23, %v9868_v35  ;;  %v10986_v9 = vld [vmem:[%s11374_s27 + $0x294] sm:$0xf0]  ;;  %v9565_v35 = vor.u32 %v10922_v7, %v9564_v2  ;;  %v9693_v25 = vor.u32 %v10954_v42, %v9692_v4 }
 0x269   : > { %5586 = vmatpush.bf16.msrb.mxu0 %v9529_v13  ;;  %v9596_v13 = vld [vmem:[%s11374_s27 + $0xc8] sm:$0xf]  ;;  %v11018_v59 = vld [vmem:[%s11374_s27 + $0x394] sm:$0xf0] }
 0x26a   : > { %5600 = vmatpush.bf16.msrb.mxu1 %v9657_v1  ;;  %v9724_v1 = vld [vmem:[%s11374_s27 + $0x1c8] sm:$0xf]  ;;  %v9597_v11 = vor.u32 %v10930_v14, %v9596_v13  ;;  %v11014_v14 = vld [vmem:[%s11374_s27 + $0x374] sm:$0xf0] }
 0x26b   : > { %5614 = vmatpush.bf16.msrb.mxu2 %v9785_v16  ;;  %v9997_v16 = vor.u32 %v11030_v17, %v9996_v38  ;;  %v9725_v54 = vor.u32 %v10962_v44, %v9724_v1  ;;  %v10918_v38 = vld [vmem:[%s11374_s27 + $0x74] sm:$0xf0]  ;;  %v9676_v17 = vld [vmem:[%s11374_s27 + $0x168] sm:$0xf] }
 0x26c   : > { %5628 = vmatpush.bf16.msrb.mxu3 %v9913_v6  ;;  %v13277_v6 = vadd.f32 %v4688_v5, %v4675_v21  ;;  %v9804_v21 = vld [vmem:[%s11374_s27 + $0x268] sm:$0xf] }
 0x26d   : > { %5587 = vmatpush.bf16.msrb.mxu0 %v9513_v43  ;;  %v10926_v43 = vld [vmem:[%s11374_s27 + $0xb4] sm:$0xf0]  ;;  %v9932_v13 = vld [vmem:[%s11374_s27 + $0x368] sm:$0xf] }
 0x26e   : > { %5601 = vmatpush.bf16.msrb.mxu1 %v9641_v26  ;;  %v10958_v26 = vld [vmem:[%s11374_s27 + $0x1b4] sm:$0xf0]  ;;  %v9581_v24 = vor.u32 %v10926_v43, %v9580_v33  ;;  %v9660_v62 = vld [vmem:[%s11374_s27 + $0x148] sm:$0xf] }
 0x26f   : > { %5615 = vmatpush.bf16.msrb.mxu2 %v9769_v41  ;;  %v9836_v41 = vld [vmem:[%s11374_s27 + $0x2a8] sm:$0xf]  ;;  %v10978_v33 = vld [vmem:[%s11374_s27 + $0x254] sm:$0xf0] }
 0x270   : > { %5629 = vmatpush.bf16.msrb.mxu3 %v9897_v46  ;;  %v9709_v46 = vor.u32 %v10958_v26, %v9708_v60  ;;  %v9837_v37 = vor.u32 %v10990_v29, %v9836_v41  ;;  %v11010_v26 = vld [vmem:[%s11374_s27 + $0x354] sm:$0xf0]  ;;  %v9533_v41 = vor.u32 %v10914_v10, %v9532_v18  ;;  %v9644_v2 = vld [vmem:[%s11374_s27 + $0x128] sm:$0xf]  ;;  %v9742_v10 = vld [vmem:[%s11374_s27 + $0x1f8] sm:$0xf0] }
 0x271   : > { %5588 = vmatpush.bf16.msrb.mxu0 %v9497_v32  ;;  %v9948_v32 = vld [vmem:[%s11374_s27 + $0x388] sm:$0xf]  ;;  %v4700_v23 = vpop.f32.mrf.mxu0 }
 0x272   : > { %5602 = vmatpush.bf16.msrb.mxu1 %v9625_v8  ;;  %v9821_v8 = vor.u32 %v10986_v9, %v9820_v45  ;;  %v4714_v5 = vpop.f32.mrf.mxu1  ;;  %v9772_v42 = vld [vmem:[%s11374_s27 + $0x228] sm:$0xf]  ;;  %v10974_v45 = vld [vmem:[%s11374_s27 + $0x234] sm:$0xf0] }
 0x273   : > { %5616 = vmatpush.bf16.msrb.mxu2 %v9753_v28  ;;  %v9548_v28 = vld [vmem:[%s11374_s27 + $0x68] sm:$0xf] }
 0x274   : > { %5630 = vmatpush.bf16.msrb.mxu3 %v9881_v63  ;;  %5589 = vmatmul.bf16.vlgmr.msrb.gmra.mxu0 %v13194_v50  ;;  %v9949_v63 = vor.u32 %v11018_v59, %v9948_v32  ;;  %v9549_v1 = vor.u32 %v10918_v38, %v9548_v28  ;;  %v9900_v32 = vld [vmem:[%s11374_s27 + $0x328] sm:$0xf]  ;;  %v11006_v59 = vld [vmem:[%s11374_s27 + $0x334] sm:$0xf0]  ;;  %v9773_v28 = vor.u32 %v10974_v45, %v9772_v42 }
 0x275   : > { %5637 = vmatpush.bf16.msra.mxu0 %v9613_v15  ;;  %5603 = vmatmul.bf16.vlgmr.msrb.gmra.mxu1 %v13204_v34  ;;  %v10950_v15 = vld [vmem:[%s11374_s27 + $0x174] sm:$0xf0]  ;;  %v9628_v38 = vld [vmem:[%s11374_s27 + $0x108] sm:$0xf] }
 0x276   : > { %5651 = vmatpush.bf16.msra.mxu1 %v9741_v39  ;;  %5617 = vmatmul.bf16.vlgmr.msrb.gmra.mxu2 %v13197_v49  ;;  %v10982_v39 = vld [vmem:[%s11374_s27 + $0x274] sm:$0xf0] }
 0x277   : > { %5665 = vmatpush.bf16.msra.mxu2 %v9869_v58  ;;  %5631 = vmatmul.bf16.vlgmr.msrb.gmra.mxu3 %v13207_v57  ;;  %v4715_v58 = vadd.f32 %v4714_v5, %v4700_v23  ;;  %v9805_v44 = vor.u32 %v10982_v39, %v9804_v21  ;;  %v9500_v23 = vld [vmem:[%s11374_s27 + $0x8] sm:$0xf]  ;;  %v10970_v21 = vld [vmem:[%s11374_s27 + $0x214] sm:$0xf0] }
 0x278   : > { %5679 = vmatpush.bf16.msra.mxu3 %v9997_v16  ;;  %v9677_v16 = vor.u32 %v10950_v15, %v9676_v17  ;;  %v10938_v17 = vld [vmem:[%s11374_s27 + $0x114] sm:$0xf0]  ;;  %v9756_v5 = vld [vmem:[%s11374_s27 + $0x208] sm:$0xf]  ;;  %v9901_v15 = vor.u32 %v11006_v59, %v9900_v32  ;;  %v10924_v32 = vld [vmem:[%s11374_s27 + $0xac] sm:$0xf] }
 0x279   : > { %5638 = vmatpush.bf16.msra.mxu0 %v9597_v11  ;;  %v4728_v61 = vpop.f32.mrf.mxu2  ;;  %v9933_v11 = vor.u32 %v11014_v14, %v9932_v13  ;;  %v4702_v0 = vpop.f32.mrf.mxu0  ;;  %v9884_v39 = vld [vmem:[%s11374_s27 + $0x308] sm:$0xf]  ;;  %v9582_v59 = vld [vmem:[%s11374_s27 + $0xb8] sm:$0xf0] }
 0x27a   : > { %5652 = vmatpush.bf16.msra.mxu1 %v9725_v54  ;;  %v10946_v54 = vld [vmem:[%s11374_s27 + $0x154] sm:$0xf0]  ;;  %v4729_v43 = vadd.f32 %v4728_v61, %v4715_v58  ;;  %v4742_v60 = vpop.f32.mrf.mxu3  ;;  %v4716_v7 = vpop.f32.mrf.mxu1  ;;  %v9870_v61 = vld [vmem:[%s11374_s27 + $0x2f8] sm:$0xf0] }
 0x27b   : > { %5666 = vmatpush.bf16.msra.mxu2 %v9853_v55  ;;  %v9788_v55 = vld [vmem:[%s11374_s27 + $0x248] sm:$0xf]  ;;  %v9661_v19 = vor.u32 %v10946_v54, %v9660_v62  ;;  %v4717_v9 = vadd.f32 %v4716_v7, %v4702_v0  ;;  %v11002_v58 = vld [vmem:[%s11374_s27 + $0x314] sm:$0xf0]  ;;  %v10996_v62 = vld [vmem:[%s11374_s27 + $0x2ec] sm:$0xf]  ;;  %v9629_v54 = vor.u32 %v10938_v17, %v9628_v38 }
 0x27c   : > { %5680 = vmatpush.bf16.msra.mxu3 %v9981_v51  ;;  %v9916_v51 = vld [vmem:[%s11374_s27 + $0x348] sm:$0xf]  ;;  %v13317_v29 = vadd.f32 %v4742_v60, %v4729_v43  ;;  %v9998_v43 = vld [vmem:[%s11374_s27 + $0x3f8] sm:$0xf0]  ;;  %v9885_v60 = vor.u32 %v11002_v58, %v9884_v39  ;;  %v10928_v0 = vld [vmem:[%s11374_s27 + $0xcc] sm:$0xf] }
 0x27d   : > { %5639 = vmatpush.bf16.msra.mxu0 %v9581_v24  ;;  %v9789_v24 = vor.u32 %v10978_v33, %v9788_v55  ;;  %v9917_v4 = vor.u32 %v11010_v26, %v9916_v51  ;;  %v9757_v55 = vor.u32 %v10970_v21, %v9756_v5  ;;  %v11028_v33 = vld [vmem:[%s11374_s27 + $0x3ec] sm:$0xf]  ;;  %v9854_v7 = vld [vmem:[%s11374_s27 + $0x2d8] sm:$0xf0]  ;;  %v9585_v5 = vor.u32 %v10924_v32, %v9582_v59 }
 0x27e   : > { %5653 = vmatpush.bf16.msra.mxu1 %v9709_v46  ;;  %v9516_v46 = vld [vmem:[%s11374_s27 + $0x28] sm:$0xf]  ;;  %v11020_v38 = vld [vmem:[%s11374_s27 + $0x3ac] sm:$0xf]  ;;  %v9966_v17 = vld [vmem:[%s11374_s27 + $0x3b8] sm:$0xf0] }
 0x27f   : > { %5667 = vmatpush.bf16.msra.mxu2 %v9837_v37  ;;  %v10910_v37 = vld [vmem:[%s11374_s27 + $0x34] sm:$0xf0]  ;;  %v10920_v21 = vld [vmem:[%s11374_s27 + $0x8c] sm:$0xf]  ;;  %v9566_v39 = vld [vmem:[%s11374_s27 + $0x98] sm:$0xf0] }
 0x280   : > { %5681 = vmatpush.bf16.msra.mxu3 %v9965_v47  ;;  %v10942_v47 = vld [vmem:[%s11374_s27 + $0x134] sm:$0xf0]  ;;  %v10952_v58 = vld [vmem:[%s11374_s27 + $0x18c] sm:$0xf]  ;;  %v9662_v32 = vld [vmem:[%s11374_s27 + $0x158] sm:$0xf0] }
 0x281   : > { %5640 = vmatpush.bf16.msra.mxu0 %v9565_v35  ;;  %v9517_v35 = vor.u32 %v10910_v37, %v9516_v46  ;;  %v10001_v46 = vor.u32 %v11028_v33, %v9998_v43  ;;  %v9726_v37 = vld [vmem:[%s11374_s27 + $0x1d8] sm:$0xf0]  ;;  %v10948_v43 = vld [vmem:[%s11374_s27 + $0x16c] sm:$0xf] }
 0x282   : > { %5654 = vmatpush.bf16.msra.mxu1 %v9693_v25  ;;  %v10906_v25 = vld [vmem:[%s11374_s27 + $0x14] sm:$0xf0]  ;;  %v4744_v14 = vpop.f32.mrf.mxu3  ;;  %v9550_v33 = vld [vmem:[%s11374_s27 + $0x78] sm:$0xf0]  ;;  %v10976_v59 = vld [vmem:[%s11374_s27 + $0x24c] sm:$0xf] }
 0x283   : > { %5668 = vmatpush.bf16.msra.mxu2 %v9821_v8  ;;  %v9645_v8 = vor.u32 %v10942_v47, %v9644_v2  ;;  %v9501_v18 = vor.u32 %v10906_v25, %v9500_v23  ;;  %v10992_v2 = vld [vmem:[%s11374_s27 + $0x2cc] sm:$0xf]  ;;  %v9982_v47 = vld [vmem:[%s11374_s27 + $0x3d8] sm:$0xf0] }
 0x284   : > { %5682 = vmatpush.bf16.msra.mxu3 %v9949_v63  ;;  %v4730_v63 = vpop.f32.mrf.mxu2  ;;  %v9710_v25 = vld [vmem:[%s11374_s27 + $0x1b8] sm:$0xf0] }
 0x285   : > { %5641 = vmatpush.bf16.msra.mxu0 %v9549_v1  ;;  %v4731_v13 = vadd.f32 %v4730_v63, %v4717_v9  ;;  %v10932_v1 = vld [vmem:[%s11374_s27 + $0xec] sm:$0xf]  ;;  %v9857_v9 = vor.u32 %v10992_v2, %v9854_v7 }
 0x286   : > { %5655 = vmatpush.bf16.msra.mxu1 %v9677_v16  ;;  %v9614_v16 = vld [vmem:[%s11374_s27 + $0xf8] sm:$0xf0] }
 0x287   : > { %5669 = vmatpush.bf16.msra.mxu2 %v9805_v44  ;;  %v10964_v44 = vld [vmem:[%s11374_s27 + $0x1ec] sm:$0xf]  ;;  %v9617_v51 = vor.u32 %v10932_v1, %v9614_v16  ;;  %v9822_v16 = vld [vmem:[%s11374_s27 + $0x298] sm:$0xf0] }
 0x288   : > { %5683 = vmatpush.bf16.msra.mxu3 %v9933_v11  ;;  %v13341_v11 = vadd.f32 %v4744_v14, %v4731_v13  ;;  %v9745_v26 = vor.u32 %v10964_v44, %v9742_v10  ;;  %v9969_v13 = vor.u32 %v11020_v38, %v9966_v17  ;;  %v9694_v14 = vld [vmem:[%s11374_s27 + $0x198] sm:$0xf0]  ;;  %v10984_v1 = vld [vmem:[%s11374_s27 + $0x28c] sm:$0xf]  ;;  %v9569_v10 = vor.u32 %v10920_v21, %v9566_v39 }
 0x289   : > { %5642 = vmatpush.bf16.msra.mxu0 %v9533_v41  ;;  %v9873_v41 = vor.u32 %v10996_v62, %v9870_v61  ;;  %v11016_v44 = vld [vmem:[%s11374_s27 + $0x38c] sm:$0xf]  ;;  %v9697_v61 = vor.u32 %v10952_v58, %v9694_v14  ;;  %v9518_v39 = vld [vmem:[%s11374_s27 + $0x38] sm:$0xf0] }
 0x28a   : > { %5656 = vmatpush.bf16.msra.mxu1 %v9661_v19  ;;  %v9598_v19 = vld [vmem:[%s11374_s27 + $0xd8] sm:$0xf0]  ;;  %v10908_v21 = vld [vmem:[%s11374_s27 + $0x2c] sm:$0xf] }
 0x28b   : > { %5670 = vmatpush.bf16.msra.mxu2 %v9789_v24  ;;  %v10960_v24 = vld [vmem:[%s11374_s27 + $0x1cc] sm:$0xf]  ;;  %v9601_v42 = vor.u32 %v10928_v0, %v9598_v19  ;;  %v9806_v0 = vld [vmem:[%s11374_s27 + $0x278] sm:$0xf0] }
 0x28c   : > { %5684 = vmatpush.bf16.msra.mxu3 %v9917_v4  ;;  %v11024_v4 = vld [vmem:[%s11374_s27 + $0x3cc] sm:$0xf]  ;;  %v9729_v45 = vor.u32 %v10960_v24, %v9726_v37 }
 0x28d   : > { %5643 = vmatpush.bf16.msra.mxu0 %v9517_v35  ;;  %v10956_v35 = vld [vmem:[%s11374_s27 + $0x1ac] sm:$0xf]  ;;  %v9985_v23 = vor.u32 %v11024_v4, %v9982_v47  ;;  %v9534_v47 = vld [vmem:[%s11374_s27 + $0x58] sm:$0xf0] }
 0x28e   : > { %5657 = vmatpush.bf16.msra.mxu1 %v9645_v8  ;;  %v10988_v8 = vld [vmem:[%s11374_s27 + $0x2ac] sm:$0xf]  ;;  %v9713_v63 = vor.u32 %v10956_v35, %v9710_v25  ;;  %v9790_v35 = vld [vmem:[%s11374_s27 + $0x258] sm:$0xf0] }
 0x28f   : > { %5671 = vmatpush.bf16.msra.mxu2 %v9773_v28  ;;  %v9838_v28 = vld [vmem:[%s11374_s27 + $0x2b8] sm:$0xf0]  ;;  %v11012_v24 = vld [vmem:[%s11374_s27 + $0x36c] sm:$0xf] }
 0x290   : > { %5685 = vmatpush.bf16.msra.mxu3 %v9901_v15  ;;  %v9841_v15 = vor.u32 %v10988_v8, %v9838_v28  ;;  %v10912_v4 = vld [vmem:[%s11374_s27 + $0x4c] sm:$0xf]  ;;  %v9918_v28 = vld [vmem:[%s11374_s27 + $0x358] sm:$0xf0] }
 0x291   : > { %5644 = vmatpush.bf16.msra.mxu0 %v9501_v18  ;;  %v9950_v18 = vld [vmem:[%s11374_s27 + $0x398] sm:$0xf0]  ;;  %v4756_v62 = vpop.f32.mrf.mxu0  ;;  %v11008_v8 = vld [vmem:[%s11374_s27 + $0x34c] sm:$0xf]  ;;  %v9537_v38 = vor.u32 %v10912_v4, %v9534_v47  ;;  %v11189_v4 = vld [vmem:[%s11374_s27 + $0x8ec] sm:$0xf0] }
 0x292   : > { %5658 = vmatpush.bf16.msra.mxu1 %v9629_v54  ;;  %v9825_v54 = vor.u32 %v10984_v1, %v9822_v16  ;;  %v10940_v58 = vld [vmem:[%s11374_s27 + $0x12c] sm:$0xf]  ;;  %v9921_v14 = vor.u32 %v11008_v8, %v9918_v28  ;;  %v9646_v1 = vld [vmem:[%s11374_s27 + $0x138] sm:$0xf0]  ;;  %v10244_v47 = vld [vmem:[%s11374_s27 + $0x9e0] sm:$0xf] }
 0x293   : > { %5672 = vmatpush.bf16.msra.mxu2 %v9757_v55  ;;  %v10916_v55 = vld [vmem:[%s11374_s27 + $0x6c] sm:$0xf]  ;;  %v11285_v8 = vld [vmem:[%s11374_s27 + $0xbec] sm:$0xf0] }
 0x294   : > { %5686 = vmatpush.bf16.msra.mxu3 %v9885_v60  ;;  %5645 = vmatmul.bf16.vlgmr.msra.gmra.mxu0 %v13194_v50  ;;  %v4770_v60 = vpop.f32.mrf.mxu1  ;;  %v9553_v37 = vor.u32 %v10916_v55, %v9550_v33  ;;  %v10972_v16 = vld [vmem:[%s11374_s27 + $0x22c] sm:$0xf]  ;;  %v9502_v55 = vld [vmem:[%s11374_s27 + $0x18] sm:$0xf0]  ;;  %v9649_v33 = vor.u32 %v10940_v58, %v9646_v1  ;;  %v11249_v1 = vld [vmem:[%s11374_s27 + $0xacc] sm:$0xf0] }
 0x295   : > { %5693 = vmatpush.bf16.msrb.mxu0 %v9617_v51  ;;  %5659 = vmatmul.bf16.vlgmr.msra.gmra.mxu1 %v13204_v34  ;;  %v9953_v51 = vor.u32 %v11016_v44, %v9950_v18  ;;  %v4771_v19 = vadd.f32 %v4770_v60, %v4756_v62  ;;  %v9774_v44 = vld [vmem:[%s11374_s27 + $0x238] sm:$0xf0]  ;;  %v10936_v60 = vld [vmem:[%s11374_s27 + $0x10c] sm:$0xf] }
 0x296   : > { %5707 = vmatpush.bf16.msrb.mxu1 %v9745_v26  ;;  %5673 = vmatmul.bf16.vlgmr.msra.gmra.mxu2 %v13197_v49  ;;  %v9678_v26 = vld [vmem:[%s11374_s27 + $0x178] sm:$0xf0] }
 0x297   : > { %5721 = vmatpush.bf16.msrb.mxu2 %v9873_v41  ;;  %5687 = vmatmul.bf16.vlgmr.msra.gmra.mxu3 %v13207_v57  ;;  %v10980_v41 = vld [vmem:[%s11374_s27 + $0x26c] sm:$0xf]  ;;  %v9681_v2 = vor.u32 %v10948_v43, %v9678_v26  ;;  %v9902_v62 = vld [vmem:[%s11374_s27 + $0x338] sm:$0xf0]  ;;  %v9777_v43 = vor.u32 %v10972_v16, %v9774_v44  ;;  %v10484_v16 = vld [vmem:[%s11374_s27 + $0xbc0] sm:$0xf] }
 0x298   : > { %5735 = vmatpush.bf16.msrb.mxu3 %v10001_v46  ;;  %v9934_v46 = vld [vmem:[%s11374_s27 + $0x378] sm:$0xf0]  ;;  %v9809_v7 = vor.u32 %v10980_v41, %v9806_v0  ;;  %v10968_v26 = vld [vmem:[%s11374_s27 + $0x20c] sm:$0xf]  ;;  %v11281_v44 = vld [vmem:[%s11374_s27 + $0xbcc] sm:$0xf0] }
 0x299   : > { %5694 = vmatpush.bf16.msrb.mxu0 %v9601_v42  ;;  %v10944_v42 = vld [vmem:[%s11374_s27 + $0x14c] sm:$0xf] }
 0x29a   : > { %5708 = vmatpush.bf16.msrb.mxu1 %v9729_v45  ;;  %v4784_v45 = vpop.f32.mrf.mxu2  ;;  %v4798_v25 = vpop.f32.mrf.mxu3 }
 0x29b   : > { %5722 = vmatpush.bf16.msrb.mxu2 %v9857_v9  ;;  %v9937_v9 = vor.u32 %v11012_v24, %v9934_v46  ;;  %v11000_v24 = vld [vmem:[%s11374_s27 + $0x30c] sm:$0xf]  ;;  %v9886_v46 = vld [vmem:[%s11374_s27 + $0x318] sm:$0xf0] }
 0x29c   : > { %5736 = vmatpush.bf16.msrb.mxu3 %v9985_v23  ;;  %v4785_v23 = vadd.f32 %v4784_v45, %v4771_v19  ;;  %v9758_v19 = vld [vmem:[%s11374_s27 + $0x218] sm:$0xf0]  ;;  %v11221_v45 = vld [vmem:[%s11374_s27 + $0x9ec] sm:$0xf0]  ;;  %v9889_v28 = vor.u32 %v11000_v24, %v9886_v46  ;;  %v10068_v24 = vld [vmem:[%s11374_s27 + $0x880] sm:$0xf] }
 0x29d   : > { %5695 = vmatpush.bf16.msrb.mxu0 %v9585_v5  ;;  %v4758_v5 = vpop.f32.mrf.mxu0  ;;  %v11177_v46 = vld [vmem:[%s11374_s27 + $0x88c] sm:$0xf0] }
 0x29e   : > { %5709 = vmatpush.bf16.msrb.mxu1 %v9713_v63  ;;  %v13389_v17 = vadd.f32 %v4798_v25, %v4785_v23  ;;  %v9665_v63 = vor.u32 %v10944_v42, %v9662_v32  ;;  %v11253_v32 = vld [vmem:[%s11374_s27 + $0xaec] sm:$0xf0]  ;;  %v9761_v23 = vor.u32 %v10968_v26, %v9758_v19  ;;  %v10500_v25 = vld [vmem:[%s11374_s27 + $0xbe0] sm:$0xf] }
 0x29f   : > { %5723 = vmatpush.bf16.msrb.mxu2 %v9841_v15  ;;  %v9793_v15 = vor.u32 %v10976_v59, %v9790_v35  ;;  %v10501_v58 = vor.u32 %v11285_v8, %v10500_v25  ;;  %v10468_v26 = vld [vmem:[%s11374_s27 + $0xba0] sm:$0xf] }
 0x2a0   : > { %5737 = vmatpush.bf16.msrb.mxu3 %v9969_v13  ;;  %v4772_v13 = vpop.f32.mrf.mxu1  ;;  %v10180_v25 = vld [vmem:[%s11374_s27 + $0x960] sm:$0xf] }
 0x2a1   : > { %5696 = vmatpush.bf16.msrb.mxu0 %v9569_v10  ;;  %v4773_v18 = vadd.f32 %v4772_v13, %v4758_v5  ;;  %v11004_v10 = vld [vmem:[%s11374_s27 + $0x32c] sm:$0xf]  ;;  %v10245_v5 = vor.u32 %v11221_v45, %v10244_v47  ;;  %v11217_v13 = vld [vmem:[%s11374_s27 + $0x9cc] sm:$0xf0] }
 0x2a2   : > { %5710 = vmatpush.bf16.msrb.mxu1 %v9697_v61  ;;  %v9521_v61 = vor.u32 %v10908_v21, %v9518_v39  ;;  %v4786_v41 = vpop.f32.mrf.mxu2  ;;  %v9905_v0 = vor.u32 %v11004_v10, %v9902_v62  ;;  %v11185_v21 = vld [vmem:[%s11374_s27 + $0x8cc] sm:$0xf0]  ;;  %v10228_v39 = vld [vmem:[%s11374_s27 + $0x9c0] sm:$0xf] }
 0x2a3   : > { %5724 = vmatpush.bf16.msrb.mxu2 %v9825_v54  ;;  %v10904_v54 = vld [vmem:[%s11374_s27 + $0xc] sm:$0xf]  ;;  %v10229_v10 = vor.u32 %v11217_v13, %v10228_v39 }
 0x2a4   : > { %5738 = vmatpush.bf16.msrb.mxu3 %v9953_v51  ;;  %v9630_v51 = vld [vmem:[%s11374_s27 + $0x118] sm:$0xf0]  ;;  %v9505_v42 = vor.u32 %v10904_v54, %v9502_v55  ;;  %v11181_v54 = vld [vmem:[%s11374_s27 + $0x8ac] sm:$0xf0]  ;;  %v10212_v55 = vld [vmem:[%s11374_s27 + $0x9a0] sm:$0xf] }
 0x2a5   : > { %5697 = vmatpush.bf16.msrb.mxu0 %v9553_v37  ;;  %v4787_v37 = vadd.f32 %v4786_v41, %v4773_v18  ;;  %v9633_v35 = vor.u32 %v10936_v60, %v9630_v51  ;;  %v10340_v60 = vld [vmem:[%s11374_s27 + $0xaa0] sm:$0xf]  ;;  %v11245_v51 = vld [vmem:[%s11374_s27 + $0xaac] sm:$0xf0] }
 0x2a6   : > { %5711 = vmatpush.bf16.msrb.mxu1 %v9681_v2  ;;  %v4800_v2 = vpop.f32.mrf.mxu3  ;;  %v11277_v41 = vld [vmem:[%s11374_s27 + $0xbac] sm:$0xf0]  ;;  %v10341_v19 = vor.u32 %v11245_v51, %v10340_v60  ;;  %v5749_v51 = vld [vmem:[#allocation2 + $0x28] sm:$0xcc] }
 0x2a7   : > { %5725 = vmatpush.bf16.msrb.mxu2 %v9809_v7  ;;  %v10116_v7 = vld [vmem:[%s11374_s27 + $0x8e0] sm:$0xf]  ;;  %v13413_v59 = vadd.f32 %v4800_v2, %v4787_v37  ;;  %v11209_v37 = vld [vmem:[%s11374_s27 + $0x98c] sm:$0xf0] }
 0x2a8   : > { %5739 = vmatpush.bf16.msrb.mxu3 %v9937_v9  ;;  %v10372_v9 = vld [vmem:[%s11374_s27 + $0xae0] sm:$0xf] }
 0x2a9   : > { %5698 = vmatpush.bf16.msrb.mxu0 %v9537_v38  ;;  %v10117_v38 = vor.u32 %v11189_v4, %v10116_v7  ;;  %v10324_v2 = vld [vmem:[%s11374_s27 + $0xa80] sm:$0xf]  ;;  %v11241_v7 = vld [vmem:[%s11374_s27 + $0xa8c] sm:$0xf0] }
 0x2aa   : > { %5712 = vmatpush.bf16.msrb.mxu1 %v9665_v63  ;;  %v10373_v63 = vor.u32 %v11253_v32, %v10372_v9  ;;  %v10452_v4 = vld [vmem:[%s11374_s27 + $0xb80] sm:$0xf]  ;;  %v10325_v32 = vor.u32 %v11241_v7, %v10324_v2  ;;  %v11229_v2 = vld [vmem:[%s11374_s27 + $0xa2c] sm:$0xf0] }
 0x2ab   : > { %5726 = vmatpush.bf16.msrb.mxu2 %v9793_v15  ;;  %v10100_v15 = vld [vmem:[%s11374_s27 + $0x8c0] sm:$0xf] }
 0x2ac   : > { %5740 = vmatpush.bf16.msrb.mxu3 %v9921_v14  ;;  %v10356_v14 = vld [vmem:[%s11374_s27 + $0xac0] sm:$0xf]  ;;  %v10101_v18 = vor.u32 %v11185_v21, %v10100_v15  ;;  %v11269_v21 = vld [vmem:[%s11374_s27 + $0xb6c] sm:$0xf0] }
 0x2ad   : > { %5699 = vmatpush.bf16.msrb.mxu0 %v9521_v61  ;;  %v10357_v62 = vor.u32 %v11249_v1, %v10356_v14  ;;  %v10084_v61 = vld [vmem:[%s11374_s27 + $0x8a0] sm:$0xf]  ;;  %v11169_v1 = vld [vmem:[%s11374_s27 + $0x84c] sm:$0xf0] }
 0x2ae   : > { %5713 = vmatpush.bf16.msrb.mxu1 %v9649_v33  ;;  %v10485_v33 = vor.u32 %v11281_v44, %v10484_v16  ;;  %v10436_v15 = vld [vmem:[%s11374_s27 + $0xb60] sm:$0xf]  ;;  %v11201_v44 = vld [vmem:[%s11374_s27 + $0x94c] sm:$0xf0] }
 0x2af   : > { %5727 = vmatpush.bf16.msrb.mxu2 %v9777_v43  ;;  %v11213_v43 = vld [vmem:[%s11374_s27 + $0x9ac] sm:$0xf0]  ;;  %v10164_v16 = vld [vmem:[%s11374_s27 + $0x940] sm:$0xf] }
 0x2b0   : > { %5741 = vmatpush.bf16.msrb.mxu3 %v9905_v0  ;;  %v10213_v0 = vor.u32 %v11213_v43, %v10212_v55  ;;  %v10420_v55 = vld [vmem:[%s11374_s27 + $0xb40] sm:$0xf] }
 0x2b1   : > { %5700 = vmatpush.bf16.msrb.mxu0 %v9505_v42  ;;  %v4812_v47 = vpop.f32.mrf.mxu0  ;;  %v10069_v42 = vor.u32 %v11177_v46, %v10068_v24 }
 0x2b2   : > { %5714 = vmatpush.bf16.msrb.mxu1 %v9633_v35  ;;  %v4826_v45 = vpop.f32.mrf.mxu1  ;;  %v10052_v35 = vld [vmem:[%s11374_s27 + $0x860] sm:$0xf] }
 0x2b3   : > { %5728 = vmatpush.bf16.msrb.mxu2 %v9761_v23  ;;  %v11173_v23 = vld [vmem:[%s11374_s27 + $0x86c] sm:$0xf0]  ;;  %v4827_v8 = vadd.f32 %v4826_v45, %v4812_v47 }
 0x2b4   : > { %5742 = vmatpush.bf16.msrb.mxu3 %v9889_v28  ;;  %5701 = vmatmul.bf16.vlgmr.msrb.gmra.mxu0 %v13194_v50  ;;  %v10085_v50 = vor.u32 %v11181_v54, %v10084_v61  ;;  %v10053_v39 = vor.u32 %v11173_v23, %v10052_v35  ;;  %v5750_v54 = vld [vmem:[#allocation2 + $0x20] sm:$0xcc]  ;;  %v11261_v45 = vld [vmem:[%s11374_s27 + $0xb2c] sm:$0xf0]  ;;  %v5881_v35 = vunpack.c.l.b16 %v5749_v51 }
 0x2b5   : > { %6546 = vmatpush.bf16.msra.mxu0 %v10117_v38  ;;  %5715 = vmatmul.bf16.vlgmr.msrb.gmra.mxu1 %v13204_v34  ;;  %v10469_v34 = vor.u32 %v11277_v41, %v10468_v26  ;;  %v11205_v38 = vld [vmem:[%s11374_s27 + $0x96c] sm:$0xf0]  ;;  %v10165_v41 = vor.u32 %v11201_v44, %v10164_v16  ;;  %v5883_v7 = vunpack.c.l.b16 %v5750_v54 }
 0x2b6   : > { %6560 = vmatpush.bf16.msra.mxu1 %v10245_v5  ;;  %5729 = vmatmul.bf16.vlgmr.msrb.gmra.mxu2 %v13197_v49  ;;  %v10196_v49 = vld [vmem:[%s11374_s27 + $0x980] sm:$0xf]  ;;  %v10181_v13 = vor.u32 %v11205_v38, %v10180_v25  ;;  %v11161_v23 = vld [vmem:[%s11374_s27 + $0x80c] sm:$0xf0] }
 0x2b7   : > { %6574 = vmatpush.bf16.msra.mxu2 %v10373_v63  ;;  %5743 = vmatmul.bf16.vlgmr.msrb.gmra.mxu3 %v13207_v57  ;;  %v11273_v57 = vld [vmem:[%s11374_s27 + $0xb8c] sm:$0xf0]  ;;  %v10197_v9 = vor.u32 %v11209_v37, %v10196_v49  ;;  %v10308_v5 = vld [vmem:[%s11374_s27 + $0xa60] sm:$0xf] }
 0x2b8   : > { %6588 = vmatpush.bf16.msra.mxu3 %v10501_v58  ;;  %v10453_v28 = vor.u32 %v11273_v57, %v10452_v4  ;;  %v11237_v63 = vld [vmem:[%s11374_s27 + $0xa6c] sm:$0xf0]  ;;  %v10036_v58 = vld [vmem:[%s11374_s27 + $0x840] sm:$0xf] }
 0x2b9   : > { %6547 = vmatpush.bf16.msra.mxu0 %v10101_v18  ;;  %v10309_v14 = vor.u32 %v11237_v63, %v10308_v5  ;;  %v10437_v18 = vor.u32 %v11269_v21, %v10436_v15  ;;  %v4840_v61 = vpop.f32.mrf.mxu2  ;;  %v10037_v26 = vor.u32 %v11169_v1, %v10036_v58  ;;  %v4814_v24 = vpop.f32.mrf.mxu0  ;;  %v10276_v37 = vld [vmem:[%s11374_s27 + $0xa20] sm:$0xf]  ;;  %v11225_v63 = vld [vmem:[%s11374_s27 + $0xa0c] sm:$0xf0]  ;;  %v14165_v1 = vunpack.c.l.b16 %v12636_v36 }
 0x2ba   : > { %6561 = vmatpush.bf16.msra.mxu1 %v10229_v10  ;;  %v10292_v10 = vld [vmem:[%s11374_s27 + $0xa40] sm:$0xf]  ;;  %v4841_v43 = vadd.f32 %v4840_v61, %v4827_v8  ;;  %v4854_v60 = vpop.f32.mrf.mxu3  ;;  %v4828_v46 = vpop.f32.mrf.mxu1  ;;  %v11193_v8 = vld [vmem:[%s11374_s27 + $0x90c] sm:$0xf0] }
 0x2bb   : > { %6575 = vmatpush.bf16.msra.mxu2 %v10357_v62  ;;  %v11233_v62 = vld [vmem:[%s11374_s27 + $0xa4c] sm:$0xf0]  ;;  %v4829_v57 = vadd.f32 %v4828_v46, %v4814_v24  ;;  %v10132_v25 = vld [vmem:[%s11374_s27 + $0x900] sm:$0xf]  ;;  %v5887_v16 = vpack.c.b16 %v14165_v1, %v5883_v7  ;;  %v10374_v24 = vld [vmem:[%s11374_s27 + $0xaf0] sm:$0xf0] }
 0x2bc   : > { %6589 = vmatpush.bf16.msra.mxu3 %v10485_v33  ;;  %v11265_v33 = vld [vmem:[%s11374_s27 + $0xb4c] sm:$0xf0]  ;;  %v10293_v49 = vor.u32 %v11233_v62, %v10292_v10  ;;  %v13467_v4 = vadd.f32 %v4854_v60, %v4841_v43  ;;  %v10260_v5 = vld [vmem:[%s11374_s27 + $0xa00] sm:$0xf]  ;;  %v14167_v62 = vunpack.c.l.b16 %v12713_v52  ;;  %v10246_v43 = vld [vmem:[%s11374_s27 + $0x9f0] sm:$0xf0]  ;;  %v14168_v60 = vunpack.c.h.b16 %v12713_v52 }
 0x2bd   : > { %6548 = vmatpush.bf16.msra.mxu0 %v10085_v50  ;;  %v10020_v50 = vld [vmem:[%s11374_s27 + $0x820] sm:$0xf]  ;;  %v10421_v47 = vor.u32 %v11265_v33, %v10420_v55  ;;  %v11257_v58 = vld [vmem:[%s11374_s27 + $0xb0c] sm:$0xf0]  ;;  %v11219_v33 = vld [vmem:[%s11374_s27 + $0x9e4] sm:$0xf] }
 0x2be   : > { %6562 = vmatpush.bf16.msra.mxu1 %v10213_v0  ;;  %v11165_v0 = vld [vmem:[%s11374_s27 + $0x82c] sm:$0xf0]  ;;  %v10388_v15 = vld [vmem:[%s11374_s27 + $0xb00] sm:$0xf]  ;;  %v5885_v61 = vpack.c.b16 %v14167_v62, %v5881_v35  ;;  %v11283_v46 = vld [vmem:[%s11374_s27 + $0xbe4] sm:$0xf]  ;;  %v10249_v35 = vor.u32 %v11219_v33, %v10246_v43 }
 0x2bf   : > { %6576 = vmatpush.bf16.msra.mxu2 %v10341_v19  ;;  %v10148_v19 = vld [vmem:[%s11374_s27 + $0x920] sm:$0xf]  ;;  %v10021_v38 = vor.u32 %v11165_v0, %v10020_v50  ;;  %v10261_v50 = vor.u32 %v11225_v63, %v10260_v5  ;;  %v10389_v0 = vor.u32 %v11257_v58, %v10388_v15  ;;  %v10230_v63 = vld [vmem:[%s11374_s27 + $0x9d0] sm:$0xf0]  ;;  %v11247_v15 = vld [vmem:[%s11374_s27 + $0xac4] sm:$0xf] }
 0x2c0   : > { %6590 = vmatpush.bf16.msra.mxu3 %v10469_v34  ;;  %v11197_v34 = vld [vmem:[%s11374_s27 + $0x92c] sm:$0xf0]  ;;  %v14169_v52 = vld [vmem:[#allocation14_spill] sm:$0xff]  ;;  %v10486_v58 = vld [vmem:[%s11374_s27 + $0xbd0] sm:$0xf0] }
 0x2c1   : > { %6549 = vmatpush.bf16.msra.mxu0 %v10069_v42  ;;  %v10404_v42 = vld [vmem:[%s11374_s27 + $0xb20] sm:$0xf]  ;;  %v10149_v21 = vor.u32 %v11197_v34, %v10148_v19  ;;  %v11251_v19 = vld [vmem:[%s11374_s27 + $0xae4] sm:$0xf]  ;;  %v10502_v34 = vld [vmem:[%s11374_s27 + $0xbf0] sm:$0xf0] }
 0x2c2   : > { %6563 = vmatpush.bf16.msra.mxu1 %v10197_v9  ;;  %v10004_v9 = vld [vmem:[%s11374_s27 + $0x800] sm:$0xf]  ;;  %v10405_v44 = vor.u32 %v11261_v45, %v10404_v42  ;;  %v11183_v45 = vld [vmem:[%s11374_s27 + $0x8c4] sm:$0xf]  ;;  %v10505_v5 = vor.u32 %v11283_v46, %v10502_v34  ;;  %v10342_v33 = vld [vmem:[%s11374_s27 + $0xab0] sm:$0xf0] }
 0x2c3   : > { %6577 = vmatpush.bf16.msra.mxu2 %v10325_v32  ;;  %v5884_v32 = vunpack.c.h.b16 %v5750_v54  ;;  %v4842_v54 = vpop.f32.mrf.mxu2  ;;  %v10005_v55 = vor.u32 %v11161_v23, %v10004_v9  ;;  %v5890_v9 = vrot.slane %v5885_v61, 2  ;;  %v10377_v23 = vor.u32 %v11251_v19, %v10374_v24  ;;  %v11211_v62 = vld [vmem:[%s11374_s27 + $0x9a4] sm:$0xf]  ;;  %v10198_v24 = vld [vmem:[%s11374_s27 + $0x990] sm:$0xf0] }
 0x2c4   : > { %6591 = vmatpush.bf16.msra.mxu3 %v10453_v28  ;;  %v5882_v28 = vunpack.c.h.b16 %v5749_v51  ;;  %v11275_v43 = vld [vmem:[%s11374_s27 + $0xba4] sm:$0xf] }
 0x2c5   : > { %6550 = vmatpush.bf16.msra.mxu0 %v10053_v39  ;;  %v10277_v39 = vor.u32 %v11229_v2, %v10276_v37  ;;  %v5896_v37 = vrot.slane %v5887_v16, 2  ;;  %v5897_v2 = vrot.slane %v14169_v52, 2  ;;  %v11239_v46 = vld [vmem:[%s11374_s27 + $0xa84] sm:$0xf]  ;;  %v10454_v52 = vld [vmem:[%s11374_s27 + $0xb90] sm:$0xf0] }
 0x2c6   : > { %6564 = vmatpush.bf16.msra.mxu1 %v10181_v13  ;;  %v11187_v13 = vld [vmem:[%s11374_s27 + $0x8e4] sm:$0xf]  ;;  %v5886_v51 = vpack.c.b16 %v14168_v60, %v5882_v28  ;;  %v10470_v60 = vld [vmem:[%s11374_s27 + $0xbb0] sm:$0xf0] }
 0x2c7   : > { %6578 = vmatpush.bf16.msra.mxu2 %v10309_v14  ;;  %v10118_v14 = vld [vmem:[%s11374_s27 + $0x8f0] sm:$0xf0]  ;;  %v10473_v19 = vor.u32 %v11275_v43, %v10470_v60 }
 0x2c8   : > { %6592 = vmatpush.bf16.msra.mxu3 %v10437_v18  ;;  %v14166_v18 = vunpack.c.h.b16 %v12636_v36  ;;  %v10121_v36 = vor.u32 %v11187_v13, %v10118_v14  ;;  %v5893_v28 = vrot.slane %v5886_v51, 2  ;;  %v10422_v43 = vld [vmem:[%s11374_s27 + $0xb50] sm:$0xf0] }
 0x2c9   : > { %6551 = vmatpush.bf16.msra.mxu0 %v10037_v26  ;;  %v4843_v26 = vadd.f32 %v4842_v54, %v4829_v57  ;;  %v10214_v54 = vld [vmem:[%s11374_s27 + $0x9b0] sm:$0xf0] }
 0x2ca   : > { %6565 = vmatpush.bf16.msra.mxu1 %v10165_v41  ;;  %v5888_v10 = vpack.c.b16 %v14166_v18, %v5884_v32  ;;  %v10133_v41 = vor.u32 %v11193_v8, %v10132_v25  ;;  %v5891_v32 = vrot.slane %v12782_v40, 2  ;;  %v10102_v25 = vld [vmem:[%s11374_s27 + $0x8d0] sm:$0xf0]  ;;  %v11215_v8 = vld [vmem:[%s11374_s27 + $0x9c4] sm:$0xf]  ;;  %v13508_v40 = vsel %vm5889_vm12, %v5896_v37, %v5897_v2 }
 0x2cb   : > { %6579 = vmatpush.bf16.msra.mxu2 %v10293_v49  ;;  %v4856_v49 = vpop.f32.mrf.mxu3  ;;  %v10105_v13 = vor.u32 %v11183_v45, %v10102_v25  ;;  %v10233_v1 = vor.u32 %v11215_v8, %v10230_v63  ;;  %v11179_v18 = vld [vmem:[%s11374_s27 + $0x8a4] sm:$0xf]  ;;  %v10182_v8 = vld [vmem:[%s11374_s27 + $0x970] sm:$0xf0] }
 0x2cc   : > { %6593 = vmatpush.bf16.msra.mxu3 %v10421_v47  ;;  %v13496_v7 = vadd.f32 %v4856_v49, %v4843_v26  ;;  %v5899_v57 = vrot.slane %v5888_v10, 2  ;;  %v14170_v47 = vld [vmem:[#allocation15_spill] sm:$0xff]  ;;  %v13516_v14 = vsel %vm5889_vm12, %v5890_v9, %v5891_v32  ;;  %v10086_v10 = vld [vmem:[%s11374_s27 + $0x8b0] sm:$0xf0]  ;;  %v10217_v26 = vor.u32 %v11211_v62, %v10214_v54  ;;  %v11271_v37 = vld [vmem:[%s11374_s27 + $0xb84] sm:$0xf] }
 0x2cd   : > { %6552 = vmatpush.bf16.msra.mxu0 %v10021_v38  ;;  %v5900_v42 = vrot.slane %v14170_v47, 2  ;;  %v5894_v38 = vrot.slane %v12829_v53, 2  ;;  %v10089_v51 = vor.u32 %v11179_v18, %v10086_v10  ;;  %v10326_v49 = vld [vmem:[%s11374_s27 + $0xa90] sm:$0xf0]  ;;  %v11171_v9 = vld [vmem:[%s11374_s27 + $0x864] sm:$0xf] }
 0x2ce   : > { %6566 = vmatpush.bf16.msra.mxu1 %v10149_v21  ;;  %v10358_v21 = vld [vmem:[%s11374_s27 + $0xad0] sm:$0xf0]  ;;  %v10329_v45 = vor.u32 %v11239_v46, %v10326_v49  ;;  %v11231_v10 = vld [vmem:[%s11374_s27 + $0xa44] sm:$0xf] }
 0x2cf   : > { %6580 = vmatpush.bf16.msra.mxu2 %v10277_v39  ;;  %v11279_v39 = vld [vmem:[%s11374_s27 + $0xbc4] sm:$0xf]  ;;  %v13513_v53 = vsel %vm5889_vm12, %v5899_v57, %v5900_v42  ;;  %v10361_v16 = vor.u32 %v11247_v15, %v10358_v21  ;;  %v10054_v32 = vld [vmem:[%s11374_s27 + $0x870] sm:$0xf0] }
 0x2d0   : > { %6594 = vmatpush.bf16.msra.mxu3 %v10405_v44  ;;  %v13519_v44 = vsel %vm5889_vm12, %v5893_v28, %v5894_v38  ;;  %v10489_v61 = vor.u32 %v11279_v39, %v10486_v58  ;;  %v11235_v28 = vld [vmem:[%s11374_s27 + $0xa64] sm:$0xf]  ;;  %v10057_v63 = vor.u32 %v11171_v9, %v10054_v32  ;;  %v10038_v58 = vld [vmem:[%s11374_s27 + $0x850] sm:$0xf0] }
 0x2d1   : > { %6553 = vmatpush.bf16.msra.mxu0 %v10005_v55  ;;  %v11243_v55 = vld [vmem:[%s11374_s27 + $0xaa4] sm:$0xf]  ;;  %v5534_v34 = vpop.f32.mrf.mxu0  ;;  %v10166_v18 = vld [vmem:[%s11374_s27 + $0x950] sm:$0xf0] }
 0x2d2   : > { %6567 = vmatpush.bf16.msra.mxu1 %v10133_v41  ;;  %v10345_v41 = vor.u32 %v11243_v55, %v10342_v33  ;;  %v5535_v2 = vadd.f32 %v5534_v34, %v13255_v22  ;;  %v5548_v47 = vpop.f32.mrf.mxu1  ;;  %v10310_v22 = vld [vmem:[%s11374_s27 + $0xa70] sm:$0xf0]  ;;  %v11267_v38 = vld [vmem:[%s11374_s27 + $0xb64] sm:$0xf] }
 0x2d3   : > { %6581 = vmatpush.bf16.msra.mxu2 %v10261_v50  ;;  %v11175_v50 = vld [vmem:[%s11374_s27 + $0x884] sm:$0xf]  ;;  %v10313_v21 = vor.u32 %v11235_v28, %v10310_v22  ;;  %v10294_v62 = vld [vmem:[%s11374_s27 + $0xa50] sm:$0xf0] }
 0x2d4   : > { %6595 = vmatpush.bf16.msra.mxu3 %v10389_v0  ;;  %6554 = vmatmul.bf16.vlgmr.msra.gmra.mxu0 %v13516_v14  ;;  %v10070_v0 = vld [vmem:[%s11374_s27 + $0x890] sm:$0xf0]  ;;  %v5549_v25 = vadd.f32 %v5548_v47, %v5535_v2  ;;  %v11167_v39 = vld [vmem:[%s11374_s27 + $0x844] sm:$0xf] }
 0x2d5   : > { %6602 = vmatpush.bf16.msrb.mxu0 %v10121_v36  ;;  %6568 = vmatmul.bf16.vlgmr.msra.gmra.mxu1 %v13519_v44  ;;  %v11207_v36 = vld [vmem:[%s11374_s27 + $0x984] sm:$0xf]  ;;  %v10073_v57 = vor.u32 %v11175_v50, %v10070_v0  ;;  %v10297_v0 = vor.u32 %v11231_v10, %v10294_v62  ;;  %v10150_v49 = vld [vmem:[%s11374_s27 + $0x930] sm:$0xf0] }
 0x2d6   : > { %6616 = vmatpush.bf16.msrb.mxu1 %v10249_v35  ;;  %6582 = vmatmul.bf16.vlgmr.msra.gmra.mxu2 %v13508_v40  ;;  %v10201_v42 = vor.u32 %v11207_v36, %v10198_v24  ;;  %v11203_v35 = vld [vmem:[%s11374_s27 + $0x964] sm:$0xf]  ;;  %v10406_v2 = vld [vmem:[%s11374_s27 + $0xb30] sm:$0xf0] }
 0x2d7   : > { %6630 = vmatpush.bf16.msrb.mxu2 %v10377_v23  ;;  %6596 = vmatmul.bf16.vlgmr.msra.gmra.mxu3 %v13513_v53  ;;  %v10457_v23 = vor.u32 %v11271_v37, %v10454_v52  ;;  %v10185_v15 = vor.u32 %v11203_v35, %v10182_v8  ;;  %v11263_v33 = vld [vmem:[%s11374_s27 + $0xb44] sm:$0xf]  ;;  %v10278_v37 = vld [vmem:[%s11374_s27 + $0xa30] sm:$0xf0] }
 0x2d8   : > { %6644 = vmatpush.bf16.msrb.mxu3 %v10505_v5  ;;  %v10438_v5 = vld [vmem:[%s11374_s27 + $0xb70] sm:$0xf0]  ;;  %v11163_v36 = vld [vmem:[%s11374_s27 + $0x824] sm:$0xf]  ;;  %v10425_v46 = vor.u32 %v11263_v33, %v10422_v43 }
 0x2d9   : > { %6603 = vmatpush.bf16.msrb.mxu0 %v10105_v13  ;;  %v11199_v13 = vld [vmem:[%s11374_s27 + $0x944] sm:$0xf]  ;;  %v5536_v54 = vpop.f32.mrf.mxu0  ;;  %v10134_v35 = vld [vmem:[%s11374_s27 + $0x910] sm:$0xf0] }
 0x2da   : > { %6617 = vmatpush.bf16.msrb.mxu1 %v10233_v1  ;;  %v10441_v1 = vor.u32 %v11267_v38, %v10438_v5  ;;  %v5576_v55 = vpop.f32.mrf.mxu3  ;;  %v5537_v60 = vadd.f32 %v5536_v54, %v13277_v6  ;;  %v10169_v50 = vor.u32 %v11199_v13, %v10166_v18  ;;  %v11195_v24 = vld [vmem:[%s11374_s27 + $0x924] sm:$0xf]  ;;  %v10262_v28 = vld [vmem:[%s11374_s27 + $0xa10] sm:$0xf0]  ;;  %v11222_v13 = vld [vmem:[%s11374_s27 + $0x9f4] sm:$0xf0] }
 0x2db   : > { %6631 = vmatpush.bf16.msrb.mxu2 %v10361_v16  ;;  %v5562_v16 = vpop.f32.mrf.mxu2  ;;  %v11227_v34 = vld [vmem:[%s11374_s27 + $0xa24] sm:$0xf]  ;;  %v10390_v38 = vld [vmem:[%s11374_s27 + $0xb10] sm:$0xf0]  ;;  %v11286_v54 = vld [vmem:[%s11374_s27 + $0xbf4] sm:$0xf0] }
 0x2dc   : > { %6645 = vmatpush.bf16.msrb.mxu3 %v10489_v61  ;;  %v5563_v61 = vadd.f32 %v5562_v16, %v5549_v25  ;;  %v11259_v52 = vld [vmem:[%s11374_s27 + $0xb24] sm:$0xf]  ;;  %v10281_v9 = vor.u32 %v11227_v34, %v10278_v37  ;;  %v11254_v16 = vld [vmem:[%s11374_s27 + $0xaf4] sm:$0xf0] }
 0x2dd   : > { %6604 = vmatpush.bf16.msrb.mxu0 %v10089_v51  ;;  %v10041_v51 = vor.u32 %v11167_v39, %v10038_v58  ;;  %v11159_v47 = vld [vmem:[%s11374_s27 + $0x804] sm:$0xf]  ;;  %v10409_v25 = vor.u32 %v11259_v52, %v10406_v2  ;;  %v10252_v39 = vld [vmem:[%s11374_s27 + $0x9e8] sm:$0xf]  ;;  %v11182_v2 = vld [vmem:[%s11374_s27 + $0x8b4] sm:$0xf0] }
 0x2de   : > { %6618 = vmatpush.bf16.msrb.mxu1 %v10217_v26  ;;  %v5550_v26 = vpop.f32.mrf.mxu1  ;;  %v11191_v32 = vld [vmem:[%s11374_s27 + $0x904] sm:$0xf]  ;;  %v10253_v43 = vor.u32 %v11222_v13, %v10252_v39  ;;  %v10092_v52 = vld [vmem:[%s11374_s27 + $0x8a8] sm:$0xf]  ;;  %v11274_v13 = vld [vmem:[%s11374_s27 + $0xb94] sm:$0xf0] }
 0x2df   : > { %6632 = vmatpush.bf16.msrb.mxu2 %v10345_v41  ;;  %v13559_v41 = vadd.f32 %v5576_v55, %v5563_v61  ;;  %v5551_v6 = vadd.f32 %v5550_v26, %v5537_v60  ;;  %v11255_v22 = vld [vmem:[%s11374_s27 + $0xb04] sm:$0xf]  ;;  %v10137_v10 = vor.u32 %v11191_v32, %v10134_v35  ;;  %v10508_v61 = vld [vmem:[%s11374_s27 + $0xbe8] sm:$0xf]  ;;  %v11186_v26 = vld [vmem:[%s11374_s27 + $0x8d4] sm:$0xf0] }
 0x2e0   : > { %6646 = vmatpush.bf16.msrb.mxu3 %v10473_v19  ;;  %v10022_v19 = vld [vmem:[%s11374_s27 + $0x830] sm:$0xf0]  ;;  %v10393_v55 = vor.u32 %v11255_v22, %v10390_v38  ;;  %v10476_v32 = vld [vmem:[%s11374_s27 + $0xba8] sm:$0xf]  ;;  %v11278_v35 = vld [vmem:[%s11374_s27 + $0xbb4] sm:$0xf0] }
 0x2e1   : > { %6605 = vmatpush.bf16.msrb.mxu0 %v10073_v57  ;;  %v10025_v57 = vor.u32 %v11163_v36, %v10022_v19  ;;  %v11218_v36 = vld [vmem:[%s11374_s27 + $0x9d4] sm:$0xf0]  ;;  %v10364_v19 = vld [vmem:[%s11374_s27 + $0xac8] sm:$0xf] }
 0x2e2   : > { %6619 = vmatpush.bf16.msrb.mxu1 %v10201_v42  ;;  %v10006_v42 = vld [vmem:[%s11374_s27 + $0x810] sm:$0xf0]  ;;  %v11178_v22 = vld [vmem:[%s11374_s27 + $0x894] sm:$0xf0]  ;;  %v10204_v38 = vld [vmem:[%s11374_s27 + $0x988] sm:$0xf] }
 0x2e3   : > { %6633 = vmatpush.bf16.msrb.mxu2 %v10329_v45  ;;  %v10153_v45 = vor.u32 %v11195_v24, %v10150_v49  ;;  %v5564_v8 = vpop.f32.mrf.mxu2  ;;  %v10009_v58 = vor.u32 %v11159_v47, %v10006_v42  ;;  %v11250_v24 = vld [vmem:[%s11374_s27 + $0xad4] sm:$0xf0] }
 0x2e4   : > { %6647 = vmatpush.bf16.msrb.mxu3 %v10457_v23  ;;  %v11223_v23 = vld [vmem:[%s11374_s27 + $0xa04] sm:$0xf]  ;;  %v5565_v5 = vadd.f32 %v5564_v8, %v5551_v6  ;;  %v11282_v6 = vld [vmem:[%s11374_s27 + $0xbd4] sm:$0xf0]  ;;  %v10365_v37 = vor.u32 %v11250_v24, %v10364_v19 }
 0x2e5   : > { %6606 = vmatpush.bf16.msrb.mxu0 %v10057_v63  ;;  %v5578_v63 = vpop.f32.mrf.mxu3  ;;  %v10265_v62 = vor.u32 %v11223_v23, %v10262_v28  ;;  %v11214_v42 = vld [vmem:[%s11374_s27 + $0x9b4] sm:$0xf0]  ;;  %v10093_v23 = vor.u32 %v11182_v2, %v10092_v52  ;;  %v10076_v28 = vld [vmem:[%s11374_s27 + $0x888] sm:$0xf] }
 0x2e6   : > { %6620 = vmatpush.bf16.msrb.mxu1 %v10185_v15  ;;  %v10124_v15 = vld [vmem:[%s11374_s27 + $0x8e8] sm:$0xf]  ;;  %v13583_v18 = vadd.f32 %v5578_v63, %v5565_v5  ;;  %v10477_v5 = vor.u32 %v11278_v35, %v10476_v32  ;;  %v11210_v63 = vld [vmem:[%s11374_s27 + $0x994] sm:$0xf0] }
 0x2e7   : > { %6634 = vmatpush.bf16.msrb.mxu2 %v10313_v21  ;;  %v11190_v21 = vld [vmem:[%s11374_s27 + $0x8f4] sm:$0xf0]  ;;  %v10300_v2 = vld [vmem:[%s11374_s27 + $0xa48] sm:$0xf] }
 0x2e8   : > { %6648 = vmatpush.bf16.msrb.mxu3 %v10441_v1  ;;  %v10380_v1 = vld [vmem:[%s11374_s27 + $0xae8] sm:$0xf]  ;;  %v10125_v33 = vor.u32 %v11190_v21, %v10124_v15  ;;  %v11242_v21 = vld [vmem:[%s11374_s27 + $0xa94] sm:$0xf0] }
 0x2e9   : > { %6607 = vmatpush.bf16.msrb.mxu0 %v10041_v51  ;;  %v10381_v60 = vor.u32 %v11254_v16, %v10380_v1  ;;  %v10108_v51 = vld [vmem:[%s11374_s27 + $0x8c8] sm:$0xf]  ;;  %v10077_v16 = vor.u32 %v11178_v22, %v10076_v28  ;;  %v11202_v52 = vld [vmem:[%s11374_s27 + $0x954] sm:$0xf0] }
 0x2ea   : > { %6621 = vmatpush.bf16.msrb.mxu1 %v10169_v50  ;;  %v10236_v50 = vld [vmem:[%s11374_s27 + $0x9c8] sm:$0xf]  ;;  %v10109_v49 = vor.u32 %v11186_v26, %v10108_v51  ;;  %v11206_v51 = vld [vmem:[%s11374_s27 + $0x974] sm:$0xf0] }
 0x2eb   : > { %6635 = vmatpush.bf16.msrb.mxu2 %v10297_v0  ;;  %v10509_v0 = vor.u32 %v11286_v54, %v10508_v61  ;;  %v10237_v34 = vor.u32 %v11218_v36, %v10236_v50  ;;  %v10332_v15 = vld [vmem:[%s11374_s27 + $0xa88] sm:$0xf]  ;;  %v11266_v32 = vld [vmem:[%s11374_s27 + $0xb54] sm:$0xf0] }
 0x2ec   : > { %6649 = vmatpush.bf16.msrb.mxu3 %v10425_v46  ;;  %v10492_v46 = vld [vmem:[%s11374_s27 + $0xbc8] sm:$0xf]  ;;  %v10333_v61 = vor.u32 %v11242_v21, %v10332_v15  ;;  %v11198_v21 = vld [vmem:[%s11374_s27 + $0x934] sm:$0xf0] }
 0x2ed   : > { %6608 = vmatpush.bf16.msrb.mxu0 %v10025_v57  ;;  %v10220_v57 = vld [vmem:[%s11374_s27 + $0x9a8] sm:$0xf]  ;;  %v10493_v47 = vor.u32 %v11282_v6, %v10492_v46  ;;  %v11170_v6 = vld [vmem:[%s11374_s27 + $0x854] sm:$0xf0] }
 0x2ee   : > { %6622 = vmatpush.bf16.msrb.mxu1 %v10153_v45  ;;  %v10348_v45 = vld [vmem:[%s11374_s27 + $0xaa8] sm:$0xf] }
 0x2ef   : > { %6636 = vmatpush.bf16.msrb.mxu2 %v10281_v9  ;;  %v11246_v9 = vld [vmem:[%s11374_s27 + $0xab4] sm:$0xf0]  ;;  %v10060_v54 = vld [vmem:[%s11374_s27 + $0x868] sm:$0xf] }
 0x2f0   : > { %6650 = vmatpush.bf16.msrb.mxu3 %v10409_v25  ;;  %v10221_v25 = vor.u32 %v11214_v42, %v10220_v57  ;;  %v10349_v8 = vor.u32 %v11246_v9, %v10348_v45  ;;  %v10316_v26 = vld [vmem:[%s11374_s27 + $0xa68] sm:$0xf]  ;;  %v11234_v57 = vld [vmem:[%s11374_s27 + $0xa54] sm:$0xf0] }
 0x2f1   : > { %6609 = vmatpush.bf16.msrb.mxu0 %v10009_v58  ;;  %v5590_v39 = vpop.f32.mrf.mxu0  ;;  %v10460_v58 = vld [vmem:[%s11374_s27 + $0xb88] sm:$0xf]  ;;  %v10301_v22 = vor.u32 %v11234_v57, %v10300_v2 }
 0x2f2   : > { %6623 = vmatpush.bf16.msrb.mxu1 %v10137_v10  ;;  %v5591_v1 = vadd.f32 %v5590_v39, %v13317_v29  ;;  %v5604_v10 = vpop.f32.mrf.mxu1  ;;  %v11238_v29 = vld [vmem:[%s11374_s27 + $0xa74] sm:$0xf0]  ;;  %v10444_v50 = vld [vmem:[%s11374_s27 + $0xb68] sm:$0xf] }
 0x2f3   : > { %6637 = vmatpush.bf16.msrb.mxu2 %v10265_v62  ;;  %v10205_v62 = vor.u32 %v11210_v63, %v10204_v38  ;;  %v10317_v24 = vor.u32 %v11238_v29, %v10316_v26  ;;  %v10044_v46 = vld [vmem:[%s11374_s27 + $0x848] sm:$0xf]  ;;  %v11226_v26 = vld [vmem:[%s11374_s27 + $0xa14] sm:$0xf0] }
 0x2f4   : > { %6651 = vmatpush.bf16.msrb.mxu3 %v10393_v55  ;;  %6610 = vmatmul.bf16.vlgmr.msrb.gmra.mxu0 %v13516_v14  ;;  %v11174_v55 = vld [vmem:[%s11374_s27 + $0x874] sm:$0xf0]  ;;  %v10428_v9 = vld [vmem:[%s11374_s27 + $0xb48] sm:$0xf] }
 0x2f5   : > { %6658 = vmatpush.bf16.msra.mxu0 %v10125_v33  ;;  %6624 = vmatmul.bf16.vlgmr.msrb.gmra.mxu1 %v13519_v44  ;;  %v10188_v33 = vld [vmem:[%s11374_s27 + $0x968] sm:$0xf]  ;;  %v10061_v36 = vor.u32 %v11174_v55, %v10060_v54  ;;  %v10429_v15 = vor.u32 %v11266_v32, %v10428_v9 }
 0x2f6   : > { %6672 = vmatpush.bf16.msra.mxu1 %v10253_v43  ;;  %6638 = vmatmul.bf16.vlgmr.msrb.gmra.mxu2 %v13508_v40  ;;  %v10461_v43 = vor.u32 %v11274_v13, %v10460_v58  ;;  %v10189_v19 = vor.u32 %v11206_v51, %v10188_v33  ;;  %v10028_v38 = vld [vmem:[%s11374_s27 + $0x828] sm:$0xf]  ;;  %v11230_v58 = vld [vmem:[%s11374_s27 + $0xa34] sm:$0xf0] }
 0x2f7   : > { %6686 = vmatpush.bf16.msra.mxu2 %v10381_v60  ;;  %6652 = vmatmul.bf16.vlgmr.msrb.gmra.mxu3 %v13513_v53  ;;  %v5605_v60 = vadd.f32 %v5604_v10, %v5591_v1  ;;  %v10156_v63 = vld [vmem:[%s11374_s27 + $0x928] sm:$0xf]  ;;  %v11262_v1 = vld [vmem:[%s11374_s27 + $0xb34] sm:$0xf0] }
 0x2f8   : > { %6700 = vmatpush.bf16.msra.mxu3 %v10509_v0  ;;  %v11270_v0 = vld [vmem:[%s11374_s27 + $0xb74] sm:$0xf0]  ;;  %v10284_v39 = vld [vmem:[%s11374_s27 + $0xa28] sm:$0xf] }
 0x2f9   : > { %6659 = vmatpush.bf16.msra.mxu0 %v10109_v49  ;;  %v10172_v49 = vld [vmem:[%s11374_s27 + $0x948] sm:$0xf]  ;;  %v5592_v42 = vpop.f32.mrf.mxu0  ;;  %v10285_v54 = vor.u32 %v11230_v58, %v10284_v39  ;;  %v11194_v33 = vld [vmem:[%s11374_s27 + $0x914] sm:$0xf0] }
 0x2fa   : > { %6673 = vmatpush.bf16.msra.mxu1 %v10237_v34  ;;  %v10445_v34 = vor.u32 %v11270_v0, %v10444_v50  ;;  %v5632_v45 = vpop.f32.mrf.mxu3  ;;  %v5593_v35 = vadd.f32 %v5592_v42, %v13341_v11  ;;  %v10173_v28 = vor.u32 %v11202_v52, %v10172_v49  ;;  %v10412_v13 = vld [vmem:[%s11374_s27 + $0xb28] sm:$0xf]  ;;  %v11258_v50 = vld [vmem:[%s11374_s27 + $0xb14] sm:$0xf0]  ;;  %v10254_v49 = vld [vmem:[%s11374_s27 + $0x9f8] sm:$0xf0] }
 0x2fb   : > { %6687 = vmatpush.bf16.msra.mxu2 %v10365_v37  ;;  %v5618_v37 = vpop.f32.mrf.mxu2  ;;  %v10012_v10 = vld [vmem:[%s11374_s27 + $0x808] sm:$0xf]  ;;  %v10510_v42 = vld [vmem:[%s11374_s27 + $0xbf8] sm:$0xf0] }
 0x2fc   : > { %6701 = vmatpush.bf16.msra.mxu3 %v10493_v47  ;;  %v5619_v47 = vadd.f32 %v5618_v37, %v5605_v60  ;;  %v10140_v55 = vld [vmem:[%s11374_s27 + $0x908] sm:$0xf]  ;;  %v10413_v60 = vor.u32 %v11262_v1, %v10412_v13  ;;  %v10382_v37 = vld [vmem:[%s11374_s27 + $0xaf8] sm:$0xf0]  ;;  %v11180_v13 = vld [vmem:[%s11374_s27 + $0x8ac] sm:$0xf] }
 0x2fd   : > { %6660 = vmatpush.bf16.msra.mxu0 %v10093_v23  ;;  %v10045_v23 = vor.u32 %v11170_v6, %v10044_v46  ;;  %v10396_v29 = vld [vmem:[%s11374_s27 + $0xb08] sm:$0xf]  ;;  %v11220_v46 = vld [vmem:[%s11374_s27 + $0x9ec] sm:$0xf]  ;;  %v10141_v2 = vor.u32 %v11194_v33, %v10140_v55  ;;  %v10094_v1 = vld [vmem:[%s11374_s27 + $0x8b8] sm:$0xf0] }
 0x2fe   : > { %6674 = vmatpush.bf16.msra.mxu1 %v10221_v25  ;;  %v5606_v25 = vpop.f32.mrf.mxu1  ;;  %v10257_v32 = vor.u32 %v11220_v46, %v10254_v49  ;;  %v11276_v55 = vld [vmem:[%s11374_s27 + $0xbac] sm:$0xf]  ;;  %v10478_v33 = vld [vmem:[%s11374_s27 + $0xbb8] sm:$0xf0] }
 0x2ff   : > { %6688 = vmatpush.bf16.msra.mxu2 %v10349_v8  ;;  %v13633_v8 = vadd.f32 %v5632_v45, %v5619_v47  ;;  %v5607_v11 = vadd.f32 %v5606_v25, %v5593_v35  ;;  %v11284_v47 = vld [vmem:[%s11374_s27 + $0xbec] sm:$0xf]  ;;  %v10397_v45 = vor.u32 %v11258_v50, %v10396_v29  ;;  %v10110_v25 = vld [vmem:[%s11374_s27 + $0x8d8] sm:$0xf0] }
 0x300   : > { %6702 = vmatpush.bf16.msra.mxu3 %v10477_v5  ;;  %v11166_v5 = vld [vmem:[%s11374_s27 + $0x834] sm:$0xf0]  ;;  %v10078_v29 = vld [vmem:[%s11374_s27 + $0x898] sm:$0xf0]  ;;  %v11208_v50 = vld [vmem:[%s11374_s27 + $0x98c] sm:$0xf] }
 0x301   : > { %6661 = vmatpush.bf16.msra.mxu0 %v10077_v16  ;;  %v10029_v16 = vor.u32 %v11166_v5, %v10028_v38  ;;  %v10238_v38 = vld [vmem:[%s11374_s27 + $0x9d8] sm:$0xf0]  ;;  %v11248_v5 = vld [vmem:[%s11374_s27 + $0xacc] sm:$0xf] }
 0x302   : > { %6675 = vmatpush.bf16.msra.mxu1 %v10205_v62  ;;  %v11162_v62 = vld [vmem:[%s11374_s27 + $0x814] sm:$0xf0]  ;;  %v10462_v49 = vld [vmem:[%s11374_s27 + $0xb98] sm:$0xf0] }
 0x303   : > { %6689 = vmatpush.bf16.msra.mxu2 %v10333_v61  ;;  %v10157_v61 = vor.u32 %v11198_v21, %v10156_v63  ;;  %v5620_v51 = vpop.f32.mrf.mxu2  ;;  %v10013_v6 = vor.u32 %v11162_v62, %v10012_v10  ;;  %v10366_v63 = vld [vmem:[%s11374_s27 + $0xad8] sm:$0xf0] }
 0x304   : > { %6703 = vmatpush.bf16.msra.mxu3 %v10461_v43  ;;  %v10268_v43 = vld [vmem:[%s11374_s27 + $0xa08] sm:$0xf]  ;;  %v5621_v0 = vadd.f32 %v5620_v51, %v5607_v11  ;;  %v10494_v11 = vld [vmem:[%s11374_s27 + $0xbd8] sm:$0xf0]  ;;  %v10369_v58 = vor.u32 %v11248_v5, %v10366_v63 }
 0x305   : > { %6662 = vmatpush.bf16.msra.mxu0 %v10061_v36  ;;  %v5634_v36 = vpop.f32.mrf.mxu3  ;;  %v10269_v57 = vor.u32 %v11226_v26, %v10268_v43  ;;  %v10222_v62 = vld [vmem:[%s11374_s27 + $0x9b8] sm:$0xf0]  ;;  %v10097_v43 = vor.u32 %v11180_v13, %v10094_v1  ;;  %v11176_v26 = vld [vmem:[%s11374_s27 + $0x88c] sm:$0xf] }
 0x306   : > { %6676 = vmatpush.bf16.msra.mxu1 %v10189_v19  ;;  %v11188_v19 = vld [vmem:[%s11374_s27 + $0x8ec] sm:$0xf]  ;;  %v13657_v52 = vadd.f32 %v5634_v36, %v5621_v0  ;;  %v10481_v0 = vor.u32 %v11276_v55, %v10478_v33  ;;  %v10206_v36 = vld [vmem:[%s11374_s27 + $0x998] sm:$0xf0] }
 0x307   : > { %6690 = vmatpush.bf16.msra.mxu2 %v10317_v24  ;;  %v10126_v24 = vld [vmem:[%s11374_s27 + $0x8f8] sm:$0xf0]  ;;  %v11232_v1 = vld [vmem:[%s11374_s27 + $0xa4c] sm:$0xf] }
 0x308   : > { %6704 = vmatpush.bf16.msra.mxu3 %v10445_v34  ;;  %v11252_v34 = vld [vmem:[%s11374_s27 + $0xaec] sm:$0xf]  ;;  %v10129_v9 = vor.u32 %v11188_v19, %v10126_v24  ;;  %v10334_v24 = vld [vmem:[%s11374_s27 + $0xa98] sm:$0xf0] }
 0x309   : > { %6663 = vmatpush.bf16.msra.mxu0 %v10045_v23  ;;  %v10385_v35 = vor.u32 %v11252_v34, %v10382_v37  ;;  %v11184_v23 = vld [vmem:[%s11374_s27 + $0x8cc] sm:$0xf]  ;;  %v10081_v37 = vor.u32 %v11176_v26, %v10078_v29  ;;  %v10174_v13 = vld [vmem:[%s11374_s27 + $0x958] sm:$0xf0] }
 0x30a   : > { %6677 = vmatpush.bf16.msra.mxu1 %v10173_v28  ;;  %v11216_v28 = vld [vmem:[%s11374_s27 + $0x9cc] sm:$0xf]  ;;  %v10113_v21 = vor.u32 %v11184_v23, %v10110_v25  ;;  %v10190_v23 = vld [vmem:[%s11374_s27 + $0x978] sm:$0xf0] }
 0x30b   : > { %6691 = vmatpush.bf16.msra.mxu2 %v10301_v22  ;;  %v10513_v22 = vor.u32 %v11284_v47, %v10510_v42  ;;  %v10241_v39 = vor.u32 %v11216_v28, %v10238_v38  ;;  %v11240_v19 = vld [vmem:[%s11374_s27 + $0xa8c] sm:$0xf]  ;;  %v10430_v55 = vld [vmem:[%s11374_s27 + $0xb58] sm:$0xf0] }
 0x30c   : > { %6705 = vmatpush.bf16.msra.mxu3 %v10429_v15  ;;  %v11280_v15 = vld [vmem:[%s11374_s27 + $0xbcc] sm:$0xf]  ;;  %v10337_v47 = vor.u32 %v11240_v19, %v10334_v24  ;;  %v10158_v24 = vld [vmem:[%s11374_s27 + $0x938] sm:$0xf0] }
 0x30d   : > { %6664 = vmatpush.bf16.msra.mxu0 %v10029_v16  ;;  %v11212_v16 = vld [vmem:[%s11374_s27 + $0x9ac] sm:$0xf]  ;;  %v10497_v10 = vor.u32 %v11280_v15, %v10494_v11  ;;  %v10046_v11 = vld [vmem:[%s11374_s27 + $0x858] sm:$0xf0] }
 0x30e   : > { %6678 = vmatpush.bf16.msra.mxu1 %v10157_v61  ;;  %v11244_v61 = vld [vmem:[%s11374_s27 + $0xaac] sm:$0xf] }
 0x30f   : > { %6692 = vmatpush.bf16.msra.mxu2 %v10285_v54  ;;  %v10350_v54 = vld [vmem:[%s11374_s27 + $0xab8] sm:$0xf0]  ;;  %v11172_v42 = vld [vmem:[%s11374_s27 + $0x86c] sm:$0xf] }
 0x310   : > { %6706 = vmatpush.bf16.msra.mxu3 %v10413_v60  ;;  %v10225_v60 = vor.u32 %v11212_v16, %v10222_v62  ;;  %v10353_v51 = vor.u32 %v11244_v61, %v10350_v54  ;;  %v11236_v25 = vld [vmem:[%s11374_s27 + $0xa6c] sm:$0xf]  ;;  %v10302_v16 = vld [vmem:[%s11374_s27 + $0xa58] sm:$0xf0] }
 0x311   : > { %6665 = vmatpush.bf16.msra.mxu0 %v10013_v6  ;;  %v5646_v46 = vpop.f32.mrf.mxu0  ;;  %v11272_v6 = vld [vmem:[%s11374_s27 + $0xb8c] sm:$0xf]  ;;  %v10305_v29 = vor.u32 %v11232_v1, %v10302_v16 }
 0x312   : > { %6679 = vmatpush.bf16.msra.mxu1 %v10141_v2  ;;  %v5647_v34 = vadd.f32 %v5646_v46, %v13389_v17  ;;  %v5660_v2 = vpop.f32.mrf.mxu1  ;;  %v10318_v17 = vld [vmem:[%s11374_s27 + $0xa78] sm:$0xf0]  ;;  %v11268_v28 = vld [vmem:[%s11374_s27 + $0xb6c] sm:$0xf] }
 0x313   : > { %6693 = vmatpush.bf16.msra.mxu2 %v10269_v57  ;;  %v10209_v57 = vor.u32 %v11208_v50, %v10206_v36  ;;  %v10321_v63 = vor.u32 %v11236_v25, %v10318_v17  ;;  %v11168_v15 = vld [vmem:[%s11374_s27 + $0x84c] sm:$0xf]  ;;  %v10270_v25 = vld [vmem:[%s11374_s27 + $0xa18] sm:$0xf0] }
 0x314   : > { %6707 = vmatpush.bf16.msra.mxu3 %v10397_v45  ;;  %6666 = vmatmul.bf16.vlgmr.msra.gmra.mxu0 %v13516_v14  ;;  %v10062_v45 = vld [vmem:[%s11374_s27 + $0x878] sm:$0xf0]  ;;  %v11264_v54 = vld [vmem:[%s11374_s27 + $0xb4c] sm:$0xf] }
 0x315   : > { %6714 = vmatpush.bf16.msrb.mxu0 %v10129_v9  ;;  %6680 = vmatmul.bf16.vlgmr.msra.gmra.mxu1 %v13519_v44  ;;  %v11204_v9 = vld [vmem:[%s11374_s27 + $0x96c] sm:$0xf]  ;;  %v10065_v38 = vor.u32 %v11172_v42, %v10062_v45  ;;  %v10433_v19 = vor.u32 %v11264_v54, %v10430_v55  ;;  %v10014_v42 = vld [vmem:[%s11374_s27 + $0x818] sm:$0xf0] }
 0x316   : > { %6728 = vmatpush.bf16.msrb.mxu1 %v10257_v32  ;;  %6694 = vmatmul.bf16.vlgmr.msra.gmra.mxu2 %v13508_v40  ;;  %v10465_v32 = vor.u32 %v11272_v6, %v10462_v49  ;;  %v10193_v5 = vor.u32 %v11204_v9, %v10190_v23  ;;  %v11164_v50 = vld [vmem:[%s11374_s27 + $0x82c] sm:$0xf]  ;;  %v10286_v6 = vld [vmem:[%s11374_s27 + $0xa38] sm:$0xf0] }
 0x317   : > { %6742 = vmatpush.bf16.msrb.mxu2 %v10385_v35  ;;  %6708 = vmatmul.bf16.vlgmr.msra.gmra.mxu3 %v13513_v53  ;;  %v5661_v35 = vadd.f32 %v5660_v2, %v5647_v34  ;;  %v11196_v36 = vld [vmem:[%s11374_s27 + $0x92c] sm:$0xf]  ;;  %v10414_v34 = vld [vmem:[%s11374_s27 + $0xb38] sm:$0xf0] }
 0x318   : > { %6756 = vmatpush.bf16.msrb.mxu3 %v10513_v22  ;;  %v10446_v22 = vld [vmem:[%s11374_s27 + $0xb78] sm:$0xf0]  ;;  %v11228_v46 = vld [vmem:[%s11374_s27 + $0xa2c] sm:$0xf]  ;;  %v10161_v2 = vor.u32 %v11196_v36, %v10158_v24 }
 0x319   : > { %6715 = vmatpush.bf16.msrb.mxu0 %v10113_v21  ;;  %v11200_v21 = vld [vmem:[%s11374_s27 + $0x94c] sm:$0xf]  ;;  %v5648_v62 = vpop.f32.mrf.mxu0 }
 0x31a   : > { %6729 = vmatpush.bf16.msrb.mxu1 %v10241_v39  ;;  %v10449_v39 = vor.u32 %v11268_v28, %v10446_v22  ;;  %v5688_v61 = vpop.f32.mrf.mxu3  ;;  %v5649_v33 = vadd.f32 %v5648_v62, %v13413_v59  ;;  %v10177_v26 = vor.u32 %v11200_v21, %v10174_v13  ;;  %v11260_v49 = vld [vmem:[%s11374_s27 + $0xb2c] sm:$0xf] }
 0x31b   : > { %6743 = vmatpush.bf16.msrb.mxu2 %v10369_v58  ;;  %v5674_v58 = vpop.f32.mrf.mxu2  ;;  %v11192_v45 = vld [vmem:[%s11374_s27 + $0x90c] sm:$0xf]  ;;  %v10417_v9 = vor.u32 %v11260_v49, %v10414_v34  ;;  %v3593_v49 = vrot.slane %v12924_v27, 4 }
 0x31c   : > { %6757 = vmatpush.bf16.msrb.mxu3 %v10497_v10  ;;  %v5675_v10 = vadd.f32 %v5674_v58, %v5661_v35  ;;  %v10142_v35 = vld [vmem:[%s11374_s27 + $0x918] sm:$0xf0]  ;;  %v11224_v23 = vld [vmem:[%s11374_s27 + $0xa0c] sm:$0xf] }
 0x31d   : > { %6716 = vmatpush.bf16.msrb.mxu0 %v10097_v43  ;;  %v10049_v43 = vor.u32 %v11168_v15, %v10046_v11  ;;  %v11256_v22 = vld [vmem:[%s11374_s27 + $0xb0c] sm:$0xf]  ;;  %v10145_v15 = vor.u32 %v11192_v45, %v10142_v35  ;;  %v10273_v11 = vor.u32 %v11224_v23, %v10270_v25 }
 0x31e   : > { %6730 = vmatpush.bf16.msrb.mxu1 %v10225_v60  ;;  %v5662_v60 = vpop.f32.mrf.mxu1 }
 0x31f   : > { %6744 = vmatpush.bf16.msrb.mxu2 %v10353_v51  ;;  %v13707_v51 = vadd.f32 %v5688_v61, %v5675_v10  ;;  %v5663_v59 = vadd.f32 %v5662_v60, %v5649_v33 }
 0x320   : > { %6758 = vmatpush.bf16.msrb.mxu3 %v10481_v0  ;;  %v10030_v0 = vld [vmem:[%s11374_s27 + $0x838] sm:$0xf0] }
 0x321   : > { %6717 = vmatpush.bf16.msrb.mxu0 %v10081_v37  ;;  %v10033_v37 = vor.u32 %v11164_v50, %v10030_v0 }
 0x322   : > { %6731 = vmatpush.bf16.msrb.mxu1 %v10209_v57  ;;  %v10289_v57 = vor.u32 %v11228_v46, %v10286_v6  ;;  %v5690_v28 = vpop.f32.mrf.mxu3  ;;  %v3553_v46 = vrot.slane %v12918_v48, 4 }
 0x323   : > { %6745 = vmatpush.bf16.msrb.mxu2 %v10337_v47  ;;  %v11160_v47 = vld [vmem:[%s11374_s27 + $0x80c] sm:$0xf] }
 0x324   : > { %6759 = vmatpush.bf16.msrb.mxu3 %v10465_v32  ;;  %v5676_v32 = vpop.f32.mrf.mxu2 }
 0x325   : > { %6718 = vmatpush.bf16.msrb.mxu0 %v10065_v38  ;;  %v5677_v17 = vadd.f32 %v5676_v32, %v5663_v59  ;;  %v10398_v38 = vld [vmem:[%s11374_s27 + $0xb18] sm:$0xf0]  ;;  %s11316_s27 = smov 32  }
 0x326   : > { %6732 = vmatpush.bf16.msrb.mxu1 %v10193_v5  ;;  %v10017_v5 = vor.u32 %v11160_v47, %v10014_v42  ;;  %v10401_v21 = vor.u32 %v11256_v22, %v10398_v38  ;;  %v3594_v47 = vadd.f32 %v3593_v49, %v12924_v27 }
 0x327   : > { %6746 = vmatpush.bf16.msrb.mxu2 %v10321_v63  ;;  %v13725_v63 = vadd.f32 %v5690_v28, %v5677_v17 }
 0x328   : > { %6760 = vmatpush.bf16.msrb.mxu3 %v10449_v39  ;;  %v3595_v25 = vrot.slane %v3594_v47, 2 }
 0x329   : > { %6719 = vmatpush.bf16.msrb.mxu0 %v10049_v43 }
 0x32a   : > { %6733 = vmatpush.bf16.msrb.mxu1 %v10177_v26 }
 0x32b   : > { %6747 = vmatpush.bf16.msrb.mxu2 %v10305_v29 }
 0x32c   : > { %6761 = vmatpush.bf16.msrb.mxu3 %v10433_v19 }
 0x32d   : > { %6720 = vmatpush.bf16.msrb.mxu0 %v10033_v37 }
 0x32e   : > { %6734 = vmatpush.bf16.msrb.mxu1 %v10161_v2  ;;  %v3554_v2 = vadd.f32 %v3553_v46, %v12918_v48 }
 0x32f   : > { %6748 = vmatpush.bf16.msrb.mxu2 %v10289_v57 }
 0x330   : > { %6762 = vmatpush.bf16.msrb.mxu3 %v10417_v9  ;;  %v3555_v45 = vrot.slane %v3554_v2, 2 }
 0x331   : > { %6721 = vmatpush.bf16.msrb.mxu0 %v10017_v5  ;;  %v5702_v39 = vpop.f32.mrf.mxu0 }
 0x332   : > { %6735 = vmatpush.bf16.msrb.mxu1 %v10145_v15  ;;  %v5703_v58 = vadd.f32 %v5702_v39, %v13467_v4  ;;  %v5716_v13 = vpop.f32.mrf.mxu1  ;;  %v3556_v22 = vadd.f32 %v3555_v45, %v3554_v2  ;;  %v3596_v15 = vadd.f32 %v3595_v25, %v3594_v47 }
 0x333   : > { %6749 = vmatpush.bf16.msrb.mxu2 %v10273_v11 }
 0x334   : > { %6763 = vmatpush.bf16.msrb.mxu3 %v10401_v21  ;;  %6722 = vmatmul.bf16.vlgmr.msrb.gmra.mxu0 %v13516_v14  ;;  %v5717_v1 = vadd.f32 %v5716_v13, %v5703_v58  ;;  %v3557_v21 = vrot.slane %v3556_v22, 1 }
 0x335   : > { %6736 = vmatmul.bf16.vlgmr.msrb.gmra.mxu1 %v13519_v44 }
 0x336   : > { %6750 = vmatmul.bf16.vlgmr.msrb.gmra.mxu2 %v13508_v40 }
 0x337   : > { %6764 = vmatmul.bf16.vlgmr.msrb.gmra.mxu3 %v13513_v53 }
 0x339   : > { %v5730_v16 = vpop.f32.mrf.mxu2  ;;  %v5704_v62 = vpop.f32.mrf.mxu0 }
 0x33a   : > { %v5731_v10 = vadd.f32 %v5730_v16, %v5717_v1  ;;  %v5744_v61 = vpop.f32.mrf.mxu3  ;;  %v5705_v54 = vadd.f32 %v5704_v62, %v13496_v7  ;;  %v5718_v55 = vpop.f32.mrf.mxu1  ;;  %v3558_v16 = vadd.f32 %v3557_v21, %v3556_v22 }
 0x33c   : > { %v13733_v33 = vadd.f32 %v5744_v61, %v5731_v10  ;;  %v5719_v14 = vadd.f32 %v5718_v55, %v5705_v54 }
 0x341   : > { %v5732_v44 = vpop.f32.mrf.mxu2 }
 0x342   : > { %v5733_v43 = vadd.f32 %v5732_v44, %v5719_v14  ;;  %v5746_v40 = vpop.f32.mrf.mxu3 }
 0x344   : > { %v13735_v60 = vadd.f32 %v5746_v40, %v5733_v43 }
 0x351   : > { %v6555_v53 = vpop.f32.mrf.mxu0 }
 0x352   : > { %v6569_v26 = vpop.f32.mrf.mxu1 }
 0x353   : > { %v6570_v4 = vadd.f32 %v6569_v26, %v6555_v53 }
 0x359   : > { %v6583_v29 = vpop.f32.mrf.mxu2  ;;  %v6557_v19 = vpop.f32.mrf.mxu0 }
 0x35a   : > { %v6584_v50 = vadd.f32 %v6583_v29, %v6570_v4  ;;  %v6597_v0 = vpop.f32.mrf.mxu3  ;;  %v6571_v59 = vpop.f32.mrf.mxu1 }
 0x35b   : > { %v6572_v24 = vadd.f32 %v6571_v59, %v6557_v19  ;;  %v3600_v19 = vrot.slane %v13005_v30, 4 }
 0x35c   : > { %v6598_v36 = vadd.f32 %v6597_v0, %v6584_v50  ;;  %v3560_v0 = vrot.slane %v12999_v56, 4 }
 0x35d   : > { %v3601_v46 = vadd.f32 %v3600_v19, %v13005_v30 }
 0x35e   : > { %v6770_v7 = vadd.f32 %v6598_v36, %v13559_v41 }
 0x360   : > { %6850 = vst [vmem:[#allocation3 + $0x68] sm:$0xff] %v6770_v7  ;;  %v6810_v9 = vmul.f32 %v6770_v7, %v6770_v7 }
 0x361   : > { %v6585_v6 = vpop.f32.mrf.mxu2 }
 0x362   : > { %v6586_v34 = vadd.f32 %v6585_v6, %v6572_v24  ;;  %v6599_v37 = vpop.f32.mrf.mxu3 }
 0x364   : > { %v6600_v57 = vadd.f32 %v6599_v37, %v6586_v34 }
 0x366   : > { %v6774_v42 = vadd.f32 %v6600_v57, %v13583_v18  ;;  %v3597_v18 = vrot.slane %v3596_v15, 1 }
 0x368   : > { %v6778_v32 = vadd.f32 %v6774_v42, %v6770_v7  ;;  %v6814_v41 = vmul.f32 %v6774_v42, %v6774_v42  ;;  %6854 = vst [vmem:[#allocation3 + $0x40] sm:$0xff] %v6774_v42  ;;  %v3598_v54 = vadd.f32 %v3597_v18, %v3596_v15  ;;  %v3602_v42 = vrot.slane %v3601_v46, 2 }
 0x36a   : > { %v6779_v35 = vrot.slane %v6778_v32, 4  ;;  %v6818_v23 = vadd.f32 %v6814_v41, %v6810_v9 }
 0x36c   : > { %v6780_v17 = vadd.f32 %v6779_v35, %v6778_v32  ;;  %v6819_v28 = vrot.slane %v6818_v23, 4 }
 0x36e   : > { %v6781_v38 = vrot.slane %v6780_v17, 2  ;;  %v6820_v5 = vadd.f32 %v6819_v28, %v6818_v23  ;;  %v3603_v23 = vadd.f32 %v3602_v42, %v3601_v46 }
 0x370   : > { %v6782_v48 = vadd.f32 %v6781_v38, %v6780_v17  ;;  %v6821_v11 = vrot.slane %v6820_v5, 2 }
 0x371   : > { %v6611_v27 = vpop.f32.mrf.mxu0 }
 0x372   : > { %v6783_v39 = vrot.slane %v6782_v48, 1  ;;  %v6822_v58 = vadd.f32 %v6821_v11, %v6820_v5  ;;  %v6625_v13 = vpop.f32.mrf.mxu1 }
 0x373   : > { %v6626_v1 = vadd.f32 %v6625_v13, %v6611_v27 }
 0x374   : > { %v6784_v10 = vadd.f32 %v6783_v39, %v6782_v48  ;;  %v6823_v62 = vrot.slane %v6822_v58, 1 }
 0x376   : > { %v13743_v61 = vadd.f32 %v6784_v10, %v3558_v16  ;;  %v6824_v55 = vadd.f32 %v6823_v62, %v6822_v58 }
 0x378   : > { %6878 = vrot.lane.b32.xlu2 %v13743_v61, %s11316_s27  ;;  %6870 = vrot.lane.b32.xlu1 %v13743_v61, %s11317_s15  ;;  %v13749_v40 = vadd.f32 %v6824_v55, %v3598_v54 }
 0x379   : > { %v6639_v14 = vpop.f32.mrf.mxu2  ;;  %6861 = vrot.lane.b32.xlu0 %v13743_v61, %s11318_s16  ;;  %v6613_v26 = vpop.f32.mrf.mxu0 }
 0x37a   : > { %v6640_v44 = vadd.f32 %v6639_v14, %v6626_v1  ;;  %v6653_v43 = vpop.f32.mrf.mxu3  ;;  %v6627_v4 = vpop.f32.mrf.mxu1  ;;  %v3567_v14 = vrot.slane %v13080_v3, 4 }
 0x37b   : > { %v6628_v50 = vadd.f32 %v6627_v4, %v6613_v26 }
 0x37c   : > { %v6654_v53 = vadd.f32 %v6653_v43, %v6640_v44  ;;  %v3607_v43 = vrot.slane %v13086_v20, 4 }
 0x37e   : > { %v6771_v29 = vadd.f32 %v6654_v53, %v13633_v8  ;;  %v3561_v8 = vadd.f32 %v3560_v0, %v12999_v56 }
 0x380   : > { %6851 = vst [vmem:[#allocation3 + $0x28] sm:$0xff] %v6771_v29  ;;  %6882 = vrot.lane.b32.xlu2 %v13749_v40, %s11316_s27  ;;  %6874 = vrot.lane.b32.xlu1 %v13749_v40, %s11317_s15  ;;  %v3562_v49 = vrot.slane %v3561_v8, 2  ;;  %v6811_v34 = vmul.f32 %v6771_v29, %v6771_v29 }
 0x381   : > { %v6641_v36 = vpop.f32.mrf.mxu2  ;;  %6866 = vrot.lane.b32.xlu0 %v13749_v40, %s11318_s16 }
 0x382   : > { %v6642_v59 = vadd.f32 %v6641_v36, %v6628_v50  ;;  %v6655_v7 = vpop.f32.mrf.mxu3  ;;  %v3563_v32 = vadd.f32 %v3562_v49, %v3561_v8 }
 0x384   : > { %v6656_v24 = vadd.f32 %v6655_v7, %v6642_v59  ;;  %v3564_v17 = vrot.slane %v3563_v32, 1 }
 0x386   : > { %v6775_v6 = vadd.f32 %v6656_v24, %v13657_v52  ;;  %v3604_v52 = vrot.slane %v3603_v23, 1  ;;  %v3565_v15 = vadd.f32 %v3564_v17, %v3563_v32 }
 0x388   : > { %v6785_v37 = vadd.f32 %v6775_v6, %v6771_v29  ;;  %v6815_v2 = vmul.f32 %v6775_v6, %v6775_v6  ;;  %6855 = vst [vmem:[#allocation3 + $0x78] sm:$0xff] %v6775_v6  ;;  %v3605_v27 = vadd.f32 %v3604_v52, %v3603_v23  ;;  %v3608_v29 = vadd.f32 %v3607_v43, %v13086_v20 }
 0x38a   : > { %v6786_v57 = vrot.slane %v6785_v37, 4  ;;  %v6825_v47 = vadd.f32 %v6815_v2, %v6811_v34  ;;  %v3609_v24 = vrot.slane %v3608_v29, 2 }
 0x38c   : > { %v6787_v45 = vadd.f32 %v6786_v57, %v6785_v37  ;;  %v6826_v9 = vrot.slane %v6825_v47, 4  ;;  %v3610_v2 = vadd.f32 %v3609_v24, %v3608_v29 }
 0x38e   : > { %v6788_v41 = vrot.slane %v6787_v45, 2  ;;  %v6827_v35 = vadd.f32 %v6826_v9, %v6825_v47 }
 0x390   : > { %v6789_v56 = vadd.f32 %v6788_v41, %v6787_v45  ;;  %v6828_v25 = vrot.slane %v6827_v35, 2  ;;  %v3611_v45 = vrot.slane %v3610_v2, 1 }
 0x391   : > { %v6667_v30 = vpop.f32.mrf.mxu0 }
 0x392   : > { %v6790_v28 = vrot.slane %v6789_v56, 1  ;;  %v6829_v22 = vadd.f32 %v6828_v25, %v6827_v35  ;;  %v6681_v38 = vpop.f32.mrf.mxu1  ;;  %v3612_v25 = vadd.f32 %v3611_v45, %v3610_v2 }
 0x393   : > { %v6682_v5 = vadd.f32 %v6681_v38, %v6667_v30 }
 0x394   : > { %v6791_v48 = vadd.f32 %v6790_v28, %v6789_v56  ;;  %v6830_v11 = vrot.slane %v6829_v22, 1 }
 0x396   : > { %v13765_v21 = vadd.f32 %v6791_v48, %v3565_v15  ;;  %v6831_v39 = vadd.f32 %v6830_v11, %v6829_v22  ;;  %v3574_v11 = vrot.slane %v13189_v12, 4 }
 0x398   : > { %6898 = vrot.lane.b32.xlu2 %v13765_v21, %s11317_s15  ;;  %6906 = vrot.lane.b32.xlu1 %v13765_v21, %s11316_s27  ;;  %v13771_v1 = vadd.f32 %v6831_v39, %v3605_v27 }
 0x399   : > { %v6695_v18 = vpop.f32.mrf.mxu2  ;;  %6889 = vrot.lane.b32.xlu0 %v13765_v21, %s11318_s16  ;;  %v6669_v10 = vpop.f32.mrf.mxu0 }
 0x39a   : > { %v6696_v58 = vadd.f32 %v6695_v18, %v6682_v5  ;;  %v6709_v13 = vpop.f32.mrf.mxu3  ;;  %v6683_v62 = vpop.f32.mrf.mxu1  ;;  %v3614_v18 = vrot.slane %v13201_v31, 4 }
 0x39b   : > { %v6684_v55 = vadd.f32 %v6683_v62, %v6669_v10 }
 0x39c   : > { %v6710_v16 = vadd.f32 %v6709_v13, %v6696_v58  ;;  %v3615_v10 = vadd.f32 %v3614_v18, %v13201_v31 }
 0x39e   : > { %v6772_v54 = vadd.f32 %v6710_v16, %v13707_v51  ;;  %v3568_v51 = vadd.f32 %v3567_v14, %v13080_v3 }
 0x3a0   : > { %6852 = vst [vmem:[#allocation3] sm:$0xff] %v6772_v54  ;;  %6910 = vrot.lane.b32.xlu2 %v13771_v1, %s11316_s27  ;;  %6894 = vrot.lane.b32.xlu1 %v13771_v1, %s11318_s16  ;;  %v3569_v0 = vrot.slane %v3568_v51, 2  ;;  %v6812_v36 = vmul.f32 %v6772_v54, %v6772_v54 }
 0x3a1   : > { %v6697_v44 = vpop.f32.mrf.mxu2  ;;  %6902 = vrot.lane.b32.xlu0 %v13771_v1, %s11317_s15 }
 0x3a2   : > { %v6698_v53 = vadd.f32 %v6697_v44, %v6684_v55  ;;  %v6711_v26 = vpop.f32.mrf.mxu3  ;;  %v3570_v49 = vadd.f32 %v3569_v0, %v3568_v51 }
 0x3a4   : > { %v6712_v4 = vadd.f32 %v6711_v26, %v6698_v53  ;;  %v3571_v47 = vrot.slane %v3570_v49, 1  ;;  %v3616_v26 = vrot.slane %v3615_v10, 2 }
 0x3a6   : > { %v6776_v50 = vadd.f32 %v6712_v4, %v13725_v63  ;;  %v3572_v41 = vadd.f32 %v3571_v47, %v3570_v49 }
 0x3a8   : > { %v6792_v19 = vadd.f32 %v6776_v50, %v6772_v54  ;;  %v6816_v59 = vmul.f32 %v6776_v50, %v6776_v50  ;;  %6856 = vst [vmem:[#allocation3 + $0x20] sm:$0xff] %v6776_v50 }
 0x3aa   : > { %v6793_v7 = vrot.slane %v6792_v19, 4  ;;  %v6832_v8 = vadd.f32 %v6816_v59, %v6812_v36  ;;  %v3617_v36 = vadd.f32 %v3616_v26, %v3615_v10 }
 0x3ac   : > { %v6794_v46 = vadd.f32 %v6793_v7, %v6792_v19  ;;  %v6833_v6 = vrot.slane %v6832_v8, 4  ;;  %v3618_v7 = vrot.slane %v3617_v36, 1 }
 0x3ae   : > { %v6795_v34 = vrot.slane %v6794_v46, 2  ;;  %v6834_v37 = vadd.f32 %v6833_v6, %v6832_v8  ;;  %v3619_v49 = vadd.f32 %v3618_v7, %v3617_v36 }
 0x3b0   : > { %v6796_v3 = vadd.f32 %v6795_v34, %v6794_v46  ;;  %v6835_v57 = vrot.slane %v6834_v37, 2 }
 0x3b1   : > { %v6723_v20 = vpop.f32.mrf.mxu0 }
 0x3b2   : > { %v6737_v42 = vpop.f32.mrf.mxu1  ;;  %v6797_v63 = vrot.slane %v6796_v3, 1  ;;  %v6836_v9 = vadd.f32 %v6835_v57, %v6834_v37 }
 0x3b3   : > { %v6738_v32 = vadd.f32 %v6737_v42, %v6723_v20 }
 0x3b4   : > { %v6798_v35 = vadd.f32 %v6797_v63, %v6796_v3  ;;  %v6837_v23 = vrot.slane %v6836_v9, 1 }
 0x3b6   : > { %v13787_v56 = vadd.f32 %v6798_v35, %v3572_v41  ;;  %v6838_v17 = vadd.f32 %v6837_v23, %v6836_v9 }
 0x3b8   : > { %6926 = vrot.lane.b32.xlu2 %v13787_v56, %s11317_s15  ;;  %6934 = vrot.lane.b32.xlu1 %v13787_v56, %s11316_s27  ;;  %v13793_v22 = vadd.f32 %v6838_v17, %v3612_v25 }
 0x3b9   : > { %v6751_v30 = vpop.f32.mrf.mxu2  ;;  %6917 = vrot.lane.b32.xlu0 %v13787_v56, %s11318_s16  ;;  %v6725_v5 = vpop.f32.mrf.mxu0 }
 0x3ba   : > { %v6752_v28 = vadd.f32 %v6751_v30, %v6738_v32  ;;  %v6765_v52 = vpop.f32.mrf.mxu3  ;;  %v6739_v15 = vpop.f32.mrf.mxu1 }
 0x3bb   : > { %v6740_v27 = vadd.f32 %v6739_v15, %v6725_v5 }
 0x3bc   : > { %v6766_v38 = vadd.f32 %v6765_v52, %v6752_v28 }
 0x3be   : > { %v6773_v48 = vadd.f32 %v6766_v38, %v13733_v33  ;;  %v3575_v33 = vadd.f32 %v3574_v11, %v13189_v12 }
 0x3c0   : > { %6853 = vst [vmem:[#allocation3 + $0x18] sm:$0xff] %v6773_v48  ;;  %6938 = vrot.lane.b32.xlu2 %v13793_v22, %s11316_s27  ;;  %6922 = vrot.lane.b32.xlu1 %v13793_v22, %s11318_s16  ;;  %v3576_v54 = vrot.slane %v3575_v33, 2  ;;  %v6813_v55 = vmul.f32 %v6773_v48, %v6773_v48 }
 0x3c1   : > { %v6753_v39 = vpop.f32.mrf.mxu2  ;;  %6930 = vrot.lane.b32.xlu0 %v13793_v22, %s11317_s15 }
 0x3c2   : > { %v6754_v58 = vadd.f32 %v6753_v39, %v6740_v27  ;;  %v6767_v13 = vpop.f32.mrf.mxu3  ;;  %v3577_v29 = vadd.f32 %v3576_v54, %v3575_v33 }
 0x3c4   : > { %v6768_v16 = vadd.f32 %v6767_v13, %v6754_v58  ;;  %v3578_v59 = vrot.slane %v3577_v29, 1 }
 0x3c6   : > { %v6777_v62 = vadd.f32 %v6768_v16, %v13735_v60  ;;  %v3579_v8 = vadd.f32 %v3578_v59, %v3577_v29 }
 0x3c8   : > { %v6799_v14 = vadd.f32 %v6777_v62, %v6773_v48  ;;  %v6817_v44 = vmul.f32 %v6777_v62, %v6777_v62  ;;  %6857 = vst [vmem:[#allocation3 + $0x70] sm:$0xff] %v6777_v62 }
 0x3ca   : > { %v6800_v43 = vrot.slane %v6799_v14, 4  ;;  %v6839_v53 = vadd.f32 %v6817_v44, %v6813_v55 }
 0x3cc   : > { %v6801_v51 = vadd.f32 %v6800_v43, %v6799_v14  ;;  %v6840_v4 = vrot.slane %v6839_v53, 4 }
 0x3ce   : > { %v6802_v50 = vrot.slane %v6801_v51, 2  ;;  %v6841_v0 = vadd.f32 %v6840_v4, %v6839_v53 }
 0x3d0   : > { %v6803_v12 = vadd.f32 %v6802_v50, %v6801_v51  ;;  %v6842_v19 = vrot.slane %v6841_v0, 2 }
 0x3d2   : > { %v6804_v31 = vrot.slane %v6803_v12, 1  ;;  %v6843_v60 = vadd.f32 %v6842_v19, %v6841_v0  ;;  %v6879_v3 = vpop.permute.xlu2 %6878 }
 0x3d4   : > { %v6805_v24 = vadd.f32 %v6804_v31, %v6803_v12  ;;  %v6844_v46 = vrot.slane %v6843_v60, 1 }
 0x3d6   : > { %v6809_v6 = vadd.f32 %v6805_v24, %v3579_v8  ;;  %v6845_v34 = vadd.f32 %v6844_v46, %v6843_v60 }
 0x3d8   : > { %6954 = vrot.lane.b32.xlu2 %v6809_v6, %s11317_s15  ;;  %6945 = vrot.lane.b32.xlu0 %v6809_v6, %s11318_s16  ;;  %v6849_v37 = vadd.f32 %v6845_v34, %v3619_v49 }
 0x3da   : > { %6950 = vrot.lane.b32.xlu1 %v6849_v37, %s11318_s16  ;;  %v6883_v20 = vpop.permute.xlu2 %6882 }
 0x3e0   : > { %6966 = vrot.lane.b32.xlu2 %v6849_v37, %s11316_s27  ;;  %6958 = vrot.lane.b32.xlu0 %v6849_v37, %s11317_s15 }
 0x3e2   : > { %6962 = vrot.lane.b32.xlu1 %v6809_v6, %s11316_s27 }
 0x3ea   : > { %v6871_v2 = vpop.permute.xlu1 %6870 }
 0x3eb   : > { %v6862_v57 = vpop.permute.xlu0 %6861 }
 0x3ec   : > { %v6864_v45 = vadd.f32 %v6862_v57, %v13743_v61 }
 0x3ee   : > { %v6873_v35 = vadd.f32 %v6871_v2, %v6864_v45 }
 0x3f0   : > { %v6881_v25 = vadd.f32 %v6879_v3, %v6873_v35 }
 0x3f2   : > { %v6875_v47 = vpop.permute.xlu1 %6874  ;;  %v6899_v9 = vpop.permute.xlu2 %6898  ;;  %v6886_v38 = vadd.f32 %v6881_v25, %v13765_v21 }
 0x3f3   : > { %v6867_v42 = vpop.permute.xlu0 %6866 }
 0x3f4   : > { %v6869_v41 = vadd.f32 %v6867_v42, %v13749_v40 }
 0x3f6   : > { %v6877_v23 = vadd.f32 %v6875_v47, %v6869_v41 }
 0x3f8   : > { %v6885_v30 = vadd.f32 %v6883_v20, %v6877_v23 }
 0x3fa   : > { %v6911_v28 = vpop.permute.xlu2 %6910  ;;  %v6887_v15 = vadd.f32 %v6885_v30, %v13771_v1 }
 0x40a   : > { %v6907_v63 = vpop.permute.xlu1 %6906 }
 0x40b   : > { %v6890_v32 = vpop.permute.xlu0 %6889 }
 0x40c   : > { %v6892_v5 = vadd.f32 %v6890_v32, %v6886_v38 }
 0x40e   : > { %v6901_v27 = vadd.f32 %v6899_v9, %v6892_v5 }
 0x410   : > { %v6909_v58 = vadd.f32 %v6907_v63, %v6901_v27 }
 0x412   : > { %v6895_v17 = vpop.permute.xlu1 %6894  ;;  %v6927_v61 = vpop.permute.xlu2 %6926  ;;  %v6914_v13 = vadd.f32 %v6909_v58, %v13787_v56 }
 0x413   : > { %v6903_v52 = vpop.permute.xlu0 %6902  ;;  %v6897_v48 = vadd.f32 %v6895_v17, %v6887_v15 }
 0x415   : > { %v6905_v18 = vadd.f32 %v6903_v52, %v6897_v48 }
 0x417   : > { %v6913_v40 = vadd.f32 %v6911_v28, %v6905_v18 }
 0x419   : > { %v6915_v10 = vadd.f32 %v6913_v40, %v13793_v22 }
 0x41a   : > { %v6939_v62 = vpop.permute.xlu2 %6938 }
 0x42a   : > { %v6935_v11 = vpop.permute.xlu1 %6934 }
 0x42b   : > { %v6918_v39 = vpop.permute.xlu0 %6917 }
 0x42c   : > { %v6920_v16 = vadd.f32 %v6918_v39, %v6914_v13 }
 0x42e   : > { %v6929_v55 = vadd.f32 %v6927_v61, %v6920_v16 }
 0x430   : > { %v6937_v1 = vadd.f32 %v6935_v11, %v6929_v55 }
 0x432   : > { %v6923_v33 = vpop.permute.xlu1 %6922  ;;  %v6955_v44 = vpop.permute.xlu2 %6954  ;;  %v6942_v51 = vadd.f32 %v6937_v1, %v6809_v6 }
 0x433   : > { %v6931_v54 = vpop.permute.xlu0 %6930  ;;  %v6925_v21 = vadd.f32 %v6923_v33, %v6915_v10 }
 0x435   : > { %v6933_v14 = vadd.f32 %v6931_v54, %v6925_v21 }
 0x437   : > { %v6941_v53 = vadd.f32 %v6939_v62, %v6933_v14 }
 0x439   : > { %v6943_v29 = vadd.f32 %v6941_v53, %v6849_v37 }
 0x43a   : > { %v6967_v12 = vpop.permute.xlu2 %6966 }
 0x44a   : > { %v6946_v43 = vpop.permute.xlu0 %6945 }
 0x44b   : > { %v6948_v4 = vadd.f32 %v6946_v43, %v6942_v51 }
 0x44c   : > { %v6951_v26 = vpop.permute.xlu1 %6950 }
 0x44d   : > { %v6953_v50 = vadd.f32 %v6951_v26, %v6943_v29  ;;  %v6957_v36 = vadd.f32 %v6955_v44, %v6948_v4 }
 0x452   : > { %v6959_v0 = vpop.permute.xlu0 %6958 }
 0x453   : > { %v6961_v56 = vadd.f32 %v6959_v0, %v6953_v50 }
 0x454   : > { %v6963_v19 = vpop.permute.xlu1 %6962 }
 0x455   : > { %v6969_v22 = vadd.f32 %v6967_v12, %v6961_v56  ;;  %v6965_v59 = vadd.f32 %v6963_v19, %v6957_v36 }
 0x457   : > { %v13821_v31 = vmul.f32 0.001953125, %v6965_v59  ;;  %v6971_v7 = vmul.f32 0.001953125, %v6969_v22  ;;  %6976 = sbr.rel (%p7441_p4) target bundleno = 1302 (0x516), region = 52 }
 0x459   : > { %v6972_v60 = vmul.f32 %v13821_v31, %v13821_v31 }
 0x45b   : > { %v13825_v8 = vsub.f32 %v6971_v7, %v6972_v60 }
 0x45c   : > { %v6977_v2 = vld [vmem:[%s14111_s2] sm:$0x1]  ;;  %vm7004_vm6 = vcmask 261120   ;;  %vm7006_vm4 = vcmask 523264   ;;  %vm7008_vm2 = vcmask 785408   ;;  %v7024_v28 = vld [vmem:[#allocation3 + $0x48] sm:$0xff] }
 0x45d   : > { %v6979_v24 = vadd.f32 1e-05, %v13825_v8  ;;  %v6978_v20 = vld [vmem:[%s14112_s3] sm:$0x1]  ;;  %v7026_v38 = vld [vmem:[#allocation3 + $0x8] sm:$0xff]  ;;  %v7027_v48 = vld [vmem:[#allocation3 + $0x58] sm:$0xff] }
 0x45e   : > { %v7025_v52 = vld [vmem:[#allocation3 + $0x50] sm:$0xff]  ;;  %v7028_v11 = vld [vmem:[#allocation3 + $0x38] sm:$0xff]  ;;  %v7031_v18 = vld [vmem:[#allocation3 + $0x60] sm:$0xff]  ;;  %vm7105_vm9 = vcmask 1043456   ;;  %vm7106_vm10 = vsmask.f32 7938 }
 0x45f   : > { %11304 = vrsqrt.f32 %v6979_v24  ;;  %vm6986_vm14 = vweird.f32 %v6979_v24  ;;  %v7029_v27 = vld [vmem:[#allocation3 + $0x10] sm:$0xff]  ;;  %v7132_v58 = vld [vmem:[#allocation3 + $0x68] sm:$0xff]  ;;  %vm7109_vm1 = vsmask.f32 7954  ;;  %vm7062_vm8 = vsmask.f32 256 }
 0x460   : > { %v7030_v39 = vld [vmem:[#allocation3 + $0x30] sm:$0xff]  ;;  %v7133_v33 = vld [vmem:[#allocation3 + $0x28] sm:$0xff]  ;;  %vm7108_vm11 = vcmask 1047556   ;;  %vm7120_vm3 = vcmask 1040384   ;;  %v7134_v10 = vld [vmem:[#allocation3] sm:$0xff]  ;;  %vm7122_vm15 = vcmask 1044484  }
 0x461   : > { %v7135_v62 = vld [vmem:[#allocation3 + $0x18] sm:$0xff]  ;;  %v7136_v54 = vld [vmem:[#allocation3 + $0x40] sm:$0xff]  ;;  %vm7123_vm13 = vsmask.f32 4352  ;;  %v7139_v26 = vld [vmem:[#allocation3 + $0x70] sm:$0xff]  ;;  %vm7215_vm12 = vcmask 1043457  }
 0x462   : > { %v7137_v43 = vld [vmem:[#allocation3 + $0x78] sm:$0xff]  ;;  %v7138_v53 = vld [vmem:[#allocation3 + $0x20] sm:$0xff]  ;;  %vm7063_vm5 = vsmask.f32 4368 }
 0x465   : > { %v11305_v46 = vpop.eup %11304 }
 0x466   : > { %v6981_v6 = vmul.f32 %v11305_v46, %v6979_v24  ;;  %vm6987_vm0 = vweird.f32 %v11305_v46 }
 0x467   : > { %vm6988_vm7 = vmor %vm6986_vm14, %vm6987_vm0  ;;  %vm7216_vm14 = vsmask.f32 7942 }
 0x468   : > { %v6982_v49 = vmul.f32 %v11305_v46, %v6981_v6  ;;  %vm13853_vm0 = vmand %vm7105_vm9, %vm7106_vm10 }
 0x469   : > { %vm13875_vm9 = vmand %vm7122_vm15, %vm7123_vm13 }
 0x46a   : > { %v6983_v34 = vmul.f32 0.5, %v6982_v49  ;;  %vm13881_vm10 = vmor %vm7062_vm8, %vm7063_vm5  ;;  %vm7230_vm5 = vcmask 1041408  }
 0x46b   : > { %vm13918_vm15 = vmand %vm7215_vm12, %vm7216_vm14  ;;  %vm7232_vm12 = vcmask 1045508   ;;  %vm7233_vm14 = vsmask.f32 5376 }
 0x46c   : > { %v6984_v37 = vsub.f32 1.5, %v6983_v34 }
 0x46e   : > { %v6985_v3 = vmul.f32 %v11305_v46, %v6984_v37 }
 0x470   : > { %v6989_v57 = vsel %vm6988_vm7, %v11305_v46, %v6985_v3  ;;  %vm7218_vm7 = vcmask 1047557  }
 0x471   : > { %v6990_v47 = vmul.f32 %v6989_v57, %v6977_v2 }
 0x473   : > { %v6994_v42 = vperm.slane %v6990_v47, 0  ;;  %v6991_v63 = vmul.f32 %v6990_v47, %v13821_v31 }
 0x475   : > { %7001 = vrot.lane.b32.xlu1 %v6994_v42, %s11319_s23  ;;  %6995 = vrot.lane.b32.xlu0 %v6994_v42, %s11320_s24  ;;  %v6992_v45 = vsub.f32 %v6978_v20, %v6991_v63 }
 0x477   : > { %v7011_v9 = vperm.slane %v6992_v45, 0 }
 0x479   : > { %7015 = vrot.lane.b32.xlu2 %v7011_v9, %s11321_s25 }
 0x47d   : > { %6998 = vrot.lane.b32.xlu0 %v6994_v42, %s11321_s25  ;;  %7012 = vrot.lane.b32.xlu1 %v7011_v9, %s11320_s24 }
 0x481   : > { %7018 = vrot.lane.b32.xlu2 %v7011_v9, %s11319_s23 }
 0x4d3   : > { %v7016_v32 = vpop.permute.xlu2 %7015 }
 0x4db   : > { %v7019_v23 = vpop.permute.xlu2 %7018 }
 0x4e7   : > { %v7002_v41 = vpop.permute.xlu1 %7001  ;;  %v6996_v35 = vpop.permute.xlu0 %6995 }
 0x4e8   : > { %v7005_v25 = vsel %vm7004_vm6, %v6990_v47, %v6996_v35 }
 0x4ef   : > { %v6999_v17 = vpop.permute.xlu0 %6998  ;;  %v7013_v30 = vpop.permute.xlu1 %7012 }
 0x4f0   : > { %v7007_v5 = vsel %vm7006_vm4, %v7005_v25, %v6999_v17  ;;  %v7021_v15 = vsel %vm7004_vm6, %v6992_v45, %v7013_v30  ;;  %vm7219_vm6 = vsmask.f32 7958 }
 0x4f1   : > { %v7009_v61 = vsel %vm7008_vm2, %v7007_v5, %v7002_v41  ;;  %v7022_v40 = vsel %vm7006_vm4, %v7021_v15, %v7016_v32  ;;  %vm13861_vm4 = vmand %vm7108_vm11, %vm7109_vm1  ;;  %vm7168_vm1 = vsmask.f32 1280  ;;  %v7222_v5 = vld [vmem:[#allocation2 + $0x28] sm:$0xee] }
 0x4f2   : > { %v7032_v13 = vperm.slane %v7009_v61, 0  ;;  %v7023_v16 = vsel %vm7008_vm2, %v7022_v40, %v7019_v23  ;;  %vm13869_vm2 = vmand %vm7120_vm3, %vm7062_vm8  ;;  %vm7169_vm3 = vsmask.f32 5392 }
 0x4f3   : > { %v13841_v21 = vperm.slane %v7023_v16, 0  ;;  %vm7111_vm11 = vmor %vm13861_vm4, %vm13853_vm0 }
 0x4f4   : > { %v7033_v55 = vmul.f32 %v7032_v13, %v7024_v28  ;;  %v7034_v14 = vmul.f32 %v7032_v13, %v7025_v52  ;;  %v7035_v1 = vmul.f32 %v7032_v13, %v7026_v38  ;;  %v7036_v44 = vmul.f32 %v7032_v13, %v7027_v48  ;;  %vm7125_vm8 = vmor %vm13875_vm9, %vm13869_vm2 }
 0x4f5   : > { %v7037_v51 = vmul.f32 %v7032_v13, %v7028_v11  ;;  %v7038_v4 = vmul.f32 %v7032_v13, %v7029_v27  ;;  %v7039_v29 = vmul.f32 %v7032_v13, %v7030_v39  ;;  %v7040_v50 = vmul.f32 %v7032_v13, %v7031_v18  ;;  %vm13924_vm13 = vmand %vm7218_vm7, %vm7219_vm6 }
 0x4f6   : > { %v7140_v0 = vmul.f32 %v7132_v58, %v7032_v13  ;;  %v7141_v56 = vmul.f32 %v7133_v33, %v7032_v13  ;;  %v7142_v36 = vmul.f32 %v7134_v10, %v7032_v13  ;;  %v7143_v12 = vmul.f32 %v7135_v62, %v7032_v13  ;;  %vm7221_vm0 = vmor %vm13924_vm13, %vm13918_vm15 }
 0x4f7   : > { %v7144_v19 = vmul.f32 %v7136_v54, %v7032_v13  ;;  %v7145_v22 = vmul.f32 %v7137_v43, %v7032_v13  ;;  %v7146_v59 = vmul.f32 %v7138_v53, %v7032_v13  ;;  %v7147_v7 = vmul.f32 %v7139_v26, %v7032_v13  ;;  %v7112_v54 = vld [vmem:[#allocation2 + $0x40] sm:$0xff]  ;;  %v7126_v53 = vld [vmem:[#allocation2 + $0x28] sm:$0x11]  ;;  %vm13939_vm7 = vmand %vm7230_vm5, %vm7168_vm1 }
 0x4f8   : > { %v7042_v60 = vadd.f32 %v13841_v21, %v7033_v55  ;;  %v7043_v24 = vadd.f32 %v13841_v21, %v7034_v14  ;;  %v7044_v46 = vadd.f32 %v13841_v21, %v7035_v1  ;;  %v7045_v6 = vadd.f32 %v13841_v21, %v7036_v44  ;;  %v7115_v55 = vld [vmem:[#allocation2] sm:$0xff]  ;;  %vm13945_vm6 = vmand %vm7232_vm12, %vm7233_vm14 }
 0x4f9   : > { %v7046_v49 = vadd.f32 %v13841_v21, %v7037_v51  ;;  %v7047_v34 = vadd.f32 %v13841_v21, %v7038_v4  ;;  %v7048_v37 = vadd.f32 %v13841_v21, %v7039_v29  ;;  %v7049_v2 = vadd.f32 %v13841_v21, %v7040_v50  ;;  %vm13951_vm4 = vmor %vm7168_vm1, %vm7169_vm3 }
 0x4fa   : > { %v7050_v3 = vmax.f32 %v7042_v60, 0.0  ;;  %v7051_v57 = vmax.f32 %v7043_v24, 0.0  ;;  %v7052_v47 = vmax.f32 %v7044_v46, 0.0  ;;  %v7053_v20 = vmax.f32 %v7045_v6, 0.0  ;;  %vm7235_vm2 = vmor %vm13945_vm6, %vm13939_vm7 }
 0x4fb   : > { %v7054_v42 = vmax.f32 %v7046_v49, 0.0  ;;  %v7055_v63 = vmax.f32 %v7047_v34, 0.0  ;;  %v7056_v45 = vmax.f32 %v7048_v37, 0.0  ;;  %v7057_v9 = vmax.f32 %v7049_v2, 0.0 }
 0x4fc   : > { %v7058_v41 = vpack.c.bf16 %v7051_v57, %v7050_v3  ;;  %v7059_v35 = vpack.c.bf16 %v7053_v20, %v7052_v47  ;;  %v7148_v23 = vadd.f32 %v7140_v0, %v13841_v21  ;;  %v7149_v25 = vadd.f32 %v7141_v56, %v13841_v21 }
 0x4fd   : > { %v7060_v30 = vpack.c.bf16 %v7055_v63, %v7054_v42  ;;  %v7061_v28 = vpack.c.bf16 %v7057_v9, %v7056_v45  ;;  %v7150_v52 = vadd.f32 %v7142_v36, %v13841_v21  ;;  %v7151_v38 = vadd.f32 %v7143_v12, %v13841_v21  ;;  %v7129_v12 = vld [vmem:[#allocation2 + $0x20] sm:$0x11] }
 0x4fe   : > { %v7066_v15 = vshrl.u32 %v7058_v41, 16  ;;  %v7069_v48 = vshll.u32 %v7058_v41, 16  ;;  %v7073_v11 = vshrl.u32 %v7059_v35, 16  ;;  %v7076_v27 = vshll.u32 %v7059_v35, 16 }
 0x4ff   : > { %v7081_v39 = vshrl.u32 %v7060_v30, 16  ;;  %v7084_v18 = vshll.u32 %v7060_v30, 16  ;;  %v7090_v58 = vshrl.u32 %v7061_v28, 16  ;;  %v7093_v40 = vshll.u32 %v7061_v28, 16 }
 0x500   : > { %v7068_v33 = vrot.slane %v7066_v15, 7  ;;  %v7075_v16 = vrot.slane %v7073_v11, 7  ;;  %v7152_v10 = vadd.f32 %v7144_v19, %v13841_v21  ;;  %v7153_v62 = vadd.f32 %v7145_v22, %v13841_v21 }
 0x501   : > { %v7083_v14 = vrot.slane %v7081_v39, 7  ;;  %v7092_v1 = vrot.slane %v7090_v58, 7  ;;  %v7154_v44 = vadd.f32 %v7146_v59, %v13841_v21  ;;  %v7155_v43 = vadd.f32 %v7147_v7, %v13841_v21  ;;  %v7225_v39 = vld [vmem:[#allocation2 + $0x20] sm:$0xee] }
 0x502   : > { %v7071_v26 = vor.u32 %v7069_v48, %v7068_v33  ;;  %v7078_v51 = vor.u32 %v7076_v27, %v7075_v16  ;;  %v7079_v4 = vrot.slane %v7068_v33, 4  ;;  %v7088_v29 = vrot.slane %v7075_v16, 4 }
 0x503   : > { %v7086_v50 = vor.u32 %v7084_v18, %v7083_v14  ;;  %v7095_v0 = vor.u32 %v7093_v40, %v7092_v1  ;;  %v7097_v56 = vrot.slane %v7083_v14, 4  ;;  %v7098_v36 = vrot.slane %v7092_v1, 4  ;;  %v7239_v14 = vld [vmem:[#allocation2 + $0x10] sm:$0x33] }
 0x504   : > { %v7113_v21 = vsel %vm7111_vm11, %v7071_v26, %v7112_v54  ;;  %v7116_v19 = vsel %vm7111_vm11, %v7078_v51, %v7115_v55  ;;  %v7156_v22 = vmax.f32 %v7148_v23, 0.0  ;;  %v7157_v59 = vmax.f32 %v7149_v25, 0.0 }
 0x505   : > { %v7087_v7 = vsel %vm13881_vm10, %v7079_v4, %v7086_v50  ;;  %v7096_v60 = vsel %vm13881_vm10, %v7088_v29, %v7095_v0  ;;  %7114 = vst [vmem:[#allocation2 + $0x40] sm:$0xff] %v7113_v21  ;;  %v7127_v24 = vsel %vm7125_vm8, %v7097_v56, %v7126_v53  ;;  %v7158_v6 = vmax.f32 %v7150_v52, 0.0 }
 0x506   : > { %7117 = vst [vmem:[#allocation2] sm:$0xff] %v7116_v19  ;;  %v7159_v49 = vmax.f32 %v7151_v38, 0.0  ;;  %v7160_v34 = vmax.f32 %v7152_v10, 0.0  ;;  %v7161_v37 = vmax.f32 %v7153_v62, 0.0  ;;  %v7130_v3 = vsel %vm7125_vm8, %v7098_v36, %v7129_v12  ;;  %v7236_v10 = vld [vmem:[#allocation2 + $0x8] sm:$0x33] }
 0x507   : > { %7118 = vst [vmem:[#allocation2 + $0x38] sm:$0xff] %v7087_v7  ;;  %v7162_v57 = vmax.f32 %v7154_v44, 0.0  ;;  %v7163_v47 = vmax.f32 %v7155_v43, 0.0  ;;  %v7164_v20 = vpack.c.bf16 %v7157_v59, %v7156_v22 }
 0x508   : > { %7119 = vst [vmem:[#allocation2 + $0x18] sm:$0xff] %v7096_v60  ;;  %v7165_v42 = vpack.c.bf16 %v7159_v49, %v7158_v6  ;;  %v7166_v63 = vpack.c.bf16 %v7161_v37, %v7160_v34 }
 0x509   : > { %7128 = vst [vmem:[#allocation2 + $0x28] sm:$0x11] %v7127_v24  ;;  %v7167_v45 = vpack.c.bf16 %v7163_v47, %v7162_v57  ;;  %v7172_v9 = vshrl.u32 %v7164_v20, 16  ;;  %v7175_v32 = vshll.u32 %v7164_v20, 16 }
 0x50a   : > { %7131 = vst [vmem:[#allocation2 + $0x20] sm:$0x11] %v7130_v3  ;;  %v7180_v41 = vshrl.u32 %v7165_v42, 16  ;;  %v7183_v35 = vshll.u32 %v7165_v42, 16  ;;  %v7189_v23 = vshrl.u32 %v7166_v63, 16  ;;  %v7192_v25 = vshll.u32 %v7166_v63, 16 }
 0x50b   : > { %v7174_v30 = vrot.slane %v7172_v9, 6  ;;  %v7177_v28 = vrot.slane %v7175_v32, 7  ;;  %v7199_v52 = vshrl.u32 %v7167_v45, 16  ;;  %v7202_v38 = vshll.u32 %v7167_v45, 16 }
 0x50c   : > { %v7182_v48 = vrot.slane %v7180_v41, 6  ;;  %v7185_v11 = vrot.slane %v7183_v35, 7  ;;  %v7191_v27 = vrot.slane %v7189_v23, 6  ;;  %v7194_v61 = vrot.slane %v7192_v25, 7 }
 0x50d   : > { %v7178_v18 = vor.u32 %v7177_v28, %v7174_v30  ;;  %v7201_v58 = vrot.slane %v7199_v52, 6  ;;  %v7204_v40 = vrot.slane %v7202_v38, 7 }
 0x50e   : > { %v7186_v33 = vor.u32 %v7185_v11, %v7182_v48  ;;  %v7195_v16 = vor.u32 %v7194_v61, %v7191_v27 }
 0x50f   : > { %v7187_v62 = vrot.slane %v7178_v18, 4  ;;  %v7205_v54 = vor.u32 %v7204_v40, %v7201_v58  ;;  %v7223_v55 = vsel %vm7221_vm0, %v7178_v18, %v7222_v5 }
 0x510   : > { %v7197_v1 = vrot.slane %v7186_v33, 4  ;;  %v7207_v44 = vrot.slane %v7195_v16, 4  ;;  %7224 = vst [vmem:[#allocation2 + $0x28] sm:$0xee] %v7223_v55  ;;  %v7226_v43 = vsel %vm7221_vm0, %v7186_v33, %v7225_v39 }
 0x511   : > { %v7196_v53 = vsel %vm13951_vm4, %v7187_v62, %v7195_v16  ;;  %v7208_v26 = vrot.slane %v7205_v54, 4  ;;  %7227 = vst [vmem:[#allocation2 + $0x20] sm:$0xee] %v7226_v43 }
 0x512   : > { %v7206_v51 = vsel %vm13951_vm4, %v7197_v1, %v7205_v54  ;;  %7228 = vst [vmem:[#allocation2 + $0x30] sm:$0xff] %v7196_v53  ;;  %v7237_v4 = vsel %vm7235_vm2, %v7207_v44, %v7236_v10 }
 0x513   : > { %7229 = vst [vmem:[#allocation2 + $0x48] sm:$0xff] %v7206_v51  ;;  %v7240_v29 = vsel %vm7235_vm2, %v7208_v26, %v7239_v14 }
 0x514   : > { %7238 = vst [vmem:[#allocation2 + $0x8] sm:$0x33] %v7237_v4 }
 0x515   : > { %7241 = vst [vmem:[#allocation2 + $0x10] sm:$0x33] %v7240_v29 }
 0x516 PF: > { %p10515_p5 = scmp.ne.s32.totalorder %s11366_s22, 1 }
 0x517   : > { %s11322_s30 = smov (!%p10515_p5), 96   ;;  %s11323_s7 = smov (!%p10515_p5), 32  }
 0x518   : > { %7245 = sbr.rel (%p10515_p5) target bundleno = 1486 (0x5ce), region = 56  ;;  %s11324_s8 = smov (!%p10515_p5), 64  }
 0x51d   : > { %v7248_v50 = vadd.f32 1e-05, %v13825_v8  ;;  %v7246_v19 = vld [vmem:[%s14113_s4] sm:$0x1]  ;;  %vm7273_vm11 = vcmask 261120   ;;  %vm7275_vm8 = vcmask 523264  }
 0x51e   : > { %v7247_v8 = vld [vmem:[%s14114_s5] sm:$0x1]  ;;  %vm7277_vm3 = vcmask 785408   ;;  %v7293_v63 = vld [vmem:[#allocation3 + $0x48] sm:$0xff]  ;;  %v7296_v35 = vld [vmem:[#allocation3 + $0x58] sm:$0xff] }
 0x51f   : > { %11306 = vrsqrt.f32 %v7248_v50  ;;  %vm7255_vm9 = vweird.f32 %v7248_v50  ;;  %v7294_v45 = vld [vmem:[#allocation3 + $0x50] sm:$0xff]  ;;  %v7295_v9 = vld [vmem:[#allocation3 + $0x8] sm:$0xff]  ;;  %v7297_v25 = vld [vmem:[#allocation3 + $0x38] sm:$0xff] }
 0x520   : > { %v7298_v17 = vld [vmem:[#allocation3 + $0x10] sm:$0xff]  ;;  %v7300_v48 = vld [vmem:[#allocation3 + $0x60] sm:$0xff]  ;;  %v7301_v27 = vld [vmem:[#allocation3 + $0x68] sm:$0xff] }
 0x521   : > { %v7299_v5 = vld [vmem:[#allocation3 + $0x30] sm:$0xff]  ;;  %v7302_v39 = vld [vmem:[#allocation3 + $0x28] sm:$0xff]  ;;  %v7303_v18 = vld [vmem:[#allocation3] sm:$0xff] }
 0x522   : > { %v7304_v62 = vld [vmem:[#allocation3 + $0x18] sm:$0xff]  ;;  %v7305_v14 = vld [vmem:[#allocation3 + $0x40] sm:$0xff] }
 0x523   : > { %v7306_v1 = vld [vmem:[#allocation3 + $0x78] sm:$0xff]  ;;  %v7307_v26 = vld [vmem:[#allocation3 + $0x20] sm:$0xff] }
 0x525   : > { %v11307_v0 = vpop.eup %11306 }
 0x526   : > { %v7250_v56 = vmul.f32 %v11307_v0, %v7248_v50  ;;  %vm7256_vm10 = vweird.f32 %v11307_v0 }
 0x527   : > { %vm7257_vm1 = vmor %vm7255_vm9, %vm7256_vm10 }
 0x528   : > { %v7251_v36 = vmul.f32 %v11307_v0, %v7250_v56  ;;  %v7359_v56 = vld [vmem:[%s14109_s0] sm:$0xff] }
 0x52a   : > { %v7252_v12 = vmul.f32 0.5, %v7251_v36  ;;  %v7360_v36 = vld [vmem:[%s14109_s0 + $0x8] sm:$0xff] }
 0x52c   : > { %v7253_v21 = vsub.f32 1.5, %v7252_v12  ;;  %v7361_v12 = vld [vmem:[%s14109_s0 + $0x10] sm:$0xff] }
 0x52e   : > { %v7254_v22 = vmul.f32 %v11307_v0, %v7253_v21 }
 0x530   : > { %v7258_v59 = vsel %vm7257_vm1, %v11307_v0, %v7254_v22  ;;  %v7308_v22 = vld [vmem:[#allocation3 + $0x70] sm:$0xff] }
 0x531   : > { %v7259_v7 = vmul.f32 %v7258_v59, %v7246_v19 }
 0x533   : > { %v7263_v60 = vperm.slane %v7259_v7, 0  ;;  %v7260_v24 = vmul.f32 %v7259_v7, %v13821_v31 }
 0x535   : > { %7270 = vrot.lane.b32.xlu1 %v7263_v60, %s11322_s30  ;;  %7264 = vrot.lane.b32.xlu0 %v7263_v60, %s11323_s7  ;;  %v7261_v46 = vsub.f32 %v7247_v8, %v7260_v24  ;;  %v7362_v8 = vld [vmem:[%s14109_s0 + $0x18] sm:$0xff] }
 0x537   : > { %v7280_v6 = vperm.slane %v7261_v46, 0 }
 0x539   : > { %7284 = vrot.lane.b32.xlu2 %v7280_v6, %s11324_s8 }
 0x53d   : > { %7267 = vrot.lane.b32.xlu0 %v7263_v60, %s11324_s8  ;;  %7281 = vrot.lane.b32.xlu1 %v7280_v6, %s11323_s7 }
 0x541   : > { %7287 = vrot.lane.b32.xlu2 %v7280_v6, %s11322_s30  ;;  %v7363_v6 = vld [vmem:[%s14109_s0 + $0x20] sm:$0xff] }
 0x593   : > { %v7285_v49 = vpop.permute.xlu2 %7284 }
 0x59b   : > { %v7288_v2 = vpop.permute.xlu2 %7287 }
 0x5a7   : > { %v7271_v34 = vpop.permute.xlu1 %7270  ;;  %v7265_v37 = vpop.permute.xlu0 %7264 }
 0x5a8   : > { %v7274_v3 = vsel %vm7273_vm11, %v7259_v7, %v7265_v37 }
 0x5af   : > { %v7268_v31 = vpop.permute.xlu0 %7267  ;;  %v7282_v57 = vpop.permute.xlu1 %7281 }
 0x5b0   : > { %v7276_v47 = vsel %vm7275_vm8, %v7274_v3, %v7268_v31  ;;  %v7290_v20 = vsel %vm7273_vm11, %v7261_v46, %v7282_v57 }
 0x5b1   : > { %v7278_v42 = vsel %vm7277_vm3, %v7276_v47, %v7271_v34  ;;  %v7291_v32 = vsel %vm7275_vm8, %v7290_v20, %v7285_v49 }
 0x5b2   : > { %v7309_v41 = vperm.slane %v7278_v42, 0  ;;  %v7292_v23 = vsel %vm7277_vm3, %v7291_v32, %v7288_v2  ;;  %v7364_v2 = vld [vmem:[%s14109_s0 + $0x28] sm:$0xff]  ;;  %v7365_v42 = vld [vmem:[%s14109_s0 + $0x30] sm:$0xff]  ;;  %v7366_v32 = vld [vmem:[%s14109_s0 + $0x38] sm:$0xff] }
 0x5b3   : > { %v13992_v38 = vperm.slane %v7292_v23, 0 }
 0x5b4   : > { %v7310_v30 = vmul.f32 %v7309_v41, %v7293_v63  ;;  %v7311_v28 = vmul.f32 %v7309_v41, %v7294_v45  ;;  %v7312_v52 = vmul.f32 %v7309_v41, %v7295_v9  ;;  %v7313_v15 = vmul.f32 %v7309_v41, %v7296_v35 }
 0x5b5   : > { %v7314_v11 = vmul.f32 %v7309_v41, %v7297_v25  ;;  %v7315_v61 = vmul.f32 %v7309_v41, %v7298_v17  ;;  %v7316_v58 = vmul.f32 %v7309_v41, %v7299_v5  ;;  %v7317_v16 = vmul.f32 %v7309_v41, %v7300_v48 }
 0x5b6   : > { %v7327_v40 = vadd.f32 %v13992_v38, %v7310_v30  ;;  %v7328_v13 = vadd.f32 %v13992_v38, %v7311_v28  ;;  %v7329_v33 = vadd.f32 %v13992_v38, %v7312_v52  ;;  %v7330_v10 = vadd.f32 %v13992_v38, %v7313_v15  ;;  %v7368_v52 = vld [vmem:[%s14109_s0 + $0x48] sm:$0xff] }
 0x5b7   : > { %v7318_v54 = vmul.f32 %v7309_v41, %v7301_v27  ;;  %v7331_v55 = vadd.f32 %v13992_v38, %v7314_v11  ;;  %v7319_v44 = vmul.f32 %v7309_v41, %v7302_v39  ;;  %v7320_v43 = vmul.f32 %v7309_v41, %v7303_v18  ;;  %v7369_v11 = vld [vmem:[%s14109_s0 + $0x50] sm:$0xff]  ;;  %v7370_v18 = vld [vmem:[%s14109_s0 + $0x58] sm:$0xff] }
 0x5b8   : > { %v7332_v53 = vadd.f32 %v13992_v38, %v7315_v61  ;;  %v7333_v51 = vadd.f32 %v13992_v38, %v7316_v58  ;;  %v7343_v4 = vmax.f32 %v7327_v40, 0.0  ;;  %v7344_v29 = vmax.f32 %v7328_v13, 0.0 }
 0x5b9   : > { %v7345_v50 = vmax.f32 %v7329_v33, 0.0  ;;  %v7321_v0 = vmul.f32 %v7309_v41, %v7304_v62  ;;  %v7334_v21 = vadd.f32 %v13992_v38, %v7317_v16  ;;  %v7346_v19 = vmax.f32 %v7330_v10, 0.0  ;;  %v7372_v16 = vld [vmem:[%s14109_s0 + $0x68] sm:$0xff] }
 0x5ba   : > { %v7322_v59 = vmul.f32 %v7309_v41, %v7305_v14  ;;  %v7323_v7 = vmul.f32 %v7309_v41, %v7306_v1  ;;  %v7335_v60 = vadd.f32 %v13992_v38, %v7318_v54  ;;  %v7347_v24 = vmax.f32 %v7331_v55, 0.0  ;;  %v7373_v54 = vld [vmem:[%s14109_s0 + $0x70] sm:$0xff]  ;;  %v7374_v1 = vld [vmem:[%s14109_s0 + $0x78] sm:$0xff] }
 0x5bb   : > { %v7324_v46 = vmul.f32 %v7309_v41, %v7307_v26  ;;  %v7336_v49 = vadd.f32 %v13992_v38, %v7319_v44  ;;  %v7337_v34 = vadd.f32 %v13992_v38, %v7320_v43  ;;  %v7348_v37 = vmax.f32 %v7332_v53, 0.0 }
 0x5bc   : > { %v7349_v3 = vmax.f32 %v7333_v51, 0.0  ;;  %v7375_v31 = vadd.f32 %v7359_v56, %v7343_v4  ;;  %v7376_v57 = vadd.f32 %v7360_v36, %v7344_v29  ;;  %v7377_v47 = vadd.f32 %v7361_v12, %v7345_v50 }
 0x5bd   : > { %v7325_v20 = vmul.f32 %v7309_v41, %v7308_v22  ;;  %v7338_v63 = vadd.f32 %v13992_v38, %v7321_v0  ;;  %v7350_v45 = vmax.f32 %v7334_v21, 0.0  ;;  %v7378_v9 = vadd.f32 %v7362_v8, %v7346_v19  ;;  %v7367_v41 = vld [vmem:[%s14109_s0 + $0x40] sm:$0xff] }
 0x5be   : > { %v7339_v35 = vadd.f32 %v13992_v38, %v7322_v59  ;;  %v7351_v23 = vmax.f32 %v7335_v60, 0.0  ;;  %v7379_v25 = vadd.f32 %v7363_v6, %v7347_v24  ;;  %7391 = vst [vmem:[%s14115_s6] sm:$0xff] %v7375_v31  ;;  %v7340_v17 = vadd.f32 %v13992_v38, %v7323_v7 }
 0x5bf   : > { %v7352_v30 = vmax.f32 %v7336_v49, 0.0  ;;  %v7380_v28 = vadd.f32 %v7364_v2, %v7348_v37  ;;  %7392 = vst [vmem:[%s14115_s6 + $0x8] sm:$0xff] %v7376_v57  ;;  %v7341_v5 = vadd.f32 %v13992_v38, %v7324_v46  ;;  %v7353_v15 = vmax.f32 %v7337_v34, 0.0 }
 0x5c0   : > { %v7381_v48 = vadd.f32 %v7365_v42, %v7349_v3  ;;  %7393 = vst [vmem:[%s14115_s6 + $0x10] sm:$0xff] %v7377_v47  ;;  %v7342_v27 = vadd.f32 %v13992_v38, %v7325_v20  ;;  %v7354_v61 = vmax.f32 %v7338_v63, 0.0  ;;  %v7382_v39 = vadd.f32 %v7366_v32, %v7350_v45  ;;  %v7371_v38 = vld [vmem:[%s14109_s0 + $0x60] sm:$0xff] }
 0x5c1   : > { %7394 = vst [vmem:[%s14115_s6 + $0x18] sm:$0xff] %v7378_v9  ;;  %v7355_v58 = vmax.f32 %v7339_v35, 0.0  ;;  %v7383_v40 = vadd.f32 %v7367_v41, %v7351_v23  ;;  %v7356_v13 = vmax.f32 %v7340_v17, 0.0  ;;  %v7384_v33 = vadd.f32 %v7368_v52, %v7352_v30 }
 0x5c2   : > { %7395 = vst [vmem:[%s14115_s6 + $0x20] sm:$0xff] %v7379_v25  ;;  %v7357_v10 = vmax.f32 %v7341_v5, 0.0  ;;  %v7385_v62 = vadd.f32 %v7369_v11, %v7353_v15  ;;  %v7358_v55 = vmax.f32 %v7342_v27, 0.0  ;;  %v7386_v14 = vadd.f32 %v7370_v18, %v7354_v61 }
 0x5c3   : > { %7396 = vst [vmem:[%s14115_s6 + $0x28] sm:$0xff] %v7380_v28  ;;  %v7387_v44 = vadd.f32 %v7371_v38, %v7355_v58  ;;  %v7388_v43 = vadd.f32 %v7372_v16, %v7356_v13 }
 0x5c4   : > { %7397 = vst [vmem:[%s14115_s6 + $0x30] sm:$0xff] %v7381_v48  ;;  %v7389_v53 = vadd.f32 %v7373_v54, %v7357_v10  ;;  %v7390_v26 = vadd.f32 %v7374_v1, %v7358_v55 }
 0x5c5   : > { %7398 = vst [vmem:[%s14115_s6 + $0x38] sm:$0xff] %v7382_v39 }
 0x5c6   : > { %7399 = vst [vmem:[%s14115_s6 + $0x40] sm:$0xff] %v7383_v40 }
 0x5c7   : > { %7400 = vst [vmem:[%s14115_s6 + $0x48] sm:$0xff] %v7384_v33 }
 0x5c8   : > { %7401 = vst [vmem:[%s14115_s6 + $0x50] sm:$0xff] %v7385_v62 }
 0x5c9   : > { %7402 = vst [vmem:[%s14115_s6 + $0x58] sm:$0xff] %v7386_v14 }
 0x5ca   : > { %7403 = vst [vmem:[%s14115_s6 + $0x60] sm:$0xff] %v7387_v44 }
 0x5cb   : > { %7404 = vst [vmem:[%s14115_s6 + $0x68] sm:$0xff] %v7388_v43 }
 0x5cc   : > { %7405 = vst [vmem:[%s14115_s6 + $0x70] sm:$0xff] %v7389_v53 }
 0x5cd   : > { %7406 = vst [vmem:[%s14115_s6 + $0x78] sm:$0xff] %v7390_v26 }
 0x5ce PF: > { %s16_s21 = sadd.s32 1, %s11314_s21  }
 0x5cf   : > { %p13_p6 = scmp.ge.s32.totalorder %s16_s21, 4  }
 0x5d1   :  { %15 = sbr.rel (!%p13_p6) target bundleno = 1 (0x1), region = 82 }

</bundles_post_ra>
